<compile_context>
chip_gen: v5e
topology: v5e:2x2
jax: 0.10.0
libtpu: 0.0.40
codegen_flags: <defaults>
</compile_context>

<pallas_src>
import functools
import math

import numpy as np
import jax
import jax.numpy as jnp
from jax.experimental import pallas as pl
from jax.experimental.pallas import tpu as pltpu

# ---- model configuration (small, consistent with the module's shapes) -------
VOCAB = 100
MAX_POS = 32
HIDDEN = 32            # bert_size
NUM_BERT_LAYERS = 2
NUM_HEADS = 4
HEAD_DIM = HIDDEN // NUM_HEADS
INTERMEDIATE = 64
RNN_SIZE = 16
LSTM_LAYERS = 2
LABELS = 8
LN_EPS = 1e-12

LAYER_KEYS = ("qkv_w", "qkv_b", "ao_w", "ao_b", "ao_ln_g", "ao_ln_b",
              "i_w", "i_b", "o_w", "o_b", "o_ln_g", "o_ln_b")
PER_LAYER_REFS = len(LAYER_KEYS)


# =============================== kernel helpers ===============================

def _layernorm(x, g, b):
    mu = jnp.mean(x, axis=-1, keepdims=True)
    var = jnp.mean((x - mu) * (x - mu), axis=-1, keepdims=True)
    return (x - mu) * jax.lax.rsqrt(var + LN_EPS) * g + b


def _gelu(x):
    # TODO(synk): pytorch_pretrained_bert uses the erf GELU; tanh approximation used here.
    return 0.5 * x * (1.0 + jnp.tanh(0.7978845608028654 * (x + 0.044715 * x * x * x)))


def _full_spec(shape):
    nd = len(shape)
    return pl.BlockSpec(tuple(shape), lambda *_: (0,) * nd)


# =============================== Pallas kernels ===============================

def bert_fused_kernel(*refs):
    """Embedding LayerNorm + all BERT encoder layers in one kernel invocation."""
    emb_ref, bias_ref, eg_ref, eb_ref = refs[:4]
    layer_refs = refs[4:-1]
    o_ref = refs[-1]

    S = bias_ref.shape[1]
    B = bias_ref.shape[0] // S
    scale = 1.0 / math.sqrt(HEAD_DIM)

    bias = bias_ref[...]                                     # (B*S, S): additive -10000 mask
    x = _layernorm(emb_ref[...], eg_ref[...], eb_ref[...])   # (B*S, H)

    n_layers = len(layer_refs) // PER_LAYER_REFS
    for l in range(n_layers):
        (qkv_w, qkv_b, ao_w, ao_b, ao_g, ao_beta,
         i_w, i_b, o_w, o_b, o_g, o_beta) = layer_refs[l * PER_LAYER_REFS:
                                                       (l + 1) * PER_LAYER_REFS]

        # fused Q/K/V projection: one (B*S, H) x (H, 3H) matmul instead of three.
        qkv = jnp.dot(x, qkv_w[...], preferred_element_type=jnp.float32) + qkv_b[...]
        q = qkv[:, 0 * HIDDEN:1 * HIDDEN]
        k = qkv[:, 1 * HIDDEN:2 * HIDDEN]
        v = qkv[:, 2 * HIDDEN:3 * HIDDEN]
        ao_w_v = ao_w[...]

        attn_rows = []
        for b in range(B):                                   # static unrolled loops (B=2, nh=4)
            r0 = b * S
            bias_b = bias[r0:r0 + S, :]                      # (S, S)
            acc = jnp.zeros((S, HIDDEN), jnp.float32)
            for h in range(NUM_HEADS):
                c0 = h * HEAD_DIM
                qh = q[r0:r0 + S, c0:c0 + HEAD_DIM]
                kh = k[r0:r0 + S, c0:c0 + HEAD_DIM]
                vh = v[r0:r0 + S, c0:c0 + HEAD_DIM]
                s = jnp.dot(qh, kh.T, preferred_element_type=jnp.float32) * scale + bias_b
                s = s - jnp.max(s, axis=-1, keepdims=True)
                p = jnp.exp(s)
                p = p * pl.reciprocal(jnp.sum(p, axis=-1, keepdims=True), approx=True)
                ctx_h = jnp.dot(p, vh, preferred_element_type=jnp.float32)   # (S, hd)
                # fold this head's slice of the attention output projection in directly.
                acc = acc + jnp.dot(ctx_h, ao_w_v[c0:c0 + HEAD_DIM, :],
                                    preferred_element_type=jnp.float32)
            attn_rows.append(acc)
        attn_out = jnp.concatenate(attn_rows, axis=0) + ao_b[...]            # (B*S, H)

        x = _layernorm(attn_out + x, ao_g[...], ao_beta[...])
        inter = _gelu(jnp.dot(x, i_w[...], preferred_element_type=jnp.float32) + i_b[...])
        ffn = jnp.dot(inter, o_w[...], preferred_element_type=jnp.float32) + o_b[...]
        x = _layernorm(ffn + x, o_g[...], o_beta[...])

    o_ref[...] = x


def lstm_head_kernel(x_ref, m_ref,
                     wif0, wir0, whf0, whr0, bf0, br0,
                     wif1, wir1, whf1, whr1, bf1, br1,
                     ow_ref, ob_ref,
                     o_ref,
                     h1f, h1r, h2f, h2r):
    """Both bidirectional LSTM layers (fwd+rev fused, fully unrolled) + output Linear."""
    S, B, _ = x_ref.shape
    H = RNN_SIZE

    def step(x_t, m_t, h, c, wih, whh, bb):
        gates = (jnp.dot(x_t, wih[...], preferred_element_type=jnp.float32)
                 + jnp.dot(h, whh[...], preferred_element_type=jnp.float32)
                 + bb[...])                                  # (B, 4H), gate order i,f,g,o
        sg = jax.nn.sigmoid(gates)                           # whole-tile EUP nonlinearities
        tg = jnp.tanh(gates)
        c_new = sg[:, H:2 * H] * c + sg[:, 0:H] * tg[:, 2 * H:3 * H]
        h_new = sg[:, 3 * H:4 * H] * jnp.tanh(c_new)
        keep = m_t > 0.0                                     # (B, 1) packed-sequence mask
        out_t = jnp.where(keep, h_new, 0.0)                  # padded steps -> 0 output
        return out_t, jnp.where(keep, h_new, h), jnp.where(keep, c_new, c)

    def run_layer(read_x, wif, wir, whf, whr, bf, br, of_scr, or_scr):
        h_f = jnp.zeros((B, H), jnp.float32)
        c_f = jnp.zeros((B, H), jnp.float32)
        h_r = jnp.zeros((B, H), jnp.float32)
        c_r = jnp.zeros((B, H), jnp.float32)
        for i in range(S):                                   # fully unrolled: S is static
            t_f = i
            t_r = S - 1 - i
            out_f, h_f, c_f = step(read_x(t_f), m_ref[t_f], h_f, c_f, wif, whf, bf)
            of_scr[t_f] = out_f
            out_r, h_r, c_r = step(read_x(t_r), m_ref[t_r], h_r, c_r, wir, whr, br)
            or_scr[t_r] = out_r

    run_layer(lambda t: x_ref[t], wif0, wir0, whf0, whr0, bf0, br0, h1f, h1r)
    run_layer(lambda t: jnp.concatenate([h1f[t], h1r[t]], axis=-1),
              wif1, wir1, whf1, whr1, bf1, br1, h2f, h2r)

    ow = ow_ref[...]
    ob = ob_ref[...]
    for t in range(S):
        h2_t = jnp.concatenate([h2f[t], h2r[t]], axis=-1)    # (B, 2H)
        o_ref[t] = jnp.dot(h2_t, ow, preferred_element_type=jnp.float32) + ob


# ============================== kernel wrappers ===============================

def bert_encode(bp, emb2d, bias_bs):
    inputs = [emb2d, bias_bs, bp["emb_ln_g"], bp["emb_ln_b"]]
    for layer in bp["layers"]:
        inputs += [layer[k] for k in LAYER_KEYS]
    return pl.pallas_call(
        bert_fused_kernel,
        out_shape=jax.ShapeDtypeStruct(emb2d.shape, jnp.float32),
        in_specs=[_full_spec(a.shape) for a in inputs],
        out_specs=_full_spec(emb2d.shape),
    )(*inputs)


def lstm_head(prep, x_tm, m_tm):
    S, B, _ = x_tm.shape
    l0, l1 = prep["lstm"]
    inputs = [x_tm, m_tm,
              l0["wih_f"], l0["wih_r"], l0["whh_f"], l0["whh_r"], l0["b_f"], l0["b_r"],
              l1["wih_f"], l1["wih_r"], l1["whh_f"], l1["whh_r"], l1["b_f"], l1["b_r"],
              prep["out_w"], prep["out_b"]]
    return pl.pallas_call(
        lstm_head_kernel,
        out_shape=jax.ShapeDtypeStruct((S, B, LABELS), jnp.float32),
        in_specs=[_full_spec(a.shape) for a in inputs],
        out_specs=_full_spec((S, B, LABELS)),
        scratch_shapes=[pltpu.VMEM((S, B, RNN_SIZE), jnp.float32) for _ in range(4)],
    )(*inputs)


# =============================== model (glue) =================================

@jax.jit
def forward_full(prep, words):
    B, S = words.shape
    bert = prep["bert"]
    mask = (words > 0).astype(jnp.float32)                        # (B, S)

    pos_ids = jnp.arange(S)
    emb = (bert["word_emb"][words]
           + bert["pos_emb"][pos_ids][None, :, :]
           + bert["type_emb"][0][None, None, :])                  # (B, S, H)
    ext_bias = (1.0 - mask) * -10000.0                            # (B, S)
    bias_bs = jnp.broadcast_to(ext_bias[:, None, :], (B, S, S)).reshape(B * S, S)

    x2 = bert_encode(bert, emb.reshape(B * S, HIDDEN), bias_bs)   # (B*S, H)
    # self.dropout(x): eval-mode identity.
    # sort -> pack -> LSTM -> unpack -> unsort is value-identical to running the masked
    # LSTM independently per sequence, so the permutation is dropped.
    x_tm = x2.reshape(B, S, HIDDEN).transpose(1, 0, 2)            # (S, B, H) time-major
    m_tm = mask.transpose(1, 0)[:, :, None]                       # (S, B, 1)
    out_tm = lstm_head(prep, x_tm, m_tm)                          # (S, B, LABELS)
    return out_tm.transpose(1, 0, 2)                              # (B, S, LABELS)


def bidi_lstm_bert_forward(prep, words):
    # pad_packed_sequence trims to max(sentence_lengths); the trim length is computed
    # on host from the input so there is no device->host sync inside the compute graph.
    words_np = np.asarray(jax.device_get(words))
    max_len = int((words_np > 0).sum(axis=1).max())
    out_full = forward_full(prep, words)                          # (B, S, LABELS)
    return out_full[:, :max_len]


# ============================= parameter init =================================

def init_params(key):
    keys = iter(jax.random.split(key, 64))

    def w(shape, scale=0.02):
        return jax.random.normal(next(keys), shape, jnp.float32) * scale

    bert = {
        "word_emb": w((VOCAB, HIDDEN)),
        "pos_emb": w((MAX_POS, HIDDEN)),
        "type_emb": w((2, HIDDEN)),
        "emb_ln_g": jnp.ones((HIDDEN,), jnp.float32),
        "emb_ln_b": jnp.zeros((HIDDEN,), jnp.float32),
        "layers": [],
    }
    for _ in range(NUM_BERT_LAYERS):
        bert["layers"].append({
            "q_w": w((HIDDEN, HIDDEN)), "q_b": jnp.zeros((HIDDEN,), jnp.float32),
            "k_w": w((HIDDEN, HIDDEN)), "k_b": jnp.zeros((HIDDEN,), jnp.float32),
            "v_w": w((HIDDEN, HIDDEN)), "v_b": jnp.zeros((HIDDEN,), jnp.float32),
            "ao_w": w((HIDDEN, HIDDEN)), "ao_b": jnp.zeros((HIDDEN,), jnp.float32),
            "ao_ln_g": jnp.ones((HIDDEN,), jnp.float32),
            "ao_ln_b": jnp.zeros((HIDDEN,), jnp.float32),
            "i_w": w((INTERMEDIATE, HIDDEN)), "i_b": jnp.zeros((INTERMEDIATE,), jnp.float32),
            "o_w": w((HIDDEN, INTERMEDIATE)), "o_b": jnp.zeros((HIDDEN,), jnp.float32),
            "o_ln_g": jnp.ones((HIDDEN,), jnp.float32),
            "o_ln_b": jnp.zeros((HIDDEN,), jnp.float32),
        })

    lstm = []
    in_size = HIDDEN
    for _ in range(LSTM_LAYERS):
        layer = {}
        for suf in ("_f", "_r"):
            layer["w_ih" + suf] = w((4 * RNN_SIZE, in_size), 0.1)
            layer["w_hh" + suf] = w((4 * RNN_SIZE, RNN_SIZE), 0.1)
            layer["b_ih" + suf] = w((4 * RNN_SIZE,), 0.1)
            layer["b_hh" + suf] = w((4 * RNN_SIZE,), 0.1)
        lstm.append(layer)
        in_size = 2 * RNN_SIZE

    return {
        "bert": bert,
        "lstm": lstm,
        "out_w": w((LABELS, 2 * RNN_SIZE), 0.1),
        "out_b": jnp.zeros((LABELS,), jnp.float32),
    }


def prepare_params(raw):
    """One-time conversion to inference layout: transposed weights, folded biases."""
    braw = raw["bert"]
    bert = {
        "word_emb": braw["word_emb"],
        "pos_emb": braw["pos_emb"],
        "type_emb": braw["type_emb"],
        "emb_ln_g": braw["emb_ln_g"].reshape(1, HIDDEN),
        "emb_ln_b": braw["emb_ln_b"].reshape(1, HIDDEN),
        "layers": [],
    }
    for lp in braw["layers"]:
        bert["layers"].append({
            "qkv_w": jnp.concatenate([lp["q_w"].T, lp["k_w"].T, lp["v_w"].T], axis=1),
            "qkv_b": jnp.concatenate([lp["q_b"], lp["k_b"], lp["v_b"]]).reshape(1, 3 * HIDDEN),
            "ao_w": lp["ao_w"].T,
            "ao_b": lp["ao_b"].reshape(1, HIDDEN),
            "ao_ln_g": lp["ao_ln_g"].reshape(1, HIDDEN),
            "ao_ln_b": lp["ao_ln_b"].reshape(1, HIDDEN),
            "i_w": lp["i_w"].T,
            "i_b": lp["i_b"].reshape(1, INTERMEDIATE),
            "o_w": lp["o_w"].T,
            "o_b": lp["o_b"].reshape(1, HIDDEN),
            "o_ln_g": lp["o_ln_g"].reshape(1, HIDDEN),
            "o_ln_b": lp["o_ln_b"].reshape(1, HIDDEN),
        })

    lstm = []
    for lp in raw["lstm"]:
        lstm.append({
            "wih_f": lp["w_ih_f"].T,                           # (D, 4H)
            "wih_r": lp["w_ih_r"].T,
            "whh_f": lp["w_hh_f"].T,                           # (H, 4H)
            "whh_r": lp["w_hh_r"].T,
            "b_f": (lp["b_ih_f"] + lp["b_hh_f"]).reshape(1, 4 * RNN_SIZE),
            "b_r": (lp["b_ih_r"] + lp["b_hh_r"]).reshape(1, 4 * RNN_SIZE),
        })

    return {
        "bert": bert,
        "lstm": lstm,
        "out_w": raw["out_w"].T,                               # (2H, LABELS)
        "out_b": raw["out_b"].reshape(1, LABELS),
    }


# =================================== main =====================================

if __name__ == "__main__":
    key = jax.random.PRNGKey(0)
    pkey, wkey = jax.random.split(key)
    params = prepare_params(init_params(pkey))

    B, S = 2, 8
    # words: 0 = padding, 1 = OOV; first sequence is full length so T_max == S
    words_full = jax.random.randint(wkey, (B, S), 2, VOCAB)
    lengths = jnp.array([S, 5], dtype=jnp.int32)
    pos = jnp.arange(S)[None, :]
    words = jnp.where(pos < lengths[:, None], words_full, 0).astype(jnp.int32)

    out = bidi_lstm_bert_forward(params, words)
    out = jax.block_until_ready(out)

    assert out.shape == (B, S, LABELS), out.shape
    assert bool(jnp.all(jnp.isfinite(out)))
    print("KERNEL_OK")
</pallas_src>

<mosaic_0001>
module attributes {stable_mosaic.version = 11 : i64} {
  func.func @bert_fused_kernel(%arg0: memref<16x32xf32, #tpu.memory_space<vmem>>, %arg1: memref<16x8xf32, #tpu.memory_space<vmem>>, %arg2: memref<1x32xf32, #tpu.memory_space<vmem>>, %arg3: memref<1x32xf32, #tpu.memory_space<vmem>>, %arg4: memref<32x96xf32, #tpu.memory_space<vmem>>, %arg5: memref<1x96xf32, #tpu.memory_space<vmem>>, %arg6: memref<32x32xf32, #tpu.memory_space<vmem>>, %arg7: memref<1x32xf32, #tpu.memory_space<vmem>>, %arg8: memref<1x32xf32, #tpu.memory_space<vmem>>, %arg9: memref<1x32xf32, #tpu.memory_space<vmem>>, %arg10: memref<32x64xf32, #tpu.memory_space<vmem>>, %arg11: memref<1x64xf32, #tpu.memory_space<vmem>>, %arg12: memref<64x32xf32, #tpu.memory_space<vmem>>, %arg13: memref<1x32xf32, #tpu.memory_space<vmem>>, %arg14: memref<1x32xf32, #tpu.memory_space<vmem>>, %arg15: memref<1x32xf32, #tpu.memory_space<vmem>>, %arg16: memref<32x96xf32, #tpu.memory_space<vmem>>, %arg17: memref<1x96xf32, #tpu.memory_space<vmem>>, %arg18: memref<32x32xf32, #tpu.memory_space<vmem>>, %arg19: memref<1x32xf32, #tpu.memory_space<vmem>>, %arg20: memref<1x32xf32, #tpu.memory_space<vmem>>, %arg21: memref<1x32xf32, #tpu.memory_space<vmem>>, %arg22: memref<32x64xf32, #tpu.memory_space<vmem>>, %arg23: memref<1x64xf32, #tpu.memory_space<vmem>>, %arg24: memref<64x32xf32, #tpu.memory_space<vmem>>, %arg25: memref<1x32xf32, #tpu.memory_space<vmem>>, %arg26: memref<1x32xf32, #tpu.memory_space<vmem>>, %arg27: memref<1x32xf32, #tpu.memory_space<vmem>>, %arg28: memref<16x32xf32, #tpu.memory_space<vmem>>) attributes {dimension_semantics = [], scalar_prefetch = 0 : i64, scratch_operands = 0 : i64, tpu.core_type = #tpu.core_type<tc>} {
    %c0 = arith.constant 0 : index
    %c0_0 = arith.constant 0 : index
    %0 = vector.load %arg1[%c0, %c0_0] : memref<16x8xf32, #tpu.memory_space<vmem>>, vector<16x8xf32>
    %c0_1 = arith.constant 0 : index
    %c0_2 = arith.constant 0 : index
    %1 = vector.load %arg0[%c0_1, %c0_2] : memref<16x32xf32, #tpu.memory_space<vmem>>, vector<16x32xf32>
    %c0_3 = arith.constant 0 : index
    %c0_4 = arith.constant 0 : index
    %2 = vector.load %arg2[%c0_3, %c0_4] : memref<1x32xf32, #tpu.memory_space<vmem>>, vector<1x32xf32>
    %c0_5 = arith.constant 0 : index
    %c0_6 = arith.constant 0 : index
    %3 = vector.load %arg3[%c0_5, %c0_6] : memref<1x32xf32, #tpu.memory_space<vmem>>, vector<1x32xf32>
    %cst = arith.constant dense<0.000000e+00> : vector<16xf32>
    %4 = vector.multi_reduction <add>, %1, %cst [1] : vector<16x32xf32> to vector<16xf32>
    %5 = vector.shape_cast %4 : vector<16xf32> to vector<16x1xf32>
    %cst_7 = arith.constant 3.200000e+01 : f32
    %6 = vector.broadcast %cst_7 : f32 to vector<16x1xf32>
    %7 = arith.divf %5, %6 : vector<16x1xf32>
    %8 = vector.broadcast %7 : vector<16x1xf32> to vector<16x32xf32>
    %9 = arith.subf %1, %8 : vector<16x32xf32>
    %10 = vector.broadcast %7 : vector<16x1xf32> to vector<16x32xf32>
    %11 = arith.subf %1, %10 : vector<16x32xf32>
    %12 = arith.mulf %9, %11 : vector<16x32xf32>
    %cst_8 = arith.constant dense<0.000000e+00> : vector<16xf32>
    %13 = vector.multi_reduction <add>, %12, %cst_8 [1] : vector<16x32xf32> to vector<16xf32>
    %14 = vector.shape_cast %13 : vector<16xf32> to vector<16x1xf32>
    %cst_9 = arith.constant 3.200000e+01 : f32
    %15 = vector.broadcast %cst_9 : f32 to vector<16x1xf32>
    %16 = arith.divf %14, %15 : vector<16x1xf32>
    %17 = vector.broadcast %7 : vector<16x1xf32> to vector<16x32xf32>
    %18 = arith.subf %1, %17 : vector<16x32xf32>
    %cst_10 = arith.constant 9.99999996E-13 : f32
    %19 = vector.broadcast %cst_10 : f32 to vector<16x1xf32>
    %20 = arith.addf %16, %19 : vector<16x1xf32>
    %21 = math.rsqrt %20 : vector<16x1xf32>
    %22 = vector.broadcast %21 : vector<16x1xf32> to vector<16x32xf32>
    %23 = arith.mulf %18, %22 : vector<16x32xf32>
    %24 = vector.broadcast %2 : vector<1x32xf32> to vector<16x32xf32>
    %25 = arith.mulf %23, %24 : vector<16x32xf32>
    %26 = vector.broadcast %3 : vector<1x32xf32> to vector<16x32xf32>
    %27 = arith.addf %25, %26 : vector<16x32xf32>
    %c0_11 = arith.constant 0 : index
    %c0_12 = arith.constant 0 : index
    %28 = vector.load %arg4[%c0_11, %c0_12] : memref<32x96xf32, #tpu.memory_space<vmem>>, vector<32x96xf32>
    %cst_13 = arith.constant dense<0.000000e+00> : vector<16x96xf32>
    %29 = tpu.matmul %27, %28, %cst_13 {dimension_numbers = #tpu.dot_dimension_numbers<[1], [0], [0], [1], [0, 0, 1, 1], [], []>} : vector<16x32xf32>, vector<32x96xf32>, vector<16x96xf32> -> vector<16x96xf32>
    %c0_14 = arith.constant 0 : index
    %c0_15 = arith.constant 0 : index
    %30 = vector.load %arg5[%c0_14, %c0_15] : memref<1x96xf32, #tpu.memory_space<vmem>>, vector<1x96xf32>
    %31 = vector.broadcast %30 : vector<1x96xf32> to vector<16x96xf32>
    %32 = arith.addf %29, %31 : vector<16x96xf32>
    %33 = vector.extract_strided_slice %32 {offsets = [0, 0], sizes = [16, 32], strides = [1, 1]} : vector<16x96xf32> to vector<16x32xf32>
    %34 = vector.extract_strided_slice %32 {offsets = [0, 32], sizes = [16, 32], strides = [1, 1]} : vector<16x96xf32> to vector<16x32xf32>
    %35 = vector.extract_strided_slice %32 {offsets = [0, 64], sizes = [16, 32], strides = [1, 1]} : vector<16x96xf32> to vector<16x32xf32>
    %c0_16 = arith.constant 0 : index
    %c0_17 = arith.constant 0 : index
    %36 = vector.load %arg6[%c0_16, %c0_17] : memref<32x32xf32, #tpu.memory_space<vmem>>, vector<32x32xf32>
    %37 = vector.extract_strided_slice %0 {offsets = [0, 0], sizes = [8, 8], strides = [1, 1]} : vector<16x8xf32> to vector<8x8xf32>
    %cst_18 = arith.constant 0.000000e+00 : f32
    %38 = vector.broadcast %cst_18 : f32 to vector<8x32xf32>
    %39 = vector.extract_strided_slice %33 {offsets = [0, 0], sizes = [8, 8], strides = [1, 1]} : vector<16x32xf32> to vector<8x8xf32>
    %40 = vector.extract_strided_slice %34 {offsets = [0, 0], sizes = [8, 8], strides = [1, 1]} : vector<16x32xf32> to vector<8x8xf32>
    %41 = vector.extract_strided_slice %35 {offsets = [0, 0], sizes = [8, 8], strides = [1, 1]} : vector<16x32xf32> to vector<8x8xf32>
    %42 = tpu.transpose %40, [1, 0] : vector<8x8xf32> -> vector<8x8xf32>
    %cst_19 = arith.constant dense<0.000000e+00> : vector<8x8xf32>
    %43 = tpu.matmul %39, %42, %cst_19 {dimension_numbers = #tpu.dot_dimension_numbers<[1], [0], [0], [1], [0, 0, 1, 1], [], []>} : vector<8x8xf32>, vector<8x8xf32>, vector<8x8xf32> -> vector<8x8xf32>
    %cst_20 = arith.constant 0.353553385 : f32
    %44 = vector.broadcast %cst_20 : f32 to vector<8x8xf32>
    %45 = arith.mulf %43, %44 : vector<8x8xf32>
    %46 = arith.addf %45, %37 : vector<8x8xf32>
    %cst_21 = arith.constant dense<0xFF800000> : vector<8xf32>
    %47 = vector.multi_reduction <maximumf>, %46, %cst_21 [1] : vector<8x8xf32> to vector<8xf32>
    %48 = vector.shape_cast %47 : vector<8xf32> to vector<8x1xf32>
    %49 = vector.broadcast %48 : vector<8x1xf32> to vector<8x8xf32>
    %50 = arith.subf %46, %49 : vector<8x8xf32>
    %51 = math.exp %50 : vector<8x8xf32>
    %cst_22 = arith.constant dense<0.000000e+00> : vector<8xf32>
    %52 = vector.multi_reduction <add>, %51, %cst_22 [1] : vector<8x8xf32> to vector<8xf32>
    %53 = vector.shape_cast %52 : vector<8xf32> to vector<8x1xf32>
    %54 = tpu.reciprocal %53 {approx = true} : vector<8x1xf32> -> vector<8x1xf32>
    %55 = vector.broadcast %54 : vector<8x1xf32> to vector<8x8xf32>
    %56 = arith.mulf %51, %55 : vector<8x8xf32>
    %cst_23 = arith.constant dense<0.000000e+00> : vector<8x8xf32>
    %57 = tpu.matmul %56, %41, %cst_23 {dimension_numbers = #tpu.dot_dimension_numbers<[1], [0], [0], [1], [0, 0, 1, 1], [], []>} : vector<8x8xf32>, vector<8x8xf32>, vector<8x8xf32> -> vector<8x8xf32>
    %58 = vector.extract_strided_slice %36 {offsets = [0, 0], sizes = [8, 32], strides = [1, 1]} : vector<32x32xf32> to vector<8x32xf32>
    %cst_24 = arith.constant dense<0.000000e+00> : vector<8x32xf32>
    %59 = tpu.matmul %57, %58, %cst_24 {dimension_numbers = #tpu.dot_dimension_numbers<[1], [0], [0], [1], [0, 0, 1, 1], [], []>} : vector<8x8xf32>, vector<8x32xf32>, vector<8x32xf32> -> vector<8x32xf32>
    %60 = arith.addf %38, %59 : vector<8x32xf32>
    %61 = vector.extract_strided_slice %33 {offsets = [0, 8], sizes = [8, 8], strides = [1, 1]} : vector<16x32xf32> to vector<8x8xf32>
    %62 = vector.extract_strided_slice %34 {offsets = [0, 8], sizes = [8, 8], strides = [1, 1]} : vector<16x32xf32> to vector<8x8xf32>
    %63 = vector.extract_strided_slice %35 {offsets = [0, 8], sizes = [8, 8], strides = [1, 1]} : vector<16x32xf32> to vector<8x8xf32>
    %64 = tpu.transpose %62, [1, 0] : vector<8x8xf32> -> vector<8x8xf32>
    %cst_25 = arith.constant dense<0.000000e+00> : vector<8x8xf32>
    %65 = tpu.matmul %61, %64, %cst_25 {dimension_numbers = #tpu.dot_dimension_numbers<[1], [0], [0], [1], [0, 0, 1, 1], [], []>} : vector<8x8xf32>, vector<8x8xf32>, vector<8x8xf32> -> vector<8x8xf32>
    %cst_26 = arith.constant 0.353553385 : f32
    %66 = vector.broadcast %cst_26 : f32 to vector<8x8xf32>
    %67 = arith.mulf %65, %66 : vector<8x8xf32>
    %68 = arith.addf %67, %37 : vector<8x8xf32>
    %cst_27 = arith.constant dense<0xFF800000> : vector<8xf32>
    %69 = vector.multi_reduction <maximumf>, %68, %cst_27 [1] : vector<8x8xf32> to vector<8xf32>
    %70 = vector.shape_cast %69 : vector<8xf32> to vector<8x1xf32>
    %71 = vector.broadcast %70 : vector<8x1xf32> to vector<8x8xf32>
    %72 = arith.subf %68, %71 : vector<8x8xf32>
    %73 = math.exp %72 : vector<8x8xf32>
    %cst_28 = arith.constant dense<0.000000e+00> : vector<8xf32>
    %74 = vector.multi_reduction <add>, %73, %cst_28 [1] : vector<8x8xf32> to vector<8xf32>
    %75 = vector.shape_cast %74 : vector<8xf32> to vector<8x1xf32>
    %76 = tpu.reciprocal %75 {approx = true} : vector<8x1xf32> -> vector<8x1xf32>
    %77 = vector.broadcast %76 : vector<8x1xf32> to vector<8x8xf32>
    %78 = arith.mulf %73, %77 : vector<8x8xf32>
    %cst_29 = arith.constant dense<0.000000e+00> : vector<8x8xf32>
    %79 = tpu.matmul %78, %63, %cst_29 {dimension_numbers = #tpu.dot_dimension_numbers<[1], [0], [0], [1], [0, 0, 1, 1], [], []>} : vector<8x8xf32>, vector<8x8xf32>, vector<8x8xf32> -> vector<8x8xf32>
    %80 = vector.extract_strided_slice %36 {offsets = [8, 0], sizes = [8, 32], strides = [1, 1]} : vector<32x32xf32> to vector<8x32xf32>
    %cst_30 = arith.constant dense<0.000000e+00> : vector<8x32xf32>
    %81 = tpu.matmul %79, %80, %cst_30 {dimension_numbers = #tpu.dot_dimension_numbers<[1], [0], [0], [1], [0, 0, 1, 1], [], []>} : vector<8x8xf32>, vector<8x32xf32>, vector<8x32xf32> -> vector<8x32xf32>
    %82 = arith.addf %60, %81 : vector<8x32xf32>
    %83 = vector.extract_strided_slice %33 {offsets = [0, 16], sizes = [8, 8], strides = [1, 1]} : vector<16x32xf32> to vector<8x8xf32>
    %84 = vector.extract_strided_slice %34 {offsets = [0, 16], sizes = [8, 8], strides = [1, 1]} : vector<16x32xf32> to vector<8x8xf32>
    %85 = vector.extract_strided_slice %35 {offsets = [0, 16], sizes = [8, 8], strides = [1, 1]} : vector<16x32xf32> to vector<8x8xf32>
    %86 = tpu.transpose %84, [1, 0] : vector<8x8xf32> -> vector<8x8xf32>
    %cst_31 = arith.constant dense<0.000000e+00> : vector<8x8xf32>
    %87 = tpu.matmul %83, %86, %cst_31 {dimension_numbers = #tpu.dot_dimension_numbers<[1], [0], [0], [1], [0, 0, 1, 1], [], []>} : vector<8x8xf32>, vector<8x8xf32>, vector<8x8xf32> -> vector<8x8xf32>
    %cst_32 = arith.constant 0.353553385 : f32
    %88 = vector.broadcast %cst_32 : f32 to vector<8x8xf32>
    %89 = arith.mulf %87, %88 : vector<8x8xf32>
    %90 = arith.addf %89, %37 : vector<8x8xf32>
    %cst_33 = arith.constant dense<0xFF800000> : vector<8xf32>
    %91 = vector.multi_reduction <maximumf>, %90, %cst_33 [1] : vector<8x8xf32> to vector<8xf32>
    %92 = vector.shape_cast %91 : vector<8xf32> to vector<8x1xf32>
    %93 = vector.broadcast %92 : vector<8x1xf32> to vector<8x8xf32>
    %94 = arith.subf %90, %93 : vector<8x8xf32>
    %95 = math.exp %94 : vector<8x8xf32>
    %cst_34 = arith.constant dense<0.000000e+00> : vector<8xf32>
    %96 = vector.multi_reduction <add>, %95, %cst_34 [1] : vector<8x8xf32> to vector<8xf32>
    %97 = vector.shape_cast %96 : vector<8xf32> to vector<8x1xf32>
    %98 = tpu.reciprocal %97 {approx = true} : vector<8x1xf32> -> vector<8x1xf32>
    %99 = vector.broadcast %98 : vector<8x1xf32> to vector<8x8xf32>
    %100 = arith.mulf %95, %99 : vector<8x8xf32>
    %cst_35 = arith.constant dense<0.000000e+00> : vector<8x8xf32>
    %101 = tpu.matmul %100, %85, %cst_35 {dimension_numbers = #tpu.dot_dimension_numbers<[1], [0], [0], [1], [0, 0, 1, 1], [], []>} : vector<8x8xf32>, vector<8x8xf32>, vector<8x8xf32> -> vector<8x8xf32>
    %102 = vector.extract_strided_slice %36 {offsets = [16, 0], sizes = [8, 32], strides = [1, 1]} : vector<32x32xf32> to vector<8x32xf32>
    %cst_36 = arith.constant dense<0.000000e+00> : vector<8x32xf32>
    %103 = tpu.matmul %101, %102, %cst_36 {dimension_numbers = #tpu.dot_dimension_numbers<[1], [0], [0], [1], [0, 0, 1, 1], [], []>} : vector<8x8xf32>, vector<8x32xf32>, vector<8x32xf32> -> vector<8x32xf32>
    %104 = arith.addf %82, %103 : vector<8x32xf32>
    %105 = vector.extract_strided_slice %33 {offsets = [0, 24], sizes = [8, 8], strides = [1, 1]} : vector<16x32xf32> to vector<8x8xf32>
    %106 = vector.extract_strided_slice %34 {offsets = [0, 24], sizes = [8, 8], strides = [1, 1]} : vector<16x32xf32> to vector<8x8xf32>
    %107 = vector.extract_strided_slice %35 {offsets = [0, 24], sizes = [8, 8], strides = [1, 1]} : vector<16x32xf32> to vector<8x8xf32>
    %108 = tpu.transpose %106, [1, 0] : vector<8x8xf32> -> vector<8x8xf32>
    %cst_37 = arith.constant dense<0.000000e+00> : vector<8x8xf32>
    %109 = tpu.matmul %105, %108, %cst_37 {dimension_numbers = #tpu.dot_dimension_numbers<[1], [0], [0], [1], [0, 0, 1, 1], [], []>} : vector<8x8xf32>, vector<8x8xf32>, vector<8x8xf32> -> vector<8x8xf32>
    %cst_38 = arith.constant 0.353553385 : f32
    %110 = vector.broadcast %cst_38 : f32 to vector<8x8xf32>
    %111 = arith.mulf %109, %110 : vector<8x8xf32>
    %112 = arith.addf %111, %37 : vector<8x8xf32>
    %cst_39 = arith.constant dense<0xFF800000> : vector<8xf32>
    %113 = vector.multi_reduction <maximumf>, %112, %cst_39 [1] : vector<8x8xf32> to vector<8xf32>
    %114 = vector.shape_cast %113 : vector<8xf32> to vector<8x1xf32>
    %115 = vector.broadcast %114 : vector<8x1xf32> to vector<8x8xf32>
    %116 = arith.subf %112, %115 : vector<8x8xf32>
    %117 = math.exp %116 : vector<8x8xf32>
    %cst_40 = arith.constant dense<0.000000e+00> : vector<8xf32>
    %118 = vector.multi_reduction <add>, %117, %cst_40 [1] : vector<8x8xf32> to vector<8xf32>
    %119 = vector.shape_cast %118 : vector<8xf32> to vector<8x1xf32>
    %120 = tpu.reciprocal %119 {approx = true} : vector<8x1xf32> -> vector<8x1xf32>
    %121 = vector.broadcast %120 : vector<8x1xf32> to vector<8x8xf32>
    %122 = arith.mulf %117, %121 : vector<8x8xf32>
    %cst_41 = arith.constant dense<0.000000e+00> : vector<8x8xf32>
    %123 = tpu.matmul %122, %107, %cst_41 {dimension_numbers = #tpu.dot_dimension_numbers<[1], [0], [0], [1], [0, 0, 1, 1], [], []>} : vector<8x8xf32>, vector<8x8xf32>, vector<8x8xf32> -> vector<8x8xf32>
    %124 = vector.extract_strided_slice %36 {offsets = [24, 0], sizes = [8, 32], strides = [1, 1]} : vector<32x32xf32> to vector<8x32xf32>
    %cst_42 = arith.constant dense<0.000000e+00> : vector<8x32xf32>
    %125 = tpu.matmul %123, %124, %cst_42 {dimension_numbers = #tpu.dot_dimension_numbers<[1], [0], [0], [1], [0, 0, 1, 1], [], []>} : vector<8x8xf32>, vector<8x32xf32>, vector<8x32xf32> -> vector<8x32xf32>
    %126 = arith.addf %104, %125 : vector<8x32xf32>
    %127 = vector.extract_strided_slice %0 {offsets = [8, 0], sizes = [8, 8], strides = [1, 1]} : vector<16x8xf32> to vector<8x8xf32>
    %cst_43 = arith.constant 0.000000e+00 : f32
    %128 = vector.broadcast %cst_43 : f32 to vector<8x32xf32>
    %129 = vector.extract_strided_slice %33 {offsets = [8, 0], sizes = [8, 8], strides = [1, 1]} : vector<16x32xf32> to vector<8x8xf32>
    %130 = vector.extract_strided_slice %34 {offsets = [8, 0], sizes = [8, 8], strides = [1, 1]} : vector<16x32xf32> to vector<8x8xf32>
    %131 = vector.extract_strided_slice %35 {offsets = [8, 0], sizes = [8, 8], strides = [1, 1]} : vector<16x32xf32> to vector<8x8xf32>
    %132 = tpu.transpose %130, [1, 0] : vector<8x8xf32> -> vector<8x8xf32>
    %cst_44 = arith.constant dense<0.000000e+00> : vector<8x8xf32>
    %133 = tpu.matmul %129, %132, %cst_44 {dimension_numbers = #tpu.dot_dimension_numbers<[1], [0], [0], [1], [0, 0, 1, 1], [], []>} : vector<8x8xf32>, vector<8x8xf32>, vector<8x8xf32> -> vector<8x8xf32>
    %cst_45 = arith.constant 0.353553385 : f32
    %134 = vector.broadcast %cst_45 : f32 to vector<8x8xf32>
    %135 = arith.mulf %133, %134 : vector<8x8xf32>
    %136 = arith.addf %135, %127 : vector<8x8xf32>
    %cst_46 = arith.constant dense<0xFF800000> : vector<8xf32>
    %137 = vector.multi_reduction <maximumf>, %136, %cst_46 [1] : vector<8x8xf32> to vector<8xf32>
    %138 = vector.shape_cast %137 : vector<8xf32> to vector<8x1xf32>
    %139 = vector.broadcast %138 : vector<8x1xf32> to vector<8x8xf32>
    %140 = arith.subf %136, %139 : vector<8x8xf32>
    %141 = math.exp %140 : vector<8x8xf32>
    %cst_47 = arith.constant dense<0.000000e+00> : vector<8xf32>
    %142 = vector.multi_reduction <add>, %141, %cst_47 [1] : vector<8x8xf32> to vector<8xf32>
    %143 = vector.shape_cast %142 : vector<8xf32> to vector<8x1xf32>
    %144 = tpu.reciprocal %143 {approx = true} : vector<8x1xf32> -> vector<8x1xf32>
    %145 = vector.broadcast %144 : vector<8x1xf32> to vector<8x8xf32>
    %146 = arith.mulf %141, %145 : vector<8x8xf32>
    %cst_48 = arith.constant dense<0.000000e+00> : vector<8x8xf32>
    %147 = tpu.matmul %146, %131, %cst_48 {dimension_numbers = #tpu.dot_dimension_numbers<[1], [0], [0], [1], [0, 0, 1, 1], [], []>} : vector<8x8xf32>, vector<8x8xf32>, vector<8x8xf32> -> vector<8x8xf32>
    %148 = vector.extract_strided_slice %36 {offsets = [0, 0], sizes = [8, 32], strides = [1, 1]} : vector<32x32xf32> to vector<8x32xf32>
    %cst_49 = arith.constant dense<0.000000e+00> : vector<8x32xf32>
    %149 = tpu.matmul %147, %148, %cst_49 {dimension_numbers = #tpu.dot_dimension_numbers<[1], [0], [0], [1], [0, 0, 1, 1], [], []>} : vector<8x8xf32>, vector<8x32xf32>, vector<8x32xf32> -> vector<8x32xf32>
    %150 = arith.addf %128, %149 : vector<8x32xf32>
    %151 = vector.extract_strided_slice %33 {offsets = [8, 8], sizes = [8, 8], strides = [1, 1]} : vector<16x32xf32> to vector<8x8xf32>
    %152 = vector.extract_strided_slice %34 {offsets = [8, 8], sizes = [8, 8], strides = [1, 1]} : vector<16x32xf32> to vector<8x8xf32>
    %153 = vector.extract_strided_slice %35 {offsets = [8, 8], sizes = [8, 8], strides = [1, 1]} : vector<16x32xf32> to vector<8x8xf32>
    %154 = tpu.transpose %152, [1, 0] : vector<8x8xf32> -> vector<8x8xf32>
    %cst_50 = arith.constant dense<0.000000e+00> : vector<8x8xf32>
    %155 = tpu.matmul %151, %154, %cst_50 {dimension_numbers = #tpu.dot_dimension_numbers<[1], [0], [0], [1], [0, 0, 1, 1], [], []>} : vector<8x8xf32>, vector<8x8xf32>, vector<8x8xf32> -> vector<8x8xf32>
    %cst_51 = arith.constant 0.353553385 : f32
    %156 = vector.broadcast %cst_51 : f32 to vector<8x8xf32>
    %157 = arith.mulf %155, %156 : vector<8x8xf32>
    %158 = arith.addf %157, %127 : vector<8x8xf32>
    %cst_52 = arith.constant dense<0xFF800000> : vector<8xf32>
    %159 = vector.multi_reduction <maximumf>, %158, %cst_52 [1] : vector<8x8xf32> to vector<8xf32>
    %160 = vector.shape_cast %159 : vector<8xf32> to vector<8x1xf32>
    %161 = vector.broadcast %160 : vector<8x1xf32> to vector<8x8xf32>
    %162 = arith.subf %158, %161 : vector<8x8xf32>
    %163 = math.exp %162 : vector<8x8xf32>
    %cst_53 = arith.constant dense<0.000000e+00> : vector<8xf32>
    %164 = vector.multi_reduction <add>, %163, %cst_53 [1] : vector<8x8xf32> to vector<8xf32>
    %165 = vector.shape_cast %164 : vector<8xf32> to vector<8x1xf32>
    %166 = tpu.reciprocal %165 {approx = true} : vector<8x1xf32> -> vector<8x1xf32>
    %167 = vector.broadcast %166 : vector<8x1xf32> to vector<8x8xf32>
    %168 = arith.mulf %163, %167 : vector<8x8xf32>
    %cst_54 = arith.constant dense<0.000000e+00> : vector<8x8xf32>
    %169 = tpu.matmul %168, %153, %cst_54 {dimension_numbers = #tpu.dot_dimension_numbers<[1], [0], [0], [1], [0, 0, 1, 1], [], []>} : vector<8x8xf32>, vector<8x8xf32>, vector<8x8xf32> -> vector<8x8xf32>
    %170 = vector.extract_strided_slice %36 {offsets = [8, 0], sizes = [8, 32], strides = [1, 1]} : vector<32x32xf32> to vector<8x32xf32>
    %cst_55 = arith.constant dense<0.000000e+00> : vector<8x32xf32>
    %171 = tpu.matmul %169, %170, %cst_55 {dimension_numbers = #tpu.dot_dimension_numbers<[1], [0], [0], [1], [0, 0, 1, 1], [], []>} : vector<8x8xf32>, vector<8x32xf32>, vector<8x32xf32> -> vector<8x32xf32>
    %172 = arith.addf %150, %171 : vector<8x32xf32>
    %173 = vector.extract_strided_slice %33 {offsets = [8, 16], sizes = [8, 8], strides = [1, 1]} : vector<16x32xf32> to vector<8x8xf32>
    %174 = vector.extract_strided_slice %34 {offsets = [8, 16], sizes = [8, 8], strides = [1, 1]} : vector<16x32xf32> to vector<8x8xf32>
    %175 = vector.extract_strided_slice %35 {offsets = [8, 16], sizes = [8, 8], strides = [1, 1]} : vector<16x32xf32> to vector<8x8xf32>
    %176 = tpu.transpose %174, [1, 0] : vector<8x8xf32> -> vector<8x8xf32>
    %cst_56 = arith.constant dense<0.000000e+00> : vector<8x8xf32>
    %177 = tpu.matmul %173, %176, %cst_56 {dimension_numbers = #tpu.dot_dimension_numbers<[1], [0], [0], [1], [0, 0, 1, 1], [], []>} : vector<8x8xf32>, vector<8x8xf32>, vector<8x8xf32> -> vector<8x8xf32>
    %cst_57 = arith.constant 0.353553385 : f32
    %178 = vector.broadcast %cst_57 : f32 to vector<8x8xf32>
    %179 = arith.mulf %177, %178 : vector<8x8xf32>
    %180 = arith.addf %179, %127 : vector<8x8xf32>
    %cst_58 = arith.constant dense<0xFF800000> : vector<8xf32>
    %181 = vector.multi_reduction <maximumf>, %180, %cst_58 [1] : vector<8x8xf32> to vector<8xf32>
    %182 = vector.shape_cast %181 : vector<8xf32> to vector<8x1xf32>
    %183 = vector.broadcast %182 : vector<8x1xf32> to vector<8x8xf32>
    %184 = arith.subf %180, %183 : vector<8x8xf32>
    %185 = math.exp %184 : vector<8x8xf32>
    %cst_59 = arith.constant dense<0.000000e+00> : vector<8xf32>
    %186 = vector.multi_reduction <add>, %185, %cst_59 [1] : vector<8x8xf32> to vector<8xf32>
    %187 = vector.shape_cast %186 : vector<8xf32> to vector<8x1xf32>
    %188 = tpu.reciprocal %187 {approx = true} : vector<8x1xf32> -> vector<8x1xf32>
    %189 = vector.broadcast %188 : vector<8x1xf32> to vector<8x8xf32>
    %190 = arith.mulf %185, %189 : vector<8x8xf32>
    %cst_60 = arith.constant dense<0.000000e+00> : vector<8x8xf32>
    %191 = tpu.matmul %190, %175, %cst_60 {dimension_numbers = #tpu.dot_dimension_numbers<[1], [0], [0], [1], [0, 0, 1, 1], [], []>} : vector<8x8xf32>, vector<8x8xf32>, vector<8x8xf32> -> vector<8x8xf32>
    %192 = vector.extract_strided_slice %36 {offsets = [16, 0], sizes = [8, 32], strides = [1, 1]} : vector<32x32xf32> to vector<8x32xf32>
    %cst_61 = arith.constant dense<0.000000e+00> : vector<8x32xf32>
    %193 = tpu.matmul %191, %192, %cst_61 {dimension_numbers = #tpu.dot_dimension_numbers<[1], [0], [0], [1], [0, 0, 1, 1], [], []>} : vector<8x8xf32>, vector<8x32xf32>, vector<8x32xf32> -> vector<8x32xf32>
    %194 = arith.addf %172, %193 : vector<8x32xf32>
    %195 = vector.extract_strided_slice %33 {offsets = [8, 24], sizes = [8, 8], strides = [1, 1]} : vector<16x32xf32> to vector<8x8xf32>
    %196 = vector.extract_strided_slice %34 {offsets = [8, 24], sizes = [8, 8], strides = [1, 1]} : vector<16x32xf32> to vector<8x8xf32>
    %197 = vector.extract_strided_slice %35 {offsets = [8, 24], sizes = [8, 8], strides = [1, 1]} : vector<16x32xf32> to vector<8x8xf32>
    %198 = tpu.transpose %196, [1, 0] : vector<8x8xf32> -> vector<8x8xf32>
    %cst_62 = arith.constant dense<0.000000e+00> : vector<8x8xf32>
    %199 = tpu.matmul %195, %198, %cst_62 {dimension_numbers = #tpu.dot_dimension_numbers<[1], [0], [0], [1], [0, 0, 1, 1], [], []>} : vector<8x8xf32>, vector<8x8xf32>, vector<8x8xf32> -> vector<8x8xf32>
    %cst_63 = arith.constant 0.353553385 : f32
    %200 = vector.broadcast %cst_63 : f32 to vector<8x8xf32>
    %201 = arith.mulf %199, %200 : vector<8x8xf32>
    %202 = arith.addf %201, %127 : vector<8x8xf32>
    %cst_64 = arith.constant dense<0xFF800000> : vector<8xf32>
    %203 = vector.multi_reduction <maximumf>, %202, %cst_64 [1] : vector<8x8xf32> to vector<8xf32>
    %204 = vector.shape_cast %203 : vector<8xf32> to vector<8x1xf32>
    %205 = vector.broadcast %204 : vector<8x1xf32> to vector<8x8xf32>
    %206 = arith.subf %202, %205 : vector<8x8xf32>
    %207 = math.exp %206 : vector<8x8xf32>
    %cst_65 = arith.constant dense<0.000000e+00> : vector<8xf32>
    %208 = vector.multi_reduction <add>, %207, %cst_65 [1] : vector<8x8xf32> to vector<8xf32>
    %209 = vector.shape_cast %208 : vector<8xf32> to vector<8x1xf32>
    %210 = tpu.reciprocal %209 {approx = true} : vector<8x1xf32> -> vector<8x1xf32>
    %211 = vector.broadcast %210 : vector<8x1xf32> to vector<8x8xf32>
    %212 = arith.mulf %207, %211 : vector<8x8xf32>
    %cst_66 = arith.constant dense<0.000000e+00> : vector<8x8xf32>
    %213 = tpu.matmul %212, %197, %cst_66 {dimension_numbers = #tpu.dot_dimension_numbers<[1], [0], [0], [1], [0, 0, 1, 1], [], []>} : vector<8x8xf32>, vector<8x8xf32>, vector<8x8xf32> -> vector<8x8xf32>
    %214 = vector.extract_strided_slice %36 {offsets = [24, 0], sizes = [8, 32], strides = [1, 1]} : vector<32x32xf32> to vector<8x32xf32>
    %cst_67 = arith.constant dense<0.000000e+00> : vector<8x32xf32>
    %215 = tpu.matmul %213, %214, %cst_67 {dimension_numbers = #tpu.dot_dimension_numbers<[1], [0], [0], [1], [0, 0, 1, 1], [], []>} : vector<8x8xf32>, vector<8x32xf32>, vector<8x32xf32> -> vector<8x32xf32>
    %216 = arith.addf %194, %215 : vector<8x32xf32>
    %217 = tpu.concatenate %126, %216 in 0 : vector<8x32xf32>, vector<8x32xf32> -> vector<16x32xf32>
    %c0_68 = arith.constant 0 : index
    %c0_69 = arith.constant 0 : index
    %218 = vector.load %arg7[%c0_68, %c0_69] : memref<1x32xf32, #tpu.memory_space<vmem>>, vector<1x32xf32>
    %219 = vector.broadcast %218 : vector<1x32xf32> to vector<16x32xf32>
    %220 = arith.addf %217, %219 : vector<16x32xf32>
    %221 = arith.addf %220, %27 : vector<16x32xf32>
    %c0_70 = arith.constant 0 : index
    %c0_71 = arith.constant 0 : index
    %222 = vector.load %arg8[%c0_70, %c0_71] : memref<1x32xf32, #tpu.memory_space<vmem>>, vector<1x32xf32>
    %c0_72 = arith.constant 0 : index
    %c0_73 = arith.constant 0 : index
    %223 = vector.load %arg9[%c0_72, %c0_73] : memref<1x32xf32, #tpu.memory_space<vmem>>, vector<1x32xf32>
    %cst_74 = arith.constant dense<0.000000e+00> : vector<16xf32>
    %224 = vector.multi_reduction <add>, %221, %cst_74 [1] : vector<16x32xf32> to vector<16xf32>
    %225 = vector.shape_cast %224 : vector<16xf32> to vector<16x1xf32>
    %cst_75 = arith.constant 3.200000e+01 : f32
    %226 = vector.broadcast %cst_75 : f32 to vector<16x1xf32>
    %227 = arith.divf %225, %226 : vector<16x1xf32>
    %228 = vector.broadcast %227 : vector<16x1xf32> to vector<16x32xf32>
    %229 = arith.subf %221, %228 : vector<16x32xf32>
    %230 = vector.broadcast %227 : vector<16x1xf32> to vector<16x32xf32>
    %231 = arith.subf %221, %230 : vector<16x32xf32>
    %232 = arith.mulf %229, %231 : vector<16x32xf32>
    %cst_76 = arith.constant dense<0.000000e+00> : vector<16xf32>
    %233 = vector.multi_reduction <add>, %232, %cst_76 [1] : vector<16x32xf32> to vector<16xf32>
    %234 = vector.shape_cast %233 : vector<16xf32> to vector<16x1xf32>
    %cst_77 = arith.constant 3.200000e+01 : f32
    %235 = vector.broadcast %cst_77 : f32 to vector<16x1xf32>
    %236 = arith.divf %234, %235 : vector<16x1xf32>
    %237 = vector.broadcast %227 : vector<16x1xf32> to vector<16x32xf32>
    %238 = arith.subf %221, %237 : vector<16x32xf32>
    %cst_78 = arith.constant 9.99999996E-13 : f32
    %239 = vector.broadcast %cst_78 : f32 to vector<16x1xf32>
    %240 = arith.addf %236, %239 : vector<16x1xf32>
    %241 = math.rsqrt %240 : vector<16x1xf32>
    %242 = vector.broadcast %241 : vector<16x1xf32> to vector<16x32xf32>
    %243 = arith.mulf %238, %242 : vector<16x32xf32>
    %244 = vector.broadcast %222 : vector<1x32xf32> to vector<16x32xf32>
    %245 = arith.mulf %243, %244 : vector<16x32xf32>
    %246 = vector.broadcast %223 : vector<1x32xf32> to vector<16x32xf32>
    %247 = arith.addf %245, %246 : vector<16x32xf32>
    %c0_79 = arith.constant 0 : index
    %c0_80 = arith.constant 0 : index
    %248 = vector.load %arg10[%c0_79, %c0_80] : memref<32x64xf32, #tpu.memory_space<vmem>>, vector<32x64xf32>
    %cst_81 = arith.constant dense<0.000000e+00> : vector<16x64xf32>
    %249 = tpu.matmul %247, %248, %cst_81 {dimension_numbers = #tpu.dot_dimension_numbers<[1], [0], [0], [1], [0, 0, 1, 1], [], []>} : vector<16x32xf32>, vector<32x64xf32>, vector<16x64xf32> -> vector<16x64xf32>
    %c0_82 = arith.constant 0 : index
    %c0_83 = arith.constant 0 : index
    %250 = vector.load %arg11[%c0_82, %c0_83] : memref<1x64xf32, #tpu.memory_space<vmem>>, vector<1x64xf32>
    %251 = vector.broadcast %250 : vector<1x64xf32> to vector<16x64xf32>
    %252 = arith.addf %249, %251 : vector<16x64xf32>
    %cst_84 = arith.constant 5.000000e-01 : f32
    %253 = vector.broadcast %cst_84 : f32 to vector<16x64xf32>
    %254 = arith.mulf %253, %252 : vector<16x64xf32>
    %cst_85 = arith.constant 4.471500e-02 : f32
    %255 = vector.broadcast %cst_85 : f32 to vector<16x64xf32>
    %256 = arith.mulf %255, %252 : vector<16x64xf32>
    %257 = arith.mulf %256, %252 : vector<16x64xf32>
    %258 = arith.mulf %257, %252 : vector<16x64xf32>
    %259 = arith.addf %252, %258 : vector<16x64xf32>
    %cst_86 = arith.constant 0.797884583 : f32
    %260 = vector.broadcast %cst_86 : f32 to vector<16x64xf32>
    %261 = arith.mulf %260, %259 : vector<16x64xf32>
    %262 = math.tanh %261 : vector<16x64xf32>
    %cst_87 = arith.constant 1.000000e+00 : f32
    %263 = vector.broadcast %cst_87 : f32 to vector<16x64xf32>
    %264 = arith.addf %263, %262 : vector<16x64xf32>
    %265 = arith.mulf %254, %264 : vector<16x64xf32>
    %c0_88 = arith.constant 0 : index
    %c0_89 = arith.constant 0 : index
    %266 = vector.load %arg12[%c0_88, %c0_89] : memref<64x32xf32, #tpu.memory_space<vmem>>, vector<64x32xf32>
    %cst_90 = arith.constant dense<0.000000e+00> : vector<16x32xf32>
    %267 = tpu.matmul %265, %266, %cst_90 {dimension_numbers = #tpu.dot_dimension_numbers<[1], [0], [0], [1], [0, 0, 1, 1], [], []>} : vector<16x64xf32>, vector<64x32xf32>, vector<16x32xf32> -> vector<16x32xf32>
    %c0_91 = arith.constant 0 : index
    %c0_92 = arith.constant 0 : index
    %268 = vector.load %arg13[%c0_91, %c0_92] : memref<1x32xf32, #tpu.memory_space<vmem>>, vector<1x32xf32>
    %269 = vector.broadcast %268 : vector<1x32xf32> to vector<16x32xf32>
    %270 = arith.addf %267, %269 : vector<16x32xf32>
    %271 = arith.addf %270, %247 : vector<16x32xf32>
    %c0_93 = arith.constant 0 : index
    %c0_94 = arith.constant 0 : index
    %272 = vector.load %arg14[%c0_93, %c0_94] : memref<1x32xf32, #tpu.memory_space<vmem>>, vector<1x32xf32>
    %c0_95 = arith.constant 0 : index
    %c0_96 = arith.constant 0 : index
    %273 = vector.load %arg15[%c0_95, %c0_96] : memref<1x32xf32, #tpu.memory_space<vmem>>, vector<1x32xf32>
    %cst_97 = arith.constant dense<0.000000e+00> : vector<16xf32>
    %274 = vector.multi_reduction <add>, %271, %cst_97 [1] : vector<16x32xf32> to vector<16xf32>
    %275 = vector.shape_cast %274 : vector<16xf32> to vector<16x1xf32>
    %cst_98 = arith.constant 3.200000e+01 : f32
    %276 = vector.broadcast %cst_98 : f32 to vector<16x1xf32>
    %277 = arith.divf %275, %276 : vector<16x1xf32>
    %278 = vector.broadcast %277 : vector<16x1xf32> to vector<16x32xf32>
    %279 = arith.subf %271, %278 : vector<16x32xf32>
    %280 = vector.broadcast %277 : vector<16x1xf32> to vector<16x32xf32>
    %281 = arith.subf %271, %280 : vector<16x32xf32>
    %282 = arith.mulf %279, %281 : vector<16x32xf32>
    %cst_99 = arith.constant dense<0.000000e+00> : vector<16xf32>
    %283 = vector.multi_reduction <add>, %282, %cst_99 [1] : vector<16x32xf32> to vector<16xf32>
    %284 = vector.shape_cast %283 : vector<16xf32> to vector<16x1xf32>
    %cst_100 = arith.constant 3.200000e+01 : f32
    %285 = vector.broadcast %cst_100 : f32 to vector<16x1xf32>
    %286 = arith.divf %284, %285 : vector<16x1xf32>
    %287 = vector.broadcast %277 : vector<16x1xf32> to vector<16x32xf32>
    %288 = arith.subf %271, %287 : vector<16x32xf32>
    %cst_101 = arith.constant 9.99999996E-13 : f32
    %289 = vector.broadcast %cst_101 : f32 to vector<16x1xf32>
    %290 = arith.addf %286, %289 : vector<16x1xf32>
    %291 = math.rsqrt %290 : vector<16x1xf32>
    %292 = vector.broadcast %291 : vector<16x1xf32> to vector<16x32xf32>
    %293 = arith.mulf %288, %292 : vector<16x32xf32>
    %294 = vector.broadcast %272 : vector<1x32xf32> to vector<16x32xf32>
    %295 = arith.mulf %293, %294 : vector<16x32xf32>
    %296 = vector.broadcast %273 : vector<1x32xf32> to vector<16x32xf32>
    %297 = arith.addf %295, %296 : vector<16x32xf32>
    %c0_102 = arith.constant 0 : index
    %c0_103 = arith.constant 0 : index
    %298 = vector.load %arg16[%c0_102, %c0_103] : memref<32x96xf32, #tpu.memory_space<vmem>>, vector<32x96xf32>
    %cst_104 = arith.constant dense<0.000000e+00> : vector<16x96xf32>
    %299 = tpu.matmul %297, %298, %cst_104 {dimension_numbers = #tpu.dot_dimension_numbers<[1], [0], [0], [1], [0, 0, 1, 1], [], []>} : vector<16x32xf32>, vector<32x96xf32>, vector<16x96xf32> -> vector<16x96xf32>
    %c0_105 = arith.constant 0 : index
    %c0_106 = arith.constant 0 : index
    %300 = vector.load %arg17[%c0_105, %c0_106] : memref<1x96xf32, #tpu.memory_space<vmem>>, vector<1x96xf32>
    %301 = vector.broadcast %300 : vector<1x96xf32> to vector<16x96xf32>
    %302 = arith.addf %299, %301 : vector<16x96xf32>
    %303 = vector.extract_strided_slice %302 {offsets = [0, 0], sizes = [16, 32], strides = [1, 1]} : vector<16x96xf32> to vector<16x32xf32>
    %304 = vector.extract_strided_slice %302 {offsets = [0, 32], sizes = [16, 32], strides = [1, 1]} : vector<16x96xf32> to vector<16x32xf32>
    %305 = vector.extract_strided_slice %302 {offsets = [0, 64], sizes = [16, 32], strides = [1, 1]} : vector<16x96xf32> to vector<16x32xf32>
    %c0_107 = arith.constant 0 : index
    %c0_108 = arith.constant 0 : index
    %306 = vector.load %arg18[%c0_107, %c0_108] : memref<32x32xf32, #tpu.memory_space<vmem>>, vector<32x32xf32>
    %307 = vector.extract_strided_slice %0 {offsets = [0, 0], sizes = [8, 8], strides = [1, 1]} : vector<16x8xf32> to vector<8x8xf32>
    %cst_109 = arith.constant 0.000000e+00 : f32
    %308 = vector.broadcast %cst_109 : f32 to vector<8x32xf32>
    %309 = vector.extract_strided_slice %303 {offsets = [0, 0], sizes = [8, 8], strides = [1, 1]} : vector<16x32xf32> to vector<8x8xf32>
    %310 = vector.extract_strided_slice %304 {offsets = [0, 0], sizes = [8, 8], strides = [1, 1]} : vector<16x32xf32> to vector<8x8xf32>
    %311 = vector.extract_strided_slice %305 {offsets = [0, 0], sizes = [8, 8], strides = [1, 1]} : vector<16x32xf32> to vector<8x8xf32>
    %312 = tpu.transpose %310, [1, 0] : vector<8x8xf32> -> vector<8x8xf32>
    %cst_110 = arith.constant dense<0.000000e+00> : vector<8x8xf32>
    %313 = tpu.matmul %309, %312, %cst_110 {dimension_numbers = #tpu.dot_dimension_numbers<[1], [0], [0], [1], [0, 0, 1, 1], [], []>} : vector<8x8xf32>, vector<8x8xf32>, vector<8x8xf32> -> vector<8x8xf32>
    %cst_111 = arith.constant 0.353553385 : f32
    %314 = vector.broadcast %cst_111 : f32 to vector<8x8xf32>
    %315 = arith.mulf %313, %314 : vector<8x8xf32>
    %316 = arith.addf %315, %307 : vector<8x8xf32>
    %cst_112 = arith.constant dense<0xFF800000> : vector<8xf32>
    %317 = vector.multi_reduction <maximumf>, %316, %cst_112 [1] : vector<8x8xf32> to vector<8xf32>
    %318 = vector.shape_cast %317 : vector<8xf32> to vector<8x1xf32>
    %319 = vector.broadcast %318 : vector<8x1xf32> to vector<8x8xf32>
    %320 = arith.subf %316, %319 : vector<8x8xf32>
    %321 = math.exp %320 : vector<8x8xf32>
    %cst_113 = arith.constant dense<0.000000e+00> : vector<8xf32>
    %322 = vector.multi_reduction <add>, %321, %cst_113 [1] : vector<8x8xf32> to vector<8xf32>
    %323 = vector.shape_cast %322 : vector<8xf32> to vector<8x1xf32>
    %324 = tpu.reciprocal %323 {approx = true} : vector<8x1xf32> -> vector<8x1xf32>
    %325 = vector.broadcast %324 : vector<8x1xf32> to vector<8x8xf32>
    %326 = arith.mulf %321, %325 : vector<8x8xf32>
    %cst_114 = arith.constant dense<0.000000e+00> : vector<8x8xf32>
    %327 = tpu.matmul %326, %311, %cst_114 {dimension_numbers = #tpu.dot_dimension_numbers<[1], [0], [0], [1], [0, 0, 1, 1], [], []>} : vector<8x8xf32>, vector<8x8xf32>, vector<8x8xf32> -> vector<8x8xf32>
    %328 = vector.extract_strided_slice %306 {offsets = [0, 0], sizes = [8, 32], strides = [1, 1]} : vector<32x32xf32> to vector<8x32xf32>
    %cst_115 = arith.constant dense<0.000000e+00> : vector<8x32xf32>
    %329 = tpu.matmul %327, %328, %cst_115 {dimension_numbers = #tpu.dot_dimension_numbers<[1], [0], [0], [1], [0, 0, 1, 1], [], []>} : vector<8x8xf32>, vector<8x32xf32>, vector<8x32xf32> -> vector<8x32xf32>
    %330 = arith.addf %308, %329 : vector<8x32xf32>
    %331 = vector.extract_strided_slice %303 {offsets = [0, 8], sizes = [8, 8], strides = [1, 1]} : vector<16x32xf32> to vector<8x8xf32>
    %332 = vector.extract_strided_slice %304 {offsets = [0, 8], sizes = [8, 8], strides = [1, 1]} : vector<16x32xf32> to vector<8x8xf32>
    %333 = vector.extract_strided_slice %305 {offsets = [0, 8], sizes = [8, 8], strides = [1, 1]} : vector<16x32xf32> to vector<8x8xf32>
    %334 = tpu.transpose %332, [1, 0] : vector<8x8xf32> -> vector<8x8xf32>
    %cst_116 = arith.constant dense<0.000000e+00> : vector<8x8xf32>
    %335 = tpu.matmul %331, %334, %cst_116 {dimension_numbers = #tpu.dot_dimension_numbers<[1], [0], [0], [1], [0, 0, 1, 1], [], []>} : vector<8x8xf32>, vector<8x8xf32>, vector<8x8xf32> -> vector<8x8xf32>
    %cst_117 = arith.constant 0.353553385 : f32
    %336 = vector.broadcast %cst_117 : f32 to vector<8x8xf32>
    %337 = arith.mulf %335, %336 : vector<8x8xf32>
    %338 = arith.addf %337, %307 : vector<8x8xf32>
    %cst_118 = arith.constant dense<0xFF800000> : vector<8xf32>
    %339 = vector.multi_reduction <maximumf>, %338, %cst_118 [1] : vector<8x8xf32> to vector<8xf32>
    %340 = vector.shape_cast %339 : vector<8xf32> to vector<8x1xf32>
    %341 = vector.broadcast %340 : vector<8x1xf32> to vector<8x8xf32>
    %342 = arith.subf %338, %341 : vector<8x8xf32>
    %343 = math.exp %342 : vector<8x8xf32>
    %cst_119 = arith.constant dense<0.000000e+00> : vector<8xf32>
    %344 = vector.multi_reduction <add>, %343, %cst_119 [1] : vector<8x8xf32> to vector<8xf32>
    %345 = vector.shape_cast %344 : vector<8xf32> to vector<8x1xf32>
    %346 = tpu.reciprocal %345 {approx = true} : vector<8x1xf32> -> vector<8x1xf32>
    %347 = vector.broadcast %346 : vector<8x1xf32> to vector<8x8xf32>
    %348 = arith.mulf %343, %347 : vector<8x8xf32>
    %cst_120 = arith.constant dense<0.000000e+00> : vector<8x8xf32>
    %349 = tpu.matmul %348, %333, %cst_120 {dimension_numbers = #tpu.dot_dimension_numbers<[1], [0], [0], [1], [0, 0, 1, 1], [], []>} : vector<8x8xf32>, vector<8x8xf32>, vector<8x8xf32> -> vector<8x8xf32>
    %350 = vector.extract_strided_slice %306 {offsets = [8, 0], sizes = [8, 32], strides = [1, 1]} : vector<32x32xf32> to vector<8x32xf32>
    %cst_121 = arith.constant dense<0.000000e+00> : vector<8x32xf32>
    %351 = tpu.matmul %349, %350, %cst_121 {dimension_numbers = #tpu.dot_dimension_numbers<[1], [0], [0], [1], [0, 0, 1, 1], [], []>} : vector<8x8xf32>, vector<8x32xf32>, vector<8x32xf32> -> vector<8x32xf32>
    %352 = arith.addf %330, %351 : vector<8x32xf32>
    %353 = vector.extract_strided_slice %303 {offsets = [0, 16], sizes = [8, 8], strides = [1, 1]} : vector<16x32xf32> to vector<8x8xf32>
    %354 = vector.extract_strided_slice %304 {offsets = [0, 16], sizes = [8, 8], strides = [1, 1]} : vector<16x32xf32> to vector<8x8xf32>
    %355 = vector.extract_strided_slice %305 {offsets = [0, 16], sizes = [8, 8], strides = [1, 1]} : vector<16x32xf32> to vector<8x8xf32>
    %356 = tpu.transpose %354, [1, 0] : vector<8x8xf32> -> vector<8x8xf32>
    %cst_122 = arith.constant dense<0.000000e+00> : vector<8x8xf32>
    %357 = tpu.matmul %353, %356, %cst_122 {dimension_numbers = #tpu.dot_dimension_numbers<[1], [0], [0], [1], [0, 0, 1, 1], [], []>} : vector<8x8xf32>, vector<8x8xf32>, vector<8x8xf32> -> vector<8x8xf32>
    %cst_123 = arith.constant 0.353553385 : f32
    %358 = vector.broadcast %cst_123 : f32 to vector<8x8xf32>
    %359 = arith.mulf %357, %358 : vector<8x8xf32>
    %360 = arith.addf %359, %307 : vector<8x8xf32>
    %cst_124 = arith.constant dense<0xFF800000> : vector<8xf32>
    %361 = vector.multi_reduction <maximumf>, %360, %cst_124 [1] : vector<8x8xf32> to vector<8xf32>
    %362 = vector.shape_cast %361 : vector<8xf32> to vector<8x1xf32>
    %363 = vector.broadcast %362 : vector<8x1xf32> to vector<8x8xf32>
    %364 = arith.subf %360, %363 : vector<8x8xf32>
    %365 = math.exp %364 : vector<8x8xf32>
    %cst_125 = arith.constant dense<0.000000e+00> : vector<8xf32>
    %366 = vector.multi_reduction <add>, %365, %cst_125 [1] : vector<8x8xf32> to vector<8xf32>
    %367 = vector.shape_cast %366 : vector<8xf32> to vector<8x1xf32>
    %368 = tpu.reciprocal %367 {approx = true} : vector<8x1xf32> -> vector<8x1xf32>
    %369 = vector.broadcast %368 : vector<8x1xf32> to vector<8x8xf32>
    %370 = arith.mulf %365, %369 : vector<8x8xf32>
    %cst_126 = arith.constant dense<0.000000e+00> : vector<8x8xf32>
    %371 = tpu.matmul %370, %355, %cst_126 {dimension_numbers = #tpu.dot_dimension_numbers<[1], [0], [0], [1], [0, 0, 1, 1], [], []>} : vector<8x8xf32>, vector<8x8xf32>, vector<8x8xf32> -> vector<8x8xf32>
    %372 = vector.extract_strided_slice %306 {offsets = [16, 0], sizes = [8, 32], strides = [1, 1]} : vector<32x32xf32> to vector<8x32xf32>
    %cst_127 = arith.constant dense<0.000000e+00> : vector<8x32xf32>
    %373 = tpu.matmul %371, %372, %cst_127 {dimension_numbers = #tpu.dot_dimension_numbers<[1], [0], [0], [1], [0, 0, 1, 1], [], []>} : vector<8x8xf32>, vector<8x32xf32>, vector<8x32xf32> -> vector<8x32xf32>
    %374 = arith.addf %352, %373 : vector<8x32xf32>
    %375 = vector.extract_strided_slice %303 {offsets = [0, 24], sizes = [8, 8], strides = [1, 1]} : vector<16x32xf32> to vector<8x8xf32>
    %376 = vector.extract_strided_slice %304 {offsets = [0, 24], sizes = [8, 8], strides = [1, 1]} : vector<16x32xf32> to vector<8x8xf32>
    %377 = vector.extract_strided_slice %305 {offsets = [0, 24], sizes = [8, 8], strides = [1, 1]} : vector<16x32xf32> to vector<8x8xf32>
    %378 = tpu.transpose %376, [1, 0] : vector<8x8xf32> -> vector<8x8xf32>
    %cst_128 = arith.constant dense<0.000000e+00> : vector<8x8xf32>
    %379 = tpu.matmul %375, %378, %cst_128 {dimension_numbers = #tpu.dot_dimension_numbers<[1], [0], [0], [1], [0, 0, 1, 1], [], []>} : vector<8x8xf32>, vector<8x8xf32>, vector<8x8xf32> -> vector<8x8xf32>
    %cst_129 = arith.constant 0.353553385 : f32
    %380 = vector.broadcast %cst_129 : f32 to vector<8x8xf32>
    %381 = arith.mulf %379, %380 : vector<8x8xf32>
    %382 = arith.addf %381, %307 : vector<8x8xf32>
    %cst_130 = arith.constant dense<0xFF800000> : vector<8xf32>
    %383 = vector.multi_reduction <maximumf>, %382, %cst_130 [1] : vector<8x8xf32> to vector<8xf32>
    %384 = vector.shape_cast %383 : vector<8xf32> to vector<8x1xf32>
    %385 = vector.broadcast %384 : vector<8x1xf32> to vector<8x8xf32>
    %386 = arith.subf %382, %385 : vector<8x8xf32>
    %387 = math.exp %386 : vector<8x8xf32>
    %cst_131 = arith.constant dense<0.000000e+00> : vector<8xf32>
    %388 = vector.multi_reduction <add>, %387, %cst_131 [1] : vector<8x8xf32> to vector<8xf32>
    %389 = vector.shape_cast %388 : vector<8xf32> to vector<8x1xf32>
    %390 = tpu.reciprocal %389 {approx = true} : vector<8x1xf32> -> vector<8x1xf32>
    %391 = vector.broadcast %390 : vector<8x1xf32> to vector<8x8xf32>
    %392 = arith.mulf %387, %391 : vector<8x8xf32>
    %cst_132 = arith.constant dense<0.000000e+00> : vector<8x8xf32>
    %393 = tpu.matmul %392, %377, %cst_132 {dimension_numbers = #tpu.dot_dimension_numbers<[1], [0], [0], [1], [0, 0, 1, 1], [], []>} : vector<8x8xf32>, vector<8x8xf32>, vector<8x8xf32> -> vector<8x8xf32>
    %394 = vector.extract_strided_slice %306 {offsets = [24, 0], sizes = [8, 32], strides = [1, 1]} : vector<32x32xf32> to vector<8x32xf32>
    %cst_133 = arith.constant dense<0.000000e+00> : vector<8x32xf32>
    %395 = tpu.matmul %393, %394, %cst_133 {dimension_numbers = #tpu.dot_dimension_numbers<[1], [0], [0], [1], [0, 0, 1, 1], [], []>} : vector<8x8xf32>, vector<8x32xf32>, vector<8x32xf32> -> vector<8x32xf32>
    %396 = arith.addf %374, %395 : vector<8x32xf32>
    %397 = vector.extract_strided_slice %0 {offsets = [8, 0], sizes = [8, 8], strides = [1, 1]} : vector<16x8xf32> to vector<8x8xf32>
    %cst_134 = arith.constant 0.000000e+00 : f32
    %398 = vector.broadcast %cst_134 : f32 to vector<8x32xf32>
    %399 = vector.extract_strided_slice %303 {offsets = [8, 0], sizes = [8, 8], strides = [1, 1]} : vector<16x32xf32> to vector<8x8xf32>
    %400 = vector.extract_strided_slice %304 {offsets = [8, 0], sizes = [8, 8], strides = [1, 1]} : vector<16x32xf32> to vector<8x8xf32>
    %401 = vector.extract_strided_slice %305 {offsets = [8, 0], sizes = [8, 8], strides = [1, 1]} : vector<16x32xf32> to vector<8x8xf32>
    %402 = tpu.transpose %400, [1, 0] : vector<8x8xf32> -> vector<8x8xf32>
    %cst_135 = arith.constant dense<0.000000e+00> : vector<8x8xf32>
    %403 = tpu.matmul %399, %402, %cst_135 {dimension_numbers = #tpu.dot_dimension_numbers<[1], [0], [0], [1], [0, 0, 1, 1], [], []>} : vector<8x8xf32>, vector<8x8xf32>, vector<8x8xf32> -> vector<8x8xf32>
    %cst_136 = arith.constant 0.353553385 : f32
    %404 = vector.broadcast %cst_136 : f32 to vector<8x8xf32>
    %405 = arith.mulf %403, %404 : vector<8x8xf32>
    %406 = arith.addf %405, %397 : vector<8x8xf32>
    %cst_137 = arith.constant dense<0xFF800000> : vector<8xf32>
    %407 = vector.multi_reduction <maximumf>, %406, %cst_137 [1] : vector<8x8xf32> to vector<8xf32>
    %408 = vector.shape_cast %407 : vector<8xf32> to vector<8x1xf32>
    %409 = vector.broadcast %408 : vector<8x1xf32> to vector<8x8xf32>
    %410 = arith.subf %406, %409 : vector<8x8xf32>
    %411 = math.exp %410 : vector<8x8xf32>
    %cst_138 = arith.constant dense<0.000000e+00> : vector<8xf32>
    %412 = vector.multi_reduction <add>, %411, %cst_138 [1] : vector<8x8xf32> to vector<8xf32>
    %413 = vector.shape_cast %412 : vector<8xf32> to vector<8x1xf32>
    %414 = tpu.reciprocal %413 {approx = true} : vector<8x1xf32> -> vector<8x1xf32>
    %415 = vector.broadcast %414 : vector<8x1xf32> to vector<8x8xf32>
    %416 = arith.mulf %411, %415 : vector<8x8xf32>
    %cst_139 = arith.constant dense<0.000000e+00> : vector<8x8xf32>
    %417 = tpu.matmul %416, %401, %cst_139 {dimension_numbers = #tpu.dot_dimension_numbers<[1], [0], [0], [1], [0, 0, 1, 1], [], []>} : vector<8x8xf32>, vector<8x8xf32>, vector<8x8xf32> -> vector<8x8xf32>
    %418 = vector.extract_strided_slice %306 {offsets = [0, 0], sizes = [8, 32], strides = [1, 1]} : vector<32x32xf32> to vector<8x32xf32>
    %cst_140 = arith.constant dense<0.000000e+00> : vector<8x32xf32>
    %419 = tpu.matmul %417, %418, %cst_140 {dimension_numbers = #tpu.dot_dimension_numbers<[1], [0], [0], [1], [0, 0, 1, 1], [], []>} : vector<8x8xf32>, vector<8x32xf32>, vector<8x32xf32> -> vector<8x32xf32>
    %420 = arith.addf %398, %419 : vector<8x32xf32>
    %421 = vector.extract_strided_slice %303 {offsets = [8, 8], sizes = [8, 8], strides = [1, 1]} : vector<16x32xf32> to vector<8x8xf32>
    %422 = vector.extract_strided_slice %304 {offsets = [8, 8], sizes = [8, 8], strides = [1, 1]} : vector<16x32xf32> to vector<8x8xf32>
    %423 = vector.extract_strided_slice %305 {offsets = [8, 8], sizes = [8, 8], strides = [1, 1]} : vector<16x32xf32> to vector<8x8xf32>
    %424 = tpu.transpose %422, [1, 0] : vector<8x8xf32> -> vector<8x8xf32>
    %cst_141 = arith.constant dense<0.000000e+00> : vector<8x8xf32>
    %425 = tpu.matmul %421, %424, %cst_141 {dimension_numbers = #tpu.dot_dimension_numbers<[1], [0], [0], [1], [0, 0, 1, 1], [], []>} : vector<8x8xf32>, vector<8x8xf32>, vector<8x8xf32> -> vector<8x8xf32>
    %cst_142 = arith.constant 0.353553385 : f32
    %426 = vector.broadcast %cst_142 : f32 to vector<8x8xf32>
    %427 = arith.mulf %425, %426 : vector<8x8xf32>
    %428 = arith.addf %427, %397 : vector<8x8xf32>
    %cst_143 = arith.constant dense<0xFF800000> : vector<8xf32>
    %429 = vector.multi_reduction <maximumf>, %428, %cst_143 [1] : vector<8x8xf32> to vector<8xf32>
    %430 = vector.shape_cast %429 : vector<8xf32> to vector<8x1xf32>
    %431 = vector.broadcast %430 : vector<8x1xf32> to vector<8x8xf32>
    %432 = arith.subf %428, %431 : vector<8x8xf32>
    %433 = math.exp %432 : vector<8x8xf32>
    %cst_144 = arith.constant dense<0.000000e+00> : vector<8xf32>
    %434 = vector.multi_reduction <add>, %433, %cst_144 [1] : vector<8x8xf32> to vector<8xf32>
    %435 = vector.shape_cast %434 : vector<8xf32> to vector<8x1xf32>
    %436 = tpu.reciprocal %435 {approx = true} : vector<8x1xf32> -> vector<8x1xf32>
    %437 = vector.broadcast %436 : vector<8x1xf32> to vector<8x8xf32>
    %438 = arith.mulf %433, %437 : vector<8x8xf32>
    %cst_145 = arith.constant dense<0.000000e+00> : vector<8x8xf32>
    %439 = tpu.matmul %438, %423, %cst_145 {dimension_numbers = #tpu.dot_dimension_numbers<[1], [0], [0], [1], [0, 0, 1, 1], [], []>} : vector<8x8xf32>, vector<8x8xf32>, vector<8x8xf32> -> vector<8x8xf32>
    %440 = vector.extract_strided_slice %306 {offsets = [8, 0], sizes = [8, 32], strides = [1, 1]} : vector<32x32xf32> to vector<8x32xf32>
    %cst_146 = arith.constant dense<0.000000e+00> : vector<8x32xf32>
    %441 = tpu.matmul %439, %440, %cst_146 {dimension_numbers = #tpu.dot_dimension_numbers<[1], [0], [0], [1], [0, 0, 1, 1], [], []>} : vector<8x8xf32>, vector<8x32xf32>, vector<8x32xf32> -> vector<8x32xf32>
    %442 = arith.addf %420, %441 : vector<8x32xf32>
    %443 = vector.extract_strided_slice %303 {offsets = [8, 16], sizes = [8, 8], strides = [1, 1]} : vector<16x32xf32> to vector<8x8xf32>
    %444 = vector.extract_strided_slice %304 {offsets = [8, 16], sizes = [8, 8], strides = [1, 1]} : vector<16x32xf32> to vector<8x8xf32>
    %445 = vector.extract_strided_slice %305 {offsets = [8, 16], sizes = [8, 8], strides = [1, 1]} : vector<16x32xf32> to vector<8x8xf32>
    %446 = tpu.transpose %444, [1, 0] : vector<8x8xf32> -> vector<8x8xf32>
    %cst_147 = arith.constant dense<0.000000e+00> : vector<8x8xf32>
    %447 = tpu.matmul %443, %446, %cst_147 {dimension_numbers = #tpu.dot_dimension_numbers<[1], [0], [0], [1], [0, 0, 1, 1], [], []>} : vector<8x8xf32>, vector<8x8xf32>, vector<8x8xf32> -> vector<8x8xf32>
    %cst_148 = arith.constant 0.353553385 : f32
    %448 = vector.broadcast %cst_148 : f32 to vector<8x8xf32>
    %449 = arith.mulf %447, %448 : vector<8x8xf32>
    %450 = arith.addf %449, %397 : vector<8x8xf32>
    %cst_149 = arith.constant dense<0xFF800000> : vector<8xf32>
    %451 = vector.multi_reduction <maximumf>, %450, %cst_149 [1] : vector<8x8xf32> to vector<8xf32>
    %452 = vector.shape_cast %451 : vector<8xf32> to vector<8x1xf32>
    %453 = vector.broadcast %452 : vector<8x1xf32> to vector<8x8xf32>
    %454 = arith.subf %450, %453 : vector<8x8xf32>
    %455 = math.exp %454 : vector<8x8xf32>
    %cst_150 = arith.constant dense<0.000000e+00> : vector<8xf32>
    %456 = vector.multi_reduction <add>, %455, %cst_150 [1] : vector<8x8xf32> to vector<8xf32>
    %457 = vector.shape_cast %456 : vector<8xf32> to vector<8x1xf32>
    %458 = tpu.reciprocal %457 {approx = true} : vector<8x1xf32> -> vector<8x1xf32>
    %459 = vector.broadcast %458 : vector<8x1xf32> to vector<8x8xf32>
    %460 = arith.mulf %455, %459 : vector<8x8xf32>
    %cst_151 = arith.constant dense<0.000000e+00> : vector<8x8xf32>
    %461 = tpu.matmul %460, %445, %cst_151 {dimension_numbers = #tpu.dot_dimension_numbers<[1], [0], [0], [1], [0, 0, 1, 1], [], []>} : vector<8x8xf32>, vector<8x8xf32>, vector<8x8xf32> -> vector<8x8xf32>
    %462 = vector.extract_strided_slice %306 {offsets = [16, 0], sizes = [8, 32], strides = [1, 1]} : vector<32x32xf32> to vector<8x32xf32>
    %cst_152 = arith.constant dense<0.000000e+00> : vector<8x32xf32>
    %463 = tpu.matmul %461, %462, %cst_152 {dimension_numbers = #tpu.dot_dimension_numbers<[1], [0], [0], [1], [0, 0, 1, 1], [], []>} : vector<8x8xf32>, vector<8x32xf32>, vector<8x32xf32> -> vector<8x32xf32>
    %464 = arith.addf %442, %463 : vector<8x32xf32>
    %465 = vector.extract_strided_slice %303 {offsets = [8, 24], sizes = [8, 8], strides = [1, 1]} : vector<16x32xf32> to vector<8x8xf32>
    %466 = vector.extract_strided_slice %304 {offsets = [8, 24], sizes = [8, 8], strides = [1, 1]} : vector<16x32xf32> to vector<8x8xf32>
    %467 = vector.extract_strided_slice %305 {offsets = [8, 24], sizes = [8, 8], strides = [1, 1]} : vector<16x32xf32> to vector<8x8xf32>
    %468 = tpu.transpose %466, [1, 0] : vector<8x8xf32> -> vector<8x8xf32>
    %cst_153 = arith.constant dense<0.000000e+00> : vector<8x8xf32>
    %469 = tpu.matmul %465, %468, %cst_153 {dimension_numbers = #tpu.dot_dimension_numbers<[1], [0], [0], [1], [0, 0, 1, 1], [], []>} : vector<8x8xf32>, vector<8x8xf32>, vector<8x8xf32> -> vector<8x8xf32>
    %cst_154 = arith.constant 0.353553385 : f32
    %470 = vector.broadcast %cst_154 : f32 to vector<8x8xf32>
    %471 = arith.mulf %469, %470 : vector<8x8xf32>
    %472 = arith.addf %471, %397 : vector<8x8xf32>
    %cst_155 = arith.constant dense<0xFF800000> : vector<8xf32>
    %473 = vector.multi_reduction <maximumf>, %472, %cst_155 [1] : vector<8x8xf32> to vector<8xf32>
    %474 = vector.shape_cast %473 : vector<8xf32> to vector<8x1xf32>
    %475 = vector.broadcast %474 : vector<8x1xf32> to vector<8x8xf32>
    %476 = arith.subf %472, %475 : vector<8x8xf32>
    %477 = math.exp %476 : vector<8x8xf32>
    %cst_156 = arith.constant dense<0.000000e+00> : vector<8xf32>
    %478 = vector.multi_reduction <add>, %477, %cst_156 [1] : vector<8x8xf32> to vector<8xf32>
    %479 = vector.shape_cast %478 : vector<8xf32> to vector<8x1xf32>
    %480 = tpu.reciprocal %479 {approx = true} : vector<8x1xf32> -> vector<8x1xf32>
    %481 = vector.broadcast %480 : vector<8x1xf32> to vector<8x8xf32>
    %482 = arith.mulf %477, %481 : vector<8x8xf32>
    %cst_157 = arith.constant dense<0.000000e+00> : vector<8x8xf32>
    %483 = tpu.matmul %482, %467, %cst_157 {dimension_numbers = #tpu.dot_dimension_numbers<[1], [0], [0], [1], [0, 0, 1, 1], [], []>} : vector<8x8xf32>, vector<8x8xf32>, vector<8x8xf32> -> vector<8x8xf32>
    %484 = vector.extract_strided_slice %306 {offsets = [24, 0], sizes = [8, 32], strides = [1, 1]} : vector<32x32xf32> to vector<8x32xf32>
    %cst_158 = arith.constant dense<0.000000e+00> : vector<8x32xf32>
    %485 = tpu.matmul %483, %484, %cst_158 {dimension_numbers = #tpu.dot_dimension_numbers<[1], [0], [0], [1], [0, 0, 1, 1], [], []>} : vector<8x8xf32>, vector<8x32xf32>, vector<8x32xf32> -> vector<8x32xf32>
    %486 = arith.addf %464, %485 : vector<8x32xf32>
    %487 = tpu.concatenate %396, %486 in 0 : vector<8x32xf32>, vector<8x32xf32> -> vector<16x32xf32>
    %c0_159 = arith.constant 0 : index
    %c0_160 = arith.constant 0 : index
    %488 = vector.load %arg19[%c0_159, %c0_160] : memref<1x32xf32, #tpu.memory_space<vmem>>, vector<1x32xf32>
    %489 = vector.broadcast %488 : vector<1x32xf32> to vector<16x32xf32>
    %490 = arith.addf %487, %489 : vector<16x32xf32>
    %491 = arith.addf %490, %297 : vector<16x32xf32>
    %c0_161 = arith.constant 0 : index
    %c0_162 = arith.constant 0 : index
    %492 = vector.load %arg20[%c0_161, %c0_162] : memref<1x32xf32, #tpu.memory_space<vmem>>, vector<1x32xf32>
    %c0_163 = arith.constant 0 : index
    %c0_164 = arith.constant 0 : index
    %493 = vector.load %arg21[%c0_163, %c0_164] : memref<1x32xf32, #tpu.memory_space<vmem>>, vector<1x32xf32>
    %cst_165 = arith.constant dense<0.000000e+00> : vector<16xf32>
    %494 = vector.multi_reduction <add>, %491, %cst_165 [1] : vector<16x32xf32> to vector<16xf32>
    %495 = vector.shape_cast %494 : vector<16xf32> to vector<16x1xf32>
    %cst_166 = arith.constant 3.200000e+01 : f32
    %496 = vector.broadcast %cst_166 : f32 to vector<16x1xf32>
    %497 = arith.divf %495, %496 : vector<16x1xf32>
    %498 = vector.broadcast %497 : vector<16x1xf32> to vector<16x32xf32>
    %499 = arith.subf %491, %498 : vector<16x32xf32>
    %500 = vector.broadcast %497 : vector<16x1xf32> to vector<16x32xf32>
    %501 = arith.subf %491, %500 : vector<16x32xf32>
    %502 = arith.mulf %499, %501 : vector<16x32xf32>
    %cst_167 = arith.constant dense<0.000000e+00> : vector<16xf32>
    %503 = vector.multi_reduction <add>, %502, %cst_167 [1] : vector<16x32xf32> to vector<16xf32>
    %504 = vector.shape_cast %503 : vector<16xf32> to vector<16x1xf32>
    %cst_168 = arith.constant 3.200000e+01 : f32
    %505 = vector.broadcast %cst_168 : f32 to vector<16x1xf32>
    %506 = arith.divf %504, %505 : vector<16x1xf32>
    %507 = vector.broadcast %497 : vector<16x1xf32> to vector<16x32xf32>
    %508 = arith.subf %491, %507 : vector<16x32xf32>
    %cst_169 = arith.constant 9.99999996E-13 : f32
    %509 = vector.broadcast %cst_169 : f32 to vector<16x1xf32>
    %510 = arith.addf %506, %509 : vector<16x1xf32>
    %511 = math.rsqrt %510 : vector<16x1xf32>
    %512 = vector.broadcast %511 : vector<16x1xf32> to vector<16x32xf32>
    %513 = arith.mulf %508, %512 : vector<16x32xf32>
    %514 = vector.broadcast %492 : vector<1x32xf32> to vector<16x32xf32>
    %515 = arith.mulf %513, %514 : vector<16x32xf32>
    %516 = vector.broadcast %493 : vector<1x32xf32> to vector<16x32xf32>
    %517 = arith.addf %515, %516 : vector<16x32xf32>
    %c0_170 = arith.constant 0 : index
    %c0_171 = arith.constant 0 : index
    %518 = vector.load %arg22[%c0_170, %c0_171] : memref<32x64xf32, #tpu.memory_space<vmem>>, vector<32x64xf32>
    %cst_172 = arith.constant dense<0.000000e+00> : vector<16x64xf32>
    %519 = tpu.matmul %517, %518, %cst_172 {dimension_numbers = #tpu.dot_dimension_numbers<[1], [0], [0], [1], [0, 0, 1, 1], [], []>} : vector<16x32xf32>, vector<32x64xf32>, vector<16x64xf32> -> vector<16x64xf32>
    %c0_173 = arith.constant 0 : index
    %c0_174 = arith.constant 0 : index
    %520 = vector.load %arg23[%c0_173, %c0_174] : memref<1x64xf32, #tpu.memory_space<vmem>>, vector<1x64xf32>
    %521 = vector.broadcast %520 : vector<1x64xf32> to vector<16x64xf32>
    %522 = arith.addf %519, %521 : vector<16x64xf32>
    %cst_175 = arith.constant 5.000000e-01 : f32
    %523 = vector.broadcast %cst_175 : f32 to vector<16x64xf32>
    %524 = arith.mulf %523, %522 : vector<16x64xf32>
    %cst_176 = arith.constant 4.471500e-02 : f32
    %525 = vector.broadcast %cst_176 : f32 to vector<16x64xf32>
    %526 = arith.mulf %525, %522 : vector<16x64xf32>
    %527 = arith.mulf %526, %522 : vector<16x64xf32>
    %528 = arith.mulf %527, %522 : vector<16x64xf32>
    %529 = arith.addf %522, %528 : vector<16x64xf32>
    %cst_177 = arith.constant 0.797884583 : f32
    %530 = vector.broadcast %cst_177 : f32 to vector<16x64xf32>
    %531 = arith.mulf %530, %529 : vector<16x64xf32>
    %532 = math.tanh %531 : vector<16x64xf32>
    %cst_178 = arith.constant 1.000000e+00 : f32
    %533 = vector.broadcast %cst_178 : f32 to vector<16x64xf32>
    %534 = arith.addf %533, %532 : vector<16x64xf32>
    %535 = arith.mulf %524, %534 : vector<16x64xf32>
    %c0_179 = arith.constant 0 : index
    %c0_180 = arith.constant 0 : index
    %536 = vector.load %arg24[%c0_179, %c0_180] : memref<64x32xf32, #tpu.memory_space<vmem>>, vector<64x32xf32>
    %cst_181 = arith.constant dense<0.000000e+00> : vector<16x32xf32>
    %537 = tpu.matmul %535, %536, %cst_181 {dimension_numbers = #tpu.dot_dimension_numbers<[1], [0], [0], [1], [0, 0, 1, 1], [], []>} : vector<16x64xf32>, vector<64x32xf32>, vector<16x32xf32> -> vector<16x32xf32>
    %c0_182 = arith.constant 0 : index
    %c0_183 = arith.constant 0 : index
    %538 = vector.load %arg25[%c0_182, %c0_183] : memref<1x32xf32, #tpu.memory_space<vmem>>, vector<1x32xf32>
    %539 = vector.broadcast %538 : vector<1x32xf32> to vector<16x32xf32>
    %540 = arith.addf %537, %539 : vector<16x32xf32>
    %541 = arith.addf %540, %517 : vector<16x32xf32>
    %c0_184 = arith.constant 0 : index
    %c0_185 = arith.constant 0 : index
    %542 = vector.load %arg26[%c0_184, %c0_185] : memref<1x32xf32, #tpu.memory_space<vmem>>, vector<1x32xf32>
    %c0_186 = arith.constant 0 : index
    %c0_187 = arith.constant 0 : index
    %543 = vector.load %arg27[%c0_186, %c0_187] : memref<1x32xf32, #tpu.memory_space<vmem>>, vector<1x32xf32>
    %cst_188 = arith.constant dense<0.000000e+00> : vector<16xf32>
    %544 = vector.multi_reduction <add>, %541, %cst_188 [1] : vector<16x32xf32> to vector<16xf32>
    %545 = vector.shape_cast %544 : vector<16xf32> to vector<16x1xf32>
    %cst_189 = arith.constant 3.200000e+01 : f32
    %546 = vector.broadcast %cst_189 : f32 to vector<16x1xf32>
    %547 = arith.divf %545, %546 : vector<16x1xf32>
    %548 = vector.broadcast %547 : vector<16x1xf32> to vector<16x32xf32>
    %549 = arith.subf %541, %548 : vector<16x32xf32>
    %550 = vector.broadcast %547 : vector<16x1xf32> to vector<16x32xf32>
    %551 = arith.subf %541, %550 : vector<16x32xf32>
    %552 = arith.mulf %549, %551 : vector<16x32xf32>
    %cst_190 = arith.constant dense<0.000000e+00> : vector<16xf32>
    %553 = vector.multi_reduction <add>, %552, %cst_190 [1] : vector<16x32xf32> to vector<16xf32>
    %554 = vector.shape_cast %553 : vector<16xf32> to vector<16x1xf32>
    %cst_191 = arith.constant 3.200000e+01 : f32
    %555 = vector.broadcast %cst_191 : f32 to vector<16x1xf32>
    %556 = arith.divf %554, %555 : vector<16x1xf32>
    %557 = vector.broadcast %547 : vector<16x1xf32> to vector<16x32xf32>
    %558 = arith.subf %541, %557 : vector<16x32xf32>
    %cst_192 = arith.constant 9.99999996E-13 : f32
    %559 = vector.broadcast %cst_192 : f32 to vector<16x1xf32>
    %560 = arith.addf %556, %559 : vector<16x1xf32>
    %561 = math.rsqrt %560 : vector<16x1xf32>
    %562 = vector.broadcast %561 : vector<16x1xf32> to vector<16x32xf32>
    %563 = arith.mulf %558, %562 : vector<16x32xf32>
    %564 = vector.broadcast %542 : vector<1x32xf32> to vector<16x32xf32>
    %565 = arith.mulf %563, %564 : vector<16x32xf32>
    %566 = vector.broadcast %543 : vector<1x32xf32> to vector<16x32xf32>
    %567 = arith.addf %565, %566 : vector<16x32xf32>
    %c0_193 = arith.constant 0 : index
    %c0_194 = arith.constant 0 : index
    %568 = vector.load %arg28[%c0_193, %c0_194] : memref<16x32xf32, #tpu.memory_space<vmem>>, vector<16x32xf32>
    tpu.vector_store %arg28[%c0_193, %c0_194], %567 {strides = array<i32>} : memref<16x32xf32, #tpu.memory_space<vmem>>, vector<16x32xf32>,
    return
  }
}

module attributes {stable_mosaic.version = 11 : i64} {
  func.func @lstm_head_kernel(%arg0: memref<8x2x32xf32, #tpu.memory_space<vmem>>, %arg1: memref<8x2x1xf32, #tpu.memory_space<vmem>>, %arg2: memref<32x64xf32, #tpu.memory_space<vmem>>, %arg3: memref<32x64xf32, #tpu.memory_space<vmem>>, %arg4: memref<16x64xf32, #tpu.memory_space<vmem>>, %arg5: memref<16x64xf32, #tpu.memory_space<vmem>>, %arg6: memref<1x64xf32, #tpu.memory_space<vmem>>, %arg7: memref<1x64xf32, #tpu.memory_space<vmem>>, %arg8: memref<32x64xf32, #tpu.memory_space<vmem>>, %arg9: memref<32x64xf32, #tpu.memory_space<vmem>>, %arg10: memref<16x64xf32, #tpu.memory_space<vmem>>, %arg11: memref<16x64xf32, #tpu.memory_space<vmem>>, %arg12: memref<1x64xf32, #tpu.memory_space<vmem>>, %arg13: memref<1x64xf32, #tpu.memory_space<vmem>>, %arg14: memref<32x8xf32, #tpu.memory_space<vmem>>, %arg15: memref<1x8xf32, #tpu.memory_space<vmem>>, %arg16: memref<8x2x8xf32, #tpu.memory_space<vmem>>, %arg17: memref<8x2x16xf32, #tpu.memory_space<vmem>>, %arg18: memref<8x2x16xf32, #tpu.memory_space<vmem>>, %arg19: memref<8x2x16xf32, #tpu.memory_space<vmem>>, %arg20: memref<8x2x16xf32, #tpu.memory_space<vmem>>) attributes {dimension_semantics = [], scalar_prefetch = 0 : i64, scratch_operands = 4 : i64, tpu.core_type = #tpu.core_type<tc>} {
    %cst = arith.constant 0.000000e+00 : f32
    %0 = vector.broadcast %cst : f32 to vector<2x16xf32>
    %cst_0 = arith.constant 0.000000e+00 : f32
    %1 = vector.broadcast %cst_0 : f32 to vector<2x16xf32>
    %cst_1 = arith.constant 0.000000e+00 : f32
    %2 = vector.broadcast %cst_1 : f32 to vector<2x16xf32>
    %cst_2 = arith.constant 0.000000e+00 : f32
    %3 = vector.broadcast %cst_2 : f32 to vector<2x16xf32>
    %c0 = arith.constant 0 : index
    %c0_3 = arith.constant 0 : index
    %c0_4 = arith.constant 0 : index
    %4 = vector.load %arg0[%c0, %c0_3, %c0_4] : memref<8x2x32xf32, #tpu.memory_space<vmem>>, vector<1x2x32xf32>
    %5 = vector.shape_cast %4 : vector<1x2x32xf32> to vector<2x32xf32>
    %c0_5 = arith.constant 0 : index
    %c0_6 = arith.constant 0 : index
    %c0_7 = arith.constant 0 : index
    %6 = vector.load %arg1[%c0_5, %c0_6, %c0_7] : memref<8x2x1xf32, #tpu.memory_space<vmem>>, vector<1x2x1xf32>
    %7 = vector.shape_cast %6 : vector<1x2x1xf32> to vector<2x1xf32>
    %c0_8 = arith.constant 0 : index
    %c0_9 = arith.constant 0 : index
    %8 = vector.load %arg2[%c0_8, %c0_9] : memref<32x64xf32, #tpu.memory_space<vmem>>, vector<32x64xf32>
    %cst_10 = arith.constant dense<0.000000e+00> : vector<2x64xf32>
    %9 = tpu.matmul %5, %8, %cst_10 {dimension_numbers = #tpu.dot_dimension_numbers<[1], [0], [0], [1], [0, 0, 1, 1], [], []>} : vector<2x32xf32>, vector<32x64xf32>, vector<2x64xf32> -> vector<2x64xf32>
    %c0_11 = arith.constant 0 : index
    %c0_12 = arith.constant 0 : index
    %10 = vector.load %arg4[%c0_11, %c0_12] : memref<16x64xf32, #tpu.memory_space<vmem>>, vector<16x64xf32>
    %cst_13 = arith.constant dense<0.000000e+00> : vector<2x64xf32>
    %11 = tpu.matmul %0, %10, %cst_13 {dimension_numbers = #tpu.dot_dimension_numbers<[1], [0], [0], [1], [0, 0, 1, 1], [], []>} : vector<2x16xf32>, vector<16x64xf32>, vector<2x64xf32> -> vector<2x64xf32>
    %12 = arith.addf %9, %11 : vector<2x64xf32>
    %c0_14 = arith.constant 0 : index
    %c0_15 = arith.constant 0 : index
    %13 = vector.load %arg6[%c0_14, %c0_15] : memref<1x64xf32, #tpu.memory_space<vmem>>, vector<1x64xf32>
    %14 = vector.broadcast %13 : vector<1x64xf32> to vector<2x64xf32>
    %15 = arith.addf %12, %14 : vector<2x64xf32>
    %16 = arith.negf %15 : vector<2x64xf32>
    %17 = math.exp %16 : vector<2x64xf32>
    %cst_16 = arith.constant 1.000000e+00 : f32
    %18 = vector.broadcast %cst_16 : f32 to vector<2x64xf32>
    %19 = arith.addf %18, %17 : vector<2x64xf32>
    %20 = arith.divf %18, %19 : vector<2x64xf32>
    %21 = math.tanh %15 : vector<2x64xf32>
    %22 = vector.extract_strided_slice %20 {offsets = [0, 16], sizes = [2, 16], strides = [1, 1]} : vector<2x64xf32> to vector<2x16xf32>
    %23 = arith.mulf %22, %1 : vector<2x16xf32>
    %24 = vector.extract_strided_slice %20 {offsets = [0, 0], sizes = [2, 16], strides = [1, 1]} : vector<2x64xf32> to vector<2x16xf32>
    %25 = vector.extract_strided_slice %21 {offsets = [0, 32], sizes = [2, 16], strides = [1, 1]} : vector<2x64xf32> to vector<2x16xf32>
    %26 = arith.mulf %24, %25 : vector<2x16xf32>
    %27 = arith.addf %23, %26 : vector<2x16xf32>
    %28 = vector.extract_strided_slice %20 {offsets = [0, 48], sizes = [2, 16], strides = [1, 1]} : vector<2x64xf32> to vector<2x16xf32>
    %29 = math.tanh %27 : vector<2x16xf32>
    %30 = arith.mulf %28, %29 : vector<2x16xf32>
    %cst_17 = arith.constant 0.000000e+00 : f32
    %31 = vector.broadcast %cst_17 : f32 to vector<2x1xf32>
    %32 = arith.cmpf ogt, %7, %31 : vector<2x1xf32>
    %cst_18 = arith.constant 0.000000e+00 : f32
    %33 = vector.shape_cast %32 : vector<2x1xi1> to vector<2x1xi1>
    %34 = vector.broadcast %33 : vector<2x1xi1> to vector<2x16xi1>
    %35 = vector.broadcast %cst_18 : f32 to vector<2x16xf32>
    %36 = arith.select %34, %30, %35 : vector<2x16xi1>, vector<2x16xf32>
    %37 = vector.shape_cast %32 : vector<2x1xi1> to vector<2x1xi1>
    %38 = vector.broadcast %37 : vector<2x1xi1> to vector<2x16xi1>
    %39 = arith.select %38, %30, %0 : vector<2x16xi1>, vector<2x16xf32>
    %40 = vector.shape_cast %32 : vector<2x1xi1> to vector<2x1xi1>
    %41 = vector.broadcast %40 : vector<2x1xi1> to vector<2x16xi1>
    %42 = arith.select %41, %27, %1 : vector<2x16xi1>, vector<2x16xf32>
    %c0_19 = arith.constant 0 : index
    %c0_20 = arith.constant 0 : index
    %c0_21 = arith.constant 0 : index
    %43 = vector.load %arg17[%c0_19, %c0_20, %c0_21] : memref<8x2x16xf32, #tpu.memory_space<vmem>>, vector<1x2x16xf32>
    %44 = vector.shape_cast %43 : vector<1x2x16xf32> to vector<2x16xf32>
    %45 = vector.shape_cast %36 : vector<2x16xf32> to vector<1x2x16xf32>
    tpu.vector_store %arg17[%c0_19, %c0_20, %c0_21], %45 {strides = array<i32>} : memref<8x2x16xf32, #tpu.memory_space<vmem>>, vector<1x2x16xf32>,
    %c7 = arith.constant 7 : index
    %c0_22 = arith.constant 0 : index
    %c0_23 = arith.constant 0 : index
    %46 = vector.load %arg0[%c7, %c0_22, %c0_23] : memref<8x2x32xf32, #tpu.memory_space<vmem>>, vector<1x2x32xf32>
    %47 = vector.shape_cast %46 : vector<1x2x32xf32> to vector<2x32xf32>
    %c7_24 = arith.constant 7 : index
    %c0_25 = arith.constant 0 : index
    %c0_26 = arith.constant 0 : index
    %48 = vector.load %arg1[%c7_24, %c0_25, %c0_26] : memref<8x2x1xf32, #tpu.memory_space<vmem>>, vector<1x2x1xf32>
    %49 = vector.shape_cast %48 : vector<1x2x1xf32> to vector<2x1xf32>
    %c0_27 = arith.constant 0 : index
    %c0_28 = arith.constant 0 : index
    %50 = vector.load %arg3[%c0_27, %c0_28] : memref<32x64xf32, #tpu.memory_space<vmem>>, vector<32x64xf32>
    %cst_29 = arith.constant dense<0.000000e+00> : vector<2x64xf32>
    %51 = tpu.matmul %47, %50, %cst_29 {dimension_numbers = #tpu.dot_dimension_numbers<[1], [0], [0], [1], [0, 0, 1, 1], [], []>} : vector<2x32xf32>, vector<32x64xf32>, vector<2x64xf32> -> vector<2x64xf32>
    %c0_30 = arith.constant 0 : index
    %c0_31 = arith.constant 0 : index
    %52 = vector.load %arg5[%c0_30, %c0_31] : memref<16x64xf32, #tpu.memory_space<vmem>>, vector<16x64xf32>
    %cst_32 = arith.constant dense<0.000000e+00> : vector<2x64xf32>
    %53 = tpu.matmul %2, %52, %cst_32 {dimension_numbers = #tpu.dot_dimension_numbers<[1], [0], [0], [1], [0, 0, 1, 1], [], []>} : vector<2x16xf32>, vector<16x64xf32>, vector<2x64xf32> -> vector<2x64xf32>
    %54 = arith.addf %51, %53 : vector<2x64xf32>
    %c0_33 = arith.constant 0 : index
    %c0_34 = arith.constant 0 : index
    %55 = vector.load %arg7[%c0_33, %c0_34] : memref<1x64xf32, #tpu.memory_space<vmem>>, vector<1x64xf32>
    %56 = vector.broadcast %55 : vector<1x64xf32> to vector<2x64xf32>
    %57 = arith.addf %54, %56 : vector<2x64xf32>
    %58 = arith.negf %57 : vector<2x64xf32>
    %59 = math.exp %58 : vector<2x64xf32>
    %cst_35 = arith.constant 1.000000e+00 : f32
    %60 = vector.broadcast %cst_35 : f32 to vector<2x64xf32>
    %61 = arith.addf %60, %59 : vector<2x64xf32>
    %62 = arith.divf %60, %61 : vector<2x64xf32>
    %63 = math.tanh %57 : vector<2x64xf32>
    %64 = vector.extract_strided_slice %62 {offsets = [0, 16], sizes = [2, 16], strides = [1, 1]} : vector<2x64xf32> to vector<2x16xf32>
    %65 = arith.mulf %64, %3 : vector<2x16xf32>
    %66 = vector.extract_strided_slice %62 {offsets = [0, 0], sizes = [2, 16], strides = [1, 1]} : vector<2x64xf32> to vector<2x16xf32>
    %67 = vector.extract_strided_slice %63 {offsets = [0, 32], sizes = [2, 16], strides = [1, 1]} : vector<2x64xf32> to vector<2x16xf32>
    %68 = arith.mulf %66, %67 : vector<2x16xf32>
    %69 = arith.addf %65, %68 : vector<2x16xf32>
    %70 = vector.extract_strided_slice %62 {offsets = [0, 48], sizes = [2, 16], strides = [1, 1]} : vector<2x64xf32> to vector<2x16xf32>
    %71 = math.tanh %69 : vector<2x16xf32>
    %72 = arith.mulf %70, %71 : vector<2x16xf32>
    %cst_36 = arith.constant 0.000000e+00 : f32
    %73 = vector.broadcast %cst_36 : f32 to vector<2x1xf32>
    %74 = arith.cmpf ogt, %49, %73 : vector<2x1xf32>
    %cst_37 = arith.constant 0.000000e+00 : f32
    %75 = vector.shape_cast %74 : vector<2x1xi1> to vector<2x1xi1>
    %76 = vector.broadcast %75 : vector<2x1xi1> to vector<2x16xi1>
    %77 = vector.broadcast %cst_37 : f32 to vector<2x16xf32>
    %78 = arith.select %76, %72, %77 : vector<2x16xi1>, vector<2x16xf32>
    %79 = vector.shape_cast %74 : vector<2x1xi1> to vector<2x1xi1>
    %80 = vector.broadcast %79 : vector<2x1xi1> to vector<2x16xi1>
    %81 = arith.select %80, %72, %2 : vector<2x16xi1>, vector<2x16xf32>
    %82 = vector.shape_cast %74 : vector<2x1xi1> to vector<2x1xi1>
    %83 = vector.broadcast %82 : vector<2x1xi1> to vector<2x16xi1>
    %84 = arith.select %83, %69, %3 : vector<2x16xi1>, vector<2x16xf32>
    %c7_38 = arith.constant 7 : index
    %c0_39 = arith.constant 0 : index
    %c0_40 = arith.constant 0 : index
    %85 = vector.load %arg18[%c7_38, %c0_39, %c0_40] : memref<8x2x16xf32, #tpu.memory_space<vmem>>, vector<1x2x16xf32>
    %86 = vector.shape_cast %85 : vector<1x2x16xf32> to vector<2x16xf32>
    %87 = vector.shape_cast %78 : vector<2x16xf32> to vector<1x2x16xf32>
    tpu.vector_store %arg18[%c7_38, %c0_39, %c0_40], %87 {strides = array<i32>} : memref<8x2x16xf32, #tpu.memory_space<vmem>>, vector<1x2x16xf32>,
    %c1 = arith.constant 1 : index
    %c0_41 = arith.constant 0 : index
    %c0_42 = arith.constant 0 : index
    %88 = vector.load %arg0[%c1, %c0_41, %c0_42] : memref<8x2x32xf32, #tpu.memory_space<vmem>>, vector<1x2x32xf32>
    %89 = vector.shape_cast %88 : vector<1x2x32xf32> to vector<2x32xf32>
    %c1_43 = arith.constant 1 : index
    %c0_44 = arith.constant 0 : index
    %c0_45 = arith.constant 0 : index
    %90 = vector.load %arg1[%c1_43, %c0_44, %c0_45] : memref<8x2x1xf32, #tpu.memory_space<vmem>>, vector<1x2x1xf32>
    %91 = vector.shape_cast %90 : vector<1x2x1xf32> to vector<2x1xf32>
    %c0_46 = arith.constant 0 : index
    %c0_47 = arith.constant 0 : index
    %92 = vector.load %arg2[%c0_46, %c0_47] : memref<32x64xf32, #tpu.memory_space<vmem>>, vector<32x64xf32>
    %cst_48 = arith.constant dense<0.000000e+00> : vector<2x64xf32>
    %93 = tpu.matmul %89, %92, %cst_48 {dimension_numbers = #tpu.dot_dimension_numbers<[1], [0], [0], [1], [0, 0, 1, 1], [], []>} : vector<2x32xf32>, vector<32x64xf32>, vector<2x64xf32> -> vector<2x64xf32>
    %c0_49 = arith.constant 0 : index
    %c0_50 = arith.constant 0 : index
    %94 = vector.load %arg4[%c0_49, %c0_50] : memref<16x64xf32, #tpu.memory_space<vmem>>, vector<16x64xf32>
    %cst_51 = arith.constant dense<0.000000e+00> : vector<2x64xf32>
    %95 = tpu.matmul %39, %94, %cst_51 {dimension_numbers = #tpu.dot_dimension_numbers<[1], [0], [0], [1], [0, 0, 1, 1], [], []>} : vector<2x16xf32>, vector<16x64xf32>, vector<2x64xf32> -> vector<2x64xf32>
    %96 = arith.addf %93, %95 : vector<2x64xf32>
    %c0_52 = arith.constant 0 : index
    %c0_53 = arith.constant 0 : index
    %97 = vector.load %arg6[%c0_52, %c0_53] : memref<1x64xf32, #tpu.memory_space<vmem>>, vector<1x64xf32>
    %98 = vector.broadcast %97 : vector<1x64xf32> to vector<2x64xf32>
    %99 = arith.addf %96, %98 : vector<2x64xf32>
    %100 = arith.negf %99 : vector<2x64xf32>
    %101 = math.exp %100 : vector<2x64xf32>
    %cst_54 = arith.constant 1.000000e+00 : f32
    %102 = vector.broadcast %cst_54 : f32 to vector<2x64xf32>
    %103 = arith.addf %102, %101 : vector<2x64xf32>
    %104 = arith.divf %102, %103 : vector<2x64xf32>
    %105 = math.tanh %99 : vector<2x64xf32>
    %106 = vector.extract_strided_slice %104 {offsets = [0, 16], sizes = [2, 16], strides = [1, 1]} : vector<2x64xf32> to vector<2x16xf32>
    %107 = arith.mulf %106, %42 : vector<2x16xf32>
    %108 = vector.extract_strided_slice %104 {offsets = [0, 0], sizes = [2, 16], strides = [1, 1]} : vector<2x64xf32> to vector<2x16xf32>
    %109 = vector.extract_strided_slice %105 {offsets = [0, 32], sizes = [2, 16], strides = [1, 1]} : vector<2x64xf32> to vector<2x16xf32>
    %110 = arith.mulf %108, %109 : vector<2x16xf32>
    %111 = arith.addf %107, %110 : vector<2x16xf32>
    %112 = vector.extract_strided_slice %104 {offsets = [0, 48], sizes = [2, 16], strides = [1, 1]} : vector<2x64xf32> to vector<2x16xf32>
    %113 = math.tanh %111 : vector<2x16xf32>
    %114 = arith.mulf %112, %113 : vector<2x16xf32>
    %cst_55 = arith.constant 0.000000e+00 : f32
    %115 = vector.broadcast %cst_55 : f32 to vector<2x1xf32>
    %116 = arith.cmpf ogt, %91, %115 : vector<2x1xf32>
    %cst_56 = arith.constant 0.000000e+00 : f32
    %117 = vector.shape_cast %116 : vector<2x1xi1> to vector<2x1xi1>
    %118 = vector.broadcast %117 : vector<2x1xi1> to vector<2x16xi1>
    %119 = vector.broadcast %cst_56 : f32 to vector<2x16xf32>
    %120 = arith.select %118, %114, %119 : vector<2x16xi1>, vector<2x16xf32>
    %121 = vector.shape_cast %116 : vector<2x1xi1> to vector<2x1xi1>
    %122 = vector.broadcast %121 : vector<2x1xi1> to vector<2x16xi1>
    %123 = arith.select %122, %114, %39 : vector<2x16xi1>, vector<2x16xf32>
    %124 = vector.shape_cast %116 : vector<2x1xi1> to vector<2x1xi1>
    %125 = vector.broadcast %124 : vector<2x1xi1> to vector<2x16xi1>
    %126 = arith.select %125, %111, %42 : vector<2x16xi1>, vector<2x16xf32>
    %c1_57 = arith.constant 1 : index
    %c0_58 = arith.constant 0 : index
    %c0_59 = arith.constant 0 : index
    %127 = vector.load %arg17[%c1_57, %c0_58, %c0_59] : memref<8x2x16xf32, #tpu.memory_space<vmem>>, vector<1x2x16xf32>
    %128 = vector.shape_cast %127 : vector<1x2x16xf32> to vector<2x16xf32>
    %129 = vector.shape_cast %120 : vector<2x16xf32> to vector<1x2x16xf32>
    tpu.vector_store %arg17[%c1_57, %c0_58, %c0_59], %129 {strides = array<i32>} : memref<8x2x16xf32, #tpu.memory_space<vmem>>, vector<1x2x16xf32>,
    %c6 = arith.constant 6 : index
    %c0_60 = arith.constant 0 : index
    %c0_61 = arith.constant 0 : index
    %130 = vector.load %arg0[%c6, %c0_60, %c0_61] : memref<8x2x32xf32, #tpu.memory_space<vmem>>, vector<1x2x32xf32>
    %131 = vector.shape_cast %130 : vector<1x2x32xf32> to vector<2x32xf32>
    %c6_62 = arith.constant 6 : index
    %c0_63 = arith.constant 0 : index
    %c0_64 = arith.constant 0 : index
    %132 = vector.load %arg1[%c6_62, %c0_63, %c0_64] : memref<8x2x1xf32, #tpu.memory_space<vmem>>, vector<1x2x1xf32>
    %133 = vector.shape_cast %132 : vector<1x2x1xf32> to vector<2x1xf32>
    %c0_65 = arith.constant 0 : index
    %c0_66 = arith.constant 0 : index
    %134 = vector.load %arg3[%c0_65, %c0_66] : memref<32x64xf32, #tpu.memory_space<vmem>>, vector<32x64xf32>
    %cst_67 = arith.constant dense<0.000000e+00> : vector<2x64xf32>
    %135 = tpu.matmul %131, %134, %cst_67 {dimension_numbers = #tpu.dot_dimension_numbers<[1], [0], [0], [1], [0, 0, 1, 1], [], []>} : vector<2x32xf32>, vector<32x64xf32>, vector<2x64xf32> -> vector<2x64xf32>
    %c0_68 = arith.constant 0 : index
    %c0_69 = arith.constant 0 : index
    %136 = vector.load %arg5[%c0_68, %c0_69] : memref<16x64xf32, #tpu.memory_space<vmem>>, vector<16x64xf32>
    %cst_70 = arith.constant dense<0.000000e+00> : vector<2x64xf32>
    %137 = tpu.matmul %81, %136, %cst_70 {dimension_numbers = #tpu.dot_dimension_numbers<[1], [0], [0], [1], [0, 0, 1, 1], [], []>} : vector<2x16xf32>, vector<16x64xf32>, vector<2x64xf32> -> vector<2x64xf32>
    %138 = arith.addf %135, %137 : vector<2x64xf32>
    %c0_71 = arith.constant 0 : index
    %c0_72 = arith.constant 0 : index
    %139 = vector.load %arg7[%c0_71, %c0_72] : memref<1x64xf32, #tpu.memory_space<vmem>>, vector<1x64xf32>
    %140 = vector.broadcast %139 : vector<1x64xf32> to vector<2x64xf32>
    %141 = arith.addf %138, %140 : vector<2x64xf32>
    %142 = arith.negf %141 : vector<2x64xf32>
    %143 = math.exp %142 : vector<2x64xf32>
    %cst_73 = arith.constant 1.000000e+00 : f32
    %144 = vector.broadcast %cst_73 : f32 to vector<2x64xf32>
    %145 = arith.addf %144, %143 : vector<2x64xf32>
    %146 = arith.divf %144, %145 : vector<2x64xf32>
    %147 = math.tanh %141 : vector<2x64xf32>
    %148 = vector.extract_strided_slice %146 {offsets = [0, 16], sizes = [2, 16], strides = [1, 1]} : vector<2x64xf32> to vector<2x16xf32>
    %149 = arith.mulf %148, %84 : vector<2x16xf32>
    %150 = vector.extract_strided_slice %146 {offsets = [0, 0], sizes = [2, 16], strides = [1, 1]} : vector<2x64xf32> to vector<2x16xf32>
    %151 = vector.extract_strided_slice %147 {offsets = [0, 32], sizes = [2, 16], strides = [1, 1]} : vector<2x64xf32> to vector<2x16xf32>
    %152 = arith.mulf %150, %151 : vector<2x16xf32>
    %153 = arith.addf %149, %152 : vector<2x16xf32>
    %154 = vector.extract_strided_slice %146 {offsets = [0, 48], sizes = [2, 16], strides = [1, 1]} : vector<2x64xf32> to vector<2x16xf32>
    %155 = math.tanh %153 : vector<2x16xf32>
    %156 = arith.mulf %154, %155 : vector<2x16xf32>
    %cst_74 = arith.constant 0.000000e+00 : f32
    %157 = vector.broadcast %cst_74 : f32 to vector<2x1xf32>
    %158 = arith.cmpf ogt, %133, %157 : vector<2x1xf32>
    %cst_75 = arith.constant 0.000000e+00 : f32
    %159 = vector.shape_cast %158 : vector<2x1xi1> to vector<2x1xi1>
    %160 = vector.broadcast %159 : vector<2x1xi1> to vector<2x16xi1>
    %161 = vector.broadcast %cst_75 : f32 to vector<2x16xf32>
    %162 = arith.select %160, %156, %161 : vector<2x16xi1>, vector<2x16xf32>
    %163 = vector.shape_cast %158 : vector<2x1xi1> to vector<2x1xi1>
    %164 = vector.broadcast %163 : vector<2x1xi1> to vector<2x16xi1>
    %165 = arith.select %164, %156, %81 : vector<2x16xi1>, vector<2x16xf32>
    %166 = vector.shape_cast %158 : vector<2x1xi1> to vector<2x1xi1>
    %167 = vector.broadcast %166 : vector<2x1xi1> to vector<2x16xi1>
    %168 = arith.select %167, %153, %84 : vector<2x16xi1>, vector<2x16xf32>
    %c6_76 = arith.constant 6 : index
    %c0_77 = arith.constant 0 : index
    %c0_78 = arith.constant 0 : index
    %169 = vector.load %arg18[%c6_76, %c0_77, %c0_78] : memref<8x2x16xf32, #tpu.memory_space<vmem>>, vector<1x2x16xf32>
    %170 = vector.shape_cast %169 : vector<1x2x16xf32> to vector<2x16xf32>
    %171 = vector.shape_cast %162 : vector<2x16xf32> to vector<1x2x16xf32>
    tpu.vector_store %arg18[%c6_76, %c0_77, %c0_78], %171 {strides = array<i32>} : memref<8x2x16xf32, #tpu.memory_space<vmem>>, vector<1x2x16xf32>,
    %c2 = arith.constant 2 : index
    %c0_79 = arith.constant 0 : index
    %c0_80 = arith.constant 0 : index
    %172 = vector.load %arg0[%c2, %c0_79, %c0_80] : memref<8x2x32xf32, #tpu.memory_space<vmem>>, vector<1x2x32xf32>
    %173 = vector.shape_cast %172 : vector<1x2x32xf32> to vector<2x32xf32>
    %c2_81 = arith.constant 2 : index
    %c0_82 = arith.constant 0 : index
    %c0_83 = arith.constant 0 : index
    %174 = vector.load %arg1[%c2_81, %c0_82, %c0_83] : memref<8x2x1xf32, #tpu.memory_space<vmem>>, vector<1x2x1xf32>
    %175 = vector.shape_cast %174 : vector<1x2x1xf32> to vector<2x1xf32>
    %c0_84 = arith.constant 0 : index
    %c0_85 = arith.constant 0 : index
    %176 = vector.load %arg2[%c0_84, %c0_85] : memref<32x64xf32, #tpu.memory_space<vmem>>, vector<32x64xf32>
    %cst_86 = arith.constant dense<0.000000e+00> : vector<2x64xf32>
    %177 = tpu.matmul %173, %176, %cst_86 {dimension_numbers = #tpu.dot_dimension_numbers<[1], [0], [0], [1], [0, 0, 1, 1], [], []>} : vector<2x32xf32>, vector<32x64xf32>, vector<2x64xf32> -> vector<2x64xf32>
    %c0_87 = arith.constant 0 : index
    %c0_88 = arith.constant 0 : index
    %178 = vector.load %arg4[%c0_87, %c0_88] : memref<16x64xf32, #tpu.memory_space<vmem>>, vector<16x64xf32>
    %cst_89 = arith.constant dense<0.000000e+00> : vector<2x64xf32>
    %179 = tpu.matmul %123, %178, %cst_89 {dimension_numbers = #tpu.dot_dimension_numbers<[1], [0], [0], [1], [0, 0, 1, 1], [], []>} : vector<2x16xf32>, vector<16x64xf32>, vector<2x64xf32> -> vector<2x64xf32>
    %180 = arith.addf %177, %179 : vector<2x64xf32>
    %c0_90 = arith.constant 0 : index
    %c0_91 = arith.constant 0 : index
    %181 = vector.load %arg6[%c0_90, %c0_91] : memref<1x64xf32, #tpu.memory_space<vmem>>, vector<1x64xf32>
    %182 = vector.broadcast %181 : vector<1x64xf32> to vector<2x64xf32>
    %183 = arith.addf %180, %182 : vector<2x64xf32>
    %184 = arith.negf %183 : vector<2x64xf32>
    %185 = math.exp %184 : vector<2x64xf32>
    %cst_92 = arith.constant 1.000000e+00 : f32
    %186 = vector.broadcast %cst_92 : f32 to vector<2x64xf32>
    %187 = arith.addf %186, %185 : vector<2x64xf32>
    %188 = arith.divf %186, %187 : vector<2x64xf32>
    %189 = math.tanh %183 : vector<2x64xf32>
    %190 = vector.extract_strided_slice %188 {offsets = [0, 16], sizes = [2, 16], strides = [1, 1]} : vector<2x64xf32> to vector<2x16xf32>
    %191 = arith.mulf %190, %126 : vector<2x16xf32>
    %192 = vector.extract_strided_slice %188 {offsets = [0, 0], sizes = [2, 16], strides = [1, 1]} : vector<2x64xf32> to vector<2x16xf32>
    %193 = vector.extract_strided_slice %189 {offsets = [0, 32], sizes = [2, 16], strides = [1, 1]} : vector<2x64xf32> to vector<2x16xf32>
    %194 = arith.mulf %192, %193 : vector<2x16xf32>
    %195 = arith.addf %191, %194 : vector<2x16xf32>
    %196 = vector.extract_strided_slice %188 {offsets = [0, 48], sizes = [2, 16], strides = [1, 1]} : vector<2x64xf32> to vector<2x16xf32>
    %197 = math.tanh %195 : vector<2x16xf32>
    %198 = arith.mulf %196, %197 : vector<2x16xf32>
    %cst_93 = arith.constant 0.000000e+00 : f32
    %199 = vector.broadcast %cst_93 : f32 to vector<2x1xf32>
    %200 = arith.cmpf ogt, %175, %199 : vector<2x1xf32>
    %cst_94 = arith.constant 0.000000e+00 : f32
    %201 = vector.shape_cast %200 : vector<2x1xi1> to vector<2x1xi1>
    %202 = vector.broadcast %201 : vector<2x1xi1> to vector<2x16xi1>
    %203 = vector.broadcast %cst_94 : f32 to vector<2x16xf32>
    %204 = arith.select %202, %198, %203 : vector<2x16xi1>, vector<2x16xf32>
    %205 = vector.shape_cast %200 : vector<2x1xi1> to vector<2x1xi1>
    %206 = vector.broadcast %205 : vector<2x1xi1> to vector<2x16xi1>
    %207 = arith.select %206, %198, %123 : vector<2x16xi1>, vector<2x16xf32>
    %208 = vector.shape_cast %200 : vector<2x1xi1> to vector<2x1xi1>
    %209 = vector.broadcast %208 : vector<2x1xi1> to vector<2x16xi1>
    %210 = arith.select %209, %195, %126 : vector<2x16xi1>, vector<2x16xf32>
    %c2_95 = arith.constant 2 : index
    %c0_96 = arith.constant 0 : index
    %c0_97 = arith.constant 0 : index
    %211 = vector.load %arg17[%c2_95, %c0_96, %c0_97] : memref<8x2x16xf32, #tpu.memory_space<vmem>>, vector<1x2x16xf32>
    %212 = vector.shape_cast %211 : vector<1x2x16xf32> to vector<2x16xf32>
    %213 = vector.shape_cast %204 : vector<2x16xf32> to vector<1x2x16xf32>
    tpu.vector_store %arg17[%c2_95, %c0_96, %c0_97], %213 {strides = array<i32>} : memref<8x2x16xf32, #tpu.memory_space<vmem>>, vector<1x2x16xf32>,
    %c5 = arith.constant 5 : index
    %c0_98 = arith.constant 0 : index
    %c0_99 = arith.constant 0 : index
    %214 = vector.load %arg0[%c5, %c0_98, %c0_99] : memref<8x2x32xf32, #tpu.memory_space<vmem>>, vector<1x2x32xf32>
    %215 = vector.shape_cast %214 : vector<1x2x32xf32> to vector<2x32xf32>
    %c5_100 = arith.constant 5 : index
    %c0_101 = arith.constant 0 : index
    %c0_102 = arith.constant 0 : index
    %216 = vector.load %arg1[%c5_100, %c0_101, %c0_102] : memref<8x2x1xf32, #tpu.memory_space<vmem>>, vector<1x2x1xf32>
    %217 = vector.shape_cast %216 : vector<1x2x1xf32> to vector<2x1xf32>
    %c0_103 = arith.constant 0 : index
    %c0_104 = arith.constant 0 : index
    %218 = vector.load %arg3[%c0_103, %c0_104] : memref<32x64xf32, #tpu.memory_space<vmem>>, vector<32x64xf32>
    %cst_105 = arith.constant dense<0.000000e+00> : vector<2x64xf32>
    %219 = tpu.matmul %215, %218, %cst_105 {dimension_numbers = #tpu.dot_dimension_numbers<[1], [0], [0], [1], [0, 0, 1, 1], [], []>} : vector<2x32xf32>, vector<32x64xf32>, vector<2x64xf32> -> vector<2x64xf32>
    %c0_106 = arith.constant 0 : index
    %c0_107 = arith.constant 0 : index
    %220 = vector.load %arg5[%c0_106, %c0_107] : memref<16x64xf32, #tpu.memory_space<vmem>>, vector<16x64xf32>
    %cst_108 = arith.constant dense<0.000000e+00> : vector<2x64xf32>
    %221 = tpu.matmul %165, %220, %cst_108 {dimension_numbers = #tpu.dot_dimension_numbers<[1], [0], [0], [1], [0, 0, 1, 1], [], []>} : vector<2x16xf32>, vector<16x64xf32>, vector<2x64xf32> -> vector<2x64xf32>
    %222 = arith.addf %219, %221 : vector<2x64xf32>
    %c0_109 = arith.constant 0 : index
    %c0_110 = arith.constant 0 : index
    %223 = vector.load %arg7[%c0_109, %c0_110] : memref<1x64xf32, #tpu.memory_space<vmem>>, vector<1x64xf32>
    %224 = vector.broadcast %223 : vector<1x64xf32> to vector<2x64xf32>
    %225 = arith.addf %222, %224 : vector<2x64xf32>
    %226 = arith.negf %225 : vector<2x64xf32>
    %227 = math.exp %226 : vector<2x64xf32>
    %cst_111 = arith.constant 1.000000e+00 : f32
    %228 = vector.broadcast %cst_111 : f32 to vector<2x64xf32>
    %229 = arith.addf %228, %227 : vector<2x64xf32>
    %230 = arith.divf %228, %229 : vector<2x64xf32>
    %231 = math.tanh %225 : vector<2x64xf32>
    %232 = vector.extract_strided_slice %230 {offsets = [0, 16], sizes = [2, 16], strides = [1, 1]} : vector<2x64xf32> to vector<2x16xf32>
    %233 = arith.mulf %232, %168 : vector<2x16xf32>
    %234 = vector.extract_strided_slice %230 {offsets = [0, 0], sizes = [2, 16], strides = [1, 1]} : vector<2x64xf32> to vector<2x16xf32>
    %235 = vector.extract_strided_slice %231 {offsets = [0, 32], sizes = [2, 16], strides = [1, 1]} : vector<2x64xf32> to vector<2x16xf32>
    %236 = arith.mulf %234, %235 : vector<2x16xf32>
    %237 = arith.addf %233, %236 : vector<2x16xf32>
    %238 = vector.extract_strided_slice %230 {offsets = [0, 48], sizes = [2, 16], strides = [1, 1]} : vector<2x64xf32> to vector<2x16xf32>
    %239 = math.tanh %237 : vector<2x16xf32>
    %240 = arith.mulf %238, %239 : vector<2x16xf32>
    %cst_112 = arith.constant 0.000000e+00 : f32
    %241 = vector.broadcast %cst_112 : f32 to vector<2x1xf32>
    %242 = arith.cmpf ogt, %217, %241 : vector<2x1xf32>
    %cst_113 = arith.constant 0.000000e+00 : f32
    %243 = vector.shape_cast %242 : vector<2x1xi1> to vector<2x1xi1>
    %244 = vector.broadcast %243 : vector<2x1xi1> to vector<2x16xi1>
    %245 = vector.broadcast %cst_113 : f32 to vector<2x16xf32>
    %246 = arith.select %244, %240, %245 : vector<2x16xi1>, vector<2x16xf32>
    %247 = vector.shape_cast %242 : vector<2x1xi1> to vector<2x1xi1>
    %248 = vector.broadcast %247 : vector<2x1xi1> to vector<2x16xi1>
    %249 = arith.select %248, %240, %165 : vector<2x16xi1>, vector<2x16xf32>
    %250 = vector.shape_cast %242 : vector<2x1xi1> to vector<2x1xi1>
    %251 = vector.broadcast %250 : vector<2x1xi1> to vector<2x16xi1>
    %252 = arith.select %251, %237, %168 : vector<2x16xi1>, vector<2x16xf32>
    %c5_114 = arith.constant 5 : index
    %c0_115 = arith.constant 0 : index
    %c0_116 = arith.constant 0 : index
    %253 = vector.load %arg18[%c5_114, %c0_115, %c0_116] : memref<8x2x16xf32, #tpu.memory_space<vmem>>, vector<1x2x16xf32>
    %254 = vector.shape_cast %253 : vector<1x2x16xf32> to vector<2x16xf32>
    %255 = vector.shape_cast %246 : vector<2x16xf32> to vector<1x2x16xf32>
    tpu.vector_store %arg18[%c5_114, %c0_115, %c0_116], %255 {strides = array<i32>} : memref<8x2x16xf32, #tpu.memory_space<vmem>>, vector<1x2x16xf32>,
    %c3 = arith.constant 3 : index
    %c0_117 = arith.constant 0 : index
    %c0_118 = arith.constant 0 : index
    %256 = vector.load %arg0[%c3, %c0_117, %c0_118] : memref<8x2x32xf32, #tpu.memory_space<vmem>>, vector<1x2x32xf32>
    %257 = vector.shape_cast %256 : vector<1x2x32xf32> to vector<2x32xf32>
    %c3_119 = arith.constant 3 : index
    %c0_120 = arith.constant 0 : index
    %c0_121 = arith.constant 0 : index
    %258 = vector.load %arg1[%c3_119, %c0_120, %c0_121] : memref<8x2x1xf32, #tpu.memory_space<vmem>>, vector<1x2x1xf32>
    %259 = vector.shape_cast %258 : vector<1x2x1xf32> to vector<2x1xf32>
    %c0_122 = arith.constant 0 : index
    %c0_123 = arith.constant 0 : index
    %260 = vector.load %arg2[%c0_122, %c0_123] : memref<32x64xf32, #tpu.memory_space<vmem>>, vector<32x64xf32>
    %cst_124 = arith.constant dense<0.000000e+00> : vector<2x64xf32>
    %261 = tpu.matmul %257, %260, %cst_124 {dimension_numbers = #tpu.dot_dimension_numbers<[1], [0], [0], [1], [0, 0, 1, 1], [], []>} : vector<2x32xf32>, vector<32x64xf32>, vector<2x64xf32> -> vector<2x64xf32>
    %c0_125 = arith.constant 0 : index
    %c0_126 = arith.constant 0 : index
    %262 = vector.load %arg4[%c0_125, %c0_126] : memref<16x64xf32, #tpu.memory_space<vmem>>, vector<16x64xf32>
    %cst_127 = arith.constant dense<0.000000e+00> : vector<2x64xf32>
    %263 = tpu.matmul %207, %262, %cst_127 {dimension_numbers = #tpu.dot_dimension_numbers<[1], [0], [0], [1], [0, 0, 1, 1], [], []>} : vector<2x16xf32>, vector<16x64xf32>, vector<2x64xf32> -> vector<2x64xf32>
    %264 = arith.addf %261, %263 : vector<2x64xf32>
    %c0_128 = arith.constant 0 : index
    %c0_129 = arith.constant 0 : index
    %265 = vector.load %arg6[%c0_128, %c0_129] : memref<1x64xf32, #tpu.memory_space<vmem>>, vector<1x64xf32>
    %266 = vector.broadcast %265 : vector<1x64xf32> to vector<2x64xf32>
    %267 = arith.addf %264, %266 : vector<2x64xf32>
    %268 = arith.negf %267 : vector<2x64xf32>
    %269 = math.exp %268 : vector<2x64xf32>
    %cst_130 = arith.constant 1.000000e+00 : f32
    %270 = vector.broadcast %cst_130 : f32 to vector<2x64xf32>
    %271 = arith.addf %270, %269 : vector<2x64xf32>
    %272 = arith.divf %270, %271 : vector<2x64xf32>
    %273 = math.tanh %267 : vector<2x64xf32>
    %274 = vector.extract_strided_slice %272 {offsets = [0, 16], sizes = [2, 16], strides = [1, 1]} : vector<2x64xf32> to vector<2x16xf32>
    %275 = arith.mulf %274, %210 : vector<2x16xf32>
    %276 = vector.extract_strided_slice %272 {offsets = [0, 0], sizes = [2, 16], strides = [1, 1]} : vector<2x64xf32> to vector<2x16xf32>
    %277 = vector.extract_strided_slice %273 {offsets = [0, 32], sizes = [2, 16], strides = [1, 1]} : vector<2x64xf32> to vector<2x16xf32>
    %278 = arith.mulf %276, %277 : vector<2x16xf32>
    %279 = arith.addf %275, %278 : vector<2x16xf32>
    %280 = vector.extract_strided_slice %272 {offsets = [0, 48], sizes = [2, 16], strides = [1, 1]} : vector<2x64xf32> to vector<2x16xf32>
    %281 = math.tanh %279 : vector<2x16xf32>
    %282 = arith.mulf %280, %281 : vector<2x16xf32>
    %cst_131 = arith.constant 0.000000e+00 : f32
    %283 = vector.broadcast %cst_131 : f32 to vector<2x1xf32>
    %284 = arith.cmpf ogt, %259, %283 : vector<2x1xf32>
    %cst_132 = arith.constant 0.000000e+00 : f32
    %285 = vector.shape_cast %284 : vector<2x1xi1> to vector<2x1xi1>
    %286 = vector.broadcast %285 : vector<2x1xi1> to vector<2x16xi1>
    %287 = vector.broadcast %cst_132 : f32 to vector<2x16xf32>
    %288 = arith.select %286, %282, %287 : vector<2x16xi1>, vector<2x16xf32>
    %289 = vector.shape_cast %284 : vector<2x1xi1> to vector<2x1xi1>
    %290 = vector.broadcast %289 : vector<2x1xi1> to vector<2x16xi1>
    %291 = arith.select %290, %282, %207 : vector<2x16xi1>, vector<2x16xf32>
    %292 = vector.shape_cast %284 : vector<2x1xi1> to vector<2x1xi1>
    %293 = vector.broadcast %292 : vector<2x1xi1> to vector<2x16xi1>
    %294 = arith.select %293, %279, %210 : vector<2x16xi1>, vector<2x16xf32>
    %c3_133 = arith.constant 3 : index
    %c0_134 = arith.constant 0 : index
    %c0_135 = arith.constant 0 : index
    %295 = vector.load %arg17[%c3_133, %c0_134, %c0_135] : memref<8x2x16xf32, #tpu.memory_space<vmem>>, vector<1x2x16xf32>
    %296 = vector.shape_cast %295 : vector<1x2x16xf32> to vector<2x16xf32>
    %297 = vector.shape_cast %288 : vector<2x16xf32> to vector<1x2x16xf32>
    tpu.vector_store %arg17[%c3_133, %c0_134, %c0_135], %297 {strides = array<i32>} : memref<8x2x16xf32, #tpu.memory_space<vmem>>, vector<1x2x16xf32>,
    %c4 = arith.constant 4 : index
    %c0_136 = arith.constant 0 : index
    %c0_137 = arith.constant 0 : index
    %298 = vector.load %arg0[%c4, %c0_136, %c0_137] : memref<8x2x32xf32, #tpu.memory_space<vmem>>, vector<1x2x32xf32>
    %299 = vector.shape_cast %298 : vector<1x2x32xf32> to vector<2x32xf32>
    %c4_138 = arith.constant 4 : index
    %c0_139 = arith.constant 0 : index
    %c0_140 = arith.constant 0 : index
    %300 = vector.load %arg1[%c4_138, %c0_139, %c0_140] : memref<8x2x1xf32, #tpu.memory_space<vmem>>, vector<1x2x1xf32>
    %301 = vector.shape_cast %300 : vector<1x2x1xf32> to vector<2x1xf32>
    %c0_141 = arith.constant 0 : index
    %c0_142 = arith.constant 0 : index
    %302 = vector.load %arg3[%c0_141, %c0_142] : memref<32x64xf32, #tpu.memory_space<vmem>>, vector<32x64xf32>
    %cst_143 = arith.constant dense<0.000000e+00> : vector<2x64xf32>
    %303 = tpu.matmul %299, %302, %cst_143 {dimension_numbers = #tpu.dot_dimension_numbers<[1], [0], [0], [1], [0, 0, 1, 1], [], []>} : vector<2x32xf32>, vector<32x64xf32>, vector<2x64xf32> -> vector<2x64xf32>
    %c0_144 = arith.constant 0 : index
    %c0_145 = arith.constant 0 : index
    %304 = vector.load %arg5[%c0_144, %c0_145] : memref<16x64xf32, #tpu.memory_space<vmem>>, vector<16x64xf32>
    %cst_146 = arith.constant dense<0.000000e+00> : vector<2x64xf32>
    %305 = tpu.matmul %249, %304, %cst_146 {dimension_numbers = #tpu.dot_dimension_numbers<[1], [0], [0], [1], [0, 0, 1, 1], [], []>} : vector<2x16xf32>, vector<16x64xf32>, vector<2x64xf32> -> vector<2x64xf32>
    %306 = arith.addf %303, %305 : vector<2x64xf32>
    %c0_147 = arith.constant 0 : index
    %c0_148 = arith.constant 0 : index
    %307 = vector.load %arg7[%c0_147, %c0_148] : memref<1x64xf32, #tpu.memory_space<vmem>>, vector<1x64xf32>
    %308 = vector.broadcast %307 : vector<1x64xf32> to vector<2x64xf32>
    %309 = arith.addf %306, %308 : vector<2x64xf32>
    %310 = arith.negf %309 : vector<2x64xf32>
    %311 = math.exp %310 : vector<2x64xf32>
    %cst_149 = arith.constant 1.000000e+00 : f32
    %312 = vector.broadcast %cst_149 : f32 to vector<2x64xf32>
    %313 = arith.addf %312, %311 : vector<2x64xf32>
    %314 = arith.divf %312, %313 : vector<2x64xf32>
    %315 = math.tanh %309 : vector<2x64xf32>
    %316 = vector.extract_strided_slice %314 {offsets = [0, 16], sizes = [2, 16], strides = [1, 1]} : vector<2x64xf32> to vector<2x16xf32>
    %317 = arith.mulf %316, %252 : vector<2x16xf32>
    %318 = vector.extract_strided_slice %314 {offsets = [0, 0], sizes = [2, 16], strides = [1, 1]} : vector<2x64xf32> to vector<2x16xf32>
    %319 = vector.extract_strided_slice %315 {offsets = [0, 32], sizes = [2, 16], strides = [1, 1]} : vector<2x64xf32> to vector<2x16xf32>
    %320 = arith.mulf %318, %319 : vector<2x16xf32>
    %321 = arith.addf %317, %320 : vector<2x16xf32>
    %322 = vector.extract_strided_slice %314 {offsets = [0, 48], sizes = [2, 16], strides = [1, 1]} : vector<2x64xf32> to vector<2x16xf32>
    %323 = math.tanh %321 : vector<2x16xf32>
    %324 = arith.mulf %322, %323 : vector<2x16xf32>
    %cst_150 = arith.constant 0.000000e+00 : f32
    %325 = vector.broadcast %cst_150 : f32 to vector<2x1xf32>
    %326 = arith.cmpf ogt, %301, %325 : vector<2x1xf32>
    %cst_151 = arith.constant 0.000000e+00 : f32
    %327 = vector.shape_cast %326 : vector<2x1xi1> to vector<2x1xi1>
    %328 = vector.broadcast %327 : vector<2x1xi1> to vector<2x16xi1>
    %329 = vector.broadcast %cst_151 : f32 to vector<2x16xf32>
    %330 = arith.select %328, %324, %329 : vector<2x16xi1>, vector<2x16xf32>
    %331 = vector.shape_cast %326 : vector<2x1xi1> to vector<2x1xi1>
    %332 = vector.broadcast %331 : vector<2x1xi1> to vector<2x16xi1>
    %333 = arith.select %332, %324, %249 : vector<2x16xi1>, vector<2x16xf32>
    %334 = vector.shape_cast %326 : vector<2x1xi1> to vector<2x1xi1>
    %335 = vector.broadcast %334 : vector<2x1xi1> to vector<2x16xi1>
    %336 = arith.select %335, %321, %252 : vector<2x16xi1>, vector<2x16xf32>
    %c4_152 = arith.constant 4 : index
    %c0_153 = arith.constant 0 : index
    %c0_154 = arith.constant 0 : index
    %337 = vector.load %arg18[%c4_152, %c0_153, %c0_154] : memref<8x2x16xf32, #tpu.memory_space<vmem>>, vector<1x2x16xf32>
    %338 = vector.shape_cast %337 : vector<1x2x16xf32> to vector<2x16xf32>
    %339 = vector.shape_cast %330 : vector<2x16xf32> to vector<1x2x16xf32>
    tpu.vector_store %arg18[%c4_152, %c0_153, %c0_154], %339 {strides = array<i32>} : memref<8x2x16xf32, #tpu.memory_space<vmem>>, vector<1x2x16xf32>,
    %c4_155 = arith.constant 4 : index
    %c0_156 = arith.constant 0 : index
    %c0_157 = arith.constant 0 : index
    %340 = vector.load %arg0[%c4_155, %c0_156, %c0_157] : memref<8x2x32xf32, #tpu.memory_space<vmem>>, vector<1x2x32xf32>
    %341 = vector.shape_cast %340 : vector<1x2x32xf32> to vector<2x32xf32>
    %c4_158 = arith.constant 4 : index
    %c0_159 = arith.constant 0 : index
    %c0_160 = arith.constant 0 : index
    %342 = vector.load %arg1[%c4_158, %c0_159, %c0_160] : memref<8x2x1xf32, #tpu.memory_space<vmem>>, vector<1x2x1xf32>
    %343 = vector.shape_cast %342 : vector<1x2x1xf32> to vector<2x1xf32>
    %c0_161 = arith.constant 0 : index
    %c0_162 = arith.constant 0 : index
    %344 = vector.load %arg2[%c0_161, %c0_162] : memref<32x64xf32, #tpu.memory_space<vmem>>, vector<32x64xf32>
    %cst_163 = arith.constant dense<0.000000e+00> : vector<2x64xf32>
    %345 = tpu.matmul %341, %344, %cst_163 {dimension_numbers = #tpu.dot_dimension_numbers<[1], [0], [0], [1], [0, 0, 1, 1], [], []>} : vector<2x32xf32>, vector<32x64xf32>, vector<2x64xf32> -> vector<2x64xf32>
    %c0_164 = arith.constant 0 : index
    %c0_165 = arith.constant 0 : index
    %346 = vector.load %arg4[%c0_164, %c0_165] : memref<16x64xf32, #tpu.memory_space<vmem>>, vector<16x64xf32>
    %cst_166 = arith.constant dense<0.000000e+00> : vector<2x64xf32>
    %347 = tpu.matmul %291, %346, %cst_166 {dimension_numbers = #tpu.dot_dimension_numbers<[1], [0], [0], [1], [0, 0, 1, 1], [], []>} : vector<2x16xf32>, vector<16x64xf32>, vector<2x64xf32> -> vector<2x64xf32>
    %348 = arith.addf %345, %347 : vector<2x64xf32>
    %c0_167 = arith.constant 0 : index
    %c0_168 = arith.constant 0 : index
    %349 = vector.load %arg6[%c0_167, %c0_168] : memref<1x64xf32, #tpu.memory_space<vmem>>, vector<1x64xf32>
    %350 = vector.broadcast %349 : vector<1x64xf32> to vector<2x64xf32>
    %351 = arith.addf %348, %350 : vector<2x64xf32>
    %352 = arith.negf %351 : vector<2x64xf32>
    %353 = math.exp %352 : vector<2x64xf32>
    %cst_169 = arith.constant 1.000000e+00 : f32
    %354 = vector.broadcast %cst_169 : f32 to vector<2x64xf32>
    %355 = arith.addf %354, %353 : vector<2x64xf32>
    %356 = arith.divf %354, %355 : vector<2x64xf32>
    %357 = math.tanh %351 : vector<2x64xf32>
    %358 = vector.extract_strided_slice %356 {offsets = [0, 16], sizes = [2, 16], strides = [1, 1]} : vector<2x64xf32> to vector<2x16xf32>
    %359 = arith.mulf %358, %294 : vector<2x16xf32>
    %360 = vector.extract_strided_slice %356 {offsets = [0, 0], sizes = [2, 16], strides = [1, 1]} : vector<2x64xf32> to vector<2x16xf32>
    %361 = vector.extract_strided_slice %357 {offsets = [0, 32], sizes = [2, 16], strides = [1, 1]} : vector<2x64xf32> to vector<2x16xf32>
    %362 = arith.mulf %360, %361 : vector<2x16xf32>
    %363 = arith.addf %359, %362 : vector<2x16xf32>
    %364 = vector.extract_strided_slice %356 {offsets = [0, 48], sizes = [2, 16], strides = [1, 1]} : vector<2x64xf32> to vector<2x16xf32>
    %365 = math.tanh %363 : vector<2x16xf32>
    %366 = arith.mulf %364, %365 : vector<2x16xf32>
    %cst_170 = arith.constant 0.000000e+00 : f32
    %367 = vector.broadcast %cst_170 : f32 to vector<2x1xf32>
    %368 = arith.cmpf ogt, %343, %367 : vector<2x1xf32>
    %cst_171 = arith.constant 0.000000e+00 : f32
    %369 = vector.shape_cast %368 : vector<2x1xi1> to vector<2x1xi1>
    %370 = vector.broadcast %369 : vector<2x1xi1> to vector<2x16xi1>
    %371 = vector.broadcast %cst_171 : f32 to vector<2x16xf32>
    %372 = arith.select %370, %366, %371 : vector<2x16xi1>, vector<2x16xf32>
    %373 = vector.shape_cast %368 : vector<2x1xi1> to vector<2x1xi1>
    %374 = vector.broadcast %373 : vector<2x1xi1> to vector<2x16xi1>
    %375 = arith.select %374, %366, %291 : vector<2x16xi1>, vector<2x16xf32>
    %376 = vector.shape_cast %368 : vector<2x1xi1> to vector<2x1xi1>
    %377 = vector.broadcast %376 : vector<2x1xi1> to vector<2x16xi1>
    %378 = arith.select %377, %363, %294 : vector<2x16xi1>, vector<2x16xf32>
    %c4_172 = arith.constant 4 : index
    %c0_173 = arith.constant 0 : index
    %c0_174 = arith.constant 0 : index
    %379 = vector.load %arg17[%c4_172, %c0_173, %c0_174] : memref<8x2x16xf32, #tpu.memory_space<vmem>>, vector<1x2x16xf32>
    %380 = vector.shape_cast %379 : vector<1x2x16xf32> to vector<2x16xf32>
    %381 = vector.shape_cast %372 : vector<2x16xf32> to vector<1x2x16xf32>
    tpu.vector_store %arg17[%c4_172, %c0_173, %c0_174], %381 {strides = array<i32>} : memref<8x2x16xf32, #tpu.memory_space<vmem>>, vector<1x2x16xf32>,
    %c3_175 = arith.constant 3 : index
    %c0_176 = arith.constant 0 : index
    %c0_177 = arith.constant 0 : index
    %382 = vector.load %arg0[%c3_175, %c0_176, %c0_177] : memref<8x2x32xf32, #tpu.memory_space<vmem>>, vector<1x2x32xf32>
    %383 = vector.shape_cast %382 : vector<1x2x32xf32> to vector<2x32xf32>
    %c3_178 = arith.constant 3 : index
    %c0_179 = arith.constant 0 : index
    %c0_180 = arith.constant 0 : index
    %384 = vector.load %arg1[%c3_178, %c0_179, %c0_180] : memref<8x2x1xf32, #tpu.memory_space<vmem>>, vector<1x2x1xf32>
    %385 = vector.shape_cast %384 : vector<1x2x1xf32> to vector<2x1xf32>
    %c0_181 = arith.constant 0 : index
    %c0_182 = arith.constant 0 : index
    %386 = vector.load %arg3[%c0_181, %c0_182] : memref<32x64xf32, #tpu.memory_space<vmem>>, vector<32x64xf32>
    %cst_183 = arith.constant dense<0.000000e+00> : vector<2x64xf32>
    %387 = tpu.matmul %383, %386, %cst_183 {dimension_numbers = #tpu.dot_dimension_numbers<[1], [0], [0], [1], [0, 0, 1, 1], [], []>} : vector<2x32xf32>, vector<32x64xf32>, vector<2x64xf32> -> vector<2x64xf32>
    %c0_184 = arith.constant 0 : index
    %c0_185 = arith.constant 0 : index
    %388 = vector.load %arg5[%c0_184, %c0_185] : memref<16x64xf32, #tpu.memory_space<vmem>>, vector<16x64xf32>
    %cst_186 = arith.constant dense<0.000000e+00> : vector<2x64xf32>
    %389 = tpu.matmul %333, %388, %cst_186 {dimension_numbers = #tpu.dot_dimension_numbers<[1], [0], [0], [1], [0, 0, 1, 1], [], []>} : vector<2x16xf32>, vector<16x64xf32>, vector<2x64xf32> -> vector<2x64xf32>
    %390 = arith.addf %387, %389 : vector<2x64xf32>
    %c0_187 = arith.constant 0 : index
    %c0_188 = arith.constant 0 : index
    %391 = vector.load %arg7[%c0_187, %c0_188] : memref<1x64xf32, #tpu.memory_space<vmem>>, vector<1x64xf32>
    %392 = vector.broadcast %391 : vector<1x64xf32> to vector<2x64xf32>
    %393 = arith.addf %390, %392 : vector<2x64xf32>
    %394 = arith.negf %393 : vector<2x64xf32>
    %395 = math.exp %394 : vector<2x64xf32>
    %cst_189 = arith.constant 1.000000e+00 : f32
    %396 = vector.broadcast %cst_189 : f32 to vector<2x64xf32>
    %397 = arith.addf %396, %395 : vector<2x64xf32>
    %398 = arith.divf %396, %397 : vector<2x64xf32>
    %399 = math.tanh %393 : vector<2x64xf32>
    %400 = vector.extract_strided_slice %398 {offsets = [0, 16], sizes = [2, 16], strides = [1, 1]} : vector<2x64xf32> to vector<2x16xf32>
    %401 = arith.mulf %400, %336 : vector<2x16xf32>
    %402 = vector.extract_strided_slice %398 {offsets = [0, 0], sizes = [2, 16], strides = [1, 1]} : vector<2x64xf32> to vector<2x16xf32>
    %403 = vector.extract_strided_slice %399 {offsets = [0, 32], sizes = [2, 16], strides = [1, 1]} : vector<2x64xf32> to vector<2x16xf32>
    %404 = arith.mulf %402, %403 : vector<2x16xf32>
    %405 = arith.addf %401, %404 : vector<2x16xf32>
    %406 = vector.extract_strided_slice %398 {offsets = [0, 48], sizes = [2, 16], strides = [1, 1]} : vector<2x64xf32> to vector<2x16xf32>
    %407 = math.tanh %405 : vector<2x16xf32>
    %408 = arith.mulf %406, %407 : vector<2x16xf32>
    %cst_190 = arith.constant 0.000000e+00 : f32
    %409 = vector.broadcast %cst_190 : f32 to vector<2x1xf32>
    %410 = arith.cmpf ogt, %385, %409 : vector<2x1xf32>
    %cst_191 = arith.constant 0.000000e+00 : f32
    %411 = vector.shape_cast %410 : vector<2x1xi1> to vector<2x1xi1>
    %412 = vector.broadcast %411 : vector<2x1xi1> to vector<2x16xi1>
    %413 = vector.broadcast %cst_191 : f32 to vector<2x16xf32>
    %414 = arith.select %412, %408, %413 : vector<2x16xi1>, vector<2x16xf32>
    %415 = vector.shape_cast %410 : vector<2x1xi1> to vector<2x1xi1>
    %416 = vector.broadcast %415 : vector<2x1xi1> to vector<2x16xi1>
    %417 = arith.select %416, %408, %333 : vector<2x16xi1>, vector<2x16xf32>
    %418 = vector.shape_cast %410 : vector<2x1xi1> to vector<2x1xi1>
    %419 = vector.broadcast %418 : vector<2x1xi1> to vector<2x16xi1>
    %420 = arith.select %419, %405, %336 : vector<2x16xi1>, vector<2x16xf32>
    %c3_192 = arith.constant 3 : index
    %c0_193 = arith.constant 0 : index
    %c0_194 = arith.constant 0 : index
    %421 = vector.load %arg18[%c3_192, %c0_193, %c0_194] : memref<8x2x16xf32, #tpu.memory_space<vmem>>, vector<1x2x16xf32>
    %422 = vector.shape_cast %421 : vector<1x2x16xf32> to vector<2x16xf32>
    %423 = vector.shape_cast %414 : vector<2x16xf32> to vector<1x2x16xf32>
    tpu.vector_store %arg18[%c3_192, %c0_193, %c0_194], %423 {strides = array<i32>} : memref<8x2x16xf32, #tpu.memory_space<vmem>>, vector<1x2x16xf32>,
    %c5_195 = arith.constant 5 : index
    %c0_196 = arith.constant 0 : index
    %c0_197 = arith.constant 0 : index
    %424 = vector.load %arg0[%c5_195, %c0_196, %c0_197] : memref<8x2x32xf32, #tpu.memory_space<vmem>>, vector<1x2x32xf32>
    %425 = vector.shape_cast %424 : vector<1x2x32xf32> to vector<2x32xf32>
    %c5_198 = arith.constant 5 : index
    %c0_199 = arith.constant 0 : index
    %c0_200 = arith.constant 0 : index
    %426 = vector.load %arg1[%c5_198, %c0_199, %c0_200] : memref<8x2x1xf32, #tpu.memory_space<vmem>>, vector<1x2x1xf32>
    %427 = vector.shape_cast %426 : vector<1x2x1xf32> to vector<2x1xf32>
    %c0_201 = arith.constant 0 : index
    %c0_202 = arith.constant 0 : index
    %428 = vector.load %arg2[%c0_201, %c0_202] : memref<32x64xf32, #tpu.memory_space<vmem>>, vector<32x64xf32>
    %cst_203 = arith.constant dense<0.000000e+00> : vector<2x64xf32>
    %429 = tpu.matmul %425, %428, %cst_203 {dimension_numbers = #tpu.dot_dimension_numbers<[1], [0], [0], [1], [0, 0, 1, 1], [], []>} : vector<2x32xf32>, vector<32x64xf32>, vector<2x64xf32> -> vector<2x64xf32>
    %c0_204 = arith.constant 0 : index
    %c0_205 = arith.constant 0 : index
    %430 = vector.load %arg4[%c0_204, %c0_205] : memref<16x64xf32, #tpu.memory_space<vmem>>, vector<16x64xf32>
    %cst_206 = arith.constant dense<0.000000e+00> : vector<2x64xf32>
    %431 = tpu.matmul %375, %430, %cst_206 {dimension_numbers = #tpu.dot_dimension_numbers<[1], [0], [0], [1], [0, 0, 1, 1], [], []>} : vector<2x16xf32>, vector<16x64xf32>, vector<2x64xf32> -> vector<2x64xf32>
    %432 = arith.addf %429, %431 : vector<2x64xf32>
    %c0_207 = arith.constant 0 : index
    %c0_208 = arith.constant 0 : index
    %433 = vector.load %arg6[%c0_207, %c0_208] : memref<1x64xf32, #tpu.memory_space<vmem>>, vector<1x64xf32>
    %434 = vector.broadcast %433 : vector<1x64xf32> to vector<2x64xf32>
    %435 = arith.addf %432, %434 : vector<2x64xf32>
    %436 = arith.negf %435 : vector<2x64xf32>
    %437 = math.exp %436 : vector<2x64xf32>
    %cst_209 = arith.constant 1.000000e+00 : f32
    %438 = vector.broadcast %cst_209 : f32 to vector<2x64xf32>
    %439 = arith.addf %438, %437 : vector<2x64xf32>
    %440 = arith.divf %438, %439 : vector<2x64xf32>
    %441 = math.tanh %435 : vector<2x64xf32>
    %442 = vector.extract_strided_slice %440 {offsets = [0, 16], sizes = [2, 16], strides = [1, 1]} : vector<2x64xf32> to vector<2x16xf32>
    %443 = arith.mulf %442, %378 : vector<2x16xf32>
    %444 = vector.extract_strided_slice %440 {offsets = [0, 0], sizes = [2, 16], strides = [1, 1]} : vector<2x64xf32> to vector<2x16xf32>
    %445 = vector.extract_strided_slice %441 {offsets = [0, 32], sizes = [2, 16], strides = [1, 1]} : vector<2x64xf32> to vector<2x16xf32>
    %446 = arith.mulf %444, %445 : vector<2x16xf32>
    %447 = arith.addf %443, %446 : vector<2x16xf32>
    %448 = vector.extract_strided_slice %440 {offsets = [0, 48], sizes = [2, 16], strides = [1, 1]} : vector<2x64xf32> to vector<2x16xf32>
    %449 = math.tanh %447 : vector<2x16xf32>
    %450 = arith.mulf %448, %449 : vector<2x16xf32>
    %cst_210 = arith.constant 0.000000e+00 : f32
    %451 = vector.broadcast %cst_210 : f32 to vector<2x1xf32>
    %452 = arith.cmpf ogt, %427, %451 : vector<2x1xf32>
    %cst_211 = arith.constant 0.000000e+00 : f32
    %453 = vector.shape_cast %452 : vector<2x1xi1> to vector<2x1xi1>
    %454 = vector.broadcast %453 : vector<2x1xi1> to vector<2x16xi1>
    %455 = vector.broadcast %cst_211 : f32 to vector<2x16xf32>
    %456 = arith.select %454, %450, %455 : vector<2x16xi1>, vector<2x16xf32>
    %457 = vector.shape_cast %452 : vector<2x1xi1> to vector<2x1xi1>
    %458 = vector.broadcast %457 : vector<2x1xi1> to vector<2x16xi1>
    %459 = arith.select %458, %450, %375 : vector<2x16xi1>, vector<2x16xf32>
    %460 = vector.shape_cast %452 : vector<2x1xi1> to vector<2x1xi1>
    %461 = vector.broadcast %460 : vector<2x1xi1> to vector<2x16xi1>
    %462 = arith.select %461, %447, %378 : vector<2x16xi1>, vector<2x16xf32>
    %c5_212 = arith.constant 5 : index
    %c0_213 = arith.constant 0 : index
    %c0_214 = arith.constant 0 : index
    %463 = vector.load %arg17[%c5_212, %c0_213, %c0_214] : memref<8x2x16xf32, #tpu.memory_space<vmem>>, vector<1x2x16xf32>
    %464 = vector.shape_cast %463 : vector<1x2x16xf32> to vector<2x16xf32>
    %465 = vector.shape_cast %456 : vector<2x16xf32> to vector<1x2x16xf32>
    tpu.vector_store %arg17[%c5_212, %c0_213, %c0_214], %465 {strides = array<i32>} : memref<8x2x16xf32, #tpu.memory_space<vmem>>, vector<1x2x16xf32>,
    %c2_215 = arith.constant 2 : index
    %c0_216 = arith.constant 0 : index
    %c0_217 = arith.constant 0 : index
    %466 = vector.load %arg0[%c2_215, %c0_216, %c0_217] : memref<8x2x32xf32, #tpu.memory_space<vmem>>, vector<1x2x32xf32>
    %467 = vector.shape_cast %466 : vector<1x2x32xf32> to vector<2x32xf32>
    %c2_218 = arith.constant 2 : index
    %c0_219 = arith.constant 0 : index
    %c0_220 = arith.constant 0 : index
    %468 = vector.load %arg1[%c2_218, %c0_219, %c0_220] : memref<8x2x1xf32, #tpu.memory_space<vmem>>, vector<1x2x1xf32>
    %469 = vector.shape_cast %468 : vector<1x2x1xf32> to vector<2x1xf32>
    %c0_221 = arith.constant 0 : index
    %c0_222 = arith.constant 0 : index
    %470 = vector.load %arg3[%c0_221, %c0_222] : memref<32x64xf32, #tpu.memory_space<vmem>>, vector<32x64xf32>
    %cst_223 = arith.constant dense<0.000000e+00> : vector<2x64xf32>
    %471 = tpu.matmul %467, %470, %cst_223 {dimension_numbers = #tpu.dot_dimension_numbers<[1], [0], [0], [1], [0, 0, 1, 1], [], []>} : vector<2x32xf32>, vector<32x64xf32>, vector<2x64xf32> -> vector<2x64xf32>
    %c0_224 = arith.constant 0 : index
    %c0_225 = arith.constant 0 : index
    %472 = vector.load %arg5[%c0_224, %c0_225] : memref<16x64xf32, #tpu.memory_space<vmem>>, vector<16x64xf32>
    %cst_226 = arith.constant dense<0.000000e+00> : vector<2x64xf32>
    %473 = tpu.matmul %417, %472, %cst_226 {dimension_numbers = #tpu.dot_dimension_numbers<[1], [0], [0], [1], [0, 0, 1, 1], [], []>} : vector<2x16xf32>, vector<16x64xf32>, vector<2x64xf32> -> vector<2x64xf32>
    %474 = arith.addf %471, %473 : vector<2x64xf32>
    %c0_227 = arith.constant 0 : index
    %c0_228 = arith.constant 0 : index
    %475 = vector.load %arg7[%c0_227, %c0_228] : memref<1x64xf32, #tpu.memory_space<vmem>>, vector<1x64xf32>
    %476 = vector.broadcast %475 : vector<1x64xf32> to vector<2x64xf32>
    %477 = arith.addf %474, %476 : vector<2x64xf32>
    %478 = arith.negf %477 : vector<2x64xf32>
    %479 = math.exp %478 : vector<2x64xf32>
    %cst_229 = arith.constant 1.000000e+00 : f32
    %480 = vector.broadcast %cst_229 : f32 to vector<2x64xf32>
    %481 = arith.addf %480, %479 : vector<2x64xf32>
    %482 = arith.divf %480, %481 : vector<2x64xf32>
    %483 = math.tanh %477 : vector<2x64xf32>
    %484 = vector.extract_strided_slice %482 {offsets = [0, 16], sizes = [2, 16], strides = [1, 1]} : vector<2x64xf32> to vector<2x16xf32>
    %485 = arith.mulf %484, %420 : vector<2x16xf32>
    %486 = vector.extract_strided_slice %482 {offsets = [0, 0], sizes = [2, 16], strides = [1, 1]} : vector<2x64xf32> to vector<2x16xf32>
    %487 = vector.extract_strided_slice %483 {offsets = [0, 32], sizes = [2, 16], strides = [1, 1]} : vector<2x64xf32> to vector<2x16xf32>
    %488 = arith.mulf %486, %487 : vector<2x16xf32>
    %489 = arith.addf %485, %488 : vector<2x16xf32>
    %490 = vector.extract_strided_slice %482 {offsets = [0, 48], sizes = [2, 16], strides = [1, 1]} : vector<2x64xf32> to vector<2x16xf32>
    %491 = math.tanh %489 : vector<2x16xf32>
    %492 = arith.mulf %490, %491 : vector<2x16xf32>
    %cst_230 = arith.constant 0.000000e+00 : f32
    %493 = vector.broadcast %cst_230 : f32 to vector<2x1xf32>
    %494 = arith.cmpf ogt, %469, %493 : vector<2x1xf32>
    %cst_231 = arith.constant 0.000000e+00 : f32
    %495 = vector.shape_cast %494 : vector<2x1xi1> to vector<2x1xi1>
    %496 = vector.broadcast %495 : vector<2x1xi1> to vector<2x16xi1>
    %497 = vector.broadcast %cst_231 : f32 to vector<2x16xf32>
    %498 = arith.select %496, %492, %497 : vector<2x16xi1>, vector<2x16xf32>
    %499 = vector.shape_cast %494 : vector<2x1xi1> to vector<2x1xi1>
    %500 = vector.broadcast %499 : vector<2x1xi1> to vector<2x16xi1>
    %501 = arith.select %500, %492, %417 : vector<2x16xi1>, vector<2x16xf32>
    %502 = vector.shape_cast %494 : vector<2x1xi1> to vector<2x1xi1>
    %503 = vector.broadcast %502 : vector<2x1xi1> to vector<2x16xi1>
    %504 = arith.select %503, %489, %420 : vector<2x16xi1>, vector<2x16xf32>
    %c2_232 = arith.constant 2 : index
    %c0_233 = arith.constant 0 : index
    %c0_234 = arith.constant 0 : index
    %505 = vector.load %arg18[%c2_232, %c0_233, %c0_234] : memref<8x2x16xf32, #tpu.memory_space<vmem>>, vector<1x2x16xf32>
    %506 = vector.shape_cast %505 : vector<1x2x16xf32> to vector<2x16xf32>
    %507 = vector.shape_cast %498 : vector<2x16xf32> to vector<1x2x16xf32>
    tpu.vector_store %arg18[%c2_232, %c0_233, %c0_234], %507 {strides = array<i32>} : memref<8x2x16xf32, #tpu.memory_space<vmem>>, vector<1x2x16xf32>,
    %c6_235 = arith.constant 6 : index
    %c0_236 = arith.constant 0 : index
    %c0_237 = arith.constant 0 : index
    %508 = vector.load %arg0[%c6_235, %c0_236, %c0_237] : memref<8x2x32xf32, #tpu.memory_space<vmem>>, vector<1x2x32xf32>
    %509 = vector.shape_cast %508 : vector<1x2x32xf32> to vector<2x32xf32>
    %c6_238 = arith.constant 6 : index
    %c0_239 = arith.constant 0 : index
    %c0_240 = arith.constant 0 : index
    %510 = vector.load %arg1[%c6_238, %c0_239, %c0_240] : memref<8x2x1xf32, #tpu.memory_space<vmem>>, vector<1x2x1xf32>
    %511 = vector.shape_cast %510 : vector<1x2x1xf32> to vector<2x1xf32>
    %c0_241 = arith.constant 0 : index
    %c0_242 = arith.constant 0 : index
    %512 = vector.load %arg2[%c0_241, %c0_242] : memref<32x64xf32, #tpu.memory_space<vmem>>, vector<32x64xf32>
    %cst_243 = arith.constant dense<0.000000e+00> : vector<2x64xf32>
    %513 = tpu.matmul %509, %512, %cst_243 {dimension_numbers = #tpu.dot_dimension_numbers<[1], [0], [0], [1], [0, 0, 1, 1], [], []>} : vector<2x32xf32>, vector<32x64xf32>, vector<2x64xf32> -> vector<2x64xf32>
    %c0_244 = arith.constant 0 : index
    %c0_245 = arith.constant 0 : index
    %514 = vector.load %arg4[%c0_244, %c0_245] : memref<16x64xf32, #tpu.memory_space<vmem>>, vector<16x64xf32>
    %cst_246 = arith.constant dense<0.000000e+00> : vector<2x64xf32>
    %515 = tpu.matmul %459, %514, %cst_246 {dimension_numbers = #tpu.dot_dimension_numbers<[1], [0], [0], [1], [0, 0, 1, 1], [], []>} : vector<2x16xf32>, vector<16x64xf32>, vector<2x64xf32> -> vector<2x64xf32>
    %516 = arith.addf %513, %515 : vector<2x64xf32>
    %c0_247 = arith.constant 0 : index
    %c0_248 = arith.constant 0 : index
    %517 = vector.load %arg6[%c0_247, %c0_248] : memref<1x64xf32, #tpu.memory_space<vmem>>, vector<1x64xf32>
    %518 = vector.broadcast %517 : vector<1x64xf32> to vector<2x64xf32>
    %519 = arith.addf %516, %518 : vector<2x64xf32>
    %520 = arith.negf %519 : vector<2x64xf32>
    %521 = math.exp %520 : vector<2x64xf32>
    %cst_249 = arith.constant 1.000000e+00 : f32
    %522 = vector.broadcast %cst_249 : f32 to vector<2x64xf32>
    %523 = arith.addf %522, %521 : vector<2x64xf32>
    %524 = arith.divf %522, %523 : vector<2x64xf32>
    %525 = math.tanh %519 : vector<2x64xf32>
    %526 = vector.extract_strided_slice %524 {offsets = [0, 16], sizes = [2, 16], strides = [1, 1]} : vector<2x64xf32> to vector<2x16xf32>
    %527 = arith.mulf %526, %462 : vector<2x16xf32>
    %528 = vector.extract_strided_slice %524 {offsets = [0, 0], sizes = [2, 16], strides = [1, 1]} : vector<2x64xf32> to vector<2x16xf32>
    %529 = vector.extract_strided_slice %525 {offsets = [0, 32], sizes = [2, 16], strides = [1, 1]} : vector<2x64xf32> to vector<2x16xf32>
    %530 = arith.mulf %528, %529 : vector<2x16xf32>
    %531 = arith.addf %527, %530 : vector<2x16xf32>
    %532 = vector.extract_strided_slice %524 {offsets = [0, 48], sizes = [2, 16], strides = [1, 1]} : vector<2x64xf32> to vector<2x16xf32>
    %533 = math.tanh %531 : vector<2x16xf32>
    %534 = arith.mulf %532, %533 : vector<2x16xf32>
    %cst_250 = arith.constant 0.000000e+00 : f32
    %535 = vector.broadcast %cst_250 : f32 to vector<2x1xf32>
    %536 = arith.cmpf ogt, %511, %535 : vector<2x1xf32>
    %cst_251 = arith.constant 0.000000e+00 : f32
    %537 = vector.shape_cast %536 : vector<2x1xi1> to vector<2x1xi1>
    %538 = vector.broadcast %537 : vector<2x1xi1> to vector<2x16xi1>
    %539 = vector.broadcast %cst_251 : f32 to vector<2x16xf32>
    %540 = arith.select %538, %534, %539 : vector<2x16xi1>, vector<2x16xf32>
    %541 = vector.shape_cast %536 : vector<2x1xi1> to vector<2x1xi1>
    %542 = vector.broadcast %541 : vector<2x1xi1> to vector<2x16xi1>
    %543 = arith.select %542, %534, %459 : vector<2x16xi1>, vector<2x16xf32>
    %544 = vector.shape_cast %536 : vector<2x1xi1> to vector<2x1xi1>
    %545 = vector.broadcast %544 : vector<2x1xi1> to vector<2x16xi1>
    %546 = arith.select %545, %531, %462 : vector<2x16xi1>, vector<2x16xf32>
    %c6_252 = arith.constant 6 : index
    %c0_253 = arith.constant 0 : index
    %c0_254 = arith.constant 0 : index
    %547 = vector.load %arg17[%c6_252, %c0_253, %c0_254] : memref<8x2x16xf32, #tpu.memory_space<vmem>>, vector<1x2x16xf32>
    %548 = vector.shape_cast %547 : vector<1x2x16xf32> to vector<2x16xf32>
    %549 = vector.shape_cast %540 : vector<2x16xf32> to vector<1x2x16xf32>
    tpu.vector_store %arg17[%c6_252, %c0_253, %c0_254], %549 {strides = array<i32>} : memref<8x2x16xf32, #tpu.memory_space<vmem>>, vector<1x2x16xf32>,
    %c1_255 = arith.constant 1 : index
    %c0_256 = arith.constant 0 : index
    %c0_257 = arith.constant 0 : index
    %550 = vector.load %arg0[%c1_255, %c0_256, %c0_257] : memref<8x2x32xf32, #tpu.memory_space<vmem>>, vector<1x2x32xf32>
    %551 = vector.shape_cast %550 : vector<1x2x32xf32> to vector<2x32xf32>
    %c1_258 = arith.constant 1 : index
    %c0_259 = arith.constant 0 : index
    %c0_260 = arith.constant 0 : index
    %552 = vector.load %arg1[%c1_258, %c0_259, %c0_260] : memref<8x2x1xf32, #tpu.memory_space<vmem>>, vector<1x2x1xf32>
    %553 = vector.shape_cast %552 : vector<1x2x1xf32> to vector<2x1xf32>
    %c0_261 = arith.constant 0 : index
    %c0_262 = arith.constant 0 : index
    %554 = vector.load %arg3[%c0_261, %c0_262] : memref<32x64xf32, #tpu.memory_space<vmem>>, vector<32x64xf32>
    %cst_263 = arith.constant dense<0.000000e+00> : vector<2x64xf32>
    %555 = tpu.matmul %551, %554, %cst_263 {dimension_numbers = #tpu.dot_dimension_numbers<[1], [0], [0], [1], [0, 0, 1, 1], [], []>} : vector<2x32xf32>, vector<32x64xf32>, vector<2x64xf32> -> vector<2x64xf32>
    %c0_264 = arith.constant 0 : index
    %c0_265 = arith.constant 0 : index
    %556 = vector.load %arg5[%c0_264, %c0_265] : memref<16x64xf32, #tpu.memory_space<vmem>>, vector<16x64xf32>
    %cst_266 = arith.constant dense<0.000000e+00> : vector<2x64xf32>
    %557 = tpu.matmul %501, %556, %cst_266 {dimension_numbers = #tpu.dot_dimension_numbers<[1], [0], [0], [1], [0, 0, 1, 1], [], []>} : vector<2x16xf32>, vector<16x64xf32>, vector<2x64xf32> -> vector<2x64xf32>
    %558 = arith.addf %555, %557 : vector<2x64xf32>
    %c0_267 = arith.constant 0 : index
    %c0_268 = arith.constant 0 : index
    %559 = vector.load %arg7[%c0_267, %c0_268] : memref<1x64xf32, #tpu.memory_space<vmem>>, vector<1x64xf32>
    %560 = vector.broadcast %559 : vector<1x64xf32> to vector<2x64xf32>
    %561 = arith.addf %558, %560 : vector<2x64xf32>
    %562 = arith.negf %561 : vector<2x64xf32>
    %563 = math.exp %562 : vector<2x64xf32>
    %cst_269 = arith.constant 1.000000e+00 : f32
    %564 = vector.broadcast %cst_269 : f32 to vector<2x64xf32>
    %565 = arith.addf %564, %563 : vector<2x64xf32>
    %566 = arith.divf %564, %565 : vector<2x64xf32>
    %567 = math.tanh %561 : vector<2x64xf32>
    %568 = vector.extract_strided_slice %566 {offsets = [0, 16], sizes = [2, 16], strides = [1, 1]} : vector<2x64xf32> to vector<2x16xf32>
    %569 = arith.mulf %568, %504 : vector<2x16xf32>
    %570 = vector.extract_strided_slice %566 {offsets = [0, 0], sizes = [2, 16], strides = [1, 1]} : vector<2x64xf32> to vector<2x16xf32>
    %571 = vector.extract_strided_slice %567 {offsets = [0, 32], sizes = [2, 16], strides = [1, 1]} : vector<2x64xf32> to vector<2x16xf32>
    %572 = arith.mulf %570, %571 : vector<2x16xf32>
    %573 = arith.addf %569, %572 : vector<2x16xf32>
    %574 = vector.extract_strided_slice %566 {offsets = [0, 48], sizes = [2, 16], strides = [1, 1]} : vector<2x64xf32> to vector<2x16xf32>
    %575 = math.tanh %573 : vector<2x16xf32>
    %576 = arith.mulf %574, %575 : vector<2x16xf32>
    %cst_270 = arith.constant 0.000000e+00 : f32
    %577 = vector.broadcast %cst_270 : f32 to vector<2x1xf32>
    %578 = arith.cmpf ogt, %553, %577 : vector<2x1xf32>
    %cst_271 = arith.constant 0.000000e+00 : f32
    %579 = vector.shape_cast %578 : vector<2x1xi1> to vector<2x1xi1>
    %580 = vector.broadcast %579 : vector<2x1xi1> to vector<2x16xi1>
    %581 = vector.broadcast %cst_271 : f32 to vector<2x16xf32>
    %582 = arith.select %580, %576, %581 : vector<2x16xi1>, vector<2x16xf32>
    %583 = vector.shape_cast %578 : vector<2x1xi1> to vector<2x1xi1>
    %584 = vector.broadcast %583 : vector<2x1xi1> to vector<2x16xi1>
    %585 = arith.select %584, %576, %501 : vector<2x16xi1>, vector<2x16xf32>
    %586 = vector.shape_cast %578 : vector<2x1xi1> to vector<2x1xi1>
    %587 = vector.broadcast %586 : vector<2x1xi1> to vector<2x16xi1>
    %588 = arith.select %587, %573, %504 : vector<2x16xi1>, vector<2x16xf32>
    %c1_272 = arith.constant 1 : index
    %c0_273 = arith.constant 0 : index
    %c0_274 = arith.constant 0 : index
    %589 = vector.load %arg18[%c1_272, %c0_273, %c0_274] : memref<8x2x16xf32, #tpu.memory_space<vmem>>, vector<1x2x16xf32>
    %590 = vector.shape_cast %589 : vector<1x2x16xf32> to vector<2x16xf32>
    %591 = vector.shape_cast %582 : vector<2x16xf32> to vector<1x2x16xf32>
    tpu.vector_store %arg18[%c1_272, %c0_273, %c0_274], %591 {strides = array<i32>} : memref<8x2x16xf32, #tpu.memory_space<vmem>>, vector<1x2x16xf32>,
    %c7_275 = arith.constant 7 : index
    %c0_276 = arith.constant 0 : index
    %c0_277 = arith.constant 0 : index
    %592 = vector.load %arg0[%c7_275, %c0_276, %c0_277] : memref<8x2x32xf32, #tpu.memory_space<vmem>>, vector<1x2x32xf32>
    %593 = vector.shape_cast %592 : vector<1x2x32xf32> to vector<2x32xf32>
    %c7_278 = arith.constant 7 : index
    %c0_279 = arith.constant 0 : index
    %c0_280 = arith.constant 0 : index
    %594 = vector.load %arg1[%c7_278, %c0_279, %c0_280] : memref<8x2x1xf32, #tpu.memory_space<vmem>>, vector<1x2x1xf32>
    %595 = vector.shape_cast %594 : vector<1x2x1xf32> to vector<2x1xf32>
    %c0_281 = arith.constant 0 : index
    %c0_282 = arith.constant 0 : index
    %596 = vector.load %arg2[%c0_281, %c0_282] : memref<32x64xf32, #tpu.memory_space<vmem>>, vector<32x64xf32>
    %cst_283 = arith.constant dense<0.000000e+00> : vector<2x64xf32>
    %597 = tpu.matmul %593, %596, %cst_283 {dimension_numbers = #tpu.dot_dimension_numbers<[1], [0], [0], [1], [0, 0, 1, 1], [], []>} : vector<2x32xf32>, vector<32x64xf32>, vector<2x64xf32> -> vector<2x64xf32>
    %c0_284 = arith.constant 0 : index
    %c0_285 = arith.constant 0 : index
    %598 = vector.load %arg4[%c0_284, %c0_285] : memref<16x64xf32, #tpu.memory_space<vmem>>, vector<16x64xf32>
    %cst_286 = arith.constant dense<0.000000e+00> : vector<2x64xf32>
    %599 = tpu.matmul %543, %598, %cst_286 {dimension_numbers = #tpu.dot_dimension_numbers<[1], [0], [0], [1], [0, 0, 1, 1], [], []>} : vector<2x16xf32>, vector<16x64xf32>, vector<2x64xf32> -> vector<2x64xf32>
    %600 = arith.addf %597, %599 : vector<2x64xf32>
    %c0_287 = arith.constant 0 : index
    %c0_288 = arith.constant 0 : index
    %601 = vector.load %arg6[%c0_287, %c0_288] : memref<1x64xf32, #tpu.memory_space<vmem>>, vector<1x64xf32>
    %602 = vector.broadcast %601 : vector<1x64xf32> to vector<2x64xf32>
    %603 = arith.addf %600, %602 : vector<2x64xf32>
    %604 = arith.negf %603 : vector<2x64xf32>
    %605 = math.exp %604 : vector<2x64xf32>
    %cst_289 = arith.constant 1.000000e+00 : f32
    %606 = vector.broadcast %cst_289 : f32 to vector<2x64xf32>
    %607 = arith.addf %606, %605 : vector<2x64xf32>
    %608 = arith.divf %606, %607 : vector<2x64xf32>
    %609 = math.tanh %603 : vector<2x64xf32>
    %610 = vector.extract_strided_slice %608 {offsets = [0, 16], sizes = [2, 16], strides = [1, 1]} : vector<2x64xf32> to vector<2x16xf32>
    %611 = arith.mulf %610, %546 : vector<2x16xf32>
    %612 = vector.extract_strided_slice %608 {offsets = [0, 0], sizes = [2, 16], strides = [1, 1]} : vector<2x64xf32> to vector<2x16xf32>
    %613 = vector.extract_strided_slice %609 {offsets = [0, 32], sizes = [2, 16], strides = [1, 1]} : vector<2x64xf32> to vector<2x16xf32>
    %614 = arith.mulf %612, %613 : vector<2x16xf32>
    %615 = arith.addf %611, %614 : vector<2x16xf32>
    %616 = vector.extract_strided_slice %608 {offsets = [0, 48], sizes = [2, 16], strides = [1, 1]} : vector<2x64xf32> to vector<2x16xf32>
    %617 = math.tanh %615 : vector<2x16xf32>
    %618 = arith.mulf %616, %617 : vector<2x16xf32>
    %cst_290 = arith.constant 0.000000e+00 : f32
    %619 = vector.broadcast %cst_290 : f32 to vector<2x1xf32>
    %620 = arith.cmpf ogt, %595, %619 : vector<2x1xf32>
    %cst_291 = arith.constant 0.000000e+00 : f32
    %621 = vector.shape_cast %620 : vector<2x1xi1> to vector<2x1xi1>
    %622 = vector.broadcast %621 : vector<2x1xi1> to vector<2x16xi1>
    %623 = vector.broadcast %cst_291 : f32 to vector<2x16xf32>
    %624 = arith.select %622, %618, %623 : vector<2x16xi1>, vector<2x16xf32>
    %c7_292 = arith.constant 7 : index
    %c0_293 = arith.constant 0 : index
    %c0_294 = arith.constant 0 : index
    %625 = vector.load %arg17[%c7_292, %c0_293, %c0_294] : memref<8x2x16xf32, #tpu.memory_space<vmem>>, vector<1x2x16xf32>
    %626 = vector.shape_cast %625 : vector<1x2x16xf32> to vector<2x16xf32>
    %627 = vector.shape_cast %624 : vector<2x16xf32> to vector<1x2x16xf32>
    tpu.vector_store %arg17[%c7_292, %c0_293, %c0_294], %627 {strides = array<i32>} : memref<8x2x16xf32, #tpu.memory_space<vmem>>, vector<1x2x16xf32>,
    %c0_295 = arith.constant 0 : index
    %c0_296 = arith.constant 0 : index
    %c0_297 = arith.constant 0 : index
    %628 = vector.load %arg0[%c0_295, %c0_296, %c0_297] : memref<8x2x32xf32, #tpu.memory_space<vmem>>, vector<1x2x32xf32>
    %629 = vector.shape_cast %628 : vector<1x2x32xf32> to vector<2x32xf32>
    %c0_298 = arith.constant 0 : index
    %c0_299 = arith.constant 0 : index
    %c0_300 = arith.constant 0 : index
    %630 = vector.load %arg1[%c0_298, %c0_299, %c0_300] : memref<8x2x1xf32, #tpu.memory_space<vmem>>, vector<1x2x1xf32>
    %631 = vector.shape_cast %630 : vector<1x2x1xf32> to vector<2x1xf32>
    %c0_301 = arith.constant 0 : index
    %c0_302 = arith.constant 0 : index
    %632 = vector.load %arg3[%c0_301, %c0_302] : memref<32x64xf32, #tpu.memory_space<vmem>>, vector<32x64xf32>
    %cst_303 = arith.constant dense<0.000000e+00> : vector<2x64xf32>
    %633 = tpu.matmul %629, %632, %cst_303 {dimension_numbers = #tpu.dot_dimension_numbers<[1], [0], [0], [1], [0, 0, 1, 1], [], []>} : vector<2x32xf32>, vector<32x64xf32>, vector<2x64xf32> -> vector<2x64xf32>
    %c0_304 = arith.constant 0 : index
    %c0_305 = arith.constant 0 : index
    %634 = vector.load %arg5[%c0_304, %c0_305] : memref<16x64xf32, #tpu.memory_space<vmem>>, vector<16x64xf32>
    %cst_306 = arith.constant dense<0.000000e+00> : vector<2x64xf32>
    %635 = tpu.matmul %585, %634, %cst_306 {dimension_numbers = #tpu.dot_dimension_numbers<[1], [0], [0], [1], [0, 0, 1, 1], [], []>} : vector<2x16xf32>, vector<16x64xf32>, vector<2x64xf32> -> vector<2x64xf32>
    %636 = arith.addf %633, %635 : vector<2x64xf32>
    %c0_307 = arith.constant 0 : index
    %c0_308 = arith.constant 0 : index
    %637 = vector.load %arg7[%c0_307, %c0_308] : memref<1x64xf32, #tpu.memory_space<vmem>>, vector<1x64xf32>
    %638 = vector.broadcast %637 : vector<1x64xf32> to vector<2x64xf32>
    %639 = arith.addf %636, %638 : vector<2x64xf32>
    %640 = arith.negf %639 : vector<2x64xf32>
    %641 = math.exp %640 : vector<2x64xf32>
    %cst_309 = arith.constant 1.000000e+00 : f32
    %642 = vector.broadcast %cst_309 : f32 to vector<2x64xf32>
    %643 = arith.addf %642, %641 : vector<2x64xf32>
    %644 = arith.divf %642, %643 : vector<2x64xf32>
    %645 = math.tanh %639 : vector<2x64xf32>
    %646 = vector.extract_strided_slice %644 {offsets = [0, 16], sizes = [2, 16], strides = [1, 1]} : vector<2x64xf32> to vector<2x16xf32>
    %647 = arith.mulf %646, %588 : vector<2x16xf32>
    %648 = vector.extract_strided_slice %644 {offsets = [0, 0], sizes = [2, 16], strides = [1, 1]} : vector<2x64xf32> to vector<2x16xf32>
    %649 = vector.extract_strided_slice %645 {offsets = [0, 32], sizes = [2, 16], strides = [1, 1]} : vector<2x64xf32> to vector<2x16xf32>
    %650 = arith.mulf %648, %649 : vector<2x16xf32>
    %651 = arith.addf %647, %650 : vector<2x16xf32>
    %652 = vector.extract_strided_slice %644 {offsets = [0, 48], sizes = [2, 16], strides = [1, 1]} : vector<2x64xf32> to vector<2x16xf32>
    %653 = math.tanh %651 : vector<2x16xf32>
    %654 = arith.mulf %652, %653 : vector<2x16xf32>
    %cst_310 = arith.constant 0.000000e+00 : f32
    %655 = vector.broadcast %cst_310 : f32 to vector<2x1xf32>
    %656 = arith.cmpf ogt, %631, %655 : vector<2x1xf32>
    %cst_311 = arith.constant 0.000000e+00 : f32
    %657 = vector.shape_cast %656 : vector<2x1xi1> to vector<2x1xi1>
    %658 = vector.broadcast %657 : vector<2x1xi1> to vector<2x16xi1>
    %659 = vector.broadcast %cst_311 : f32 to vector<2x16xf32>
    %660 = arith.select %658, %654, %659 : vector<2x16xi1>, vector<2x16xf32>
    %c0_312 = arith.constant 0 : index
    %c0_313 = arith.constant 0 : index
    %c0_314 = arith.constant 0 : index
    %661 = vector.load %arg18[%c0_312, %c0_313, %c0_314] : memref<8x2x16xf32, #tpu.memory_space<vmem>>, vector<1x2x16xf32>
    %662 = vector.shape_cast %661 : vector<1x2x16xf32> to vector<2x16xf32>
    %663 = vector.shape_cast %660 : vector<2x16xf32> to vector<1x2x16xf32>
    tpu.vector_store %arg18[%c0_312, %c0_313, %c0_314], %663 {strides = array<i32>} : memref<8x2x16xf32, #tpu.memory_space<vmem>>, vector<1x2x16xf32>,
    %cst_315 = arith.constant 0.000000e+00 : f32
    %664 = vector.broadcast %cst_315 : f32 to vector<2x16xf32>
    %cst_316 = arith.constant 0.000000e+00 : f32
    %665 = vector.broadcast %cst_316 : f32 to vector<2x16xf32>
    %cst_317 = arith.constant 0.000000e+00 : f32
    %666 = vector.broadcast %cst_317 : f32 to vector<2x16xf32>
    %cst_318 = arith.constant 0.000000e+00 : f32
    %667 = vector.broadcast %cst_318 : f32 to vector<2x16xf32>
    %c0_319 = arith.constant 0 : index
    %c0_320 = arith.constant 0 : index
    %c0_321 = arith.constant 0 : index
    %668 = vector.load %arg17[%c0_319, %c0_320, %c0_321] : memref<8x2x16xf32, #tpu.memory_space<vmem>>, vector<1x2x16xf32>
    %669 = vector.shape_cast %668 : vector<1x2x16xf32> to vector<2x16xf32>
    %c0_322 = arith.constant 0 : index
    %c0_323 = arith.constant 0 : index
    %c0_324 = arith.constant 0 : index
    %670 = vector.load %arg18[%c0_322, %c0_323, %c0_324] : memref<8x2x16xf32, #tpu.memory_space<vmem>>, vector<1x2x16xf32>
    %671 = vector.shape_cast %670 : vector<1x2x16xf32> to vector<2x16xf32>
    %672 = tpu.concatenate %669, %671 in 1 : vector<2x16xf32>, vector<2x16xf32> -> vector<2x32xf32>
    %c0_325 = arith.constant 0 : index
    %c0_326 = arith.constant 0 : index
    %c0_327 = arith.constant 0 : index
    %673 = vector.load %arg1[%c0_325, %c0_326, %c0_327] : memref<8x2x1xf32, #tpu.memory_space<vmem>>, vector<1x2x1xf32>
    %674 = vector.shape_cast %673 : vector<1x2x1xf32> to vector<2x1xf32>
    %c0_328 = arith.constant 0 : index
    %c0_329 = arith.constant 0 : index
    %675 = vector.load %arg8[%c0_328, %c0_329] : memref<32x64xf32, #tpu.memory_space<vmem>>, vector<32x64xf32>
    %cst_330 = arith.constant dense<0.000000e+00> : vector<2x64xf32>
    %676 = tpu.matmul %672, %675, %cst_330 {dimension_numbers = #tpu.dot_dimension_numbers<[1], [0], [0], [1], [0, 0, 1, 1], [], []>} : vector<2x32xf32>, vector<32x64xf32>, vector<2x64xf32> -> vector<2x64xf32>
    %c0_331 = arith.constant 0 : index
    %c0_332 = arith.constant 0 : index
    %677 = vector.load %arg10[%c0_331, %c0_332] : memref<16x64xf32, #tpu.memory_space<vmem>>, vector<16x64xf32>
    %cst_333 = arith.constant dense<0.000000e+00> : vector<2x64xf32>
    %678 = tpu.matmul %664, %677, %cst_333 {dimension_numbers = #tpu.dot_dimension_numbers<[1], [0], [0], [1], [0, 0, 1, 1], [], []>} : vector<2x16xf32>, vector<16x64xf32>, vector<2x64xf32> -> vector<2x64xf32>
    %679 = arith.addf %676, %678 : vector<2x64xf32>
    %c0_334 = arith.constant 0 : index
    %c0_335 = arith.constant 0 : index
    %680 = vector.load %arg12[%c0_334, %c0_335] : memref<1x64xf32, #tpu.memory_space<vmem>>, vector<1x64xf32>
    %681 = vector.broadcast %680 : vector<1x64xf32> to vector<2x64xf32>
    %682 = arith.addf %679, %681 : vector<2x64xf32>
    %683 = arith.negf %682 : vector<2x64xf32>
    %684 = math.exp %683 : vector<2x64xf32>
    %cst_336 = arith.constant 1.000000e+00 : f32
    %685 = vector.broadcast %cst_336 : f32 to vector<2x64xf32>
    %686 = arith.addf %685, %684 : vector<2x64xf32>
    %687 = arith.divf %685, %686 : vector<2x64xf32>
    %688 = math.tanh %682 : vector<2x64xf32>
    %689 = vector.extract_strided_slice %687 {offsets = [0, 16], sizes = [2, 16], strides = [1, 1]} : vector<2x64xf32> to vector<2x16xf32>
    %690 = arith.mulf %689, %665 : vector<2x16xf32>
    %691 = vector.extract_strided_slice %687 {offsets = [0, 0], sizes = [2, 16], strides = [1, 1]} : vector<2x64xf32> to vector<2x16xf32>
    %692 = vector.extract_strided_slice %688 {offsets = [0, 32], sizes = [2, 16], strides = [1, 1]} : vector<2x64xf32> to vector<2x16xf32>
    %693 = arith.mulf %691, %692 : vector<2x16xf32>
    %694 = arith.addf %690, %693 : vector<2x16xf32>
    %695 = vector.extract_strided_slice %687 {offsets = [0, 48], sizes = [2, 16], strides = [1, 1]} : vector<2x64xf32> to vector<2x16xf32>
    %696 = math.tanh %694 : vector<2x16xf32>
    %697 = arith.mulf %695, %696 : vector<2x16xf32>
    %cst_337 = arith.constant 0.000000e+00 : f32
    %698 = vector.broadcast %cst_337 : f32 to vector<2x1xf32>
    %699 = arith.cmpf ogt, %674, %698 : vector<2x1xf32>
    %cst_338 = arith.constant 0.000000e+00 : f32
    %700 = vector.shape_cast %699 : vector<2x1xi1> to vector<2x1xi1>
    %701 = vector.broadcast %700 : vector<2x1xi1> to vector<2x16xi1>
    %702 = vector.broadcast %cst_338 : f32 to vector<2x16xf32>
    %703 = arith.select %701, %697, %702 : vector<2x16xi1>, vector<2x16xf32>
    %704 = vector.shape_cast %699 : vector<2x1xi1> to vector<2x1xi1>
    %705 = vector.broadcast %704 : vector<2x1xi1> to vector<2x16xi1>
    %706 = arith.select %705, %697, %664 : vector<2x16xi1>, vector<2x16xf32>
    %707 = vector.shape_cast %699 : vector<2x1xi1> to vector<2x1xi1>
    %708 = vector.broadcast %707 : vector<2x1xi1> to vector<2x16xi1>
    %709 = arith.select %708, %694, %665 : vector<2x16xi1>, vector<2x16xf32>
    %c0_339 = arith.constant 0 : index
    %c0_340 = arith.constant 0 : index
    %c0_341 = arith.constant 0 : index
    %710 = vector.load %arg19[%c0_339, %c0_340, %c0_341] : memref<8x2x16xf32, #tpu.memory_space<vmem>>, vector<1x2x16xf32>
    %711 = vector.shape_cast %710 : vector<1x2x16xf32> to vector<2x16xf32>
    %712 = vector.shape_cast %703 : vector<2x16xf32> to vector<1x2x16xf32>
    tpu.vector_store %arg19[%c0_339, %c0_340, %c0_341], %712 {strides = array<i32>} : memref<8x2x16xf32, #tpu.memory_space<vmem>>, vector<1x2x16xf32>,
    %c7_342 = arith.constant 7 : index
    %c0_343 = arith.constant 0 : index
    %c0_344 = arith.constant 0 : index
    %713 = vector.load %arg17[%c7_342, %c0_343, %c0_344] : memref<8x2x16xf32, #tpu.memory_space<vmem>>, vector<1x2x16xf32>
    %714 = vector.shape_cast %713 : vector<1x2x16xf32> to vector<2x16xf32>
    %c7_345 = arith.constant 7 : index
    %c0_346 = arith.constant 0 : index
    %c0_347 = arith.constant 0 : index
    %715 = vector.load %arg18[%c7_345, %c0_346, %c0_347] : memref<8x2x16xf32, #tpu.memory_space<vmem>>, vector<1x2x16xf32>
    %716 = vector.shape_cast %715 : vector<1x2x16xf32> to vector<2x16xf32>
    %717 = tpu.concatenate %714, %716 in 1 : vector<2x16xf32>, vector<2x16xf32> -> vector<2x32xf32>
    %c7_348 = arith.constant 7 : index
    %c0_349 = arith.constant 0 : index
    %c0_350 = arith.constant 0 : index
    %718 = vector.load %arg1[%c7_348, %c0_349, %c0_350] : memref<8x2x1xf32, #tpu.memory_space<vmem>>, vector<1x2x1xf32>
    %719 = vector.shape_cast %718 : vector<1x2x1xf32> to vector<2x1xf32>
    %c0_351 = arith.constant 0 : index
    %c0_352 = arith.constant 0 : index
    %720 = vector.load %arg9[%c0_351, %c0_352] : memref<32x64xf32, #tpu.memory_space<vmem>>, vector<32x64xf32>
    %cst_353 = arith.constant dense<0.000000e+00> : vector<2x64xf32>
    %721 = tpu.matmul %717, %720, %cst_353 {dimension_numbers = #tpu.dot_dimension_numbers<[1], [0], [0], [1], [0, 0, 1, 1], [], []>} : vector<2x32xf32>, vector<32x64xf32>, vector<2x64xf32> -> vector<2x64xf32>
    %c0_354 = arith.constant 0 : index
    %c0_355 = arith.constant 0 : index
    %722 = vector.load %arg11[%c0_354, %c0_355] : memref<16x64xf32, #tpu.memory_space<vmem>>, vector<16x64xf32>
    %cst_356 = arith.constant dense<0.000000e+00> : vector<2x64xf32>
    %723 = tpu.matmul %666, %722, %cst_356 {dimension_numbers = #tpu.dot_dimension_numbers<[1], [0], [0], [1], [0, 0, 1, 1], [], []>} : vector<2x16xf32>, vector<16x64xf32>, vector<2x64xf32> -> vector<2x64xf32>
    %724 = arith.addf %721, %723 : vector<2x64xf32>
    %c0_357 = arith.constant 0 : index
    %c0_358 = arith.constant 0 : index
    %725 = vector.load %arg13[%c0_357, %c0_358] : memref<1x64xf32, #tpu.memory_space<vmem>>, vector<1x64xf32>
    %726 = vector.broadcast %725 : vector<1x64xf32> to vector<2x64xf32>
    %727 = arith.addf %724, %726 : vector<2x64xf32>
    %728 = arith.negf %727 : vector<2x64xf32>
    %729 = math.exp %728 : vector<2x64xf32>
    %cst_359 = arith.constant 1.000000e+00 : f32
    %730 = vector.broadcast %cst_359 : f32 to vector<2x64xf32>
    %731 = arith.addf %730, %729 : vector<2x64xf32>
    %732 = arith.divf %730, %731 : vector<2x64xf32>
    %733 = math.tanh %727 : vector<2x64xf32>
    %734 = vector.extract_strided_slice %732 {offsets = [0, 16], sizes = [2, 16], strides = [1, 1]} : vector<2x64xf32> to vector<2x16xf32>
    %735 = arith.mulf %734, %667 : vector<2x16xf32>
    %736 = vector.extract_strided_slice %732 {offsets = [0, 0], sizes = [2, 16], strides = [1, 1]} : vector<2x64xf32> to vector<2x16xf32>
    %737 = vector.extract_strided_slice %733 {offsets = [0, 32], sizes = [2, 16], strides = [1, 1]} : vector<2x64xf32> to vector<2x16xf32>
    %738 = arith.mulf %736, %737 : vector<2x16xf32>
    %739 = arith.addf %735, %738 : vector<2x16xf32>
    %740 = vector.extract_strided_slice %732 {offsets = [0, 48], sizes = [2, 16], strides = [1, 1]} : vector<2x64xf32> to vector<2x16xf32>
    %741 = math.tanh %739 : vector<2x16xf32>
    %742 = arith.mulf %740, %741 : vector<2x16xf32>
    %cst_360 = arith.constant 0.000000e+00 : f32
    %743 = vector.broadcast %cst_360 : f32 to vector<2x1xf32>
    %744 = arith.cmpf ogt, %719, %743 : vector<2x1xf32>
    %cst_361 = arith.constant 0.000000e+00 : f32
    %745 = vector.shape_cast %744 : vector<2x1xi1> to vector<2x1xi1>
    %746 = vector.broadcast %745 : vector<2x1xi1> to vector<2x16xi1>
    %747 = vector.broadcast %cst_361 : f32 to vector<2x16xf32>
    %748 = arith.select %746, %742, %747 : vector<2x16xi1>, vector<2x16xf32>
    %749 = vector.shape_cast %744 : vector<2x1xi1> to vector<2x1xi1>
    %750 = vector.broadcast %749 : vector<2x1xi1> to vector<2x16xi1>
    %751 = arith.select %750, %742, %666 : vector<2x16xi1>, vector<2x16xf32>
    %752 = vector.shape_cast %744 : vector<2x1xi1> to vector<2x1xi1>
    %753 = vector.broadcast %752 : vector<2x1xi1> to vector<2x16xi1>
    %754 = arith.select %753, %739, %667 : vector<2x16xi1>, vector<2x16xf32>
    %c7_362 = arith.constant 7 : index
    %c0_363 = arith.constant 0 : index
    %c0_364 = arith.constant 0 : index
    %755 = vector.load %arg20[%c7_362, %c0_363, %c0_364] : memref<8x2x16xf32, #tpu.memory_space<vmem>>, vector<1x2x16xf32>
    %756 = vector.shape_cast %755 : vector<1x2x16xf32> to vector<2x16xf32>
    %757 = vector.shape_cast %748 : vector<2x16xf32> to vector<1x2x16xf32>
    tpu.vector_store %arg20[%c7_362, %c0_363, %c0_364], %757 {strides = array<i32>} : memref<8x2x16xf32, #tpu.memory_space<vmem>>, vector<1x2x16xf32>,
    %c1_365 = arith.constant 1 : index
    %c0_366 = arith.constant 0 : index
    %c0_367 = arith.constant 0 : index
    %758 = vector.load %arg17[%c1_365, %c0_366, %c0_367] : memref<8x2x16xf32, #tpu.memory_space<vmem>>, vector<1x2x16xf32>
    %759 = vector.shape_cast %758 : vector<1x2x16xf32> to vector<2x16xf32>
    %c1_368 = arith.constant 1 : index
    %c0_369 = arith.constant 0 : index
    %c0_370 = arith.constant 0 : index
    %760 = vector.load %arg18[%c1_368, %c0_369, %c0_370] : memref<8x2x16xf32, #tpu.memory_space<vmem>>, vector<1x2x16xf32>
    %761 = vector.shape_cast %760 : vector<1x2x16xf32> to vector<2x16xf32>
    %762 = tpu.concatenate %759, %761 in 1 : vector<2x16xf32>, vector<2x16xf32> -> vector<2x32xf32>
    %c1_371 = arith.constant 1 : index
    %c0_372 = arith.constant 0 : index
    %c0_373 = arith.constant 0 : index
    %763 = vector.load %arg1[%c1_371, %c0_372, %c0_373] : memref<8x2x1xf32, #tpu.memory_space<vmem>>, vector<1x2x1xf32>
    %764 = vector.shape_cast %763 : vector<1x2x1xf32> to vector<2x1xf32>
    %c0_374 = arith.constant 0 : index
    %c0_375 = arith.constant 0 : index
    %765 = vector.load %arg8[%c0_374, %c0_375] : memref<32x64xf32, #tpu.memory_space<vmem>>, vector<32x64xf32>
    %cst_376 = arith.constant dense<0.000000e+00> : vector<2x64xf32>
    %766 = tpu.matmul %762, %765, %cst_376 {dimension_numbers = #tpu.dot_dimension_numbers<[1], [0], [0], [1], [0, 0, 1, 1], [], []>} : vector<2x32xf32>, vector<32x64xf32>, vector<2x64xf32> -> vector<2x64xf32>
    %c0_377 = arith.constant 0 : index
    %c0_378 = arith.constant 0 : index
    %767 = vector.load %arg10[%c0_377, %c0_378] : memref<16x64xf32, #tpu.memory_space<vmem>>, vector<16x64xf32>
    %cst_379 = arith.constant dense<0.000000e+00> : vector<2x64xf32>
    %768 = tpu.matmul %706, %767, %cst_379 {dimension_numbers = #tpu.dot_dimension_numbers<[1], [0], [0], [1], [0, 0, 1, 1], [], []>} : vector<2x16xf32>, vector<16x64xf32>, vector<2x64xf32> -> vector<2x64xf32>
    %769 = arith.addf %766, %768 : vector<2x64xf32>
    %c0_380 = arith.constant 0 : index
    %c0_381 = arith.constant 0 : index
    %770 = vector.load %arg12[%c0_380, %c0_381] : memref<1x64xf32, #tpu.memory_space<vmem>>, vector<1x64xf32>
    %771 = vector.broadcast %770 : vector<1x64xf32> to vector<2x64xf32>
    %772 = arith.addf %769, %771 : vector<2x64xf32>
    %773 = arith.negf %772 : vector<2x64xf32>
    %774 = math.exp %773 : vector<2x64xf32>
    %cst_382 = arith.constant 1.000000e+00 : f32
    %775 = vector.broadcast %cst_382 : f32 to vector<2x64xf32>
    %776 = arith.addf %775, %774 : vector<2x64xf32>
    %777 = arith.divf %775, %776 : vector<2x64xf32>
    %778 = math.tanh %772 : vector<2x64xf32>
    %779 = vector.extract_strided_slice %777 {offsets = [0, 16], sizes = [2, 16], strides = [1, 1]} : vector<2x64xf32> to vector<2x16xf32>
    %780 = arith.mulf %779, %709 : vector<2x16xf32>
    %781 = vector.extract_strided_slice %777 {offsets = [0, 0], sizes = [2, 16], strides = [1, 1]} : vector<2x64xf32> to vector<2x16xf32>
    %782 = vector.extract_strided_slice %778 {offsets = [0, 32], sizes = [2, 16], strides = [1, 1]} : vector<2x64xf32> to vector<2x16xf32>
    %783 = arith.mulf %781, %782 : vector<2x16xf32>
    %784 = arith.addf %780, %783 : vector<2x16xf32>
    %785 = vector.extract_strided_slice %777 {offsets = [0, 48], sizes = [2, 16], strides = [1, 1]} : vector<2x64xf32> to vector<2x16xf32>
    %786 = math.tanh %784 : vector<2x16xf32>
    %787 = arith.mulf %785, %786 : vector<2x16xf32>
    %cst_383 = arith.constant 0.000000e+00 : f32
    %788 = vector.broadcast %cst_383 : f32 to vector<2x1xf32>
    %789 = arith.cmpf ogt, %764, %788 : vector<2x1xf32>
    %cst_384 = arith.constant 0.000000e+00 : f32
    %790 = vector.shape_cast %789 : vector<2x1xi1> to vector<2x1xi1>
    %791 = vector.broadcast %790 : vector<2x1xi1> to vector<2x16xi1>
    %792 = vector.broadcast %cst_384 : f32 to vector<2x16xf32>
    %793 = arith.select %791, %787, %792 : vector<2x16xi1>, vector<2x16xf32>
    %794 = vector.shape_cast %789 : vector<2x1xi1> to vector<2x1xi1>
    %795 = vector.broadcast %794 : vector<2x1xi1> to vector<2x16xi1>
    %796 = arith.select %795, %787, %706 : vector<2x16xi1>, vector<2x16xf32>
    %797 = vector.shape_cast %789 : vector<2x1xi1> to vector<2x1xi1>
    %798 = vector.broadcast %797 : vector<2x1xi1> to vector<2x16xi1>
    %799 = arith.select %798, %784, %709 : vector<2x16xi1>, vector<2x16xf32>
    %c1_385 = arith.constant 1 : index
    %c0_386 = arith.constant 0 : index
    %c0_387 = arith.constant 0 : index
    %800 = vector.load %arg19[%c1_385, %c0_386, %c0_387] : memref<8x2x16xf32, #tpu.memory_space<vmem>>, vector<1x2x16xf32>
    %801 = vector.shape_cast %800 : vector<1x2x16xf32> to vector<2x16xf32>
    %802 = vector.shape_cast %793 : vector<2x16xf32> to vector<1x2x16xf32>
    tpu.vector_store %arg19[%c1_385, %c0_386, %c0_387], %802 {strides = array<i32>} : memref<8x2x16xf32, #tpu.memory_space<vmem>>, vector<1x2x16xf32>,
    %c6_388 = arith.constant 6 : index
    %c0_389 = arith.constant 0 : index
    %c0_390 = arith.constant 0 : index
    %803 = vector.load %arg17[%c6_388, %c0_389, %c0_390] : memref<8x2x16xf32, #tpu.memory_space<vmem>>, vector<1x2x16xf32>
    %804 = vector.shape_cast %803 : vector<1x2x16xf32> to vector<2x16xf32>
    %c6_391 = arith.constant 6 : index
    %c0_392 = arith.constant 0 : index
    %c0_393 = arith.constant 0 : index
    %805 = vector.load %arg18[%c6_391, %c0_392, %c0_393] : memref<8x2x16xf32, #tpu.memory_space<vmem>>, vector<1x2x16xf32>
    %806 = vector.shape_cast %805 : vector<1x2x16xf32> to vector<2x16xf32>
    %807 = tpu.concatenate %804, %806 in 1 : vector<2x16xf32>, vector<2x16xf32> -> vector<2x32xf32>
    %c6_394 = arith.constant 6 : index
    %c0_395 = arith.constant 0 : index
    %c0_396 = arith.constant 0 : index
    %808 = vector.load %arg1[%c6_394, %c0_395, %c0_396] : memref<8x2x1xf32, #tpu.memory_space<vmem>>, vector<1x2x1xf32>
    %809 = vector.shape_cast %808 : vector<1x2x1xf32> to vector<2x1xf32>
    %c0_397 = arith.constant 0 : index
    %c0_398 = arith.constant 0 : index
    %810 = vector.load %arg9[%c0_397, %c0_398] : memref<32x64xf32, #tpu.memory_space<vmem>>, vector<32x64xf32>
    %cst_399 = arith.constant dense<0.000000e+00> : vector<2x64xf32>
    %811 = tpu.matmul %807, %810, %cst_399 {dimension_numbers = #tpu.dot_dimension_numbers<[1], [0], [0], [1], [0, 0, 1, 1], [], []>} : vector<2x32xf32>, vector<32x64xf32>, vector<2x64xf32> -> vector<2x64xf32>
    %c0_400 = arith.constant 0 : index
    %c0_401 = arith.constant 0 : index
    %812 = vector.load %arg11[%c0_400, %c0_401] : memref<16x64xf32, #tpu.memory_space<vmem>>, vector<16x64xf32>
    %cst_402 = arith.constant dense<0.000000e+00> : vector<2x64xf32>
    %813 = tpu.matmul %751, %812, %cst_402 {dimension_numbers = #tpu.dot_dimension_numbers<[1], [0], [0], [1], [0, 0, 1, 1], [], []>} : vector<2x16xf32>, vector<16x64xf32>, vector<2x64xf32> -> vector<2x64xf32>
    %814 = arith.addf %811, %813 : vector<2x64xf32>
    %c0_403 = arith.constant 0 : index
    %c0_404 = arith.constant 0 : index
    %815 = vector.load %arg13[%c0_403, %c0_404] : memref<1x64xf32, #tpu.memory_space<vmem>>, vector<1x64xf32>
    %816 = vector.broadcast %815 : vector<1x64xf32> to vector<2x64xf32>
    %817 = arith.addf %814, %816 : vector<2x64xf32>
    %818 = arith.negf %817 : vector<2x64xf32>
    %819 = math.exp %818 : vector<2x64xf32>
    %cst_405 = arith.constant 1.000000e+00 : f32
    %820 = vector.broadcast %cst_405 : f32 to vector<2x64xf32>
    %821 = arith.addf %820, %819 : vector<2x64xf32>
    %822 = arith.divf %820, %821 : vector<2x64xf32>
    %823 = math.tanh %817 : vector<2x64xf32>
    %824 = vector.extract_strided_slice %822 {offsets = [0, 16], sizes = [2, 16], strides = [1, 1]} : vector<2x64xf32> to vector<2x16xf32>
    %825 = arith.mulf %824, %754 : vector<2x16xf32>
    %826 = vector.extract_strided_slice %822 {offsets = [0, 0], sizes = [2, 16], strides = [1, 1]} : vector<2x64xf32> to vector<2x16xf32>
    %827 = vector.extract_strided_slice %823 {offsets = [0, 32], sizes = [2, 16], strides = [1, 1]} : vector<2x64xf32> to vector<2x16xf32>
    %828 = arith.mulf %826, %827 : vector<2x16xf32>
    %829 = arith.addf %825, %828 : vector<2x16xf32>
    %830 = vector.extract_strided_slice %822 {offsets = [0, 48], sizes = [2, 16], strides = [1, 1]} : vector<2x64xf32> to vector<2x16xf32>
    %831 = math.tanh %829 : vector<2x16xf32>
    %832 = arith.mulf %830, %831 : vector<2x16xf32>
    %cst_406 = arith.constant 0.000000e+00 : f32
    %833 = vector.broadcast %cst_406 : f32 to vector<2x1xf32>
    %834 = arith.cmpf ogt, %809, %833 : vector<2x1xf32>
    %cst_407 = arith.constant 0.000000e+00 : f32
    %835 = vector.shape_cast %834 : vector<2x1xi1> to vector<2x1xi1>
    %836 = vector.broadcast %835 : vector<2x1xi1> to vector<2x16xi1>
    %837 = vector.broadcast %cst_407 : f32 to vector<2x16xf32>
    %838 = arith.select %836, %832, %837 : vector<2x16xi1>, vector<2x16xf32>
    %839 = vector.shape_cast %834 : vector<2x1xi1> to vector<2x1xi1>
    %840 = vector.broadcast %839 : vector<2x1xi1> to vector<2x16xi1>
    %841 = arith.select %840, %832, %751 : vector<2x16xi1>, vector<2x16xf32>
    %842 = vector.shape_cast %834 : vector<2x1xi1> to vector<2x1xi1>
    %843 = vector.broadcast %842 : vector<2x1xi1> to vector<2x16xi1>
    %844 = arith.select %843, %829, %754 : vector<2x16xi1>, vector<2x16xf32>
    %c6_408 = arith.constant 6 : index
    %c0_409 = arith.constant 0 : index
    %c0_410 = arith.constant 0 : index
    %845 = vector.load %arg20[%c6_408, %c0_409, %c0_410] : memref<8x2x16xf32, #tpu.memory_space<vmem>>, vector<1x2x16xf32>
    %846 = vector.shape_cast %845 : vector<1x2x16xf32> to vector<2x16xf32>
    %847 = vector.shape_cast %838 : vector<2x16xf32> to vector<1x2x16xf32>
    tpu.vector_store %arg20[%c6_408, %c0_409, %c0_410], %847 {strides = array<i32>} : memref<8x2x16xf32, #tpu.memory_space<vmem>>, vector<1x2x16xf32>,
    %c2_411 = arith.constant 2 : index
    %c0_412 = arith.constant 0 : index
    %c0_413 = arith.constant 0 : index
    %848 = vector.load %arg17[%c2_411, %c0_412, %c0_413] : memref<8x2x16xf32, #tpu.memory_space<vmem>>, vector<1x2x16xf32>
    %849 = vector.shape_cast %848 : vector<1x2x16xf32> to vector<2x16xf32>
    %c2_414 = arith.constant 2 : index
    %c0_415 = arith.constant 0 : index
    %c0_416 = arith.constant 0 : index
    %850 = vector.load %arg18[%c2_414, %c0_415, %c0_416] : memref<8x2x16xf32, #tpu.memory_space<vmem>>, vector<1x2x16xf32>
    %851 = vector.shape_cast %850 : vector<1x2x16xf32> to vector<2x16xf32>
    %852 = tpu.concatenate %849, %851 in 1 : vector<2x16xf32>, vector<2x16xf32> -> vector<2x32xf32>
    %c2_417 = arith.constant 2 : index
    %c0_418 = arith.constant 0 : index
    %c0_419 = arith.constant 0 : index
    %853 = vector.load %arg1[%c2_417, %c0_418, %c0_419] : memref<8x2x1xf32, #tpu.memory_space<vmem>>, vector<1x2x1xf32>
    %854 = vector.shape_cast %853 : vector<1x2x1xf32> to vector<2x1xf32>
    %c0_420 = arith.constant 0 : index
    %c0_421 = arith.constant 0 : index
    %855 = vector.load %arg8[%c0_420, %c0_421] : memref<32x64xf32, #tpu.memory_space<vmem>>, vector<32x64xf32>
    %cst_422 = arith.constant dense<0.000000e+00> : vector<2x64xf32>
    %856 = tpu.matmul %852, %855, %cst_422 {dimension_numbers = #tpu.dot_dimension_numbers<[1], [0], [0], [1], [0, 0, 1, 1], [], []>} : vector<2x32xf32>, vector<32x64xf32>, vector<2x64xf32> -> vector<2x64xf32>
    %c0_423 = arith.constant 0 : index
    %c0_424 = arith.constant 0 : index
    %857 = vector.load %arg10[%c0_423, %c0_424] : memref<16x64xf32, #tpu.memory_space<vmem>>, vector<16x64xf32>
    %cst_425 = arith.constant dense<0.000000e+00> : vector<2x64xf32>
    %858 = tpu.matmul %796, %857, %cst_425 {dimension_numbers = #tpu.dot_dimension_numbers<[1], [0], [0], [1], [0, 0, 1, 1], [], []>} : vector<2x16xf32>, vector<16x64xf32>, vector<2x64xf32> -> vector<2x64xf32>
    %859 = arith.addf %856, %858 : vector<2x64xf32>
    %c0_426 = arith.constant 0 : index
    %c0_427 = arith.constant 0 : index
    %860 = vector.load %arg12[%c0_426, %c0_427] : memref<1x64xf32, #tpu.memory_space<vmem>>, vector<1x64xf32>
    %861 = vector.broadcast %860 : vector<1x64xf32> to vector<2x64xf32>
    %862 = arith.addf %859, %861 : vector<2x64xf32>
    %863 = arith.negf %862 : vector<2x64xf32>
    %864 = math.exp %863 : vector<2x64xf32>
    %cst_428 = arith.constant 1.000000e+00 : f32
    %865 = vector.broadcast %cst_428 : f32 to vector<2x64xf32>
    %866 = arith.addf %865, %864 : vector<2x64xf32>
    %867 = arith.divf %865, %866 : vector<2x64xf32>
    %868 = math.tanh %862 : vector<2x64xf32>
    %869 = vector.extract_strided_slice %867 {offsets = [0, 16], sizes = [2, 16], strides = [1, 1]} : vector<2x64xf32> to vector<2x16xf32>
    %870 = arith.mulf %869, %799 : vector<2x16xf32>
    %871 = vector.extract_strided_slice %867 {offsets = [0, 0], sizes = [2, 16], strides = [1, 1]} : vector<2x64xf32> to vector<2x16xf32>
    %872 = vector.extract_strided_slice %868 {offsets = [0, 32], sizes = [2, 16], strides = [1, 1]} : vector<2x64xf32> to vector<2x16xf32>
    %873 = arith.mulf %871, %872 : vector<2x16xf32>
    %874 = arith.addf %870, %873 : vector<2x16xf32>
    %875 = vector.extract_strided_slice %867 {offsets = [0, 48], sizes = [2, 16], strides = [1, 1]} : vector<2x64xf32> to vector<2x16xf32>
    %876 = math.tanh %874 : vector<2x16xf32>
    %877 = arith.mulf %875, %876 : vector<2x16xf32>
    %cst_429 = arith.constant 0.000000e+00 : f32
    %878 = vector.broadcast %cst_429 : f32 to vector<2x1xf32>
    %879 = arith.cmpf ogt, %854, %878 : vector<2x1xf32>
    %cst_430 = arith.constant 0.000000e+00 : f32
    %880 = vector.shape_cast %879 : vector<2x1xi1> to vector<2x1xi1>
    %881 = vector.broadcast %880 : vector<2x1xi1> to vector<2x16xi1>
    %882 = vector.broadcast %cst_430 : f32 to vector<2x16xf32>
    %883 = arith.select %881, %877, %882 : vector<2x16xi1>, vector<2x16xf32>
    %884 = vector.shape_cast %879 : vector<2x1xi1> to vector<2x1xi1>
    %885 = vector.broadcast %884 : vector<2x1xi1> to vector<2x16xi1>
    %886 = arith.select %885, %877, %796 : vector<2x16xi1>, vector<2x16xf32>
    %887 = vector.shape_cast %879 : vector<2x1xi1> to vector<2x1xi1>
    %888 = vector.broadcast %887 : vector<2x1xi1> to vector<2x16xi1>
    %889 = arith.select %888, %874, %799 : vector<2x16xi1>, vector<2x16xf32>
    %c2_431 = arith.constant 2 : index
    %c0_432 = arith.constant 0 : index
    %c0_433 = arith.constant 0 : index
    %890 = vector.load %arg19[%c2_431, %c0_432, %c0_433] : memref<8x2x16xf32, #tpu.memory_space<vmem>>, vector<1x2x16xf32>
    %891 = vector.shape_cast %890 : vector<1x2x16xf32> to vector<2x16xf32>
    %892 = vector.shape_cast %883 : vector<2x16xf32> to vector<1x2x16xf32>
    tpu.vector_store %arg19[%c2_431, %c0_432, %c0_433], %892 {strides = array<i32>} : memref<8x2x16xf32, #tpu.memory_space<vmem>>, vector<1x2x16xf32>,
    %c5_434 = arith.constant 5 : index
    %c0_435 = arith.constant 0 : index
    %c0_436 = arith.constant 0 : index
    %893 = vector.load %arg17[%c5_434, %c0_435, %c0_436] : memref<8x2x16xf32, #tpu.memory_space<vmem>>, vector<1x2x16xf32>
    %894 = vector.shape_cast %893 : vector<1x2x16xf32> to vector<2x16xf32>
    %c5_437 = arith.constant 5 : index
    %c0_438 = arith.constant 0 : index
    %c0_439 = arith.constant 0 : index
    %895 = vector.load %arg18[%c5_437, %c0_438, %c0_439] : memref<8x2x16xf32, #tpu.memory_space<vmem>>, vector<1x2x16xf32>
    %896 = vector.shape_cast %895 : vector<1x2x16xf32> to vector<2x16xf32>
    %897 = tpu.concatenate %894, %896 in 1 : vector<2x16xf32>, vector<2x16xf32> -> vector<2x32xf32>
    %c5_440 = arith.constant 5 : index
    %c0_441 = arith.constant 0 : index
    %c0_442 = arith.constant 0 : index
    %898 = vector.load %arg1[%c5_440, %c0_441, %c0_442] : memref<8x2x1xf32, #tpu.memory_space<vmem>>, vector<1x2x1xf32>
    %899 = vector.shape_cast %898 : vector<1x2x1xf32> to vector<2x1xf32>
    %c0_443 = arith.constant 0 : index
    %c0_444 = arith.constant 0 : index
    %900 = vector.load %arg9[%c0_443, %c0_444] : memref<32x64xf32, #tpu.memory_space<vmem>>, vector<32x64xf32>
    %cst_445 = arith.constant dense<0.000000e+00> : vector<2x64xf32>
    %901 = tpu.matmul %897, %900, %cst_445 {dimension_numbers = #tpu.dot_dimension_numbers<[1], [0], [0], [1], [0, 0, 1, 1], [], []>} : vector<2x32xf32>, vector<32x64xf32>, vector<2x64xf32> -> vector<2x64xf32>
    %c0_446 = arith.constant 0 : index
    %c0_447 = arith.constant 0 : index
    %902 = vector.load %arg11[%c0_446, %c0_447] : memref<16x64xf32, #tpu.memory_space<vmem>>, vector<16x64xf32>
    %cst_448 = arith.constant dense<0.000000e+00> : vector<2x64xf32>
    %903 = tpu.matmul %841, %902, %cst_448 {dimension_numbers = #tpu.dot_dimension_numbers<[1], [0], [0], [1], [0, 0, 1, 1], [], []>} : vector<2x16xf32>, vector<16x64xf32>, vector<2x64xf32> -> vector<2x64xf32>
    %904 = arith.addf %901, %903 : vector<2x64xf32>
    %c0_449 = arith.constant 0 : index
    %c0_450 = arith.constant 0 : index
    %905 = vector.load %arg13[%c0_449, %c0_450] : memref<1x64xf32, #tpu.memory_space<vmem>>, vector<1x64xf32>
    %906 = vector.broadcast %905 : vector<1x64xf32> to vector<2x64xf32>
    %907 = arith.addf %904, %906 : vector<2x64xf32>
    %908 = arith.negf %907 : vector<2x64xf32>
    %909 = math.exp %908 : vector<2x64xf32>
    %cst_451 = arith.constant 1.000000e+00 : f32
    %910 = vector.broadcast %cst_451 : f32 to vector<2x64xf32>
    %911 = arith.addf %910, %909 : vector<2x64xf32>
    %912 = arith.divf %910, %911 : vector<2x64xf32>
    %913 = math.tanh %907 : vector<2x64xf32>
    %914 = vector.extract_strided_slice %912 {offsets = [0, 16], sizes = [2, 16], strides = [1, 1]} : vector<2x64xf32> to vector<2x16xf32>
    %915 = arith.mulf %914, %844 : vector<2x16xf32>
    %916 = vector.extract_strided_slice %912 {offsets = [0, 0], sizes = [2, 16], strides = [1, 1]} : vector<2x64xf32> to vector<2x16xf32>
    %917 = vector.extract_strided_slice %913 {offsets = [0, 32], sizes = [2, 16], strides = [1, 1]} : vector<2x64xf32> to vector<2x16xf32>
    %918 = arith.mulf %916, %917 : vector<2x16xf32>
    %919 = arith.addf %915, %918 : vector<2x16xf32>
    %920 = vector.extract_strided_slice %912 {offsets = [0, 48], sizes = [2, 16], strides = [1, 1]} : vector<2x64xf32> to vector<2x16xf32>
    %921 = math.tanh %919 : vector<2x16xf32>
    %922 = arith.mulf %920, %921 : vector<2x16xf32>
    %cst_452 = arith.constant 0.000000e+00 : f32
    %923 = vector.broadcast %cst_452 : f32 to vector<2x1xf32>
    %924 = arith.cmpf ogt, %899, %923 : vector<2x1xf32>
    %cst_453 = arith.constant 0.000000e+00 : f32
    %925 = vector.shape_cast %924 : vector<2x1xi1> to vector<2x1xi1>
    %926 = vector.broadcast %925 : vector<2x1xi1> to vector<2x16xi1>
    %927 = vector.broadcast %cst_453 : f32 to vector<2x16xf32>
    %928 = arith.select %926, %922, %927 : vector<2x16xi1>, vector<2x16xf32>
    %929 = vector.shape_cast %924 : vector<2x1xi1> to vector<2x1xi1>
    %930 = vector.broadcast %929 : vector<2x1xi1> to vector<2x16xi1>
    %931 = arith.select %930, %922, %841 : vector<2x16xi1>, vector<2x16xf32>
    %932 = vector.shape_cast %924 : vector<2x1xi1> to vector<2x1xi1>
    %933 = vector.broadcast %932 : vector<2x1xi1> to vector<2x16xi1>
    %934 = arith.select %933, %919, %844 : vector<2x16xi1>, vector<2x16xf32>
    %c5_454 = arith.constant 5 : index
    %c0_455 = arith.constant 0 : index
    %c0_456 = arith.constant 0 : index
    %935 = vector.load %arg20[%c5_454, %c0_455, %c0_456] : memref<8x2x16xf32, #tpu.memory_space<vmem>>, vector<1x2x16xf32>
    %936 = vector.shape_cast %935 : vector<1x2x16xf32> to vector<2x16xf32>
    %937 = vector.shape_cast %928 : vector<2x16xf32> to vector<1x2x16xf32>
    tpu.vector_store %arg20[%c5_454, %c0_455, %c0_456], %937 {strides = array<i32>} : memref<8x2x16xf32, #tpu.memory_space<vmem>>, vector<1x2x16xf32>,
    %c3_457 = arith.constant 3 : index
    %c0_458 = arith.constant 0 : index
    %c0_459 = arith.constant 0 : index
    %938 = vector.load %arg17[%c3_457, %c0_458, %c0_459] : memref<8x2x16xf32, #tpu.memory_space<vmem>>, vector<1x2x16xf32>
    %939 = vector.shape_cast %938 : vector<1x2x16xf32> to vector<2x16xf32>
    %c3_460 = arith.constant 3 : index
    %c0_461 = arith.constant 0 : index
    %c0_462 = arith.constant 0 : index
    %940 = vector.load %arg18[%c3_460, %c0_461, %c0_462] : memref<8x2x16xf32, #tpu.memory_space<vmem>>, vector<1x2x16xf32>
    %941 = vector.shape_cast %940 : vector<1x2x16xf32> to vector<2x16xf32>
    %942 = tpu.concatenate %939, %941 in 1 : vector<2x16xf32>, vector<2x16xf32> -> vector<2x32xf32>
    %c3_463 = arith.constant 3 : index
    %c0_464 = arith.constant 0 : index
    %c0_465 = arith.constant 0 : index
    %943 = vector.load %arg1[%c3_463, %c0_464, %c0_465] : memref<8x2x1xf32, #tpu.memory_space<vmem>>, vector<1x2x1xf32>
    %944 = vector.shape_cast %943 : vector<1x2x1xf32> to vector<2x1xf32>
    %c0_466 = arith.constant 0 : index
    %c0_467 = arith.constant 0 : index
    %945 = vector.load %arg8[%c0_466, %c0_467] : memref<32x64xf32, #tpu.memory_space<vmem>>, vector<32x64xf32>
    %cst_468 = arith.constant dense<0.000000e+00> : vector<2x64xf32>
    %946 = tpu.matmul %942, %945, %cst_468 {dimension_numbers = #tpu.dot_dimension_numbers<[1], [0], [0], [1], [0, 0, 1, 1], [], []>} : vector<2x32xf32>, vector<32x64xf32>, vector<2x64xf32> -> vector<2x64xf32>
    %c0_469 = arith.constant 0 : index
    %c0_470 = arith.constant 0 : index
    %947 = vector.load %arg10[%c0_469, %c0_470] : memref<16x64xf32, #tpu.memory_space<vmem>>, vector<16x64xf32>
    %cst_471 = arith.constant dense<0.000000e+00> : vector<2x64xf32>
    %948 = tpu.matmul %886, %947, %cst_471 {dimension_numbers = #tpu.dot_dimension_numbers<[1], [0], [0], [1], [0, 0, 1, 1], [], []>} : vector<2x16xf32>, vector<16x64xf32>, vector<2x64xf32> -> vector<2x64xf32>
    %949 = arith.addf %946, %948 : vector<2x64xf32>
    %c0_472 = arith.constant 0 : index
    %c0_473 = arith.constant 0 : index
    %950 = vector.load %arg12[%c0_472, %c0_473] : memref<1x64xf32, #tpu.memory_space<vmem>>, vector<1x64xf32>
    %951 = vector.broadcast %950 : vector<1x64xf32> to vector<2x64xf32>
    %952 = arith.addf %949, %951 : vector<2x64xf32>
    %953 = arith.negf %952 : vector<2x64xf32>
    %954 = math.exp %953 : vector<2x64xf32>
    %cst_474 = arith.constant 1.000000e+00 : f32
    %955 = vector.broadcast %cst_474 : f32 to vector<2x64xf32>
    %956 = arith.addf %955, %954 : vector<2x64xf32>
    %957 = arith.divf %955, %956 : vector<2x64xf32>
    %958 = math.tanh %952 : vector<2x64xf32>
    %959 = vector.extract_strided_slice %957 {offsets = [0, 16], sizes = [2, 16], strides = [1, 1]} : vector<2x64xf32> to vector<2x16xf32>
    %960 = arith.mulf %959, %889 : vector<2x16xf32>
    %961 = vector.extract_strided_slice %957 {offsets = [0, 0], sizes = [2, 16], strides = [1, 1]} : vector<2x64xf32> to vector<2x16xf32>
    %962 = vector.extract_strided_slice %958 {offsets = [0, 32], sizes = [2, 16], strides = [1, 1]} : vector<2x64xf32> to vector<2x16xf32>
    %963 = arith.mulf %961, %962 : vector<2x16xf32>
    %964 = arith.addf %960, %963 : vector<2x16xf32>
    %965 = vector.extract_strided_slice %957 {offsets = [0, 48], sizes = [2, 16], strides = [1, 1]} : vector<2x64xf32> to vector<2x16xf32>
    %966 = math.tanh %964 : vector<2x16xf32>
    %967 = arith.mulf %965, %966 : vector<2x16xf32>
    %cst_475 = arith.constant 0.000000e+00 : f32
    %968 = vector.broadcast %cst_475 : f32 to vector<2x1xf32>
    %969 = arith.cmpf ogt, %944, %968 : vector<2x1xf32>
    %cst_476 = arith.constant 0.000000e+00 : f32
    %970 = vector.shape_cast %969 : vector<2x1xi1> to vector<2x1xi1>
    %971 = vector.broadcast %970 : vector<2x1xi1> to vector<2x16xi1>
    %972 = vector.broadcast %cst_476 : f32 to vector<2x16xf32>
    %973 = arith.select %971, %967, %972 : vector<2x16xi1>, vector<2x16xf32>
    %974 = vector.shape_cast %969 : vector<2x1xi1> to vector<2x1xi1>
    %975 = vector.broadcast %974 : vector<2x1xi1> to vector<2x16xi1>
    %976 = arith.select %975, %967, %886 : vector<2x16xi1>, vector<2x16xf32>
    %977 = vector.shape_cast %969 : vector<2x1xi1> to vector<2x1xi1>
    %978 = vector.broadcast %977 : vector<2x1xi1> to vector<2x16xi1>
    %979 = arith.select %978, %964, %889 : vector<2x16xi1>, vector<2x16xf32>
    %c3_477 = arith.constant 3 : index
    %c0_478 = arith.constant 0 : index
    %c0_479 = arith.constant 0 : index
    %980 = vector.load %arg19[%c3_477, %c0_478, %c0_479] : memref<8x2x16xf32, #tpu.memory_space<vmem>>, vector<1x2x16xf32>
    %981 = vector.shape_cast %980 : vector<1x2x16xf32> to vector<2x16xf32>
    %982 = vector.shape_cast %973 : vector<2x16xf32> to vector<1x2x16xf32>
    tpu.vector_store %arg19[%c3_477, %c0_478, %c0_479], %982 {strides = array<i32>} : memref<8x2x16xf32, #tpu.memory_space<vmem>>, vector<1x2x16xf32>,
    %c4_480 = arith.constant 4 : index
    %c0_481 = arith.constant 0 : index
    %c0_482 = arith.constant 0 : index
    %983 = vector.load %arg17[%c4_480, %c0_481, %c0_482] : memref<8x2x16xf32, #tpu.memory_space<vmem>>, vector<1x2x16xf32>
    %984 = vector.shape_cast %983 : vector<1x2x16xf32> to vector<2x16xf32>
    %c4_483 = arith.constant 4 : index
    %c0_484 = arith.constant 0 : index
    %c0_485 = arith.constant 0 : index
    %985 = vector.load %arg18[%c4_483, %c0_484, %c0_485] : memref<8x2x16xf32, #tpu.memory_space<vmem>>, vector<1x2x16xf32>
    %986 = vector.shape_cast %985 : vector<1x2x16xf32> to vector<2x16xf32>
    %987 = tpu.concatenate %984, %986 in 1 : vector<2x16xf32>, vector<2x16xf32> -> vector<2x32xf32>
    %c4_486 = arith.constant 4 : index
    %c0_487 = arith.constant 0 : index
    %c0_488 = arith.constant 0 : index
    %988 = vector.load %arg1[%c4_486, %c0_487, %c0_488] : memref<8x2x1xf32, #tpu.memory_space<vmem>>, vector<1x2x1xf32>
    %989 = vector.shape_cast %988 : vector<1x2x1xf32> to vector<2x1xf32>
    %c0_489 = arith.constant 0 : index
    %c0_490 = arith.constant 0 : index
    %990 = vector.load %arg9[%c0_489, %c0_490] : memref<32x64xf32, #tpu.memory_space<vmem>>, vector<32x64xf32>
    %cst_491 = arith.constant dense<0.000000e+00> : vector<2x64xf32>
    %991 = tpu.matmul %987, %990, %cst_491 {dimension_numbers = #tpu.dot_dimension_numbers<[1], [0], [0], [1], [0, 0, 1, 1], [], []>} : vector<2x32xf32>, vector<32x64xf32>, vector<2x64xf32> -> vector<2x64xf32>
    %c0_492 = arith.constant 0 : index
    %c0_493 = arith.constant 0 : index
    %992 = vector.load %arg11[%c0_492, %c0_493] : memref<16x64xf32, #tpu.memory_space<vmem>>, vector<16x64xf32>
    %cst_494 = arith.constant dense<0.000000e+00> : vector<2x64xf32>
    %993 = tpu.matmul %931, %992, %cst_494 {dimension_numbers = #tpu.dot_dimension_numbers<[1], [0], [0], [1], [0, 0, 1, 1], [], []>} : vector<2x16xf32>, vector<16x64xf32>, vector<2x64xf32> -> vector<2x64xf32>
    %994 = arith.addf %991, %993 : vector<2x64xf32>
    %c0_495 = arith.constant 0 : index
    %c0_496 = arith.constant 0 : index
    %995 = vector.load %arg13[%c0_495, %c0_496] : memref<1x64xf32, #tpu.memory_space<vmem>>, vector<1x64xf32>
    %996 = vector.broadcast %995 : vector<1x64xf32> to vector<2x64xf32>
    %997 = arith.addf %994, %996 : vector<2x64xf32>
    %998 = arith.negf %997 : vector<2x64xf32>
    %999 = math.exp %998 : vector<2x64xf32>
    %cst_497 = arith.constant 1.000000e+00 : f32
    %1000 = vector.broadcast %cst_497 : f32 to vector<2x64xf32>
    %1001 = arith.addf %1000, %999 : vector<2x64xf32>
    %1002 = arith.divf %1000, %1001 : vector<2x64xf32>
    %1003 = math.tanh %997 : vector<2x64xf32>
    %1004 = vector.extract_strided_slice %1002 {offsets = [0, 16], sizes = [2, 16], strides = [1, 1]} : vector<2x64xf32> to vector<2x16xf32>
    %1005 = arith.mulf %1004, %934 : vector<2x16xf32>
    %1006 = vector.extract_strided_slice %1002 {offsets = [0, 0], sizes = [2, 16], strides = [1, 1]} : vector<2x64xf32> to vector<2x16xf32>
    %1007 = vector.extract_strided_slice %1003 {offsets = [0, 32], sizes = [2, 16], strides = [1, 1]} : vector<2x64xf32> to vector<2x16xf32>
    %1008 = arith.mulf %1006, %1007 : vector<2x16xf32>
    %1009 = arith.addf %1005, %1008 : vector<2x16xf32>
    %1010 = vector.extract_strided_slice %1002 {offsets = [0, 48], sizes = [2, 16], strides = [1, 1]} : vector<2x64xf32> to vector<2x16xf32>
    %1011 = math.tanh %1009 : vector<2x16xf32>
    %1012 = arith.mulf %1010, %1011 : vector<2x16xf32>
    %cst_498 = arith.constant 0.000000e+00 : f32
    %1013 = vector.broadcast %cst_498 : f32 to vector<2x1xf32>
    %1014 = arith.cmpf ogt, %989, %1013 : vector<2x1xf32>
    %cst_499 = arith.constant 0.000000e+00 : f32
    %1015 = vector.shape_cast %1014 : vector<2x1xi1> to vector<2x1xi1>
    %1016 = vector.broadcast %1015 : vector<2x1xi1> to vector<2x16xi1>
    %1017 = vector.broadcast %cst_499 : f32 to vector<2x16xf32>
    %1018 = arith.select %1016, %1012, %1017 : vector<2x16xi1>, vector<2x16xf32>
    %1019 = vector.shape_cast %1014 : vector<2x1xi1> to vector<2x1xi1>
    %1020 = vector.broadcast %1019 : vector<2x1xi1> to vector<2x16xi1>
    %1021 = arith.select %1020, %1012, %931 : vector<2x16xi1>, vector<2x16xf32>
    %1022 = vector.shape_cast %1014 : vector<2x1xi1> to vector<2x1xi1>
    %1023 = vector.broadcast %1022 : vector<2x1xi1> to vector<2x16xi1>
    %1024 = arith.select %1023, %1009, %934 : vector<2x16xi1>, vector<2x16xf32>
    %c4_500 = arith.constant 4 : index
    %c0_501 = arith.constant 0 : index
    %c0_502 = arith.constant 0 : index
    %1025 = vector.load %arg20[%c4_500, %c0_501, %c0_502] : memref<8x2x16xf32, #tpu.memory_space<vmem>>, vector<1x2x16xf32>
    %1026 = vector.shape_cast %1025 : vector<1x2x16xf32> to vector<2x16xf32>
    %1027 = vector.shape_cast %1018 : vector<2x16xf32> to vector<1x2x16xf32>
    tpu.vector_store %arg20[%c4_500, %c0_501, %c0_502], %1027 {strides = array<i32>} : memref<8x2x16xf32, #tpu.memory_space<vmem>>, vector<1x2x16xf32>,
    %c4_503 = arith.constant 4 : index
    %c0_504 = arith.constant 0 : index
    %c0_505 = arith.constant 0 : index
    %1028 = vector.load %arg17[%c4_503, %c0_504, %c0_505] : memref<8x2x16xf32, #tpu.memory_space<vmem>>, vector<1x2x16xf32>
    %1029 = vector.shape_cast %1028 : vector<1x2x16xf32> to vector<2x16xf32>
    %c4_506 = arith.constant 4 : index
    %c0_507 = arith.constant 0 : index
    %c0_508 = arith.constant 0 : index
    %1030 = vector.load %arg18[%c4_506, %c0_507, %c0_508] : memref<8x2x16xf32, #tpu.memory_space<vmem>>, vector<1x2x16xf32>
    %1031 = vector.shape_cast %1030 : vector<1x2x16xf32> to vector<2x16xf32>
    %1032 = tpu.concatenate %1029, %1031 in 1 : vector<2x16xf32>, vector<2x16xf32> -> vector<2x32xf32>
    %c4_509 = arith.constant 4 : index
    %c0_510 = arith.constant 0 : index
    %c0_511 = arith.constant 0 : index
    %1033 = vector.load %arg1[%c4_509, %c0_510, %c0_511] : memref<8x2x1xf32, #tpu.memory_space<vmem>>, vector<1x2x1xf32>
    %1034 = vector.shape_cast %1033 : vector<1x2x1xf32> to vector<2x1xf32>
    %c0_512 = arith.constant 0 : index
    %c0_513 = arith.constant 0 : index
    %1035 = vector.load %arg8[%c0_512, %c0_513] : memref<32x64xf32, #tpu.memory_space<vmem>>, vector<32x64xf32>
    %cst_514 = arith.constant dense<0.000000e+00> : vector<2x64xf32>
    %1036 = tpu.matmul %1032, %1035, %cst_514 {dimension_numbers = #tpu.dot_dimension_numbers<[1], [0], [0], [1], [0, 0, 1, 1], [], []>} : vector<2x32xf32>, vector<32x64xf32>, vector<2x64xf32> -> vector<2x64xf32>
    %c0_515 = arith.constant 0 : index
    %c0_516 = arith.constant 0 : index
    %1037 = vector.load %arg10[%c0_515, %c0_516] : memref<16x64xf32, #tpu.memory_space<vmem>>, vector<16x64xf32>
    %cst_517 = arith.constant dense<0.000000e+00> : vector<2x64xf32>
    %1038 = tpu.matmul %976, %1037, %cst_517 {dimension_numbers = #tpu.dot_dimension_numbers<[1], [0], [0], [1], [0, 0, 1, 1], [], []>} : vector<2x16xf32>, vector<16x64xf32>, vector<2x64xf32> -> vector<2x64xf32>
    %1039 = arith.addf %1036, %1038 : vector<2x64xf32>
    %c0_518 = arith.constant 0 : index
    %c0_519 = arith.constant 0 : index
    %1040 = vector.load %arg12[%c0_518, %c0_519] : memref<1x64xf32, #tpu.memory_space<vmem>>, vector<1x64xf32>
    %1041 = vector.broadcast %1040 : vector<1x64xf32> to vector<2x64xf32>
    %1042 = arith.addf %1039, %1041 : vector<2x64xf32>
    %1043 = arith.negf %1042 : vector<2x64xf32>
    %1044 = math.exp %1043 : vector<2x64xf32>
    %cst_520 = arith.constant 1.000000e+00 : f32
    %1045 = vector.broadcast %cst_520 : f32 to vector<2x64xf32>
    %1046 = arith.addf %1045, %1044 : vector<2x64xf32>
    %1047 = arith.divf %1045, %1046 : vector<2x64xf32>
    %1048 = math.tanh %1042 : vector<2x64xf32>
    %1049 = vector.extract_strided_slice %1047 {offsets = [0, 16], sizes = [2, 16], strides = [1, 1]} : vector<2x64xf32> to vector<2x16xf32>
    %1050 = arith.mulf %1049, %979 : vector<2x16xf32>
    %1051 = vector.extract_strided_slice %1047 {offsets = [0, 0], sizes = [2, 16], strides = [1, 1]} : vector<2x64xf32> to vector<2x16xf32>
    %1052 = vector.extract_strided_slice %1048 {offsets = [0, 32], sizes = [2, 16], strides = [1, 1]} : vector<2x64xf32> to vector<2x16xf32>
    %1053 = arith.mulf %1051, %1052 : vector<2x16xf32>
    %1054 = arith.addf %1050, %1053 : vector<2x16xf32>
    %1055 = vector.extract_strided_slice %1047 {offsets = [0, 48], sizes = [2, 16], strides = [1, 1]} : vector<2x64xf32> to vector<2x16xf32>
    %1056 = math.tanh %1054 : vector<2x16xf32>
    %1057 = arith.mulf %1055, %1056 : vector<2x16xf32>
    %cst_521 = arith.constant 0.000000e+00 : f32
    %1058 = vector.broadcast %cst_521 : f32 to vector<2x1xf32>
    %1059 = arith.cmpf ogt, %1034, %1058 : vector<2x1xf32>
    %cst_522 = arith.constant 0.000000e+00 : f32
    %1060 = vector.shape_cast %1059 : vector<2x1xi1> to vector<2x1xi1>
    %1061 = vector.broadcast %1060 : vector<2x1xi1> to vector<2x16xi1>
    %1062 = vector.broadcast %cst_522 : f32 to vector<2x16xf32>
    %1063 = arith.select %1061, %1057, %1062 : vector<2x16xi1>, vector<2x16xf32>
    %1064 = vector.shape_cast %1059 : vector<2x1xi1> to vector<2x1xi1>
    %1065 = vector.broadcast %1064 : vector<2x1xi1> to vector<2x16xi1>
    %1066 = arith.select %1065, %1057, %976 : vector<2x16xi1>, vector<2x16xf32>
    %1067 = vector.shape_cast %1059 : vector<2x1xi1> to vector<2x1xi1>
    %1068 = vector.broadcast %1067 : vector<2x1xi1> to vector<2x16xi1>
    %1069 = arith.select %1068, %1054, %979 : vector<2x16xi1>, vector<2x16xf32>
    %c4_523 = arith.constant 4 : index
    %c0_524 = arith.constant 0 : index
    %c0_525 = arith.constant 0 : index
    %1070 = vector.load %arg19[%c4_523, %c0_524, %c0_525] : memref<8x2x16xf32, #tpu.memory_space<vmem>>, vector<1x2x16xf32>
    %1071 = vector.shape_cast %1070 : vector<1x2x16xf32> to vector<2x16xf32>
    %1072 = vector.shape_cast %1063 : vector<2x16xf32> to vector<1x2x16xf32>
    tpu.vector_store %arg19[%c4_523, %c0_524, %c0_525], %1072 {strides = array<i32>} : memref<8x2x16xf32, #tpu.memory_space<vmem>>, vector<1x2x16xf32>,
    %c3_526 = arith.constant 3 : index
    %c0_527 = arith.constant 0 : index
    %c0_528 = arith.constant 0 : index
    %1073 = vector.load %arg17[%c3_526, %c0_527, %c0_528] : memref<8x2x16xf32, #tpu.memory_space<vmem>>, vector<1x2x16xf32>
    %1074 = vector.shape_cast %1073 : vector<1x2x16xf32> to vector<2x16xf32>
    %c3_529 = arith.constant 3 : index
    %c0_530 = arith.constant 0 : index
    %c0_531 = arith.constant 0 : index
    %1075 = vector.load %arg18[%c3_529, %c0_530, %c0_531] : memref<8x2x16xf32, #tpu.memory_space<vmem>>, vector<1x2x16xf32>
    %1076 = vector.shape_cast %1075 : vector<1x2x16xf32> to vector<2x16xf32>
    %1077 = tpu.concatenate %1074, %1076 in 1 : vector<2x16xf32>, vector<2x16xf32> -> vector<2x32xf32>
    %c3_532 = arith.constant 3 : index
    %c0_533 = arith.constant 0 : index
    %c0_534 = arith.constant 0 : index
    %1078 = vector.load %arg1[%c3_532, %c0_533, %c0_534] : memref<8x2x1xf32, #tpu.memory_space<vmem>>, vector<1x2x1xf32>
    %1079 = vector.shape_cast %1078 : vector<1x2x1xf32> to vector<2x1xf32>
    %c0_535 = arith.constant 0 : index
    %c0_536 = arith.constant 0 : index
    %1080 = vector.load %arg9[%c0_535, %c0_536] : memref<32x64xf32, #tpu.memory_space<vmem>>, vector<32x64xf32>
    %cst_537 = arith.constant dense<0.000000e+00> : vector<2x64xf32>
    %1081 = tpu.matmul %1077, %1080, %cst_537 {dimension_numbers = #tpu.dot_dimension_numbers<[1], [0], [0], [1], [0, 0, 1, 1], [], []>} : vector<2x32xf32>, vector<32x64xf32>, vector<2x64xf32> -> vector<2x64xf32>
    %c0_538 = arith.constant 0 : index
    %c0_539 = arith.constant 0 : index
    %1082 = vector.load %arg11[%c0_538, %c0_539] : memref<16x64xf32, #tpu.memory_space<vmem>>, vector<16x64xf32>
    %cst_540 = arith.constant dense<0.000000e+00> : vector<2x64xf32>
    %1083 = tpu.matmul %1021, %1082, %cst_540 {dimension_numbers = #tpu.dot_dimension_numbers<[1], [0], [0], [1], [0, 0, 1, 1], [], []>} : vector<2x16xf32>, vector<16x64xf32>, vector<2x64xf32> -> vector<2x64xf32>
    %1084 = arith.addf %1081, %1083 : vector<2x64xf32>
    %c0_541 = arith.constant 0 : index
    %c0_542 = arith.constant 0 : index
    %1085 = vector.load %arg13[%c0_541, %c0_542] : memref<1x64xf32, #tpu.memory_space<vmem>>, vector<1x64xf32>
    %1086 = vector.broadcast %1085 : vector<1x64xf32> to vector<2x64xf32>
    %1087 = arith.addf %1084, %1086 : vector<2x64xf32>
    %1088 = arith.negf %1087 : vector<2x64xf32>
    %1089 = math.exp %1088 : vector<2x64xf32>
    %cst_543 = arith.constant 1.000000e+00 : f32
    %1090 = vector.broadcast %cst_543 : f32 to vector<2x64xf32>
    %1091 = arith.addf %1090, %1089 : vector<2x64xf32>
    %1092 = arith.divf %1090, %1091 : vector<2x64xf32>
    %1093 = math.tanh %1087 : vector<2x64xf32>
    %1094 = vector.extract_strided_slice %1092 {offsets = [0, 16], sizes = [2, 16], strides = [1, 1]} : vector<2x64xf32> to vector<2x16xf32>
    %1095 = arith.mulf %1094, %1024 : vector<2x16xf32>
    %1096 = vector.extract_strided_slice %1092 {offsets = [0, 0], sizes = [2, 16], strides = [1, 1]} : vector<2x64xf32> to vector<2x16xf32>
    %1097 = vector.extract_strided_slice %1093 {offsets = [0, 32], sizes = [2, 16], strides = [1, 1]} : vector<2x64xf32> to vector<2x16xf32>
    %1098 = arith.mulf %1096, %1097 : vector<2x16xf32>
    %1099 = arith.addf %1095, %1098 : vector<2x16xf32>
    %1100 = vector.extract_strided_slice %1092 {offsets = [0, 48], sizes = [2, 16], strides = [1, 1]} : vector<2x64xf32> to vector<2x16xf32>
    %1101 = math.tanh %1099 : vector<2x16xf32>
    %1102 = arith.mulf %1100, %1101 : vector<2x16xf32>
    %cst_544 = arith.constant 0.000000e+00 : f32
    %1103 = vector.broadcast %cst_544 : f32 to vector<2x1xf32>
    %1104 = arith.cmpf ogt, %1079, %1103 : vector<2x1xf32>
    %cst_545 = arith.constant 0.000000e+00 : f32
    %1105 = vector.shape_cast %1104 : vector<2x1xi1> to vector<2x1xi1>
    %1106 = vector.broadcast %1105 : vector<2x1xi1> to vector<2x16xi1>
    %1107 = vector.broadcast %cst_545 : f32 to vector<2x16xf32>
    %1108 = arith.select %1106, %1102, %1107 : vector<2x16xi1>, vector<2x16xf32>
    %1109 = vector.shape_cast %1104 : vector<2x1xi1> to vector<2x1xi1>
    %1110 = vector.broadcast %1109 : vector<2x1xi1> to vector<2x16xi1>
    %1111 = arith.select %1110, %1102, %1021 : vector<2x16xi1>, vector<2x16xf32>
    %1112 = vector.shape_cast %1104 : vector<2x1xi1> to vector<2x1xi1>
    %1113 = vector.broadcast %1112 : vector<2x1xi1> to vector<2x16xi1>
    %1114 = arith.select %1113, %1099, %1024 : vector<2x16xi1>, vector<2x16xf32>
    %c3_546 = arith.constant 3 : index
    %c0_547 = arith.constant 0 : index
    %c0_548 = arith.constant 0 : index
    %1115 = vector.load %arg20[%c3_546, %c0_547, %c0_548] : memref<8x2x16xf32, #tpu.memory_space<vmem>>, vector<1x2x16xf32>
    %1116 = vector.shape_cast %1115 : vector<1x2x16xf32> to vector<2x16xf32>
    %1117 = vector.shape_cast %1108 : vector<2x16xf32> to vector<1x2x16xf32>
    tpu.vector_store %arg20[%c3_546, %c0_547, %c0_548], %1117 {strides = array<i32>} : memref<8x2x16xf32, #tpu.memory_space<vmem>>, vector<1x2x16xf32>,
    %c5_549 = arith.constant 5 : index
    %c0_550 = arith.constant 0 : index
    %c0_551 = arith.constant 0 : index
    %1118 = vector.load %arg17[%c5_549, %c0_550, %c0_551] : memref<8x2x16xf32, #tpu.memory_space<vmem>>, vector<1x2x16xf32>
    %1119 = vector.shape_cast %1118 : vector<1x2x16xf32> to vector<2x16xf32>
    %c5_552 = arith.constant 5 : index
    %c0_553 = arith.constant 0 : index
    %c0_554 = arith.constant 0 : index
    %1120 = vector.load %arg18[%c5_552, %c0_553, %c0_554] : memref<8x2x16xf32, #tpu.memory_space<vmem>>, vector<1x2x16xf32>
    %1121 = vector.shape_cast %1120 : vector<1x2x16xf32> to vector<2x16xf32>
    %1122 = tpu.concatenate %1119, %1121 in 1 : vector<2x16xf32>, vector<2x16xf32> -> vector<2x32xf32>
    %c5_555 = arith.constant 5 : index
    %c0_556 = arith.constant 0 : index
    %c0_557 = arith.constant 0 : index
    %1123 = vector.load %arg1[%c5_555, %c0_556, %c0_557] : memref<8x2x1xf32, #tpu.memory_space<vmem>>, vector<1x2x1xf32>
    %1124 = vector.shape_cast %1123 : vector<1x2x1xf32> to vector<2x1xf32>
    %c0_558 = arith.constant 0 : index
    %c0_559 = arith.constant 0 : index
    %1125 = vector.load %arg8[%c0_558, %c0_559] : memref<32x64xf32, #tpu.memory_space<vmem>>, vector<32x64xf32>
    %cst_560 = arith.constant dense<0.000000e+00> : vector<2x64xf32>
    %1126 = tpu.matmul %1122, %1125, %cst_560 {dimension_numbers = #tpu.dot_dimension_numbers<[1], [0], [0], [1], [0, 0, 1, 1], [], []>} : vector<2x32xf32>, vector<32x64xf32>, vector<2x64xf32> -> vector<2x64xf32>
    %c0_561 = arith.constant 0 : index
    %c0_562 = arith.constant 0 : index
    %1127 = vector.load %arg10[%c0_561, %c0_562] : memref<16x64xf32, #tpu.memory_space<vmem>>, vector<16x64xf32>
    %cst_563 = arith.constant dense<0.000000e+00> : vector<2x64xf32>
    %1128 = tpu.matmul %1066, %1127, %cst_563 {dimension_numbers = #tpu.dot_dimension_numbers<[1], [0], [0], [1], [0, 0, 1, 1], [], []>} : vector<2x16xf32>, vector<16x64xf32>, vector<2x64xf32> -> vector<2x64xf32>
    %1129 = arith.addf %1126, %1128 : vector<2x64xf32>
    %c0_564 = arith.constant 0 : index
    %c0_565 = arith.constant 0 : index
    %1130 = vector.load %arg12[%c0_564, %c0_565] : memref<1x64xf32, #tpu.memory_space<vmem>>, vector<1x64xf32>
    %1131 = vector.broadcast %1130 : vector<1x64xf32> to vector<2x64xf32>
    %1132 = arith.addf %1129, %1131 : vector<2x64xf32>
    %1133 = arith.negf %1132 : vector<2x64xf32>
    %1134 = math.exp %1133 : vector<2x64xf32>
    %cst_566 = arith.constant 1.000000e+00 : f32
    %1135 = vector.broadcast %cst_566 : f32 to vector<2x64xf32>
    %1136 = arith.addf %1135, %1134 : vector<2x64xf32>
    %1137 = arith.divf %1135, %1136 : vector<2x64xf32>
    %1138 = math.tanh %1132 : vector<2x64xf32>
    %1139 = vector.extract_strided_slice %1137 {offsets = [0, 16], sizes = [2, 16], strides = [1, 1]} : vector<2x64xf32> to vector<2x16xf32>
    %1140 = arith.mulf %1139, %1069 : vector<2x16xf32>
    %1141 = vector.extract_strided_slice %1137 {offsets = [0, 0], sizes = [2, 16], strides = [1, 1]} : vector<2x64xf32> to vector<2x16xf32>
    %1142 = vector.extract_strided_slice %1138 {offsets = [0, 32], sizes = [2, 16], strides = [1, 1]} : vector<2x64xf32> to vector<2x16xf32>
    %1143 = arith.mulf %1141, %1142 : vector<2x16xf32>
    %1144 = arith.addf %1140, %1143 : vector<2x16xf32>
    %1145 = vector.extract_strided_slice %1137 {offsets = [0, 48], sizes = [2, 16], strides = [1, 1]} : vector<2x64xf32> to vector<2x16xf32>
    %1146 = math.tanh %1144 : vector<2x16xf32>
    %1147 = arith.mulf %1145, %1146 : vector<2x16xf32>
    %cst_567 = arith.constant 0.000000e+00 : f32
    %1148 = vector.broadcast %cst_567 : f32 to vector<2x1xf32>
    %1149 = arith.cmpf ogt, %1124, %1148 : vector<2x1xf32>
    %cst_568 = arith.constant 0.000000e+00 : f32
    %1150 = vector.shape_cast %1149 : vector<2x1xi1> to vector<2x1xi1>
    %1151 = vector.broadcast %1150 : vector<2x1xi1> to vector<2x16xi1>
    %1152 = vector.broadcast %cst_568 : f32 to vector<2x16xf32>
    %1153 = arith.select %1151, %1147, %1152 : vector<2x16xi1>, vector<2x16xf32>
    %1154 = vector.shape_cast %1149 : vector<2x1xi1> to vector<2x1xi1>
    %1155 = vector.broadcast %1154 : vector<2x1xi1> to vector<2x16xi1>
    %1156 = arith.select %1155, %1147, %1066 : vector<2x16xi1>, vector<2x16xf32>
    %1157 = vector.shape_cast %1149 : vector<2x1xi1> to vector<2x1xi1>
    %1158 = vector.broadcast %1157 : vector<2x1xi1> to vector<2x16xi1>
    %1159 = arith.select %1158, %1144, %1069 : vector<2x16xi1>, vector<2x16xf32>
    %c5_569 = arith.constant 5 : index
    %c0_570 = arith.constant 0 : index
    %c0_571 = arith.constant 0 : index
    %1160 = vector.load %arg19[%c5_569, %c0_570, %c0_571] : memref<8x2x16xf32, #tpu.memory_space<vmem>>, vector<1x2x16xf32>
    %1161 = vector.shape_cast %1160 : vector<1x2x16xf32> to vector<2x16xf32>
    %1162 = vector.shape_cast %1153 : vector<2x16xf32> to vector<1x2x16xf32>
    tpu.vector_store %arg19[%c5_569, %c0_570, %c0_571], %1162 {strides = array<i32>} : memref<8x2x16xf32, #tpu.memory_space<vmem>>, vector<1x2x16xf32>,
    %c2_572 = arith.constant 2 : index
    %c0_573 = arith.constant 0 : index
    %c0_574 = arith.constant 0 : index
    %1163 = vector.load %arg17[%c2_572, %c0_573, %c0_574] : memref<8x2x16xf32, #tpu.memory_space<vmem>>, vector<1x2x16xf32>
    %1164 = vector.shape_cast %1163 : vector<1x2x16xf32> to vector<2x16xf32>
    %c2_575 = arith.constant 2 : index
    %c0_576 = arith.constant 0 : index
    %c0_577 = arith.constant 0 : index
    %1165 = vector.load %arg18[%c2_575, %c0_576, %c0_577] : memref<8x2x16xf32, #tpu.memory_space<vmem>>, vector<1x2x16xf32>
    %1166 = vector.shape_cast %1165 : vector<1x2x16xf32> to vector<2x16xf32>
    %1167 = tpu.concatenate %1164, %1166 in 1 : vector<2x16xf32>, vector<2x16xf32> -> vector<2x32xf32>
    %c2_578 = arith.constant 2 : index
    %c0_579 = arith.constant 0 : index
    %c0_580 = arith.constant 0 : index
    %1168 = vector.load %arg1[%c2_578, %c0_579, %c0_580] : memref<8x2x1xf32, #tpu.memory_space<vmem>>, vector<1x2x1xf32>
    %1169 = vector.shape_cast %1168 : vector<1x2x1xf32> to vector<2x1xf32>
    %c0_581 = arith.constant 0 : index
    %c0_582 = arith.constant 0 : index
    %1170 = vector.load %arg9[%c0_581, %c0_582] : memref<32x64xf32, #tpu.memory_space<vmem>>, vector<32x64xf32>
    %cst_583 = arith.constant dense<0.000000e+00> : vector<2x64xf32>
    %1171 = tpu.matmul %1167, %1170, %cst_583 {dimension_numbers = #tpu.dot_dimension_numbers<[1], [0], [0], [1], [0, 0, 1, 1], [], []>} : vector<2x32xf32>, vector<32x64xf32>, vector<2x64xf32> -> vector<2x64xf32>
    %c0_584 = arith.constant 0 : index
    %c0_585 = arith.constant 0 : index
    %1172 = vector.load %arg11[%c0_584, %c0_585] : memref<16x64xf32, #tpu.memory_space<vmem>>, vector<16x64xf32>
    %cst_586 = arith.constant dense<0.000000e+00> : vector<2x64xf32>
    %1173 = tpu.matmul %1111, %1172, %cst_586 {dimension_numbers = #tpu.dot_dimension_numbers<[1], [0], [0], [1], [0, 0, 1, 1], [], []>} : vector<2x16xf32>, vector<16x64xf32>, vector<2x64xf32> -> vector<2x64xf32>
    %1174 = arith.addf %1171, %1173 : vector<2x64xf32>
    %c0_587 = arith.constant 0 : index
    %c0_588 = arith.constant 0 : index
    %1175 = vector.load %arg13[%c0_587, %c0_588] : memref<1x64xf32, #tpu.memory_space<vmem>>, vector<1x64xf32>
    %1176 = vector.broadcast %1175 : vector<1x64xf32> to vector<2x64xf32>
    %1177 = arith.addf %1174, %1176 : vector<2x64xf32>
    %1178 = arith.negf %1177 : vector<2x64xf32>
    %1179 = math.exp %1178 : vector<2x64xf32>
    %cst_589 = arith.constant 1.000000e+00 : f32
    %1180 = vector.broadcast %cst_589 : f32 to vector<2x64xf32>
    %1181 = arith.addf %1180, %1179 : vector<2x64xf32>
    %1182 = arith.divf %1180, %1181 : vector<2x64xf32>
    %1183 = math.tanh %1177 : vector<2x64xf32>
    %1184 = vector.extract_strided_slice %1182 {offsets = [0, 16], sizes = [2, 16], strides = [1, 1]} : vector<2x64xf32> to vector<2x16xf32>
    %1185 = arith.mulf %1184, %1114 : vector<2x16xf32>
    %1186 = vector.extract_strided_slice %1182 {offsets = [0, 0], sizes = [2, 16], strides = [1, 1]} : vector<2x64xf32> to vector<2x16xf32>
    %1187 = vector.extract_strided_slice %1183 {offsets = [0, 32], sizes = [2, 16], strides = [1, 1]} : vector<2x64xf32> to vector<2x16xf32>
    %1188 = arith.mulf %1186, %1187 : vector<2x16xf32>
    %1189 = arith.addf %1185, %1188 : vector<2x16xf32>
    %1190 = vector.extract_strided_slice %1182 {offsets = [0, 48], sizes = [2, 16], strides = [1, 1]} : vector<2x64xf32> to vector<2x16xf32>
    %1191 = math.tanh %1189 : vector<2x16xf32>
    %1192 = arith.mulf %1190, %1191 : vector<2x16xf32>
    %cst_590 = arith.constant 0.000000e+00 : f32
    %1193 = vector.broadcast %cst_590 : f32 to vector<2x1xf32>
    %1194 = arith.cmpf ogt, %1169, %1193 : vector<2x1xf32>
    %cst_591 = arith.constant 0.000000e+00 : f32
    %1195 = vector.shape_cast %1194 : vector<2x1xi1> to vector<2x1xi1>
    %1196 = vector.broadcast %1195 : vector<2x1xi1> to vector<2x16xi1>
    %1197 = vector.broadcast %cst_591 : f32 to vector<2x16xf32>
    %1198 = arith.select %1196, %1192, %1197 : vector<2x16xi1>, vector<2x16xf32>
    %1199 = vector.shape_cast %1194 : vector<2x1xi1> to vector<2x1xi1>
    %1200 = vector.broadcast %1199 : vector<2x1xi1> to vector<2x16xi1>
    %1201 = arith.select %1200, %1192, %1111 : vector<2x16xi1>, vector<2x16xf32>
    %1202 = vector.shape_cast %1194 : vector<2x1xi1> to vector<2x1xi1>
    %1203 = vector.broadcast %1202 : vector<2x1xi1> to vector<2x16xi1>
    %1204 = arith.select %1203, %1189, %1114 : vector<2x16xi1>, vector<2x16xf32>
    %c2_592 = arith.constant 2 : index
    %c0_593 = arith.constant 0 : index
    %c0_594 = arith.constant 0 : index
    %1205 = vector.load %arg20[%c2_592, %c0_593, %c0_594] : memref<8x2x16xf32, #tpu.memory_space<vmem>>, vector<1x2x16xf32>
    %1206 = vector.shape_cast %1205 : vector<1x2x16xf32> to vector<2x16xf32>
    %1207 = vector.shape_cast %1198 : vector<2x16xf32> to vector<1x2x16xf32>
    tpu.vector_store %arg20[%c2_592, %c0_593, %c0_594], %1207 {strides = array<i32>} : memref<8x2x16xf32, #tpu.memory_space<vmem>>, vector<1x2x16xf32>,
    %c6_595 = arith.constant 6 : index
    %c0_596 = arith.constant 0 : index
    %c0_597 = arith.constant 0 : index
    %1208 = vector.load %arg17[%c6_595, %c0_596, %c0_597] : memref<8x2x16xf32, #tpu.memory_space<vmem>>, vector<1x2x16xf32>
    %1209 = vector.shape_cast %1208 : vector<1x2x16xf32> to vector<2x16xf32>
    %c6_598 = arith.constant 6 : index
    %c0_599 = arith.constant 0 : index
    %c0_600 = arith.constant 0 : index
    %1210 = vector.load %arg18[%c6_598, %c0_599, %c0_600] : memref<8x2x16xf32, #tpu.memory_space<vmem>>, vector<1x2x16xf32>
    %1211 = vector.shape_cast %1210 : vector<1x2x16xf32> to vector<2x16xf32>
    %1212 = tpu.concatenate %1209, %1211 in 1 : vector<2x16xf32>, vector<2x16xf32> -> vector<2x32xf32>
    %c6_601 = arith.constant 6 : index
    %c0_602 = arith.constant 0 : index
    %c0_603 = arith.constant 0 : index
    %1213 = vector.load %arg1[%c6_601, %c0_602, %c0_603] : memref<8x2x1xf32, #tpu.memory_space<vmem>>, vector<1x2x1xf32>
    %1214 = vector.shape_cast %1213 : vector<1x2x1xf32> to vector<2x1xf32>
    %c0_604 = arith.constant 0 : index
    %c0_605 = arith.constant 0 : index
    %1215 = vector.load %arg8[%c0_604, %c0_605] : memref<32x64xf32, #tpu.memory_space<vmem>>, vector<32x64xf32>
    %cst_606 = arith.constant dense<0.000000e+00> : vector<2x64xf32>
    %1216 = tpu.matmul %1212, %1215, %cst_606 {dimension_numbers = #tpu.dot_dimension_numbers<[1], [0], [0], [1], [0, 0, 1, 1], [], []>} : vector<2x32xf32>, vector<32x64xf32>, vector<2x64xf32> -> vector<2x64xf32>
    %c0_607 = arith.constant 0 : index
    %c0_608 = arith.constant 0 : index
    %1217 = vector.load %arg10[%c0_607, %c0_608] : memref<16x64xf32, #tpu.memory_space<vmem>>, vector<16x64xf32>
    %cst_609 = arith.constant dense<0.000000e+00> : vector<2x64xf32>
    %1218 = tpu.matmul %1156, %1217, %cst_609 {dimension_numbers = #tpu.dot_dimension_numbers<[1], [0], [0], [1], [0, 0, 1, 1], [], []>} : vector<2x16xf32>, vector<16x64xf32>, vector<2x64xf32> -> vector<2x64xf32>
    %1219 = arith.addf %1216, %1218 : vector<2x64xf32>
    %c0_610 = arith.constant 0 : index
    %c0_611 = arith.constant 0 : index
    %1220 = vector.load %arg12[%c0_610, %c0_611] : memref<1x64xf32, #tpu.memory_space<vmem>>, vector<1x64xf32>
    %1221 = vector.broadcast %1220 : vector<1x64xf32> to vector<2x64xf32>
    %1222 = arith.addf %1219, %1221 : vector<2x64xf32>
    %1223 = arith.negf %1222 : vector<2x64xf32>
    %1224 = math.exp %1223 : vector<2x64xf32>
    %cst_612 = arith.constant 1.000000e+00 : f32
    %1225 = vector.broadcast %cst_612 : f32 to vector<2x64xf32>
    %1226 = arith.addf %1225, %1224 : vector<2x64xf32>
    %1227 = arith.divf %1225, %1226 : vector<2x64xf32>
    %1228 = math.tanh %1222 : vector<2x64xf32>
    %1229 = vector.extract_strided_slice %1227 {offsets = [0, 16], sizes = [2, 16], strides = [1, 1]} : vector<2x64xf32> to vector<2x16xf32>
    %1230 = arith.mulf %1229, %1159 : vector<2x16xf32>
    %1231 = vector.extract_strided_slice %1227 {offsets = [0, 0], sizes = [2, 16], strides = [1, 1]} : vector<2x64xf32> to vector<2x16xf32>
    %1232 = vector.extract_strided_slice %1228 {offsets = [0, 32], sizes = [2, 16], strides = [1, 1]} : vector<2x64xf32> to vector<2x16xf32>
    %1233 = arith.mulf %1231, %1232 : vector<2x16xf32>
    %1234 = arith.addf %1230, %1233 : vector<2x16xf32>
    %1235 = vector.extract_strided_slice %1227 {offsets = [0, 48], sizes = [2, 16], strides = [1, 1]} : vector<2x64xf32> to vector<2x16xf32>
    %1236 = math.tanh %1234 : vector<2x16xf32>
    %1237 = arith.mulf %1235, %1236 : vector<2x16xf32>
    %cst_613 = arith.constant 0.000000e+00 : f32
    %1238 = vector.broadcast %cst_613 : f32 to vector<2x1xf32>
    %1239 = arith.cmpf ogt, %1214, %1238 : vector<2x1xf32>
    %cst_614 = arith.constant 0.000000e+00 : f32
    %1240 = vector.shape_cast %1239 : vector<2x1xi1> to vector<2x1xi1>
    %1241 = vector.broadcast %1240 : vector<2x1xi1> to vector<2x16xi1>
    %1242 = vector.broadcast %cst_614 : f32 to vector<2x16xf32>
    %1243 = arith.select %1241, %1237, %1242 : vector<2x16xi1>, vector<2x16xf32>
    %1244 = vector.shape_cast %1239 : vector<2x1xi1> to vector<2x1xi1>
    %1245 = vector.broadcast %1244 : vector<2x1xi1> to vector<2x16xi1>
    %1246 = arith.select %1245, %1237, %1156 : vector<2x16xi1>, vector<2x16xf32>
    %1247 = vector.shape_cast %1239 : vector<2x1xi1> to vector<2x1xi1>
    %1248 = vector.broadcast %1247 : vector<2x1xi1> to vector<2x16xi1>
    %1249 = arith.select %1248, %1234, %1159 : vector<2x16xi1>, vector<2x16xf32>
    %c6_615 = arith.constant 6 : index
    %c0_616 = arith.constant 0 : index
    %c0_617 = arith.constant 0 : index
    %1250 = vector.load %arg19[%c6_615, %c0_616, %c0_617] : memref<8x2x16xf32, #tpu.memory_space<vmem>>, vector<1x2x16xf32>
    %1251 = vector.shape_cast %1250 : vector<1x2x16xf32> to vector<2x16xf32>
    %1252 = vector.shape_cast %1243 : vector<2x16xf32> to vector<1x2x16xf32>
    tpu.vector_store %arg19[%c6_615, %c0_616, %c0_617], %1252 {strides = array<i32>} : memref<8x2x16xf32, #tpu.memory_space<vmem>>, vector<1x2x16xf32>,
    %c1_618 = arith.constant 1 : index
    %c0_619 = arith.constant 0 : index
    %c0_620 = arith.constant 0 : index
    %1253 = vector.load %arg17[%c1_618, %c0_619, %c0_620] : memref<8x2x16xf32, #tpu.memory_space<vmem>>, vector<1x2x16xf32>
    %1254 = vector.shape_cast %1253 : vector<1x2x16xf32> to vector<2x16xf32>
    %c1_621 = arith.constant 1 : index
    %c0_622 = arith.constant 0 : index
    %c0_623 = arith.constant 0 : index
    %1255 = vector.load %arg18[%c1_621, %c0_622, %c0_623] : memref<8x2x16xf32, #tpu.memory_space<vmem>>, vector<1x2x16xf32>
    %1256 = vector.shape_cast %1255 : vector<1x2x16xf32> to vector<2x16xf32>
    %1257 = tpu.concatenate %1254, %1256 in 1 : vector<2x16xf32>, vector<2x16xf32> -> vector<2x32xf32>
    %c1_624 = arith.constant 1 : index
    %c0_625 = arith.constant 0 : index
    %c0_626 = arith.constant 0 : index
    %1258 = vector.load %arg1[%c1_624, %c0_625, %c0_626] : memref<8x2x1xf32, #tpu.memory_space<vmem>>, vector<1x2x1xf32>
    %1259 = vector.shape_cast %1258 : vector<1x2x1xf32> to vector<2x1xf32>
    %c0_627 = arith.constant 0 : index
    %c0_628 = arith.constant 0 : index
    %1260 = vector.load %arg9[%c0_627, %c0_628] : memref<32x64xf32, #tpu.memory_space<vmem>>, vector<32x64xf32>
    %cst_629 = arith.constant dense<0.000000e+00> : vector<2x64xf32>
    %1261 = tpu.matmul %1257, %1260, %cst_629 {dimension_numbers = #tpu.dot_dimension_numbers<[1], [0], [0], [1], [0, 0, 1, 1], [], []>} : vector<2x32xf32>, vector<32x64xf32>, vector<2x64xf32> -> vector<2x64xf32>
    %c0_630 = arith.constant 0 : index
    %c0_631 = arith.constant 0 : index
    %1262 = vector.load %arg11[%c0_630, %c0_631] : memref<16x64xf32, #tpu.memory_space<vmem>>, vector<16x64xf32>
    %cst_632 = arith.constant dense<0.000000e+00> : vector<2x64xf32>
    %1263 = tpu.matmul %1201, %1262, %cst_632 {dimension_numbers = #tpu.dot_dimension_numbers<[1], [0], [0], [1], [0, 0, 1, 1], [], []>} : vector<2x16xf32>, vector<16x64xf32>, vector<2x64xf32> -> vector<2x64xf32>
    %1264 = arith.addf %1261, %1263 : vector<2x64xf32>
    %c0_633 = arith.constant 0 : index
    %c0_634 = arith.constant 0 : index
    %1265 = vector.load %arg13[%c0_633, %c0_634] : memref<1x64xf32, #tpu.memory_space<vmem>>, vector<1x64xf32>
    %1266 = vector.broadcast %1265 : vector<1x64xf32> to vector<2x64xf32>
    %1267 = arith.addf %1264, %1266 : vector<2x64xf32>
    %1268 = arith.negf %1267 : vector<2x64xf32>
    %1269 = math.exp %1268 : vector<2x64xf32>
    %cst_635 = arith.constant 1.000000e+00 : f32
    %1270 = vector.broadcast %cst_635 : f32 to vector<2x64xf32>
    %1271 = arith.addf %1270, %1269 : vector<2x64xf32>
    %1272 = arith.divf %1270, %1271 : vector<2x64xf32>
    %1273 = math.tanh %1267 : vector<2x64xf32>
    %1274 = vector.extract_strided_slice %1272 {offsets = [0, 16], sizes = [2, 16], strides = [1, 1]} : vector<2x64xf32> to vector<2x16xf32>
    %1275 = arith.mulf %1274, %1204 : vector<2x16xf32>
    %1276 = vector.extract_strided_slice %1272 {offsets = [0, 0], sizes = [2, 16], strides = [1, 1]} : vector<2x64xf32> to vector<2x16xf32>
    %1277 = vector.extract_strided_slice %1273 {offsets = [0, 32], sizes = [2, 16], strides = [1, 1]} : vector<2x64xf32> to vector<2x16xf32>
    %1278 = arith.mulf %1276, %1277 : vector<2x16xf32>
    %1279 = arith.addf %1275, %1278 : vector<2x16xf32>
    %1280 = vector.extract_strided_slice %1272 {offsets = [0, 48], sizes = [2, 16], strides = [1, 1]} : vector<2x64xf32> to vector<2x16xf32>
    %1281 = math.tanh %1279 : vector<2x16xf32>
    %1282 = arith.mulf %1280, %1281 : vector<2x16xf32>
    %cst_636 = arith.constant 0.000000e+00 : f32
    %1283 = vector.broadcast %cst_636 : f32 to vector<2x1xf32>
    %1284 = arith.cmpf ogt, %1259, %1283 : vector<2x1xf32>
    %cst_637 = arith.constant 0.000000e+00 : f32
    %1285 = vector.shape_cast %1284 : vector<2x1xi1> to vector<2x1xi1>
    %1286 = vector.broadcast %1285 : vector<2x1xi1> to vector<2x16xi1>
    %1287 = vector.broadcast %cst_637 : f32 to vector<2x16xf32>
    %1288 = arith.select %1286, %1282, %1287 : vector<2x16xi1>, vector<2x16xf32>
    %1289 = vector.shape_cast %1284 : vector<2x1xi1> to vector<2x1xi1>
    %1290 = vector.broadcast %1289 : vector<2x1xi1> to vector<2x16xi1>
    %1291 = arith.select %1290, %1282, %1201 : vector<2x16xi1>, vector<2x16xf32>
    %1292 = vector.shape_cast %1284 : vector<2x1xi1> to vector<2x1xi1>
    %1293 = vector.broadcast %1292 : vector<2x1xi1> to vector<2x16xi1>
    %1294 = arith.select %1293, %1279, %1204 : vector<2x16xi1>, vector<2x16xf32>
    %c1_638 = arith.constant 1 : index
    %c0_639 = arith.constant 0 : index
    %c0_640 = arith.constant 0 : index
    %1295 = vector.load %arg20[%c1_638, %c0_639, %c0_640] : memref<8x2x16xf32, #tpu.memory_space<vmem>>, vector<1x2x16xf32>
    %1296 = vector.shape_cast %1295 : vector<1x2x16xf32> to vector<2x16xf32>
    %1297 = vector.shape_cast %1288 : vector<2x16xf32> to vector<1x2x16xf32>
    tpu.vector_store %arg20[%c1_638, %c0_639, %c0_640], %1297 {strides = array<i32>} : memref<8x2x16xf32, #tpu.memory_space<vmem>>, vector<1x2x16xf32>,
    %c7_641 = arith.constant 7 : index
    %c0_642 = arith.constant 0 : index
    %c0_643 = arith.constant 0 : index
    %1298 = vector.load %arg17[%c7_641, %c0_642, %c0_643] : memref<8x2x16xf32, #tpu.memory_space<vmem>>, vector<1x2x16xf32>
    %1299 = vector.shape_cast %1298 : vector<1x2x16xf32> to vector<2x16xf32>
    %c7_644 = arith.constant 7 : index
    %c0_645 = arith.constant 0 : index
    %c0_646 = arith.constant 0 : index
    %1300 = vector.load %arg18[%c7_644, %c0_645, %c0_646] : memref<8x2x16xf32, #tpu.memory_space<vmem>>, vector<1x2x16xf32>
    %1301 = vector.shape_cast %1300 : vector<1x2x16xf32> to vector<2x16xf32>
    %1302 = tpu.concatenate %1299, %1301 in 1 : vector<2x16xf32>, vector<2x16xf32> -> vector<2x32xf32>
    %c7_647 = arith.constant 7 : index
    %c0_648 = arith.constant 0 : index
    %c0_649 = arith.constant 0 : index
    %1303 = vector.load %arg1[%c7_647, %c0_648, %c0_649] : memref<8x2x1xf32, #tpu.memory_space<vmem>>, vector<1x2x1xf32>
    %1304 = vector.shape_cast %1303 : vector<1x2x1xf32> to vector<2x1xf32>
    %c0_650 = arith.constant 0 : index
    %c0_651 = arith.constant 0 : index
    %1305 = vector.load %arg8[%c0_650, %c0_651] : memref<32x64xf32, #tpu.memory_space<vmem>>, vector<32x64xf32>
    %cst_652 = arith.constant dense<0.000000e+00> : vector<2x64xf32>
    %1306 = tpu.matmul %1302, %1305, %cst_652 {dimension_numbers = #tpu.dot_dimension_numbers<[1], [0], [0], [1], [0, 0, 1, 1], [], []>} : vector<2x32xf32>, vector<32x64xf32>, vector<2x64xf32> -> vector<2x64xf32>
    %c0_653 = arith.constant 0 : index
    %c0_654 = arith.constant 0 : index
    %1307 = vector.load %arg10[%c0_653, %c0_654] : memref<16x64xf32, #tpu.memory_space<vmem>>, vector<16x64xf32>
    %cst_655 = arith.constant dense<0.000000e+00> : vector<2x64xf32>
    %1308 = tpu.matmul %1246, %1307, %cst_655 {dimension_numbers = #tpu.dot_dimension_numbers<[1], [0], [0], [1], [0, 0, 1, 1], [], []>} : vector<2x16xf32>, vector<16x64xf32>, vector<2x64xf32> -> vector<2x64xf32>
    %1309 = arith.addf %1306, %1308 : vector<2x64xf32>
    %c0_656 = arith.constant 0 : index
    %c0_657 = arith.constant 0 : index
    %1310 = vector.load %arg12[%c0_656, %c0_657] : memref<1x64xf32, #tpu.memory_space<vmem>>, vector<1x64xf32>
    %1311 = vector.broadcast %1310 : vector<1x64xf32> to vector<2x64xf32>
    %1312 = arith.addf %1309, %1311 : vector<2x64xf32>
    %1313 = arith.negf %1312 : vector<2x64xf32>
    %1314 = math.exp %1313 : vector<2x64xf32>
    %cst_658 = arith.constant 1.000000e+00 : f32
    %1315 = vector.broadcast %cst_658 : f32 to vector<2x64xf32>
    %1316 = arith.addf %1315, %1314 : vector<2x64xf32>
    %1317 = arith.divf %1315, %1316 : vector<2x64xf32>
    %1318 = math.tanh %1312 : vector<2x64xf32>
    %1319 = vector.extract_strided_slice %1317 {offsets = [0, 16], sizes = [2, 16], strides = [1, 1]} : vector<2x64xf32> to vector<2x16xf32>
    %1320 = arith.mulf %1319, %1249 : vector<2x16xf32>
    %1321 = vector.extract_strided_slice %1317 {offsets = [0, 0], sizes = [2, 16], strides = [1, 1]} : vector<2x64xf32> to vector<2x16xf32>
    %1322 = vector.extract_strided_slice %1318 {offsets = [0, 32], sizes = [2, 16], strides = [1, 1]} : vector<2x64xf32> to vector<2x16xf32>
    %1323 = arith.mulf %1321, %1322 : vector<2x16xf32>
    %1324 = arith.addf %1320, %1323 : vector<2x16xf32>
    %1325 = vector.extract_strided_slice %1317 {offsets = [0, 48], sizes = [2, 16], strides = [1, 1]} : vector<2x64xf32> to vector<2x16xf32>
    %1326 = math.tanh %1324 : vector<2x16xf32>
    %1327 = arith.mulf %1325, %1326 : vector<2x16xf32>
    %cst_659 = arith.constant 0.000000e+00 : f32
    %1328 = vector.broadcast %cst_659 : f32 to vector<2x1xf32>
    %1329 = arith.cmpf ogt, %1304, %1328 : vector<2x1xf32>
    %cst_660 = arith.constant 0.000000e+00 : f32
    %1330 = vector.shape_cast %1329 : vector<2x1xi1> to vector<2x1xi1>
    %1331 = vector.broadcast %1330 : vector<2x1xi1> to vector<2x16xi1>
    %1332 = vector.broadcast %cst_660 : f32 to vector<2x16xf32>
    %1333 = arith.select %1331, %1327, %1332 : vector<2x16xi1>, vector<2x16xf32>
    %c7_661 = arith.constant 7 : index
    %c0_662 = arith.constant 0 : index
    %c0_663 = arith.constant 0 : index
    %1334 = vector.load %arg19[%c7_661, %c0_662, %c0_663] : memref<8x2x16xf32, #tpu.memory_space<vmem>>, vector<1x2x16xf32>
    %1335 = vector.shape_cast %1334 : vector<1x2x16xf32> to vector<2x16xf32>
    %1336 = vector.shape_cast %1333 : vector<2x16xf32> to vector<1x2x16xf32>
    tpu.vector_store %arg19[%c7_661, %c0_662, %c0_663], %1336 {strides = array<i32>} : memref<8x2x16xf32, #tpu.memory_space<vmem>>, vector<1x2x16xf32>,
    %c0_664 = arith.constant 0 : index
    %c0_665 = arith.constant 0 : index
    %c0_666 = arith.constant 0 : index
    %1337 = vector.load %arg17[%c0_664, %c0_665, %c0_666] : memref<8x2x16xf32, #tpu.memory_space<vmem>>, vector<1x2x16xf32>
    %1338 = vector.shape_cast %1337 : vector<1x2x16xf32> to vector<2x16xf32>
    %c0_667 = arith.constant 0 : index
    %c0_668 = arith.constant 0 : index
    %c0_669 = arith.constant 0 : index
    %1339 = vector.load %arg18[%c0_667, %c0_668, %c0_669] : memref<8x2x16xf32, #tpu.memory_space<vmem>>, vector<1x2x16xf32>
    %1340 = vector.shape_cast %1339 : vector<1x2x16xf32> to vector<2x16xf32>
    %1341 = tpu.concatenate %1338, %1340 in 1 : vector<2x16xf32>, vector<2x16xf32> -> vector<2x32xf32>
    %c0_670 = arith.constant 0 : index
    %c0_671 = arith.constant 0 : index
    %c0_672 = arith.constant 0 : index
    %1342 = vector.load %arg1[%c0_670, %c0_671, %c0_672] : memref<8x2x1xf32, #tpu.memory_space<vmem>>, vector<1x2x1xf32>
    %1343 = vector.shape_cast %1342 : vector<1x2x1xf32> to vector<2x1xf32>
    %c0_673 = arith.constant 0 : index
    %c0_674 = arith.constant 0 : index
    %1344 = vector.load %arg9[%c0_673, %c0_674] : memref<32x64xf32, #tpu.memory_space<vmem>>, vector<32x64xf32>
    %cst_675 = arith.constant dense<0.000000e+00> : vector<2x64xf32>
    %1345 = tpu.matmul %1341, %1344, %cst_675 {dimension_numbers = #tpu.dot_dimension_numbers<[1], [0], [0], [1], [0, 0, 1, 1], [], []>} : vector<2x32xf32>, vector<32x64xf32>, vector<2x64xf32> -> vector<2x64xf32>
    %c0_676 = arith.constant 0 : index
    %c0_677 = arith.constant 0 : index
    %1346 = vector.load %arg11[%c0_676, %c0_677] : memref<16x64xf32, #tpu.memory_space<vmem>>, vector<16x64xf32>
    %cst_678 = arith.constant dense<0.000000e+00> : vector<2x64xf32>
    %1347 = tpu.matmul %1291, %1346, %cst_678 {dimension_numbers = #tpu.dot_dimension_numbers<[1], [0], [0], [1], [0, 0, 1, 1], [], []>} : vector<2x16xf32>, vector<16x64xf32>, vector<2x64xf32> -> vector<2x64xf32>
    %1348 = arith.addf %1345, %1347 : vector<2x64xf32>
    %c0_679 = arith.constant 0 : index
    %c0_680 = arith.constant 0 : index
    %1349 = vector.load %arg13[%c0_679, %c0_680] : memref<1x64xf32, #tpu.memory_space<vmem>>, vector<1x64xf32>
    %1350 = vector.broadcast %1349 : vector<1x64xf32> to vector<2x64xf32>
    %1351 = arith.addf %1348, %1350 : vector<2x64xf32>
    %1352 = arith.negf %1351 : vector<2x64xf32>
    %1353 = math.exp %1352 : vector<2x64xf32>
    %cst_681 = arith.constant 1.000000e+00 : f32
    %1354 = vector.broadcast %cst_681 : f32 to vector<2x64xf32>
    %1355 = arith.addf %1354, %1353 : vector<2x64xf32>
    %1356 = arith.divf %1354, %1355 : vector<2x64xf32>
    %1357 = math.tanh %1351 : vector<2x64xf32>
    %1358 = vector.extract_strided_slice %1356 {offsets = [0, 16], sizes = [2, 16], strides = [1, 1]} : vector<2x64xf32> to vector<2x16xf32>
    %1359 = arith.mulf %1358, %1294 : vector<2x16xf32>
    %1360 = vector.extract_strided_slice %1356 {offsets = [0, 0], sizes = [2, 16], strides = [1, 1]} : vector<2x64xf32> to vector<2x16xf32>
    %1361 = vector.extract_strided_slice %1357 {offsets = [0, 32], sizes = [2, 16], strides = [1, 1]} : vector<2x64xf32> to vector<2x16xf32>
    %1362 = arith.mulf %1360, %1361 : vector<2x16xf32>
    %1363 = arith.addf %1359, %1362 : vector<2x16xf32>
    %1364 = vector.extract_strided_slice %1356 {offsets = [0, 48], sizes = [2, 16], strides = [1, 1]} : vector<2x64xf32> to vector<2x16xf32>
    %1365 = math.tanh %1363 : vector<2x16xf32>
    %1366 = arith.mulf %1364, %1365 : vector<2x16xf32>
    %cst_682 = arith.constant 0.000000e+00 : f32
    %1367 = vector.broadcast %cst_682 : f32 to vector<2x1xf32>
    %1368 = arith.cmpf ogt, %1343, %1367 : vector<2x1xf32>
    %cst_683 = arith.constant 0.000000e+00 : f32
    %1369 = vector.shape_cast %1368 : vector<2x1xi1> to vector<2x1xi1>
    %1370 = vector.broadcast %1369 : vector<2x1xi1> to vector<2x16xi1>
    %1371 = vector.broadcast %cst_683 : f32 to vector<2x16xf32>
    %1372 = arith.select %1370, %1366, %1371 : vector<2x16xi1>, vector<2x16xf32>
    %c0_684 = arith.constant 0 : index
    %c0_685 = arith.constant 0 : index
    %c0_686 = arith.constant 0 : index
    %1373 = vector.load %arg20[%c0_684, %c0_685, %c0_686] : memref<8x2x16xf32, #tpu.memory_space<vmem>>, vector<1x2x16xf32>
    %1374 = vector.shape_cast %1373 : vector<1x2x16xf32> to vector<2x16xf32>
    %1375 = vector.shape_cast %1372 : vector<2x16xf32> to vector<1x2x16xf32>
    tpu.vector_store %arg20[%c0_684, %c0_685, %c0_686], %1375 {strides = array<i32>} : memref<8x2x16xf32, #tpu.memory_space<vmem>>, vector<1x2x16xf32>,
    %c0_687 = arith.constant 0 : index
    %c0_688 = arith.constant 0 : index
    %1376 = vector.load %arg14[%c0_687, %c0_688] : memref<32x8xf32, #tpu.memory_space<vmem>>, vector<32x8xf32>
    %c0_689 = arith.constant 0 : index
    %c0_690 = arith.constant 0 : index
    %1377 = vector.load %arg15[%c0_689, %c0_690] : memref<1x8xf32, #tpu.memory_space<vmem>>, vector<1x8xf32>
    %c0_691 = arith.constant 0 : index
    %c0_692 = arith.constant 0 : index
    %c0_693 = arith.constant 0 : index
    %1378 = vector.load %arg19[%c0_691, %c0_692, %c0_693] : memref<8x2x16xf32, #tpu.memory_space<vmem>>, vector<1x2x16xf32>
    %1379 = vector.shape_cast %1378 : vector<1x2x16xf32> to vector<2x16xf32>
    %c0_694 = arith.constant 0 : index
    %c0_695 = arith.constant 0 : index
    %c0_696 = arith.constant 0 : index
    %1380 = vector.load %arg20[%c0_694, %c0_695, %c0_696] : memref<8x2x16xf32, #tpu.memory_space<vmem>>, vector<1x2x16xf32>
    %1381 = vector.shape_cast %1380 : vector<1x2x16xf32> to vector<2x16xf32>
    %1382 = tpu.concatenate %1379, %1381 in 1 : vector<2x16xf32>, vector<2x16xf32> -> vector<2x32xf32>
    %cst_697 = arith.constant dense<0.000000e+00> : vector<2x8xf32>
    %1383 = tpu.matmul %1382, %1376, %cst_697 {dimension_numbers = #tpu.dot_dimension_numbers<[1], [0], [0], [1], [0, 0, 1, 1], [], []>} : vector<2x32xf32>, vector<32x8xf32>, vector<2x8xf32> -> vector<2x8xf32>
    %1384 = vector.broadcast %1377 : vector<1x8xf32> to vector<2x8xf32>
    %1385 = arith.addf %1383, %1384 : vector<2x8xf32>
    %c0_698 = arith.constant 0 : index
    %c0_699 = arith.constant 0 : index
    %c0_700 = arith.constant 0 : index
    %1386 = vector.load %arg16[%c0_698, %c0_699, %c0_700] : memref<8x2x8xf32, #tpu.memory_space<vmem>>, vector<1x2x8xf32>
    %1387 = vector.shape_cast %1386 : vector<1x2x8xf32> to vector<2x8xf32>
    %1388 = vector.shape_cast %1385 : vector<2x8xf32> to vector<1x2x8xf32>
    tpu.vector_store %arg16[%c0_698, %c0_699, %c0_700], %1388 {strides = array<i32>} : memref<8x2x8xf32, #tpu.memory_space<vmem>>, vector<1x2x8xf32>,
    %c1_701 = arith.constant 1 : index
    %c0_702 = arith.constant 0 : index
    %c0_703 = arith.constant 0 : index
    %1389 = vector.load %arg19[%c1_701, %c0_702, %c0_703] : memref<8x2x16xf32, #tpu.memory_space<vmem>>, vector<1x2x16xf32>
    %1390 = vector.shape_cast %1389 : vector<1x2x16xf32> to vector<2x16xf32>
    %c1_704 = arith.constant 1 : index
    %c0_705 = arith.constant 0 : index
    %c0_706 = arith.constant 0 : index
    %1391 = vector.load %arg20[%c1_704, %c0_705, %c0_706] : memref<8x2x16xf32, #tpu.memory_space<vmem>>, vector<1x2x16xf32>
    %1392 = vector.shape_cast %1391 : vector<1x2x16xf32> to vector<2x16xf32>
    %1393 = tpu.concatenate %1390, %1392 in 1 : vector<2x16xf32>, vector<2x16xf32> -> vector<2x32xf32>
    %cst_707 = arith.constant dense<0.000000e+00> : vector<2x8xf32>
    %1394 = tpu.matmul %1393, %1376, %cst_707 {dimension_numbers = #tpu.dot_dimension_numbers<[1], [0], [0], [1], [0, 0, 1, 1], [], []>} : vector<2x32xf32>, vector<32x8xf32>, vector<2x8xf32> -> vector<2x8xf32>
    %1395 = vector.broadcast %1377 : vector<1x8xf32> to vector<2x8xf32>
    %1396 = arith.addf %1394, %1395 : vector<2x8xf32>
    %c1_708 = arith.constant 1 : index
    %c0_709 = arith.constant 0 : index
    %c0_710 = arith.constant 0 : index
    %1397 = vector.load %arg16[%c1_708, %c0_709, %c0_710] : memref<8x2x8xf32, #tpu.memory_space<vmem>>, vector<1x2x8xf32>
    %1398 = vector.shape_cast %1397 : vector<1x2x8xf32> to vector<2x8xf32>
    %1399 = vector.shape_cast %1396 : vector<2x8xf32> to vector<1x2x8xf32>
    tpu.vector_store %arg16[%c1_708, %c0_709, %c0_710], %1399 {strides = array<i32>} : memref<8x2x8xf32, #tpu.memory_space<vmem>>, vector<1x2x8xf32>,
    %c2_711 = arith.constant 2 : index
    %c0_712 = arith.constant 0 : index
    %c0_713 = arith.constant 0 : index
    %1400 = vector.load %arg19[%c2_711, %c0_712, %c0_713] : memref<8x2x16xf32, #tpu.memory_space<vmem>>, vector<1x2x16xf32>
    %1401 = vector.shape_cast %1400 : vector<1x2x16xf32> to vector<2x16xf32>
    %c2_714 = arith.constant 2 : index
    %c0_715 = arith.constant 0 : index
    %c0_716 = arith.constant 0 : index
    %1402 = vector.load %arg20[%c2_714, %c0_715, %c0_716] : memref<8x2x16xf32, #tpu.memory_space<vmem>>, vector<1x2x16xf32>
    %1403 = vector.shape_cast %1402 : vector<1x2x16xf32> to vector<2x16xf32>
    %1404 = tpu.concatenate %1401, %1403 in 1 : vector<2x16xf32>, vector<2x16xf32> -> vector<2x32xf32>
    %cst_717 = arith.constant dense<0.000000e+00> : vector<2x8xf32>
    %1405 = tpu.matmul %1404, %1376, %cst_717 {dimension_numbers = #tpu.dot_dimension_numbers<[1], [0], [0], [1], [0, 0, 1, 1], [], []>} : vector<2x32xf32>, vector<32x8xf32>, vector<2x8xf32> -> vector<2x8xf32>
    %1406 = vector.broadcast %1377 : vector<1x8xf32> to vector<2x8xf32>
    %1407 = arith.addf %1405, %1406 : vector<2x8xf32>
    %c2_718 = arith.constant 2 : index
    %c0_719 = arith.constant 0 : index
    %c0_720 = arith.constant 0 : index
    %1408 = vector.load %arg16[%c2_718, %c0_719, %c0_720] : memref<8x2x8xf32, #tpu.memory_space<vmem>>, vector<1x2x8xf32>
    %1409 = vector.shape_cast %1408 : vector<1x2x8xf32> to vector<2x8xf32>
    %1410 = vector.shape_cast %1407 : vector<2x8xf32> to vector<1x2x8xf32>
    tpu.vector_store %arg16[%c2_718, %c0_719, %c0_720], %1410 {strides = array<i32>} : memref<8x2x8xf32, #tpu.memory_space<vmem>>, vector<1x2x8xf32>,
    %c3_721 = arith.constant 3 : index
    %c0_722 = arith.constant 0 : index
    %c0_723 = arith.constant 0 : index
    %1411 = vector.load %arg19[%c3_721, %c0_722, %c0_723] : memref<8x2x16xf32, #tpu.memory_space<vmem>>, vector<1x2x16xf32>
    %1412 = vector.shape_cast %1411 : vector<1x2x16xf32> to vector<2x16xf32>
    %c3_724 = arith.constant 3 : index
    %c0_725 = arith.constant 0 : index
    %c0_726 = arith.constant 0 : index
    %1413 = vector.load %arg20[%c3_724, %c0_725, %c0_726] : memref<8x2x16xf32, #tpu.memory_space<vmem>>, vector<1x2x16xf32>
    %1414 = vector.shape_cast %1413 : vector<1x2x16xf32> to vector<2x16xf32>
    %1415 = tpu.concatenate %1412, %1414 in 1 : vector<2x16xf32>, vector<2x16xf32> -> vector<2x32xf32>
    %cst_727 = arith.constant dense<0.000000e+00> : vector<2x8xf32>
    %1416 = tpu.matmul %1415, %1376, %cst_727 {dimension_numbers = #tpu.dot_dimension_numbers<[1], [0], [0], [1], [0, 0, 1, 1], [], []>} : vector<2x32xf32>, vector<32x8xf32>, vector<2x8xf32> -> vector<2x8xf32>
    %1417 = vector.broadcast %1377 : vector<1x8xf32> to vector<2x8xf32>
    %1418 = arith.addf %1416, %1417 : vector<2x8xf32>
    %c3_728 = arith.constant 3 : index
    %c0_729 = arith.constant 0 : index
    %c0_730 = arith.constant 0 : index
    %1419 = vector.load %arg16[%c3_728, %c0_729, %c0_730] : memref<8x2x8xf32, #tpu.memory_space<vmem>>, vector<1x2x8xf32>
    %1420 = vector.shape_cast %1419 : vector<1x2x8xf32> to vector<2x8xf32>
    %1421 = vector.shape_cast %1418 : vector<2x8xf32> to vector<1x2x8xf32>
    tpu.vector_store %arg16[%c3_728, %c0_729, %c0_730], %1421 {strides = array<i32>} : memref<8x2x8xf32, #tpu.memory_space<vmem>>, vector<1x2x8xf32>,
    %c4_731 = arith.constant 4 : index
    %c0_732 = arith.constant 0 : index
    %c0_733 = arith.constant 0 : index
    %1422 = vector.load %arg19[%c4_731, %c0_732, %c0_733] : memref<8x2x16xf32, #tpu.memory_space<vmem>>, vector<1x2x16xf32>
    %1423 = vector.shape_cast %1422 : vector<1x2x16xf32> to vector<2x16xf32>
    %c4_734 = arith.constant 4 : index
    %c0_735 = arith.constant 0 : index
    %c0_736 = arith.constant 0 : index
    %1424 = vector.load %arg20[%c4_734, %c0_735, %c0_736] : memref<8x2x16xf32, #tpu.memory_space<vmem>>, vector<1x2x16xf32>
    %1425 = vector.shape_cast %1424 : vector<1x2x16xf32> to vector<2x16xf32>
    %1426 = tpu.concatenate %1423, %1425 in 1 : vector<2x16xf32>, vector<2x16xf32> -> vector<2x32xf32>
    %cst_737 = arith.constant dense<0.000000e+00> : vector<2x8xf32>
    %1427 = tpu.matmul %1426, %1376, %cst_737 {dimension_numbers = #tpu.dot_dimension_numbers<[1], [0], [0], [1], [0, 0, 1, 1], [], []>} : vector<2x32xf32>, vector<32x8xf32>, vector<2x8xf32> -> vector<2x8xf32>
    %1428 = vector.broadcast %1377 : vector<1x8xf32> to vector<2x8xf32>
    %1429 = arith.addf %1427, %1428 : vector<2x8xf32>
    %c4_738 = arith.constant 4 : index
    %c0_739 = arith.constant 0 : index
    %c0_740 = arith.constant 0 : index
    %1430 = vector.load %arg16[%c4_738, %c0_739, %c0_740] : memref<8x2x8xf32, #tpu.memory_space<vmem>>, vector<1x2x8xf32>
    %1431 = vector.shape_cast %1430 : vector<1x2x8xf32> to vector<2x8xf32>
    %1432 = vector.shape_cast %1429 : vector<2x8xf32> to vector<1x2x8xf32>
    tpu.vector_store %arg16[%c4_738, %c0_739, %c0_740], %1432 {strides = array<i32>} : memref<8x2x8xf32, #tpu.memory_space<vmem>>, vector<1x2x8xf32>,
    %c5_741 = arith.constant 5 : index
    %c0_742 = arith.constant 0 : index
    %c0_743 = arith.constant 0 : index
    %1433 = vector.load %arg19[%c5_741, %c0_742, %c0_743] : memref<8x2x16xf32, #tpu.memory_space<vmem>>, vector<1x2x16xf32>
    %1434 = vector.shape_cast %1433 : vector<1x2x16xf32> to vector<2x16xf32>
    %c5_744 = arith.constant 5 : index
    %c0_745 = arith.constant 0 : index
    %c0_746 = arith.constant 0 : index
    %1435 = vector.load %arg20[%c5_744, %c0_745, %c0_746] : memref<8x2x16xf32, #tpu.memory_space<vmem>>, vector<1x2x16xf32>
    %1436 = vector.shape_cast %1435 : vector<1x2x16xf32> to vector<2x16xf32>
    %1437 = tpu.concatenate %1434, %1436 in 1 : vector<2x16xf32>, vector<2x16xf32> -> vector<2x32xf32>
    %cst_747 = arith.constant dense<0.000000e+00> : vector<2x8xf32>
    %1438 = tpu.matmul %1437, %1376, %cst_747 {dimension_numbers = #tpu.dot_dimension_numbers<[1], [0], [0], [1], [0, 0, 1, 1], [], []>} : vector<2x32xf32>, vector<32x8xf32>, vector<2x8xf32> -> vector<2x8xf32>
    %1439 = vector.broadcast %1377 : vector<1x8xf32> to vector<2x8xf32>
    %1440 = arith.addf %1438, %1439 : vector<2x8xf32>
    %c5_748 = arith.constant 5 : index
    %c0_749 = arith.constant 0 : index
    %c0_750 = arith.constant 0 : index
    %1441 = vector.load %arg16[%c5_748, %c0_749, %c0_750] : memref<8x2x8xf32, #tpu.memory_space<vmem>>, vector<1x2x8xf32>
    %1442 = vector.shape_cast %1441 : vector<1x2x8xf32> to vector<2x8xf32>
    %1443 = vector.shape_cast %1440 : vector<2x8xf32> to vector<1x2x8xf32>
    tpu.vector_store %arg16[%c5_748, %c0_749, %c0_750], %1443 {strides = array<i32>} : memref<8x2x8xf32, #tpu.memory_space<vmem>>, vector<1x2x8xf32>,
    %c6_751 = arith.constant 6 : index
    %c0_752 = arith.constant 0 : index
    %c0_753 = arith.constant 0 : index
    %1444 = vector.load %arg19[%c6_751, %c0_752, %c0_753] : memref<8x2x16xf32, #tpu.memory_space<vmem>>, vector<1x2x16xf32>
    %1445 = vector.shape_cast %1444 : vector<1x2x16xf32> to vector<2x16xf32>
    %c6_754 = arith.constant 6 : index
    %c0_755 = arith.constant 0 : index
    %c0_756 = arith.constant 0 : index
    %1446 = vector.load %arg20[%c6_754, %c0_755, %c0_756] : memref<8x2x16xf32, #tpu.memory_space<vmem>>, vector<1x2x16xf32>
    %1447 = vector.shape_cast %1446 : vector<1x2x16xf32> to vector<2x16xf32>
    %1448 = tpu.concatenate %1445, %1447 in 1 : vector<2x16xf32>, vector<2x16xf32> -> vector<2x32xf32>
    %cst_757 = arith.constant dense<0.000000e+00> : vector<2x8xf32>
    %1449 = tpu.matmul %1448, %1376, %cst_757 {dimension_numbers = #tpu.dot_dimension_numbers<[1], [0], [0], [1], [0, 0, 1, 1], [], []>} : vector<2x32xf32>, vector<32x8xf32>, vector<2x8xf32> -> vector<2x8xf32>
    %1450 = vector.broadcast %1377 : vector<1x8xf32> to vector<2x8xf32>
    %1451 = arith.addf %1449, %1450 : vector<2x8xf32>
    %c6_758 = arith.constant 6 : index
    %c0_759 = arith.constant 0 : index
    %c0_760 = arith.constant 0 : index
    %1452 = vector.load %arg16[%c6_758, %c0_759, %c0_760] : memref<8x2x8xf32, #tpu.memory_space<vmem>>, vector<1x2x8xf32>
    %1453 = vector.shape_cast %1452 : vector<1x2x8xf32> to vector<2x8xf32>
    %1454 = vector.shape_cast %1451 : vector<2x8xf32> to vector<1x2x8xf32>
    tpu.vector_store %arg16[%c6_758, %c0_759, %c0_760], %1454 {strides = array<i32>} : memref<8x2x8xf32, #tpu.memory_space<vmem>>, vector<1x2x8xf32>,
    %c7_761 = arith.constant 7 : index
    %c0_762 = arith.constant 0 : index
    %c0_763 = arith.constant 0 : index
    %1455 = vector.load %arg19[%c7_761, %c0_762, %c0_763] : memref<8x2x16xf32, #tpu.memory_space<vmem>>, vector<1x2x16xf32>
    %1456 = vector.shape_cast %1455 : vector<1x2x16xf32> to vector<2x16xf32>
    %c7_764 = arith.constant 7 : index
    %c0_765 = arith.constant 0 : index
    %c0_766 = arith.constant 0 : index
    %1457 = vector.load %arg20[%c7_764, %c0_765, %c0_766] : memref<8x2x16xf32, #tpu.memory_space<vmem>>, vector<1x2x16xf32>
    %1458 = vector.shape_cast %1457 : vector<1x2x16xf32> to vector<2x16xf32>
    %1459 = tpu.concatenate %1456, %1458 in 1 : vector<2x16xf32>, vector<2x16xf32> -> vector<2x32xf32>
    %cst_767 = arith.constant dense<0.000000e+00> : vector<2x8xf32>
    %1460 = tpu.matmul %1459, %1376, %cst_767 {dimension_numbers = #tpu.dot_dimension_numbers<[1], [0], [0], [1], [0, 0, 1, 1], [], []>} : vector<2x32xf32>, vector<32x8xf32>, vector<2x8xf32> -> vector<2x8xf32>
    %1461 = vector.broadcast %1377 : vector<1x8xf32> to vector<2x8xf32>
    %1462 = arith.addf %1460, %1461 : vector<2x8xf32>
    %c7_768 = arith.constant 7 : index
    %c0_769 = arith.constant 0 : index
    %c0_770 = arith.constant 0 : index
    %1463 = vector.load %arg16[%c7_768, %c0_769, %c0_770] : memref<8x2x8xf32, #tpu.memory_space<vmem>>, vector<1x2x8xf32>
    %1464 = vector.shape_cast %1463 : vector<1x2x8xf32> to vector<2x8xf32>
    %1465 = vector.shape_cast %1462 : vector<2x8xf32> to vector<1x2x8xf32>
    tpu.vector_store %arg16[%c7_768, %c0_769, %c0_770], %1465 {strides = array<i32>} : memref<8x2x8xf32, #tpu.memory_space<vmem>>, vector<1x2x8xf32>,
    return
  }
}

</mosaic_0001>

<bundles_post_ra>
// kernel: forward_full.2
= control target key start
LH: loop header
LB: loop body
LE: loop exit
PB: predicated region body
PF: predicated region fallthrough
CT: control target
= control target key end

     0   :  { %vm95_vm0 = vcmask 261120   ;;  %v2329_v2 = vmov 32.0   ;;  %s3121_s29 = smov 88   ;;  %vm201_vm5 = vcmask 64512   ;;  %vm1052_vm15 = vcmask 523264   ;;  %s3070_s0 = inlined_call_operand.vmem [shape: f32[16,32], index: 0, kind: input, shape index: {}]   ;;  %s3071_s2 = inlined_call_operand.vmem [shape: f32[1,32], index: 2, kind: input, shape index: {}]   ;;  %s3072_s3 = inlined_call_operand.vmem [shape: f32[1,32], index: 3, kind: input, shape index: {}]   ;;  %s3073_s5 = inlined_call_operand.vmem [shape: f32[1,96], index: 5, kind: input, shape index: {}]   ;;  %s3074_s4 = inlined_call_operand.vmem [shape: f32[32,96], index: 4, kind: input, shape index: {}]   ;;  %s3075_s1 = inlined_call_operand.vmem [shape: f32[16,8], index: 1, kind: input, shape index: {}]   ;;  %s3076_s6 = inlined_call_operand.vmem [shape: f32[32,32], index: 6, kind: input, shape index: {}]   ;;  %s3077_s7 = inlined_call_operand.vmem [shape: f32[1,32], index: 7, kind: input, shape index: {}]   ;;  %s3078_s8 = inlined_call_operand.vmem [shape: f32[1,32], index: 8, kind: input, shape index: {}]   ;;  %s3079_s9 = inlined_call_operand.vmem [shape: f32[1,32], index: 9, kind: input, shape index: {}]   ;;  %s3080_s11 = inlined_call_operand.vmem [shape: f32[1,64], index: 11, kind: input, shape index: {}]   ;;  %s3081_s10 = inlined_call_operand.vmem [shape: f32[32,64], index: 10, kind: input, shape index: {}]   ;;  %s3082_s12 = inlined_call_operand.vmem [shape: f32[64,32], index: 12, kind: input, shape index: {}]   ;;  %s3083_s13 = inlined_call_operand.vmem [shape: f32[1,32], index: 13, kind: input, shape index: {}]   ;;  %s3084_s14 = inlined_call_operand.vmem [shape: f32[1,32], index: 14, kind: input, shape index: {}]   ;;  %s3085_s15 = inlined_call_operand.vmem [shape: f32[1,32], index: 15, kind: input, shape index: {}]   ;;  %s3086_s17 = inlined_call_operand.vmem [shape: f32[1,96], index: 17, kind: input, shape index: {}]   ;;  %s3087_s16 = inlined_call_operand.vmem [shape: f32[32,96], index: 16, kind: input, shape index: {}]   ;;  %s3088_s18 = inlined_call_operand.vmem [shape: f32[32,32], index: 18, kind: input, shape index: {}]   ;;  %s3089_s19 = inlined_call_operand.vmem [shape: f32[1,32], index: 19, kind: input, shape index: {}]   ;;  %s3090_s20 = inlined_call_operand.vmem [shape: f32[1,32], index: 20, kind: input, shape index: {}]   ;;  %s3091_s21 = inlined_call_operand.vmem [shape: f32[1,32], index: 21, kind: input, shape index: {}]   ;;  %s3092_s22 = inlined_call_operand.vmem [shape: f32[32,64], index: 22, kind: input, shape index: {}]   ;;  %s3093_s23 = inlined_call_operand.vmem [shape: f32[1,64], index: 23, kind: input, shape index: {}]   ;;  %s3094_s24 = inlined_call_operand.vmem [shape: f32[64,32], index: 24, kind: input, shape index: {}]   ;;  %s3095_s25 = inlined_call_operand.vmem [shape: f32[1,32], index: 25, kind: input, shape index: {}]   ;;  %s3096_s26 = inlined_call_operand.vmem [shape: f32[1,32], index: 26, kind: input, shape index: {}]   ;;  %s3097_s27 = inlined_call_operand.vmem [shape: f32[1,32], index: 27, kind: input, shape index: {}]   ;;  %s3098_s28 = inlined_call_operand.vmem [shape: f32[16,32], index: 28, kind: output, shape index: {}]  }
   0x1   :  { %3123 = sst [smem:[#allocation2_spill]] %s3070_s0  ;;  %2233 = vrcp.f32 %v2329_v2  ;;  %s2330_s0 = smov 120  }
   0x2   :  { %3124 = sst [smem:[#allocation3_spill]] %s3071_s2  ;;  %s2336_s2 = smov 80  }
   0x3   :  { %3125 = sst [smem:[#allocation4_spill]] %s3072_s3 }
   0x4   :  { %3126 = sst [smem:[#allocation5_spill]] %s3073_s5  ;;  %s3113_s5 = smov 48  }
   0x5   :  { %3127 = sst [smem:[#allocation6_spill]] %s3074_s4 }
   0x6   :  { %3128 = sst [smem:[#allocation7_spill]] %s3075_s1  ;;  %s3115_s1 = smov 56  }
   0x7   :  { %3129 = sst [smem:[#allocation8_spill]] %s3076_s6  ;;  %v2234_v3 = vpop.eup %2233 }
   0x8   :  { %3130 = sst [smem:[#allocation9_spill]] %s3077_s7  ;;  %v103_v4 = vmul.f32 32.0, %v2234_v3  ;;  %vm107_vm1 = vweird.f32 %v2234_v3  ;;  %s3154_s7 = smov 72  }
   0x9   :  { %3131 = sst [smem:[#allocation10_spill]] %s3078_s8  ;;  %s3107_s8 = smov 64  }
   0xa   :  { %3132 = sst [smem:[#allocation11_spill]] %s3079_s9  ;;  %v104_v5 = vsub.f32 1.0, %v103_v4 }
   0xb   :  { %3133 = sst [smem:[#allocation12_spill]] %s3080_s11 }
   0xc   :  { %3134 = sst [smem:[#allocation13_spill]] %s3081_s10  ;;  %v105_v6 = vmul.f32 %v2234_v3, %v104_v5  ;;  %s3117_s10 = smov 96  }
   0xd   :  { %3135 = sst [smem:[#allocation14_spill]] %s3082_s12 }
   0xe   :  { %s3136_s9 = sld [smem:[#allocation2_spill]]  ;;  %v106_v7 = vadd.f32 %v2234_v3, %v105_v6 }
   0xf   :  { %s3137_s6 = sld [smem:[#allocation6_spill]] }
  0x10   :  { %v2490_v8 = vsel %vm107_vm1, %v2234_v3, %v106_v7  ;;  %s3138_s4 = sld [smem:[#allocation3_spill]] }
  0x11   :  { %s3139_s30 = sld [smem:[#allocation4_spill]] }
  0x12   :  { %s3140_s11 = sld [smem:[#allocation5_spill]] }
  0x13   :  { %s3141_s12 = sld [smem:[#allocation7_spill]] }
  0x14   :  { %v91_v0 = vld [vmem:[%s3136_s9] sm:$0xff]  ;;  %v92_v58 = vld [vmem:[%s3136_s9 + $0x8] sm:$0xff]  ;;  %s3142_s3 = sld [smem:[#allocation8_spill]]  ;;  %s3105_s9 = smov 40  }
  0x15   :  { %v96_v1 = vsel %vm95_vm0, %v91_v0, 0.0  ;;  %v160_v14 = vld [vmem:[%s3137_s6 + $0x18] sm:$0xff]  ;;  %v159_v15 = vld [vmem:[%s3137_s6 + $0x10] sm:$0xff]  ;;  %v158_v16 = vld [vmem:[%s3137_s6 + $0x8] sm:$0xff]  ;;  %v99_v59 = vsel %vm95_vm0, %v92_v58, 0.0 }
  0x16   :  { %97 = vadd.xlane.f32.xlu0 %v96_v1  ;;  %183 = vmatpush.msra.mxu0 %v160_v14  ;;  %v157_v17 = vld [vmem:[%s3137_s6] sm:$0xff]  ;;  %s3109_s6 = smov 104  }
  0x17   :  { %v2510_v27 = vld [vmem:[%s3138_s4] ss:$0 sm:$0xff]  ;;  %s3119_s4 = smov 112  }
  0x18   :  { %184 = vmatpush.msra.mxu0 %v159_v15  ;;  %v2515_v30 = vld [vmem:[%s3139_s30] ss:$0 sm:$0xff]  ;;  %s3111_s30 = smov 72  }
  0x19   :  { %v2526_v33 = vld [vmem:[%s3140_s11] ss:$0 sm:$0xff]  ;;  %s3143_s11 = sld [smem:[#allocation9_spill]] }
  0x1a   :  { %185 = vmatpush.msra.mxu0 %v158_v16  ;;  %v2545_v40 = vld [vmem:[%s3141_s12] sm:$0xff]  ;;  %v2568_v1 = vld [vmem:[%s3142_s3 + $0x8] sm:$0xff] }
  0x1b   :  { %v2577_v6 = vld [vmem:[%s3142_s3] sm:$0xff] }
  0x1c   :  { %186 = vmatpush.msra.mxu0 %v157_v17 }
  0x89   :  { %v98_v9 = vpop.xlane.xlu0 %97 }
  0x8a   :  { %v109_v10 = vmul.f32 %v2490_v8, %v98_v9 }
  0x8c   :  { %v111_v11 = vsub.f32 %v91_v0, %v109_v10 }
  0x8e   :  { %v113_v12 = vmul.f32 %v111_v11, %v111_v11 }
  0x90   :  { %v115_v13 = vsel %vm95_vm0, %v113_v12, 0.0 }
  0x91   :  { %116 = vadd.xlane.f32.xlu0 %v115_v13 }
 0x104   :  { %v117_v18 = vpop.xlane.xlu0 %116 }
 0x105   :  { %v121_v19 = vmul.f32 %v117_v18, %v2490_v8 }
 0x107   :  { %v123_v20 = vadd.f32 1e-12, %v121_v19 }
 0x109   :  { %2235 = vrsqrt.f32 %v123_v20  ;;  %vm131_vm3 = vweird.f32 %v123_v20 }
 0x10f   :  { %v2236_v21 = vpop.eup %2235 }
 0x110   :  { %v126_v22 = vmul.f32 %v2236_v21, %v123_v20  ;;  %vm132_vm2 = vweird.f32 %v2236_v21 }
 0x111   :  { %vm133_vm4 = vmor %vm131_vm3, %vm132_vm2 }
 0x112   :  { %v127_v23 = vmul.f32 %v2236_v21, %v126_v22 }
 0x114   :  { %v128_v24 = vmul.f32 0.5, %v127_v23 }
 0x116   :  { %v129_v25 = vsub.f32 1.5, %v128_v24 }
 0x118   :  { %v130_v26 = vmul.f32 %v2236_v21, %v129_v25 }
 0x11a   :  { %v134_v28 = vsel %vm133_vm4, %v2236_v21, %v130_v26 }
 0x11b   :  { %v145_v29 = vmul.f32 %v134_v28, %v111_v11 }
 0x11d   :  { %v150_v31 = vmul.f32 %v2510_v27, %v145_v29 }
 0x11f   :  { %v2519_v32 = vadd.f32 %v2515_v30, %v150_v31 }
 0x121   :  { %2127 = vmatmul.msk.f32.vlgmr.msra.gmra.mxu0 %vm95_vm0, %v2519_v32 }
 0x19e   :  { %v188_v34 = vpop.f32.mrf.mxu0 }
 0x19f   :  { %v2529_v35 = vadd.f32 %v2526_v33, %v188_v34 }
 0x1a1   :  { %265 = vrot.lane.b32.xlu2 %v2529_v35, %s2330_s0  ;;  %199 = vrot.lane.b32.xlu1 %v2529_v35, %s3117_s10 }
 0x1a9   :  { %267 = vrot.lane.b32.xlu1 %v2529_v35, %s3121_s29 }
 0x1fb   :  { %v266_v38 = vpop.permute.xlu2 %265 }
 0x213   :  { %v200_v36 = vpop.permute.xlu1 %199 }
 0x214   :  { %2129 = vmatpush.xpose.msk.msra.mxu1 %vm201_vm5, %v200_v36 }
 0x217   :  { %2130 = vmatmul.msk.f32.vlgmr.msra.gmra.mxu1 %vm201_vm5, %v2529_v35 }
 0x21b   :  { %v268_v37 = vpop.permute.xlu1 %267 }
 0x21c   :  { %2132 = vmatpush.xpose.msk.msra.mxu3 %vm201_vm5, %v268_v37 }
 0x21f   :  { %2133 = vmatmul.msk.f32.vlgmr.msra.gmra.mxu3 %vm201_vm5, %v266_v38 }
 0x220   :  { %373 = vmatpush.msrb.mxu3 %v2577_v6 }
 0x294   :  { %v223_v39 = vpop.f32.mrf.mxu1 }
 0x295   :  { %v226_v41 = vmul.f32 0.35355338, %v223_v39 }
 0x297   :  { %v227_v42 = vadd.f32 %v226_v41, %v2545_v40 }
 0x299   :  { %v228_v43 = vsel %vm201_vm5, %v227_v42, -inf }
 0x29a   :  { %229 = vmax.xlane.f32.xlu2 %v228_v43 }
 0x2a2   :  { %v290_v44 = vpop.f32.mrf.mxu3 }
 0x2a3   :  { %v293_v45 = vmul.f32 0.35355338, %v290_v44 }
 0x2a5   :  { %v294_v46 = vadd.f32 %v293_v45, %v2545_v40 }
 0x2a7   :  { %v295_v47 = vsel %vm201_vm5, %v294_v46, -inf }
 0x2a8   :  { %296 = vmax.xlane.f32.xlu0 %v295_v47 }
 0x2b2   :  { %306 = vrot.lane.b32.xlu2 %v2529_v35, %s3115_s1 }
 0x30d   :  { %v230_v48 = vpop.xlane.xlu2 %229 }
 0x30e   :  { %v231_v49 = vsub.f32 %v227_v42, %v230_v48 }
 0x310   :  { %v232_v50 = vmul.f32 1.442695, %v231_v49 }
 0x312   :  { %2237 = vpow2.f32 %v232_v50 }
 0x315   :  { %v307_v2 = vpop.permute.xlu2 %306 }
 0x318   :  { %v2238_v51 = vpop.eup %2237 }
 0x319   :  { %v234_v52 = vsel %vm201_vm5, %v2238_v51, 0.0 }
 0x31a   :  { %235 = vadd.xlane.f32.xlu1 %v234_v52 }
 0x31b   :  { %v297_v53 = vpop.xlane.xlu0 %296 }
 0x31c   :  { %v298_v54 = vsub.f32 %v294_v46, %v297_v53 }
 0x31e   :  { %v299_v55 = vmul.f32 1.442695, %v298_v54 }
 0x320   :  { %2239 = vpow2.f32 %v299_v55 }
 0x326   :  { %v2240_v56 = vpop.eup %2239 }
 0x327   :  { %v301_v57 = vsel %vm201_vm5, %v2240_v56, 0.0 }
 0x328   :  { %302 = vadd.xlane.f32.xlu0 %v301_v57 }
 0x333   :  { %378 = vrot.lane.b32.xlu1 %v2529_v35, %s3119_s4 }
 0x33c   :  { %239 = vrot.lane.b32.xlu0 %v2529_v35, %s3107_s8 }
 0x344   :  { %380 = vrot.lane.b32.xlu0 %v2529_v35, %s2336_s2 }
 0x36e   :  { %100 = vadd.xlane.f32.xlu0 %v99_v59 }
 0x38d   :  { %v236_v60 = vpop.xlane.xlu1 %235 }
 0x38e   :  { %2241 = vrcp.f32 %v236_v60 }
 0x394   :  { %v2242_v62 = vpop.eup %2241 }
 0x395   :  { %v238_v0 = vmul.f32 %v2242_v62, %v2238_v51 }
 0x39b   :  { %v303_v61 = vpop.xlane.xlu0 %302 }
 0x39c   :  { %2243 = vrcp.f32 %v303_v61 }
 0x3a2   :  { %v2244_v3 = vpop.eup %2243 }
 0x3a3   :  { %v305_v5 = vmul.f32 %v2244_v3, %v2240_v56 }
 0x3a5   :  { %v379_v15 = vpop.permute.xlu1 %378 }
 0x3ae   :  { %v240_v63 = vpop.permute.xlu0 %239 }
 0x3af   :  { %260 = vmatpush.msra.mxu2 %v240_v63  ;;  %v2629_v63 = vld [vmem:[%s3141_s12 + $0x8] sm:$0xff] }
 0x3b0   :  { %2131 = vmatmul.msk.f32.vlgmr.msra.gmra.mxu2 %vm201_vm5, %v238_v0 }
 0x3b1   :  { %327 = vmatpush.msrb.mxu2 %v307_v2 }
 0x3b3   :  { %350 = vmatpush.msra.mxu2 %v2568_v1 }
 0x3b6   :  { %v381_v4 = vpop.permute.xlu0 %380 }
 0x3b8   :  { %2134 = vmatmul.msk.f32.vlgmr.msrb.gmra.mxu2 %vm201_vm5, %v305_v5 }
 0x3b9   :  { %2137 = vmatpush.xpose.msk.msrb.mxu2 %vm201_vm5, %v381_v4 }
 0x3e1   :  { %v101_v7 = vpop.xlane.xlu0 %100 }
 0x3e2   :  { %v110_v9 = vmul.f32 %v2490_v8, %v101_v7 }
 0x3e4   :  { %v112_v10 = vsub.f32 %v92_v58, %v110_v9 }
 0x3e6   :  { %v114_v11 = vmul.f32 %v112_v10, %v112_v10 }
 0x3e8   :  { %v118_v12 = vsel %vm95_vm0, %v114_v11, 0.0 }
 0x3e9   :  { %119 = vadd.xlane.f32.xlu2 %v118_v12 }
 0x433   :  { %v262_v13 = vpop.f32.mrf.mxu2 }
 0x434   :  { %2136 = vmatmul.msk.f32.vlgmr.msrb.gmra.mxu3 %vm201_vm5, %v262_v13 }
 0x43b   :  { %v329_v14 = vpop.f32.mrf.mxu2 }
 0x43c   :  { %2135 = vmatmul.msk.f32.vlgmr.msra.gmra.mxu2 %vm201_vm5, %v329_v14 }
 0x444   :  { %2138 = vmatmul.msk.f32.vlgmr.msrb.gmra.mxu2 %vm201_vm5, %v379_v15 }
 0x45c   :  { %v120_v16 = vpop.xlane.xlu2 %119 }
 0x45d   :  { %v122_v17 = vmul.f32 %v120_v16, %v2490_v8 }
 0x45f   :  { %v124_v18 = vadd.f32 1e-12, %v122_v17 }
 0x461   :  { %2245 = vrsqrt.f32 %v124_v18  ;;  %vm141_vm6 = vweird.f32 %v124_v18 }
 0x467   :  { %v2246_v19 = vpop.eup %2245 }
 0x468   :  { %v136_v20 = vmul.f32 %v2246_v19, %v124_v18  ;;  %vm142_vm7 = vweird.f32 %v2246_v19 }
 0x469   :  { %vm143_vm8 = vmor %vm141_vm6, %vm142_vm7 }
 0x46a   :  { %v137_v21 = vmul.f32 %v2246_v19, %v136_v20 }
 0x46c   :  { %v138_v22 = vmul.f32 0.5, %v137_v21 }
 0x46e   :  { %v139_v24 = vsub.f32 1.5, %v138_v22 }
 0x470   :  { %v140_v25 = vmul.f32 %v2246_v19, %v139_v24 }
 0x472   :  { %v144_v26 = vsel %vm143_vm8, %v2246_v19, %v140_v25  ;;  %v2657_v25 = vld [vmem:[%s3142_s3 + $0x18] sm:$0xff] }
 0x473   :  { %v146_v28 = vmul.f32 %v144_v26, %v112_v10 }
 0x475   :  { %v151_v34 = vmul.f32 %v2510_v27, %v146_v28 }
 0x477   :  { %v2589_v37 = vadd.f32 %v2515_v30, %v151_v34 }
 0x479   :  { %2128 = vmatmul.msk.f32.gmra.mxu0 %vm95_vm0, %v2589_v37 }
 0x4b7   :  { %v375_v58 = vpop.f32.mrf.mxu3 }
 0x4bf   :  { %v352_v23 = vpop.f32.mrf.mxu2 }
 0x4c0   :  { %v376_v59 = vadd.f32 %v375_v58, %v352_v23 }
 0x4c7   :  { %v403_v29 = vpop.f32.mrf.mxu2 }
 0x4c8   :  { %v406_v31 = vmul.f32 0.35355338, %v403_v29 }
 0x4ca   :  { %v407_v36 = vadd.f32 %v406_v31, %v2545_v40 }
 0x4cc   :  { %v408_v38 = vsel %vm201_vm5, %v407_v36, -inf }
 0x4cd   :  { %409 = vmax.xlane.f32.xlu1 %v408_v38 }
 0x4e6   :  { %471 = vrot.lane.b32.xlu1 %v2529_v35, %s3111_s30 }
 0x4f6   :  { %v191_v27 = vpop.f32.mrf.mxu0 }
 0x4f7   :  { %v2597_v43 = vadd.f32 %v2526_v33, %v191_v27  ;;  %v196_v33 = vld [vmem:[%s3142_s3 + $0x10] sm:$0xff]  ;;  %s3153_s3 = smov 48  }
 0x4f8   :  { %463 = vmatpush.msra.mxu3 %v196_v33 }
 0x4f9   :  { %561 = vrot.lane.b32.xlu2 %v2597_v43, %s3117_s10  ;;  %600 = vrot.lane.b32.xlu1 %v2597_v43, %s3107_s8  ;;  %s3148_s10 = sld [smem:[#allocation12_spill]]  ;;  %s3155_s8 = smov 104  }
 0x540   :  { %v410_v39 = vpop.xlane.xlu1 %409 }
 0x541   :  { %v411_v41 = vsub.f32 %v407_v36, %v410_v39 }
 0x543   :  { %v412_v42 = vmul.f32 1.442695, %v411_v41 }
 0x545   :  { %2247 = vpow2.f32 %v412_v42 }
 0x54b   :  { %v2248_v30 = vpop.eup %2247 }
 0x54c   :  { %v414_v44 = vsel %vm201_vm5, %v2248_v30, 0.0 }
 0x54d   :  { %415 = vadd.xlane.f32.xlu0 %v414_v44 }
 0x553   :  { %v562_v46 = vpop.permute.xlu2 %561 }
 0x554   :  { %2145 = vmatpush.xpose.msk.msrb.mxu3 %vm201_vm5, %v562_v46 }
 0x558   :  { %v472_v45 = vpop.permute.xlu1 %471 }
 0x559   :  { %2141 = vmatpush.xpose.msk.msrb.mxu0 %vm201_vm5, %v472_v45 }
 0x561   :  { %419 = vrot.lane.b32.xlu0 %v2529_v35, %s3113_s5 }
 0x569   :  { %469 = vrot.lane.b32.xlu0 %v2529_v35, %s3109_s6 }
 0x56b   :  { %v601_v47 = vpop.permute.xlu1 %600 }
 0x56c   :  { %621 = vmatpush.msra.mxu0 %v601_v47 }
 0x5c0   :  { %v416_v48 = vpop.xlane.xlu0 %415 }
 0x5c1   :  { %2249 = vrcp.f32 %v416_v48 }
 0x5c7   :  { %v2250_v49 = vpop.eup %2249 }
 0x5c8   :  { %v418_v51 = vmul.f32 %v2250_v49, %v2248_v30 }
 0x5d3   :  { %v420_v50 = vpop.permute.xlu0 %419 }
 0x5d4   :  { %440 = vmatpush.msrb.mxu1 %v420_v50 }
 0x5d5   :  { %2139 = vmatmul.msk.f32.vlgmr.msrb.gmra.mxu1 %vm201_vm5, %v418_v51 }
 0x5d6   :  { %554 = vmatpush.msra.mxu1 %v2657_v25 }
 0x5db   :  { %v470_v52 = vpop.permute.xlu0 %469 }
 0x5dc   :  { %2142 = vmatmul.msk.f32.vlgmr.msrb.gmra.mxu0 %vm201_vm5, %v470_v52 }
 0x5dd   :  { %734 = vmatpush.msrb.mxu0 %v2577_v6 }
 0x652   :  { %v442_v53 = vpop.f32.mrf.mxu1 }
 0x653   :  { %2140 = vmatmul.msk.f32.vlgmr.msra.gmra.mxu3 %vm201_vm5, %v442_v53 }
 0x654   :  { %711 = vmatpush.msra.mxu3 %v2568_v1 }
 0x659   :  { %v494_v54 = vpop.f32.mrf.mxu0 }
 0x65a   :  { %v497_v55 = vmul.f32 0.35355338, %v494_v54 }
 0x65b   :  { %2146 = vmatmul.msk.f32.vlgmr.msrb.gmra.mxu3 %vm201_vm5, %v2597_v43 }
 0x65c   :  { %v498_v56 = vadd.f32 %v497_v55, %v2545_v40  ;;  %824 = vmatpush.msrb.mxu3 %v196_v33 }
 0x65e   :  { %v499_v57 = vsel %vm201_vm5, %v498_v56, -inf }
 0x65f   :  { %500 = vmax.xlane.f32.xlu1 %v499_v57 }
 0x678   :  { %741 = vrot.lane.b32.xlu1 %v2597_v43, %s2336_s2 }
 0x6d2   :  { %v501_v3 = vpop.xlane.xlu1 %500 }
 0x6d3   :  { %v502_v6 = vsub.f32 %v498_v56, %v501_v3 }
 0x6d5   :  { %v503_v9 = vmul.f32 1.442695, %v502_v6 }
 0x6d6   :  { %v465_v60 = vpop.f32.mrf.mxu3 }
 0x6d7   :  { %v2624_v61 = vadd.f32 %v465_v60, %v376_v59  ;;  %v2681_v59 = vld [vmem:[%s3143_s11] ss:$0 sm:$0xff]  ;;  %s3144_s11 = sld [smem:[#allocation13_spill]] }
 0x6de   :  { %v584_v62 = vpop.f32.mrf.mxu3 }
 0x6df   :  { %v587_v0 = vmul.f32 0.35355338, %v584_v62 }
 0x6e1   :  { %v588_v1 = vadd.f32 %v587_v0, %v2629_v63 }
 0x6e3   :  { %v589_v2 = vsel %vm201_vm5, %v588_v1, -inf }
 0x6e4   :  { %590 = vmax.xlane.f32.xlu0 %v589_v2 }
 0x6ea   :  { %v742_v21 = vpop.permute.xlu1 %741 }
 0x6f8   :  { %510 = vrot.lane.b32.xlu0 %v2529_v35, %s3105_s9 }
 0x700   :  { %626 = vrot.lane.b32.xlu0 %v2597_v43, %s2330_s0 }
 0x708   :  { %739 = vrot.lane.b32.xlu0 %v2597_v43, %s3119_s4 }
 0x710   :  { %830 = vrot.lane.b32.xlu0 %v2597_v43, %s3109_s6  ;;  %s3145_s6 = sld [smem:[#allocation10_spill]] }
 0x757   :  { %v591_v4 = vpop.xlane.xlu0 %590 }
 0x758   :  { %v592_v5 = vsub.f32 %v588_v1, %v591_v4 }
 0x75a   :  { %v593_v7 = vmul.f32 1.442695, %v592_v5 }
 0x75c   :  { %2251 = vpow2.f32 %v593_v7 }
 0x75d   :  { %2253 = vpow2.f32 %v503_v9 }
 0x762   :  { %v2252_v10 = vpop.eup %2251 }
 0x763   :  { %v595_v35 = vsel %vm201_vm5, %v2252_v10, 0.0  ;;  %v2254_v11 = vpop.eup %2253 }
 0x764   :  { %596 = vadd.xlane.f32.xlu2 %v595_v35  ;;  %v505_v13 = vsel %vm201_vm5, %v2254_v11, 0.0 }
 0x76a   :  { %v511_v12 = vpop.permute.xlu0 %510 }
 0x76b   :  { %531 = vmatpush.msra.mxu2 %v511_v12 }
 0x76c   :  { %506 = vadd.xlane.f32.xlu2 %v505_v13 }
 0x772   :  { %v627_v22 = vpop.permute.xlu0 %626 }
 0x77a   :  { %v740_v24 = vpop.permute.xlu0 %739 }
 0x782   :  { %v831_v28 = vpop.permute.xlu0 %830 }
 0x784   :  { %628 = vrot.lane.b32.xlu2 %v2597_v43, %s3121_s29 }
 0x78c   :  { %832 = vrot.lane.b32.xlu2 %v2597_v43, %s3111_s30 }
 0x7d7   :  { %v597_v14 = vpop.xlane.xlu2 %596 }
 0x7d8   :  { %2255 = vrcp.f32 %v597_v14 }
 0x7de   :  { %v2256_v15 = vpop.eup %2255 }
 0x7df   :  { %v599_v16 = vmul.f32 %v2256_v15, %v2252_v10  ;;  %v507_v17 = vpop.xlane.xlu2 %506 }
 0x7e0   :  { %2257 = vrcp.f32 %v507_v17 }
 0x7e1   :  { %2147 = vmatmul.msk.f32.vlgmr.msra.gmra.mxu0 %vm201_vm5, %v599_v16 }
 0x7e6   :  { %v2258_v18 = vpop.eup %2257 }
 0x7e7   :  { %v509_v19 = vmul.f32 %v2258_v18, %v2254_v11  ;;  %v629_v20 = vpop.permute.xlu2 %628 }
 0x7e8   :  { %2148 = vmatpush.xpose.msk.msrb.mxu2 %vm201_vm5, %v629_v20 }
 0x7e9   :  { %2143 = vmatmul.msk.f32.vlgmr.msra.gmra.mxu2 %vm201_vm5, %v509_v19 }
 0x7ec   :  { %2153 = vmatpush.xpose.msk.msra.mxu2 %vm201_vm5, %v742_v21 }
 0x7ef   :  { %v833_v23 = vpop.permute.xlu2 %832 }
 0x7f0   :  { %2157 = vmatpush.xpose.msk.msra.mxu0 %vm201_vm5, %v833_v23  ;;  %v987_v23 = vld [vmem:[%s3144_s11 + $0x10] sm:$0xff] }
 0x7f1   :  { %2149 = vmatmul.msk.f32.vlgmr.msrb.gmra.mxu2 %vm201_vm5, %v627_v22  ;;  %v988_v22 = vld [vmem:[%s3144_s11 + $0x18] sm:$0xff] }
 0x7f9   :  { %2154 = vmatmul.msk.f32.vlgmr.msra.gmra.mxu2 %vm201_vm5, %v740_v24  ;;  %v986_v24 = vld [vmem:[%s3144_s11 + $0x8] sm:$0xff] }
 0x85e   :  { %v623_v26 = vpop.f32.mrf.mxu0 }
 0x85f   :  { %2152 = vmatmul.msk.f32.vlgmr.msrb.gmra.mxu0 %vm201_vm5, %v623_v26 }
 0x860   :  { %1011 = vmatpush.msrb.mxu0 %v988_v22 }
 0x862   :  { %1012 = vmatpush.msrb.mxu0 %v987_v23 }
 0x864   :  { %1013 = vmatpush.msrb.mxu0 %v986_v24 }
 0x867   :  { %2158 = vmatmul.msk.f32.vlgmr.msra.gmra.mxu0 %vm201_vm5, %v831_v28 }
 0x86c   :  { %v533_v29 = vpop.f32.mrf.mxu2 }
 0x86d   :  { %2144 = vmatmul.msk.f32.vlgmr.msra.gmra.mxu1 %vm201_vm5, %v533_v29 }
 0x874   :  { %v651_v31 = vpop.f32.mrf.mxu2 }
 0x875   :  { %v654_v34 = vmul.f32 0.35355338, %v651_v31 }
 0x877   :  { %v655_v36 = vadd.f32 %v654_v34, %v2629_v63 }
 0x879   :  { %v656_v38 = vsel %vm201_vm5, %v655_v36, -inf }
 0x87a   :  { %657 = vmax.xlane.f32.xlu2 %v656_v38 }
 0x87c   :  { %v764_v39 = vpop.f32.mrf.mxu2 }
 0x87d   :  { %v767_v41 = vmul.f32 0.35355338, %v764_v39 }
 0x87f   :  { %v768_v42 = vadd.f32 %v767_v41, %v2629_v63 }
 0x881   :  { %v769_v27 = vsel %vm201_vm5, %v768_v42, -inf }
 0x882   :  { %770 = vmax.xlane.f32.xlu0 %v769_v27 }
 0x8dc   :  { %v2667_v30 = vpop.f32.mrf.mxu0 }
 0x8e4   :  { %v855_v44 = vpop.f32.mrf.mxu0 }
 0x8e5   :  { %v858_v45 = vmul.f32 0.35355338, %v855_v44 }
 0x8e7   :  { %v859_v33 = vadd.f32 %v858_v45, %v2629_v63 }
 0x8e9   :  { %v860_v46 = vsel %vm201_vm5, %v859_v33, -inf }
 0x8ea   :  { %861 = vmax.xlane.f32.xlu1 %v860_v46  ;;  %v556_v57 = vpop.f32.mrf.mxu1 }
 0x8eb   :  { %v559_v58 = vadd.f32 %v556_v57, %v2624_v61 }
 0x8ed   :  { %v658_v47 = vpop.xlane.xlu2 %657  ;;  %v925_v60 = vadd.f32 %v2681_v59, %v559_v58 }
 0x8ee   :  { %v659_v48 = vsub.f32 %v655_v36, %v658_v47 }
 0x8ef   :  { %v927_v62 = vadd.f32 %v925_v60, %v2519_v32 }
 0x8f0   :  { %v660_v49 = vmul.f32 1.442695, %v659_v48 }
 0x8f1   :  { %v931_v0 = vsel %vm95_vm0, %v927_v62, 0.0 }
 0x8f2   :  { %2259 = vpow2.f32 %v660_v49 }
 0x8f5   :  { %v771_v50 = vpop.xlane.xlu0 %770 }
 0x8f6   :  { %v772_v51 = vsub.f32 %v768_v42, %v771_v50  ;;  %v2713_v42 = vld [vmem:[%s3145_s6] ss:$0 sm:$0xff] }
 0x8f8   :  { %v2260_v52 = vpop.eup %2259  ;;  %v773_v53 = vmul.f32 1.442695, %v772_v51 }
 0x8f9   :  { %v662_v54 = vsel %vm201_vm5, %v2260_v52, 0.0 }
 0x8fa   :  { %2261 = vpow2.f32 %v773_v53  ;;  %663 = vadd.xlane.f32.xlu2 %v662_v54 }
 0x900   :  { %v2262_v55 = vpop.eup %2261 }
 0x901   :  { %v775_v56 = vsel %vm201_vm5, %v2262_v55, 0.0 }
 0x902   :  { %776 = vadd.xlane.f32.xlu0 %v775_v56 }
 0x903   :  { %667 = vrot.lane.b32.xlu1 %v2597_v43, %s3115_s1  ;;  %s3157_s1 = smov 40  }
 0x916   :  { %780 = vrot.lane.b32.xlu0 %v2597_v43, %s3113_s5 }
 0x92d   :  { %932 = vadd.xlane.f32.xlu1 %v931_v0 }
 0x95d   :  { %v862_v1 = vpop.xlane.xlu1 %861 }
 0x95e   :  { %v863_v2 = vsub.f32 %v859_v33, %v862_v1  ;;  %v2221_v1 = vld [vmem:[%s3148_s10] ss:$0 sm:$0xff]  ;;  %s3156_s10 = smov 64  }
 0x960   :  { %v864_v3 = vmul.f32 1.442695, %v863_v2 }
 0x962   :  { %2263 = vpow2.f32 %v864_v3 }
 0x968   :  { %v2264_v4 = vpop.eup %2263 }
 0x969   :  { %v866_v5 = vsel %vm201_vm5, %v2264_v4, 0.0 }
 0x96a   :  { %867 = vadd.xlane.f32.xlu2 %v866_v5 }
 0x96d   :  { %v664_v61 = vpop.xlane.xlu2 %663 }
 0x96e   :  { %2265 = vrcp.f32 %v664_v61 }
 0x974   :  { %v2266_v6 = vpop.eup %2265 }
 0x975   :  { %v666_v7 = vmul.f32 %v2266_v6, %v2260_v52  ;;  %v668_v9 = vpop.permute.xlu1 %667  ;;  %v777_v32 = vpop.xlane.xlu0 %776 }
 0x976   :  { %688 = vmatpush.msrb.mxu1 %v668_v9  ;;  %2267 = vrcp.f32 %v777_v32 }
 0x977   :  { %2150 = vmatmul.msk.f32.vlgmr.msrb.gmra.mxu1 %vm201_vm5, %v666_v7 }
 0x97c   :  { %v2268_v10 = vpop.eup %2267 }
 0x97d   :  { %v779_v35 = vmul.f32 %v2268_v10, %v2262_v55 }
 0x982   :  { %871 = vrot.lane.b32.xlu2 %v2597_v43, %s3105_s9  ;;  %s3146_s9 = sld [smem:[#allocation11_spill]] }
 0x988   :  { %v781_v11 = vpop.permute.xlu0 %780  ;;  %v2718_v45 = vld [vmem:[%s3146_s9] ss:$0 sm:$0xff] }
 0x989   :  { %801 = vmatpush.msra.mxu1 %v781_v11 }
 0x98a   :  { %2155 = vmatmul.msk.f32.vlgmr.msra.gmra.mxu1 %vm201_vm5, %v779_v35 }
 0x98b   :  { %915 = vmatpush.msrb.mxu1 %v2657_v25  ;;  %v985_v25 = vld [vmem:[%s3144_s11] sm:$0xff]  ;;  %s3147_s11 = sld [smem:[#allocation14_spill]] }
 0x98c   :  { %1014 = vmatpush.msrb.mxu0 %v985_v25 }
 0x991   :  { %v1044_v2 = vld [vmem:[%s3147_s11 + $0x20] sm:$0xff]  ;;  %v1042_v61 = vld [vmem:[%s3147_s11 + $0x10] sm:$0xff]  ;;  %v1041_v7 = vld [vmem:[%s3147_s11 + $0x8] sm:$0xff] }
 0x992   :  { %v1040_v10 = vld [vmem:[%s3147_s11] sm:$0xff] }
 0x9a0   :  { %v933_v12 = vpop.xlane.xlu1 %932 }
 0x9a1   :  { %v937_v13 = vmul.f32 %v933_v12, %v2490_v8 }
 0x9a3   :  { %v939_v14 = vsub.f32 %v927_v62, %v937_v13 }
 0x9a5   :  { %v941_v15 = vmul.f32 %v939_v14, %v939_v14 }
 0x9a7   :  { %v943_v16 = vsel %vm95_vm0, %v941_v15, 0.0 }
 0x9a8   :  { %944 = vadd.xlane.f32.xlu0 %v943_v16 }
 0x9dd   :  { %v868_v17 = vpop.xlane.xlu2 %867 }
 0x9de   :  { %2269 = vrcp.f32 %v868_v17 }
 0x9e4   :  { %v2270_v18 = vpop.eup %2269 }
 0x9e5   :  { %v870_v43 = vmul.f32 %v2270_v18, %v2264_v4  ;;  %v872_v19 = vpop.permute.xlu2 %871  ;;  %v1043_v4 = vld [vmem:[%s3147_s11 + $0x18] sm:$0xff] }
 0x9e6   :  { %892 = vmatpush.msrb.mxu2 %v872_v19 }
 0x9e7   :  { %2159 = vmatmul.msk.f32.vlgmr.msrb.gmra.mxu2 %vm201_vm5, %v870_v43 }
 0x9f4   :  { %v690_v20 = vpop.f32.mrf.mxu1 }
 0x9f5   :  { %2151 = vmatmul.msk.f32.vlgmr.msra.gmra.mxu3 %vm201_vm5, %v690_v20 }
 0xa07   :  { %v803_v21 = vpop.f32.mrf.mxu1 }
 0xa08   :  { %2156 = vmatmul.msk.f32.vlgmr.msrb.gmra.mxu3 %vm201_vm5, %v803_v21 }
 0xa1b   :  { %v945_v26 = vpop.xlane.xlu0 %944 }
 0xa1c   :  { %v949_v28 = vmul.f32 %v945_v26, %v2490_v8 }
 0xa1e   :  { %v951_v29 = vadd.f32 1e-12, %v949_v28 }
 0xa20   :  { %2271 = vrsqrt.f32 %v951_v29  ;;  %vm959_vm10 = vweird.f32 %v951_v29 }
 0xa26   :  { %v2272_v31 = vpop.eup %2271 }
 0xa27   :  { %v954_v34 = vmul.f32 %v2272_v31, %v951_v29  ;;  %vm960_vm9 = vweird.f32 %v2272_v31 }
 0xa28   :  { %vm961_vm11 = vmor %vm959_vm10, %vm960_vm9 }
 0xa29   :  { %v955_v36 = vmul.f32 %v2272_v31, %v954_v34 }
 0xa2b   :  { %v956_v38 = vmul.f32 0.5, %v955_v36  ;;  %v2771_v36 = vld [vmem:[%s3083_s13] ss:$0 sm:$0xff]  ;;  %s3151_s13 = smov 96  }
 0xa2d   :  { %v957_v39 = vsub.f32 1.5, %v956_v38 }
 0xa2f   :  { %v958_v41 = vmul.f32 %v2272_v31, %v957_v39 }
 0xa31   :  { %v962_v27 = vsel %vm961_vm11, %v2272_v31, %v958_v41 }
 0xa32   :  { %v973_v44 = vmul.f32 %v962_v27, %v939_v14 }
 0xa34   :  { %v978_v33 = vmul.f32 %v2713_v42, %v973_v44 }
 0xa36   :  { %v2722_v46 = vadd.f32 %v2718_v45, %v978_v33 }
 0xa38   :  { %2161 = vmatmul.msk.f32.vlgmr.msrb.gmra.mxu0 %vm95_vm0, %v2722_v46 }
 0xa6a   :  { %v894_v47 = vpop.f32.mrf.mxu2 }
 0xa6b   :  { %2160 = vmatmul.msk.f32.vlgmr.msrb.gmra.mxu1 %vm201_vm5, %v894_v47 }
 0xa78   :  { %v713_v48 = vpop.f32.mrf.mxu3 }
 0xa79   :  { %v737_v50 = vadd.f32 %v2667_v30, %v713_v48  ;;  %v1047_v30 = vld [vmem:[%s3147_s11 + $0x38] sm:$0xff] }
 0xa7a   :  { %1067 = vmatpush.msra.mxu0 %v1047_v30 }
 0xa8b   :  { %v826_v49 = vpop.f32.mrf.mxu3 }
 0xa8c   :  { %v829_v51 = vadd.f32 %v826_v49, %v737_v50 }
 0xab5   :  { %v1016_v3 = vpop.f32.mrf.mxu0 }
 0xab6   :  { %v1017_v5 = vadd.f32 %v2221_v1, %v1016_v3 }
 0xab8   :  { %v1024_v32 = vmul.f32 0.044715, %v1017_v5  ;;  %v1022_v26 = vmul.f32 0.5, %v1017_v5 }
 0xaba   :  { %v1026_v11 = vmul.f32 %v1024_v32, %v1017_v5  ;;  %v2808_v32 = vld [vmem:[%s3086_s17] ss:$0 sm:$0xff]  ;;  %s3152_s17 = smov 56  }
 0xabc   :  { %v1028_v12 = vmul.f32 %v1026_v11, %v1017_v5 }
 0xabe   :  { %v1030_v15 = vadd.f32 %v1028_v12, %v1017_v5 }
 0xac0   :  { %v1032_v18 = vmul.f32 0.7978846, %v1030_v15 }
 0xae8   :  { %v917_v52 = vpop.f32.mrf.mxu1 }
 0xae9   :  { %v920_v53 = vadd.f32 %v917_v52, %v829_v51 }
 0xaeb   :  { %v926_v54 = vadd.f32 %v2681_v59, %v920_v53  ;;  %v1046_v59 = vld [vmem:[%s3147_s11 + $0x30] sm:$0xff] }
 0xaec   :  { %1068 = vmatpush.msra.mxu0 %v1046_v59 }
 0xaed   :  { %v928_v55 = vadd.f32 %v926_v54, %v2589_v37  ;;  %v1045_v37 = vld [vmem:[%s3147_s11 + $0x28] sm:$0xff] }
 0xaee   :  { %1069 = vmatpush.msra.mxu0 %v1045_v37 }
 0xaef   :  { %v934_v56 = vsel %vm95_vm0, %v928_v55, 0.0 }
 0xaf0   :  { %935 = vadd.xlane.f32.xlu2 %v934_v56  ;;  %1070 = vmatpush.msra.mxu0 %v1044_v2  ;;  %v1142_v56 = vld [vmem:[%s3087_s16 + $0x10] sm:$0xff] }
 0xaf2   :  { %1071 = vmatpush.msra.mxu0 %v1043_v4  ;;  %v2795_v4 = vld [vmem:[%s3084_s14] ss:$0 sm:$0xff]  ;;  %s3149_s14 = smov 88  }
 0xaf4   :  { %1072 = vmatpush.msra.mxu0 %v1042_v61 }
 0xaf6   :  { %1073 = vmatpush.msra.mxu0 %v1041_v7 }
 0xaf8   :  { %1074 = vmatpush.msra.mxu0 %v1040_v10 }
 0xb63   :  { %v936_v57 = vpop.xlane.xlu2 %935 }
 0xb64   :  { %v938_v58 = vmul.f32 %v936_v57, %v2490_v8  ;;  %v1141_v57 = vld [vmem:[%s3087_s16 + $0x8] sm:$0xff] }
 0xb66   :  { %v940_v60 = vsub.f32 %v928_v55, %v938_v58  ;;  %v1140_v58 = vld [vmem:[%s3087_s16] sm:$0xff] }
 0xb68   :  { %v942_v62 = vmul.f32 %v940_v60, %v940_v60 }
 0xb6a   :  { %v946_v0 = vsel %vm95_vm0, %v942_v62, 0.0 }
 0xb6b   :  { %947 = vadd.xlane.f32.xlu1 %v946_v0 }
 0xbde   :  { %v948_v6 = vpop.xlane.xlu1 %947 }
 0xbdf   :  { %v950_v9 = vmul.f32 %v948_v6, %v2490_v8  ;;  %v2224_v6 = vld [vmem:[%s3085_s15] ss:$0 sm:$0xff]  ;;  %s3150_s15 = smov 112  }
 0xbe1   :  { %v952_v35 = vadd.f32 1e-12, %v950_v9 }
 0xbe3   :  { %2273 = vrsqrt.f32 %v952_v35  ;;  %vm969_vm13 = vweird.f32 %v952_v35 }
 0xbe4   :  { %2275 = vtanh.f32 %v1032_v18 }
 0xbe9   :  { %v2274_v13 = vpop.eup %2273 }
 0xbea   :  { %v964_v14 = vmul.f32 %v2274_v13, %v952_v35  ;;  %vm970_vm12 = vweird.f32 %v2274_v13  ;;  %v2276_v24 = vpop.eup %2275 }
 0xbeb   :  { %vm971_vm14 = vmor %vm969_vm13, %vm970_vm12  ;;  %v1036_v25 = vadd.f32 1.0, %v2276_v24 }
 0xbec   :  { %v965_v16 = vmul.f32 %v2274_v13, %v964_v14 }
 0xbed   :  { %v1038_v28 = vmul.f32 %v1036_v25, %v1022_v26 }
 0xbee   :  { %v966_v17 = vmul.f32 0.5, %v965_v16 }
 0xbf0   :  { %v967_v43 = vsub.f32 1.5, %v966_v17 }
 0xbf2   :  { %v968_v19 = vmul.f32 %v2274_v13, %v967_v43 }
 0xbf4   :  { %v972_v20 = vsel %vm971_vm14, %v2274_v13, %v968_v19 }
 0xbf5   :  { %v974_v21 = vmul.f32 %v972_v20, %v940_v60 }
 0xbf7   :  { %v979_v22 = vmul.f32 %v2713_v42, %v974_v21 }
 0xbf9   :  { %v2763_v23 = vadd.f32 %v2718_v45, %v979_v22 }
 0xbfb   :  { %2162 = vmatmul.msk.f32.gmra.mxu0 %vm95_vm0, %v2763_v23 }
 0xc03   :  { %2163 = vmatmul.msk.f32.vlgmr.msra.gmra.mxu0 %vm1052_vm15, %v1038_v28 }
 0xc78   :  { %v1019_v29 = vpop.f32.mrf.mxu0 }
 0xc79   :  { %v1020_v31 = vadd.f32 %v2221_v1, %v1019_v29 }
 0xc7b   :  { %v1025_v34 = vmul.f32 0.044715, %v1020_v31  ;;  %v1023_v48 = vmul.f32 0.5, %v1020_v31 }
 0xc7d   :  { %v1027_v38 = vmul.f32 %v1025_v34, %v1020_v31 }
 0xc7f   :  { %v1029_v39 = vmul.f32 %v1027_v38, %v1020_v31 }
 0xc80   :  { %v1076_v41 = vpop.f32.mrf.mxu0 }
 0xc81   :  { %v1077_v42 = vadd.f32 %v2771_v36, %v1076_v41  ;;  %v1031_v27 = vadd.f32 %v1029_v39, %v1020_v31 }
 0xc83   :  { %v1082_v44 = vadd.f32 %v1077_v42, %v2722_v46  ;;  %v1033_v45 = vmul.f32 0.7978846, %v1031_v27  ;;  %v1143_v46 = vld [vmem:[%s3087_s16 + $0x18] sm:$0xff] }
 0xc84   :  { %1166 = vmatpush.msra.mxu2 %v1143_v46 }
 0xc85   :  { %v1086_v33 = vsel %vm95_vm0, %v1082_v44, 0.0  ;;  %2277 = vtanh.f32 %v1033_v45 }
 0xc86   :  { %1087 = vadd.xlane.f32.xlu0 %v1086_v33  ;;  %1167 = vmatpush.msra.mxu2 %v1142_v56 }
 0xc88   :  { %1168 = vmatpush.msra.mxu2 %v1141_v57 }
 0xc8a   :  { %1169 = vmatpush.msra.mxu2 %v1140_v58 }
 0xc8b   :  { %v2278_v47 = vpop.eup %2277 }
 0xc8c   :  { %v1037_v49 = vadd.f32 1.0, %v2278_v47 }
 0xc8e   :  { %v1039_v50 = vmul.f32 %v1037_v49, %v1023_v48 }
 0xc90   :  { %2164 = vmatmul.msk.f32.gmra.mxu0 %vm1052_vm15, %v1039_v50 }
 0xcf9   :  { %v1088_v51 = vpop.xlane.xlu0 %1087 }
 0xcfa   :  { %v1092_v52 = vmul.f32 %v1088_v51, %v2490_v8 }
 0xcfc   :  { %v1094_v53 = vsub.f32 %v1082_v44, %v1092_v52 }
 0xcfe   :  { %v1096_v54 = vmul.f32 %v1094_v53, %v1094_v53 }
 0xd00   :  { %v1098_v55 = vsel %vm95_vm0, %v1096_v54, 0.0 }
 0xd01   :  { %1099 = vadd.xlane.f32.xlu2 %v1098_v55 }
 0xd0d   :  { %v1079_v11 = vpop.f32.mrf.mxu0 }
 0xd0e   :  { %v1080_v12 = vadd.f32 %v2771_v36, %v1079_v11 }
 0xd10   :  { %v1083_v13 = vadd.f32 %v1080_v12, %v2763_v23 }
 0xd12   :  { %v1089_v14 = vsel %vm95_vm0, %v1083_v13, 0.0 }
 0xd74   :  { %v1100_v60 = vpop.xlane.xlu2 %1099 }
 0xd75   :  { %v1104_v62 = vmul.f32 %v1100_v60, %v2490_v8 }
 0xd77   :  { %v1106_v0 = vadd.f32 1e-12, %v1104_v62 }
 0xd79   :  { %2279 = vrsqrt.f32 %v1106_v0  ;;  %vm1114_vm2 = vweird.f32 %v1106_v0 }
 0xd7f   :  { %v2280_v30 = vpop.eup %2279 }
 0xd80   :  { %v1109_v59 = vmul.f32 %v2280_v30, %v1106_v0  ;;  %vm1115_vm1 = vweird.f32 %v2280_v30 }
 0xd81   :  { %vm1116_vm3 = vmor %vm1114_vm2, %vm1115_vm1 }
 0xd82   :  { %v1110_v37 = vmul.f32 %v2280_v30, %v1109_v59 }
 0xd84   :  { %v1111_v1 = vmul.f32 0.5, %v1110_v37 }
 0xd86   :  { %v1112_v2 = vsub.f32 1.5, %v1111_v1 }
 0xd88   :  { %v1113_v3 = vmul.f32 %v2280_v30, %v1112_v2 }
 0xd8a   :  { %v1117_v5 = vsel %vm1116_vm3, %v2280_v30, %v1113_v3  ;;  %v2852_v30 = vld [vmem:[%s3141_s12] sm:$0xff] }
 0xd8b   :  { %v1128_v61 = vmul.f32 %v1117_v5, %v1094_v53 }
 0xd8d   :  { %v1133_v7 = vmul.f32 %v2795_v4, %v1128_v61 }
 0xd8f   :  { %v2801_v9 = vadd.f32 %v2224_v6, %v1133_v7 }
 0xd91   :  { %2165 = vmatmul.msk.f32.vlgmr.msra.gmra.mxu2 %vm95_vm0, %v2801_v9 }
 0xe14   :  { %v1171_v10 = vpop.f32.mrf.mxu2 }
 0xe15   :  { %v2811_v35 = vadd.f32 %v2808_v32, %v1171_v10 }
 0xe17   :  { %1362 = vrot.lane.b32.xlu2 %v2811_v35, %s2336_s2  ;;  %1247 = vrot.lane.b32.xlu0 %v2811_v35, %s2330_s0 }
 0xe18   :  { %1249 = vrot.lane.b32.xlu1 %v2811_v35, %s3149_s14 }
 0xe1f   :  { %1360 = vrot.lane.b32.xlu0 %v2811_v35, %s3150_s15 }
 0xe20   :  { %1182 = vrot.lane.b32.xlu1 %v2811_v35, %s3151_s13 }
 0xe49   :  { %1090 = vadd.xlane.f32.xlu0 %v1089_v14 }
 0xe71   :  { %v1363_v15 = vpop.permute.xlu2 %1362 }
 0xe72   :  { %2175 = vmatpush.xpose.msk.msrb.mxu0 %vm201_vm5, %v1363_v15 }
 0xe89   :  { %v1248_v16 = vpop.permute.xlu0 %1247 }
 0xe8a   :  { %v1250_v17 = vpop.permute.xlu1 %1249 }
 0xe8b   :  { %2170 = vmatpush.xpose.msk.msra.mxu3 %vm201_vm5, %v1250_v17 }
 0xe8e   :  { %2171 = vmatmul.msk.f32.vlgmr.msra.gmra.mxu3 %vm201_vm5, %v1248_v16 }
 0xe91   :  { %v1361_v18 = vpop.permute.xlu0 %1360 }
 0xe92   :  { %v1183_v43 = vpop.permute.xlu1 %1182  ;;  %2176 = vmatmul.msk.f32.vlgmr.msrb.gmra.mxu0 %vm201_vm5, %v1361_v18 }
 0xe93   :  { %2167 = vmatpush.xpose.msk.msra.mxu1 %vm201_vm5, %v1183_v43 }
 0xe96   :  { %2168 = vmatmul.msk.f32.vlgmr.msra.gmra.mxu1 %vm201_vm5, %v2811_v35 }
 0xebc   :  { %v1091_v19 = vpop.xlane.xlu0 %1090 }
 0xebd   :  { %v1093_v20 = vmul.f32 %v1091_v19, %v2490_v8 }
 0xebf   :  { %v1095_v21 = vsub.f32 %v1083_v13, %v1093_v20 }
 0xec1   :  { %v1097_v22 = vmul.f32 %v1095_v21, %v1095_v21 }
 0xec3   :  { %v1101_v23 = vsel %vm95_vm0, %v1097_v22, 0.0  ;;  %v1179_v22 = vld [vmem:[%s3088_s18 + $0x10] sm:$0xff] }
 0xec4   :  { %1102 = vadd.xlane.f32.xlu1 %v1101_v23 }
 0xf0f   :  { %v1385_v24 = vpop.f32.mrf.mxu0 }
 0xf10   :  { %v1388_v25 = vmul.f32 0.35355338, %v1385_v24 }
 0xf11   :  { %v1272_v26 = vpop.f32.mrf.mxu3 }
 0xf12   :  { %v1275_v28 = vmul.f32 0.35355338, %v1272_v26  ;;  %v1389_v29 = vadd.f32 %v1388_v25, %v2545_v40 }
 0xf13   :  { %v1205_v56 = vpop.f32.mrf.mxu1 }
 0xf14   :  { %v1390_v31 = vsel %vm201_vm5, %v1389_v29, -inf  ;;  %v1276_v34 = vadd.f32 %v1275_v28, %v2545_v40  ;;  %v1208_v58 = vmul.f32 0.35355338, %v1205_v56 }
 0xf15   :  { %1391 = vmax.xlane.f32.xlu0 %v1390_v31 }
 0xf16   :  { %v1277_v36 = vsel %vm201_vm5, %v1276_v34, -inf  ;;  %v1209_v59 = vadd.f32 %v2852_v30, %v1208_v58 }
 0xf17   :  { %1278 = vmax.xlane.f32.xlu2 %v1277_v36 }
 0xf18   :  { %v1210_v1 = vsel %vm201_vm5, %v1209_v59, -inf }
 0xf29   :  { %1288 = vrot.lane.b32.xlu0 %v2811_v35, %s3152_s17 }
 0xf37   :  { %v1103_v38 = vpop.xlane.xlu1 %1102 }
 0xf38   :  { %v1105_v39 = vmul.f32 %v1103_v38, %v2490_v8 }
 0xf3a   :  { %v1107_v41 = vadd.f32 1e-12, %v1105_v39 }
 0xf3c   :  { %2281 = vrsqrt.f32 %v1107_v41  ;;  %vm1124_vm6 = vweird.f32 %v1107_v41 }
 0xf42   :  { %v2282_v42 = vpop.eup %2281 }
 0xf43   :  { %v1119_v27 = vmul.f32 %v2282_v42, %v1107_v41  ;;  %vm1125_vm4 = vweird.f32 %v2282_v42 }
 0xf44   :  { %vm1126_vm7 = vmor %vm1124_vm6, %vm1125_vm4 }
 0xf45   :  { %v1120_v44 = vmul.f32 %v2282_v42, %v1119_v27 }
 0xf47   :  { %v1121_v45 = vmul.f32 0.5, %v1120_v44 }
 0xf49   :  { %v1122_v33 = vsub.f32 1.5, %v1121_v45 }
 0xf4b   :  { %v1123_v47 = vmul.f32 %v2282_v42, %v1122_v33 }
 0xf4d   :  { %v1127_v40 = vsel %vm1126_vm7, %v2282_v42, %v1123_v47 }
 0xf4e   :  { %v1129_v48 = vmul.f32 %v1127_v40, %v1095_v21  ;;  %v1178_v21 = vld [vmem:[%s3088_s18 + $0x8] sm:$0xff] }
 0xf50   :  { %v1134_v49 = vmul.f32 %v2795_v4, %v1129_v48  ;;  %v1177_v4 = vld [vmem:[%s3088_s18] sm:$0xff] }
 0xf51   :  { %1355 = vmatpush.msrb.mxu3 %v1177_v4 }
 0xf52   :  { %v2843_v50 = vadd.f32 %v2224_v6, %v1134_v49 }
 0xf54   :  { %2166 = vmatmul.msk.f32.gmra.mxu2 %vm95_vm0, %v2843_v50 }
 0xf88   :  { %v1392_v51 = vpop.xlane.xlu0 %1391 }
 0xf89   :  { %v1393_v52 = vsub.f32 %v1389_v29, %v1392_v51 }
 0xf8a   :  { %v1279_v53 = vpop.xlane.xlu2 %1278 }
 0xf8b   :  { %v1394_v54 = vmul.f32 1.442695, %v1393_v52  ;;  %v1280_v55 = vsub.f32 %v1276_v34, %v1279_v53 }
 0xf8d   :  { %2283 = vpow2.f32 %v1394_v54  ;;  %v1281_v46 = vmul.f32 1.442695, %v1280_v55 }
 0xf8f   :  { %2285 = vpow2.f32 %v1281_v46 }
 0xf93   :  { %v2284_v57 = vpop.eup %2283 }
 0xf94   :  { %v1396_v60 = vsel %vm201_vm5, %v2284_v57, 0.0 }
 0xf95   :  { %v2286_v62 = vpop.eup %2285  ;;  %1397 = vadd.xlane.f32.xlu1 %v1396_v60 }
 0xf96   :  { %v1283_v0 = vsel %vm201_vm5, %v2286_v62, 0.0 }
 0xf97   :  { %1284 = vadd.xlane.f32.xlu2 %v1283_v0 }
 0xf9b   :  { %v1289_v37 = vpop.permute.xlu0 %1288 }
 0xf9c   :  { %1309 = vmatpush.msrb.mxu2 %v1289_v37 }
 0xf9d   :  { %1211 = vmax.xlane.f32.xlu1 %v1210_v1 }
 0xfaf   :  { %1401 = vrot.lane.b32.xlu2 %v2811_v35, %s3153_s3 }
 0xfb7   :  { %1453 = vrot.lane.b32.xlu2 %v2811_v35, %s3154_s7 }
 0xfd7   :  { %v1174_v2 = vpop.f32.mrf.mxu2 }
 0xfd8   :  { %v2861_v3 = vadd.f32 %v2808_v32, %v1174_v2 }
 0xfda   :  { %1543 = vrot.lane.b32.xlu0 %v2861_v3, %s3151_s13 }
 0xfe2   :  { %1451 = vrot.lane.b32.xlu0 %v2811_v35, %s3155_s8 }
0x1008   :  { %v1398_v5 = vpop.xlane.xlu1 %1397 }
0x100a   :  { %v1285_v61 = vpop.xlane.xlu2 %1284 }
0x100b   :  { %2287 = vrcp.f32 %v1285_v61  ;;  %v2930_v61 = vld [vmem:[%s3088_s18 + $0x18] sm:$0xff] }
0x100c   :  { %2289 = vrcp.f32 %v1398_v5 }
0x1010   :  { %v1212_v6 = vpop.xlane.xlu1 %1211 }
0x1011   :  { %v2288_v7 = vpop.eup %2287  ;;  %v1213_v10 = vsub.f32 %v1209_v59, %v1212_v6 }
0x1012   :  { %v1287_v32 = vmul.f32 %v2288_v7, %v2286_v62  ;;  %v1402_v11 = vpop.permute.xlu2 %1401  ;;  %v2290_v13 = vpop.eup %2289 }
0x1013   :  { %v1214_v12 = vmul.f32 1.442695, %v1213_v10  ;;  %1422 = vmatpush.msra.mxu2 %v1402_v11  ;;  %v1400_v14 = vmul.f32 %v2290_v13, %v2284_v57 }
0x1014   :  { %2172 = vmatmul.msk.f32.vlgmr.msrb.gmra.mxu2 %vm201_vm5, %v1287_v32 }
0x1015   :  { %2291 = vpow2.f32 %v1214_v12  ;;  %1536 = vmatpush.msrb.mxu2 %v2930_v61 }
0x101a   :  { %v1454_v15 = vpop.permute.xlu2 %1453 }
0x101b   :  { %v2292_v16 = vpop.eup %2291  ;;  %2179 = vmatpush.xpose.msk.msra.mxu3 %vm201_vm5, %v1454_v15 }
0x101c   :  { %2177 = vmatmul.msk.f32.vlgmr.msra.gmra.mxu2 %vm201_vm5, %v1400_v14  ;;  %v1216_v17 = vsel %vm201_vm5, %v2292_v16, 0.0  ;;  %v2328_v14 = vld [vmem:[%s3141_s12 + $0x8] sm:$0xff] }
0x101d   :  { %1217 = vadd.xlane.f32.xlu1 %v1216_v17 }
0x1036   :  { %1221 = vrot.lane.b32.xlu1 %v2811_v35, %s3156_s10 }
0x103e   :  { %1582 = vrot.lane.b32.xlu1 %v2861_v3, %s3156_s10 }
0x104c   :  { %v1544_v24 = vpop.permute.xlu0 %1543 }
0x1054   :  { %v1452_v29 = vpop.permute.xlu0 %1451 }
0x1090   :  { %v1218_v18 = vpop.xlane.xlu1 %1217 }
0x1091   :  { %2293 = vrcp.f32 %v1218_v18 }
0x1097   :  { %v2294_v43 = vpop.eup %2293  ;;  %v1311_v23 = vpop.f32.mrf.mxu2 }
0x1098   :  { %v1220_v19 = vmul.f32 %v2294_v43, %v2292_v16 }
0x109f   :  { %v1424_v25 = vpop.f32.mrf.mxu2 }
0x10a8   :  { %v1222_v20 = vpop.permute.xlu1 %1221 }
0x10a9   :  { %1242 = vmatpush.msrb.mxu1 %v1222_v20 }
0x10aa   :  { %2169 = vmatmul.msk.f32.vlgmr.msrb.gmra.mxu1 %vm201_vm5, %v1220_v19 }
0x10ab   :  { %1332 = vmatpush.msra.mxu1 %v1178_v21 }
0x10ad   :  { %1445 = vmatpush.msrb.mxu1 %v1179_v22 }
0x10b0   :  { %v1583_v28 = vpop.permute.xlu1 %1582 }
0x10b2   :  { %2173 = vmatmul.msk.f32.vlgmr.msra.gmra.mxu1 %vm201_vm5, %v1311_v23 }
0x10b3   :  { %2183 = vmatpush.xpose.msk.msra.mxu1 %vm201_vm5, %v1544_v24  ;;  %v2951_v24 = vld [vmem:[%s3089_s19] ss:$0 sm:$0xff] }
0x10ba   :  { %2178 = vmatmul.msk.f32.vlgmr.msrb.gmra.mxu1 %vm201_vm5, %v1424_v25 }
0x10bb   :  { %1693 = vmatpush.msrb.mxu1 %v1178_v21 }
0x10c2   :  { %2184 = vmatmul.msk.f32.vlgmr.msra.gmra.mxu1 %vm201_vm5, %v2861_v3 }
0x10c3   :  { %1806 = vmatpush.msra.mxu1 %v1179_v22 }
0x1127   :  { %v1244_v26 = vpop.f32.mrf.mxu1 }
0x1128   :  { %2174 = vmatmul.msk.f32.vlgmr.msrb.gmra.mxu3 %vm201_vm5, %v1244_v26 }
0x1129   :  { %1603 = vmatpush.msrb.mxu3 %v1583_v28 }
0x112f   :  { %v2891_v31 = vpop.f32.mrf.mxu1 }
0x1130   :  { %2180 = vmatmul.msk.f32.vlgmr.msra.gmra.mxu3 %vm201_vm5, %v1452_v29 }
0x1131   :  { %1716 = vmatpush.msra.mxu3 %v1177_v4 }
0x1137   :  { %v2894_v34 = vpop.f32.mrf.mxu1 }
0x113f   :  { %v1566_v36 = vpop.f32.mrf.mxu1 }
0x1140   :  { %v1569_v38 = vmul.f32 0.35355338, %v1566_v36 }
0x1142   :  { %v1570_v39 = vadd.f32 %v1569_v38, %v2629_v63 }
0x1144   :  { %v1571_v41 = vsel %vm201_vm5, %v1570_v39, -inf }
0x1145   :  { %1572 = vmax.xlane.f32.xlu2 %v1571_v41 }
0x11ab   :  { %v2898_v42 = vpop.f32.mrf.mxu3 }
0x11ac   :  { %v1358_v20 = vadd.f32 %v2898_v42, %v2891_v31 }
0x11ae   :  { %v1450_v23 = vadd.f32 %v2894_v34, %v1358_v20 }
0x11b3   :  { %v1476_v27 = vpop.f32.mrf.mxu3 }
0x11b4   :  { %v1479_v44 = vmul.f32 0.35355338, %v1476_v27 }
0x11b6   :  { %v1480_v45 = vadd.f32 %v2852_v30, %v1479_v44 }
0x11b8   :  { %v1573_v33 = vpop.xlane.xlu2 %1572  ;;  %v1481_v47 = vsel %vm201_vm5, %v1480_v45, -inf }
0x11b9   :  { %v1574_v40 = vsub.f32 %v1570_v39, %v1573_v33  ;;  %1482 = vmax.xlane.f32.xlu1 %v1481_v47 }
0x11bb   :  { %v1575_v48 = vmul.f32 1.442695, %v1574_v40 }
0x11bd   :  { %2295 = vpow2.f32 %v1575_v48 }
0x11c3   :  { %v2296_v49 = vpop.eup %2295 }
0x11c4   :  { %v1577_v51 = vsel %vm201_vm5, %v2296_v49, 0.0 }
0x11c5   :  { %1578 = vadd.xlane.f32.xlu0 %v1577_v51 }
0x11d2   :  { %1608 = vrot.lane.b32.xlu1 %v2861_v3, %s2330_s0 }
0x11d9   :  { %1492 = vrot.lane.b32.xlu0 %v2811_v35, %s3157_s1 }
0x11e1   :  { %1814 = vrot.lane.b32.xlu0 %v2861_v3, %s3154_s7 }
0x11e9   :  { %1723 = vrot.lane.b32.xlu0 %v2861_v3, %s2336_s2 }
0x122c   :  { %v1483_v52 = vpop.xlane.xlu1 %1482 }
0x122d   :  { %v1484_v53 = vsub.f32 %v1480_v45, %v1483_v52 }
0x122f   :  { %v1485_v54 = vmul.f32 1.442695, %v1484_v53 }
0x1231   :  { %2297 = vpow2.f32 %v1485_v54 }
0x1237   :  { %v2298_v55 = vpop.eup %2297 }
0x1238   :  { %v1579_v46 = vpop.xlane.xlu0 %1578  ;;  %v1487_v56 = vsel %vm201_vm5, %v2298_v55, 0.0 }
0x1239   :  { %2299 = vrcp.f32 %v1579_v46  ;;  %1488 = vadd.xlane.f32.xlu2 %v1487_v56 }
0x123f   :  { %v2300_v57 = vpop.eup %2299 }
0x1240   :  { %v1581_v58 = vmul.f32 %v2300_v57, %v2296_v49 }
0x1242   :  { %2185 = vmatmul.msk.f32.vlgmr.msrb.gmra.mxu3 %vm201_vm5, %v1581_v58 }
0x1244   :  { %v1609_v2 = vpop.permute.xlu1 %1608 }
0x124b   :  { %v1493_v35 = vpop.permute.xlu0 %1492 }
0x124c   :  { %1513 = vmatpush.msra.mxu0 %v1493_v35 }
0x1251   :  { %1610 = vrot.lane.b32.xlu2 %v2861_v3, %s3149_s14 }
0x1253   :  { %v1815_v60 = vpop.permute.xlu0 %1814 }
0x1254   :  { %2195 = vmatpush.xpose.msk.msrb.mxu3 %vm201_vm5, %v1815_v60 }
0x1259   :  { %1812 = vrot.lane.b32.xlu2 %v2861_v3, %s3155_s8 }
0x125b   :  { %v1724_v37 = vpop.permute.xlu0 %1723 }
0x1261   :  { %1721 = vrot.lane.b32.xlu2 %v2861_v3, %s3150_s15 }
0x12ac   :  { %v1489_v62 = vpop.xlane.xlu2 %1488 }
0x12ad   :  { %2301 = vrcp.f32 %v1489_v62 }
0x12b3   :  { %v2302_v0 = vpop.eup %2301 }
0x12b4   :  { %v1491_v30 = vmul.f32 %v2302_v0, %v2298_v55  ;;  %v1611_v59 = vpop.permute.xlu2 %1610 }
0x12b5   :  { %2186 = vmatpush.xpose.msk.msrb.mxu0 %vm201_vm5, %v1611_v59 }
0x12b6   :  { %2181 = vmatmul.msk.f32.vlgmr.msra.gmra.mxu0 %vm201_vm5, %v1491_v30 }
0x12b9   :  { %2191 = vmatpush.xpose.msk.msra.mxu0 %vm201_vm5, %v1724_v37 }
0x12bc   :  { %v1813_v1 = vpop.permute.xlu2 %1812 }
0x12be   :  { %2187 = vmatmul.msk.f32.vlgmr.msrb.gmra.mxu0 %vm201_vm5, %v1609_v2 }
0x12c4   :  { %v1722_v4 = vpop.permute.xlu2 %1721 }
0x12c5   :  { %v1605_v5 = vpop.f32.mrf.mxu3 }
0x12c6   :  { %2190 = vmatmul.msk.f32.vlgmr.msra.gmra.mxu3 %vm201_vm5, %v1605_v5  ;;  %2192 = vmatmul.msk.f32.vlgmr.msra.gmra.mxu0 %vm201_vm5, %v1722_v4  ;;  %v1970_v4 = vld [vmem:[%s3092_s22 + $0x18] sm:$0xff] }
0x12ce   :  { %2196 = vmatmul.msk.f32.vlgmr.msrb.gmra.mxu3 %vm201_vm5, %v1813_v1 }
0x1333   :  { %v1515_v6 = vpop.f32.mrf.mxu0 }
0x1334   :  { %2182 = vmatmul.msk.f32.vlgmr.msrb.gmra.mxu2 %vm201_vm5, %v1515_v6 }
0x133b   :  { %v1633_v7 = vpop.f32.mrf.mxu0 }
0x133c   :  { %v1636_v10 = vmul.f32 0.35355338, %v1633_v7  ;;  %v1968_v7 = vld [vmem:[%s3092_s22 + $0x8] sm:$0xff] }
0x133e   :  { %v1637_v32 = vadd.f32 %v1636_v10, %v2629_v63 }
0x1340   :  { %v1638_v11 = vsel %vm201_vm5, %v1637_v32, -inf }
0x1341   :  { %1639 = vmax.xlane.f32.xlu0 %v1638_v11 }
0x1343   :  { %v1746_v12 = vpop.f32.mrf.mxu0 }
0x1344   :  { %v1749_v13 = vmul.f32 0.35355338, %v1746_v12 }
0x1346   :  { %v1750_v15 = vadd.f32 %v2328_v14, %v1749_v13 }
0x1348   :  { %v1751_v16 = vsel %vm201_vm5, %v1750_v15, -inf }
0x1349   :  { %v2940_v17 = vpop.f32.mrf.mxu3  ;;  %1752 = vmax.xlane.f32.xlu1 %v1751_v16 }
0x1351   :  { %v1837_v18 = vpop.f32.mrf.mxu3 }
0x1352   :  { %v1840_v43 = vmul.f32 0.35355338, %v1837_v18 }
0x1354   :  { %v1841_v19 = vadd.f32 %v2328_v14, %v1840_v43 }
0x1356   :  { %v1842_v63 = vsel %vm201_vm5, %v1841_v19, -inf }
0x1357   :  { %1843 = vmax.xlane.f32.xlu2 %v1842_v63  ;;  %v2993_v63 = vld [vmem:[%s3091_s21] ss:$0 sm:$0xff] }
0x136f   :  { %1649 = vrot.lane.b32.xlu2 %v2861_v3, %s3152_s17 }
0x13b4   :  { %v1640_v21 = vpop.xlane.xlu0 %1639 }
0x13b5   :  { %v1641_v22 = vsub.f32 %v1637_v32, %v1640_v21  ;;  %v1967_v32 = vld [vmem:[%s3092_s22] sm:$0xff]  ;;  %v2029_v21 = vld [vmem:[%s3094_s24 + $0x38] sm:$0xff] }
0x13b6   :  { %2048 = vmatpush.msra.mxu3 %v2029_v21 }
0x13b7   :  { %v1642_v25 = vmul.f32 1.442695, %v1641_v22  ;;  %v1538_v26 = vpop.f32.mrf.mxu2  ;;  %v2028_v22 = vld [vmem:[%s3094_s24 + $0x30] sm:$0xff] }
0x13b8   :  { %v1541_v28 = vadd.f32 %v1538_v26, %v1450_v23  ;;  %2049 = vmatpush.msra.mxu3 %v2028_v22  ;;  %v2027_v23 = vld [vmem:[%s3094_s24 + $0x28] sm:$0xff]  ;;  %v2025_v26 = vld [vmem:[%s3094_s24 + $0x18] sm:$0xff] }
0x13b9   :  { %2303 = vpow2.f32 %v1642_v25  ;;  %v2026_v25 = vld [vmem:[%s3094_s24 + $0x20] sm:$0xff] }
0x13ba   :  { %v1907_v29 = vadd.f32 %v2951_v24, %v1541_v28  ;;  %2050 = vmatpush.msra.mxu3 %v2027_v23 }
0x13bc   :  { %v1753_v36 = vpop.xlane.xlu1 %1752  ;;  %v1909_v38 = vadd.f32 %v1907_v29, %v2801_v9  ;;  %2051 = vmatpush.msra.mxu3 %v2026_v25  ;;  %v2024_v29 = vld [vmem:[%s3094_s24 + $0x10] sm:$0xff] }
0x13bd   :  { %v1754_v39 = vsub.f32 %v1750_v15, %v1753_v36  ;;  %v2986_v15 = vld [vmem:[%s3090_s20] ss:$0 sm:$0xff]  ;;  %v2023_v36 = vld [vmem:[%s3094_s24 + $0x8] sm:$0xff] }
0x13be   :  { %v1913_v31 = vsel %vm95_vm0, %v1909_v38, 0.0  ;;  %2052 = vmatpush.msra.mxu3 %v2025_v26 }
0x13bf   :  { %v2304_v41 = vpop.eup %2303  ;;  %v1755_v42 = vmul.f32 1.442695, %v1754_v39  ;;  %1914 = vadd.xlane.f32.xlu2 %v1913_v31  ;;  %v3025_v31 = vld [vmem:[%s3093_s23] ss:$0 sm:$0xff] }
0x13c0   :  { %v1644_v34 = vsel %vm201_vm5, %v2304_v41, 0.0  ;;  %2053 = vmatpush.msra.mxu3 %v2024_v29 }
0x13c1   :  { %2305 = vpow2.f32 %v1755_v42  ;;  %1645 = vadd.xlane.f32.xlu0 %v1644_v34 }
0x13c2   :  { %2054 = vmatpush.msra.mxu3 %v2023_v36 }
0x13c7   :  { %v2306_v27 = vpop.eup %2305 }
0x13c8   :  { %v1757_v44 = vsel %vm201_vm5, %v2306_v27, 0.0 }
0x13c9   :  { %1758 = vadd.xlane.f32.xlu1 %v1757_v44 }
0x13ca   :  { %v1844_v45 = vpop.xlane.xlu2 %1843 }
0x13cb   :  { %v1845_v33 = vsub.f32 %v1841_v19, %v1844_v45 }
0x13cd   :  { %v1846_v47 = vmul.f32 1.442695, %v1845_v33 }
0x13cf   :  { %2307 = vpow2.f32 %v1846_v47 }
0x13d2   :  { %v1650_v40 = vpop.permute.xlu2 %1649 }
0x13d3   :  { %1670 = vmatpush.msra.mxu2 %v1650_v40 }
0x13d5   :  { %v2308_v9 = vpop.eup %2307 }
0x13d6   :  { %v1848_v48 = vsel %vm201_vm5, %v2308_v9, 0.0 }
0x13d7   :  { %1849 = vadd.xlane.f32.xlu0 %v1848_v48 }
0x13e2   :  { %1762 = vrot.lane.b32.xlu1 %v2861_v3, %s3153_s3 }
0x13eb   :  { %1853 = vrot.lane.b32.xlu0 %v2861_v3, %s3157_s1 }
0x1432   :  { %v1915_v49 = vpop.xlane.xlu2 %1914 }
0x1433   :  { %v1919_v51 = vmul.f32 %v1915_v49, %v2490_v8 }
0x1434   :  { %v1646_v52 = vpop.xlane.xlu0 %1645 }
0x1435   :  { %v1921_v53 = vsub.f32 %v1909_v38, %v1919_v51  ;;  %2309 = vrcp.f32 %v1646_v52  ;;  %v2022_v38 = vld [vmem:[%s3094_s24] sm:$0xff] }
0x1436   :  { %2055 = vmatpush.msra.mxu3 %v2022_v38 }
0x1437   :  { %v1923_v54 = vmul.f32 %v1921_v53, %v1921_v53 }
0x1439   :  { %v1925_v55 = vsel %vm95_vm0, %v1923_v54, 0.0 }
0x143a   :  { %1926 = vadd.xlane.f32.xlu1 %v1925_v55 }
0x143b   :  { %v2310_v46 = vpop.eup %2309 }
0x143c   :  { %v1648_v56 = vmul.f32 %v2310_v46, %v2304_v41  ;;  %v1759_v57 = vpop.xlane.xlu1 %1758 }
0x143d   :  { %2311 = vrcp.f32 %v1759_v57 }
0x143e   :  { %2188 = vmatmul.msk.f32.vlgmr.msra.gmra.mxu2 %vm201_vm5, %v1648_v56 }
0x1443   :  { %v2312_v58 = vpop.eup %2311 }
0x1444   :  { %v1761_v60 = vmul.f32 %v2312_v58, %v2306_v27  ;;  %v3038_v58 = vld [vmem:[%s3095_s25] ss:$0 sm:$0xff] }
0x144a   :  { %v1850_v35 = vpop.xlane.xlu0 %1849 }
0x144b   :  { %2313 = vrcp.f32 %v1850_v35 }
0x1451   :  { %v2314_v62 = vpop.eup %2313 }
0x1452   :  { %v1852_v0 = vmul.f32 %v2314_v62, %v2308_v9 }
0x1454   :  { %v1763_v3 = vpop.permute.xlu1 %1762 }
0x1455   :  { %1783 = vmatpush.msrb.mxu2 %v1763_v3 }
0x1456   :  { %2193 = vmatmul.msk.f32.vlgmr.msrb.gmra.mxu2 %vm201_vm5, %v1761_v60 }
0x1457   :  { %1897 = vmatpush.msra.mxu2 %v2930_v61  ;;  %v1969_v61 = vld [vmem:[%s3092_s22 + $0x10] sm:$0xff] }
0x145d   :  { %v1854_v30 = vpop.permute.xlu0 %1853 }
0x145e   :  { %1874 = vmatpush.msrb.mxu0 %v1854_v30 }
0x145f   :  { %2197 = vmatmul.msk.f32.vlgmr.msrb.gmra.mxu0 %vm201_vm5, %v1852_v0 }
0x14ad   :  { %v1927_v59 = vpop.xlane.xlu1 %1926 }
0x14ae   :  { %v1931_v37 = vmul.f32 %v1927_v59, %v2490_v8 }
0x14b0   :  { %v1933_v1 = vadd.f32 1e-12, %v1931_v37 }
0x14b2   :  { %2315 = vrsqrt.f32 %v1933_v1  ;;  %vm1941_vm9 = vweird.f32 %v1933_v1 }
0x14b8   :  { %v2316_v2 = vpop.eup %2315 }
0x14b9   :  { %v1936_v5 = vmul.f32 %v2316_v2, %v1933_v1  ;;  %vm1942_vm8 = vweird.f32 %v2316_v2 }
0x14ba   :  { %vm1943_vm10 = vmor %vm1941_vm9, %vm1942_vm8 }
0x14bb   :  { %v1937_v10 = vmul.f32 %v2316_v2, %v1936_v5 }
0x14bd   :  { %v1938_v11 = vmul.f32 0.5, %v1937_v10 }
0x14bf   :  { %v1939_v12 = vsub.f32 1.5, %v1938_v11 }
0x14c1   :  { %v1672_v6 = vpop.f32.mrf.mxu2  ;;  %v1940_v13 = vmul.f32 %v2316_v2, %v1939_v12 }
0x14c2   :  { %2189 = vmatmul.msk.f32.vlgmr.msrb.gmra.mxu1 %vm201_vm5, %v1672_v6 }
0x14c3   :  { %1993 = vmatpush.msrb.mxu1 %v1970_v4  ;;  %v1944_v14 = vsel %vm1943_vm10, %v2316_v2, %v1940_v13 }
0x14c4   :  { %v1955_v16 = vmul.f32 %v1944_v14, %v1921_v53 }
0x14c5   :  { %1994 = vmatpush.msrb.mxu1 %v1969_v61 }
0x14c6   :  { %v1960_v43 = vmul.f32 %v2986_v15, %v1955_v16 }
0x14c7   :  { %1995 = vmatpush.msrb.mxu1 %v1968_v7 }
0x14c8   :  { %v1965_v20 = vadd.f32 %v2993_v63, %v1960_v43 }
0x14c9   :  { %1996 = vmatpush.msrb.mxu1 %v1967_v32 }
0x14d9   :  { %v1785_v18 = vpop.f32.mrf.mxu2 }
0x14da   :  { %2194 = vmatmul.msk.f32.vlgmr.msra.gmra.mxu1 %vm201_vm5, %v1785_v18 }
0x14dc   :  { %v1876_v19 = vpop.f32.mrf.mxu0 }
0x14dd   :  { %2198 = vmatmul.msk.f32.vlgmr.msra.gmra.mxu2 %vm201_vm5, %v1876_v19 }
0x14e2   :  { %2199 = vmatmul.msk.f32.vlgmr.msrb.gmra.mxu1 %vm95_vm0, %v1965_v20 }
0x153f   :  { %v1695_v28 = vpop.f32.mrf.mxu1 }
0x1540   :  { %v1719_v41 = vadd.f32 %v2940_v17, %v1695_v28 }
0x1557   :  { %v1808_v39 = vpop.f32.mrf.mxu1 }
0x1558   :  { %v1811_v42 = vadd.f32 %v1808_v39, %v1719_v41 }
0x155f   :  { %v1998_v34 = vpop.f32.mrf.mxu1 }
0x1560   :  { %v1999_v27 = vadd.f32 %v3025_v31, %v1998_v34  ;;  %v1899_v44 = vpop.f32.mrf.mxu2 }
0x1561   :  { %v1902_v45 = vadd.f32 %v1899_v44, %v1811_v42  ;;  %v2232_v44 = vld [vmem:[%s3097_s27] ss:$0 sm:$0xff] }
0x1562   :  { %v2006_v33 = vmul.f32 0.044715, %v1999_v27  ;;  %v2004_v53 = vmul.f32 0.5, %v1999_v27 }
0x1563   :  { %v1908_v47 = vadd.f32 %v2951_v24, %v1902_v45 }
0x1564   :  { %v2008_v40 = vmul.f32 %v2006_v33, %v1999_v27 }
0x1565   :  { %v1910_v9 = vadd.f32 %v1908_v47, %v2843_v50 }
0x1566   :  { %v2010_v48 = vmul.f32 %v2008_v40, %v1999_v27 }
0x1567   :  { %v1916_v49 = vsel %vm95_vm0, %v1910_v9, 0.0 }
0x1568   :  { %v2012_v51 = vadd.f32 %v2010_v48, %v1999_v27  ;;  %1917 = vadd.xlane.f32.xlu0 %v1916_v49 }
0x156a   :  { %v2014_v52 = vmul.f32 0.7978846, %v2012_v51 }
0x156c   :  { %2317 = vtanh.f32 %v2014_v52 }
0x1572   :  { %v2318_v17 = vpop.eup %2317 }
0x1573   :  { %v2018_v54 = vadd.f32 1.0, %v2318_v17 }
0x1575   :  { %v2020_v55 = vmul.f32 %v2018_v54, %v2004_v53 }
0x1577   :  { %2201 = vmatmul.msk.f32.vlgmr.msra.gmra.mxu3 %vm1052_vm15, %v2020_v55 }
0x15db   :  { %v1918_v46 = vpop.xlane.xlu0 %1917 }
0x15dc   :  { %v1920_v56 = vmul.f32 %v1918_v46, %v2490_v8 }
0x15de   :  { %v1922_v24 = vsub.f32 %v1910_v9, %v1920_v56 }
0x15e0   :  { %v1924_v57 = vmul.f32 %v1922_v24, %v1922_v24 }
0x15e2   :  { %v1928_v50 = vsel %vm95_vm0, %v1924_v57, 0.0 }
0x15e3   :  { %1929 = vadd.xlane.f32.xlu2 %v1928_v50 }
0x15fa   :  { %v2057_v35 = vpop.f32.mrf.mxu3 }
0x15fb   :  { %v2058_v60 = vadd.f32 %v3038_v58, %v2057_v35 }
0x15fd   :  { %v2063_v3 = vadd.f32 %v2058_v60, %v1965_v20 }
0x15ff   :  { %v2067_v62 = vsel %vm95_vm0, %v2063_v3, 0.0 }
0x1600   :  { %2068 = vadd.xlane.f32.xlu0 %v2067_v62 }
0x1656   :  { %v1930_v0 = vpop.xlane.xlu2 %1929 }
0x1657   :  { %v1932_v30 = vmul.f32 %v1930_v0, %v2490_v8 }
0x1659   :  { %v1934_v59 = vadd.f32 1e-12, %v1932_v30 }
0x165b   :  { %2319 = vrsqrt.f32 %v1934_v59  ;;  %vm1951_vm11 = vweird.f32 %v1934_v59 }
0x1661   :  { %v2320_v37 = vpop.eup %2319 }
0x1662   :  { %v1946_v1 = vmul.f32 %v2320_v37, %v1934_v59  ;;  %vm1952_vm5 = vweird.f32 %v2320_v37 }
0x1663   :  { %vm1953_vm12 = vmor %vm1951_vm11, %vm1952_vm5 }
0x1664   :  { %v1947_v2 = vmul.f32 %v2320_v37, %v1946_v1 }
0x1666   :  { %v1948_v4 = vmul.f32 0.5, %v1947_v2 }
0x1668   :  { %v1949_v5 = vsub.f32 1.5, %v1948_v4 }
0x166a   :  { %v1950_v6 = vmul.f32 %v2320_v37, %v1949_v5 }
0x166c   :  { %v1954_v61 = vsel %vm1953_vm12, %v2320_v37, %v1950_v6 }
0x166d   :  { %v1956_v7 = vmul.f32 %v1954_v61, %v1922_v24 }
0x166f   :  { %v1961_v10 = vmul.f32 %v2986_v15, %v1956_v7 }
0x1671   :  { %v1966_v32 = vadd.f32 %v2993_v63, %v1961_v10 }
0x1673   :  { %2200 = vmatmul.msk.f32.gmra.mxu1 %vm95_vm0, %v1966_v32  ;;  %v2069_v11 = vpop.xlane.xlu0 %2068 }
0x1674   :  { %v2073_v12 = vmul.f32 %v2069_v11, %v2490_v8 }
0x1676   :  { %v2075_v13 = vsub.f32 %v2063_v3, %v2073_v12 }
0x1678   :  { %v2077_v14 = vmul.f32 %v2075_v13, %v2075_v13 }
0x167a   :  { %v2079_v16 = vsel %vm95_vm0, %v2077_v14, 0.0 }
0x167b   :  { %2080 = vadd.xlane.f32.xlu1 %v2079_v16 }
0x16ee   :  { %v2081_v18 = vpop.xlane.xlu1 %2080 }
0x16ef   :  { %v2085_v43 = vmul.f32 %v2081_v18, %v2490_v8 }
0x16f0   :  { %v2001_v19 = vpop.f32.mrf.mxu1 }
0x16f1   :  { %v2087_v20 = vadd.f32 1e-12, %v2085_v43  ;;  %v2002_v21 = vadd.f32 %v3025_v31, %v2001_v19  ;;  %v2231_v31 = vld [vmem:[%s3096_s26] ss:$0 sm:$0xff] }
0x16f3   :  { %2321 = vrsqrt.f32 %v2087_v20  ;;  %v2007_v15 = vmul.f32 0.044715, %v2002_v21  ;;  %vm2095_vm14 = vweird.f32 %v2087_v20  ;;  %v2005_v34 = vmul.f32 0.5, %v2002_v21 }
0x16f5   :  { %v2009_v63 = vmul.f32 %v2007_v15, %v2002_v21 }
0x16f7   :  { %v2011_v22 = vmul.f32 %v2009_v63, %v2002_v21 }
0x16f9   :  { %v2322_v23 = vpop.eup %2321  ;;  %v2013_v25 = vadd.f32 %v2011_v22, %v2002_v21 }
0x16fa   :  { %v2090_v26 = vmul.f32 %v2322_v23, %v2087_v20  ;;  %vm2096_vm13 = vweird.f32 %v2322_v23 }
0x16fb   :  { %v2015_v28 = vmul.f32 0.7978846, %v2013_v25  ;;  %vm2097_vm1 = vmor %vm2095_vm14, %vm2096_vm13 }
0x16fc   :  { %v2091_v29 = vmul.f32 %v2322_v23, %v2090_v26 }
0x16fd   :  { %2323 = vtanh.f32 %v2015_v28 }
0x16fe   :  { %v2092_v36 = vmul.f32 0.5, %v2091_v29 }
0x1700   :  { %v2093_v38 = vsub.f32 1.5, %v2092_v36 }
0x1702   :  { %v2094_v39 = vmul.f32 %v2322_v23, %v2093_v38 }
0x1703   :  { %v2324_v41 = vpop.eup %2323 }
0x1704   :  { %v2098_v42 = vsel %vm2097_vm1, %v2322_v23, %v2094_v39  ;;  %v2019_v27 = vadd.f32 1.0, %v2324_v41 }
0x1705   :  { %v2109_v45 = vmul.f32 %v2098_v42, %v2075_v13 }
0x1706   :  { %v2021_v33 = vmul.f32 %v2019_v27, %v2005_v34 }
0x1707   :  { %v2114_v47 = vmul.f32 %v2231_v31, %v2109_v45 }
0x1708   :  { %2202 = vmatmul.msk.f32.gmra.mxu3 %vm1052_vm15, %v2021_v33 }
0x1709   :  { %v2119_v40 = vadd.f32 %v2232_v44, %v2114_v47 }
0x170b   :  { %2121 = vst.msk [vmem:[%s3098_s28] sm:$0xff] %vm95_vm0, %v2119_v40 }
0x178b   :  { %v2060_v9 = vpop.f32.mrf.mxu3 }
0x178c   :  { %v2061_v48 = vadd.f32 %v3038_v58, %v2060_v9 }
0x178e   :  { %v2064_v49 = vadd.f32 %v2061_v48, %v1966_v32 }
0x1790   :  { %v2070_v51 = vsel %vm95_vm0, %v2064_v49, 0.0 }
0x1791   :  { %2071 = vadd.xlane.f32.xlu2 %v2070_v51 }
0x1804   :  { %v2072_v52 = vpop.xlane.xlu2 %2071 }
0x1805   :  { %v2074_v17 = vmul.f32 %v2072_v52, %v2490_v8 }
0x1807   :  { %v2076_v53 = vsub.f32 %v2064_v49, %v2074_v17 }
0x1809   :  { %v2078_v54 = vmul.f32 %v2076_v53, %v2076_v53 }
0x180b   :  { %v2082_v55 = vsel %vm95_vm0, %v2078_v54, 0.0 }
0x180c   :  { %2083 = vadd.xlane.f32.xlu0 %v2082_v55 }
0x187f   :  { %v2084_v46 = vpop.xlane.xlu0 %2083 }
0x1880   :  { %v2086_v56 = vmul.f32 %v2084_v46, %v2490_v8 }
0x1882   :  { %v2088_v24 = vadd.f32 1e-12, %v2086_v56 }
0x1884   :  { %2325 = vrsqrt.f32 %v2088_v24  ;;  %vm2105_vm2 = vweird.f32 %v2088_v24 }
0x188a   :  { %v2326_v57 = vpop.eup %2325 }
0x188b   :  { %v2100_v50 = vmul.f32 %v2326_v57, %v2088_v24  ;;  %vm2106_vm15 = vweird.f32 %v2326_v57 }
0x188c   :  { %vm2107_vm3 = vmor %vm2105_vm2, %vm2106_vm15 }
0x188d   :  { %v2101_v58 = vmul.f32 %v2326_v57, %v2100_v50 }
0x188f   :  { %v2102_v35 = vmul.f32 0.5, %v2101_v58 }
0x1891   :  { %v2103_v60 = vsub.f32 1.5, %v2102_v35 }
0x1893   :  { %v2104_v3 = vmul.f32 %v2326_v57, %v2103_v60 }
0x1895   :  { %v2108_v62 = vsel %vm2107_vm3, %v2326_v57, %v2104_v3 }
0x1896   :  { %v2110_v0 = vmul.f32 %v2108_v62, %v2076_v53 }
0x1898   :  { %v2115_v30 = vmul.f32 %v2231_v31, %v2110_v0 }
0x189a   :  { %v2120_v59 = vadd.f32 %v2232_v44, %v2115_v30 }
0x189c   :  { %2122 = vst.msk [vmem:[%s3098_s28 + $0x8] sm:$0xff] %vm95_vm0, %v2120_v59 }

// kernel: forward_full.3
= control target key start
LH: loop header
LB: loop body
LE: loop exit
PB: predicated region body
PF: predicated region fallthrough
CT: control target
= control target key end

     0   :  { %vm6210_vm0 = vcmask 261120   ;;  %v4452_v14 = vmov 0.0   ;;  %s4453_s26 = smov 96   ;;  %v4454_v34 = vmov 0   ;;  %s4455_s27 = smov 16   ;;  %vm163_vm13 = vcmask 123904   ;;  %s6190_s2 = inlined_call_operand.vmem [shape: f32[32,64], index: 2, kind: input, shape index: {}]   ;;  %s6191_s3 = inlined_call_operand.vmem [shape: f32[32,64], index: 3, kind: input, shape index: {}]   ;;  %s6192_s4 = inlined_call_operand.vmem [shape: f32[16,64], index: 4, kind: input, shape index: {}]   ;;  %s6193_s5 = inlined_call_operand.vmem [shape: f32[16,64], index: 5, kind: input, shape index: {}]   ;;  %s6194_s0 = inlined_call_operand.vmem [shape: f32[8,2,32], index: 0, kind: input, shape index: {}]   ;;  %s6195_s6 = inlined_call_operand.vmem [shape: f32[1,64], index: 6, kind: input, shape index: {}]   ;;  %s6196_s7 = inlined_call_operand.vmem [shape: f32[1,64], index: 7, kind: input, shape index: {}]   ;;  %s6197_s1 = inlined_call_operand.vmem [shape: f32[8,2,1], index: 1, kind: input, shape index: {}]   ;;  %s6198_s9 = inlined_call_operand.vmem [shape: f32[32,64], index: 9, kind: input, shape index: {}]   ;;  %s6199_s11 = inlined_call_operand.vmem [shape: f32[16,64], index: 11, kind: input, shape index: {}]   ;;  %s6200_s13 = inlined_call_operand.vmem [shape: f32[1,64], index: 13, kind: input, shape index: {}]   ;;  %s6201_s8 = inlined_call_operand.vmem [shape: f32[32,64], index: 8, kind: input, shape index: {}]   ;;  %s6202_s10 = inlined_call_operand.vmem [shape: f32[16,64], index: 10, kind: input, shape index: {}]   ;;  %s6203_s12 = inlined_call_operand.vmem [shape: f32[1,64], index: 12, kind: input, shape index: {}]   ;;  %s6204_s14 = inlined_call_operand.vmem [shape: f32[32,8], index: 14, kind: input, shape index: {}]   ;;  %s6205_s15 = inlined_call_operand.vmem [shape: f32[1,8], index: 15, kind: input, shape index: {}]   ;;  %s6206_s16 = inlined_call_operand.vmem [shape: f32[8,2,8], index: 16, kind: output, shape index: {}]  }
   0x1   :  { %6212 = sst [smem:[#allocation6_spill]] %s6190_s2  ;;  %v4551_v1 = vld [vmem:[%s6191_s3 + $0x18] sm:$0xff]  ;;  %v4563_v3 = vld [vmem:[%s6191_s3 + $0x10] sm:$0xff]  ;;  %v4568_v4 = vld [vmem:[%s6192_s4 + $0x8] sm:$0xff]  ;;  %4161 = vset.pattern.permute.xlu1 %v4454_v34  ;;  %4160 = vset.pattern.permute.xlu2 %v4454_v34  ;;  %s4456_s17 = smov 32   ;;  %vm61_vm14 = vcmask 130048  }
   0x2   :  { %s6213_s23 = sld [smem:[#allocation6_spill]]  ;;  %210 = vmatpush.msra.mxu3 %v4551_v1  ;;  %79 = vmatpush.msra.mxu0 %v4568_v4  ;;  %v4579_v6 = vld [vmem:[%s6193_s5 + $0x8] sm:$0xff]  ;;  %v4589_v8 = vld [vmem:[%s6192_s4] sm:$0xff]  ;;  %s4457_s20 = smov 80  }
   0x3   :  { %v4584_v7 = vld [vmem:[%s6191_s3 + $0x8] sm:$0xff]  ;;  %v4601_v10 = vld [vmem:[%s6193_s5] sm:$0xff]  ;;  %189 = vmatpush.msra.mxu2 %v4579_v6  ;;  %4162 = vset.pattern.permute.xlu0 %v4454_v34 }
   0x4   :  { %211 = vmatpush.msra.mxu3 %v4563_v3  ;;  %v4606_v11 = vld [vmem:[%s6191_s3] sm:$0xff]  ;;  %80 = vmatpush.msra.mxu0 %v4589_v8  ;;  %v4007_v13 = vld [vmem:[%s6194_s0 + $0xe] sm:$0x3] }
   0x5   :  { %v53_v12 = vld [vmem:[%s6194_s0] sm:$0x3]  ;;  %190 = vmatpush.msra.mxu2 %v4601_v10  ;;  %81 = vmatmul.f32.vlgmr.msra.gmra.mxu0 %v4452_v14  ;;  %v4008_v58 = vld [vmem:[%s6197_s1 + $0xe] sm:$0x3] }
   0x6   :  { %212 = vmatpush.msra.mxu3 %v4584_v7  ;;  %191 = vmatmul.f32.vlgmr.msra.gmra.mxu2 %v4452_v14  ;;  %v4163_v16 = vld [vmem:[%s6195_s6] ss:$0 sm:$0xff]  ;;  %vm260_vm9 = vcmp.gt.f32.partialorder %v4008_v58, 0.0 }
   0x7   :  { %300 = vmatpush.msrb.mxu0 %v4568_v4  ;;  %v4164_v21 = vld [vmem:[%s6196_s7] ss:$0 sm:$0xff]  ;;  %v261_v59 = vsel %vm260_vm9, 1, %v4454_v34 }
   0x8   :  { %v4546_v0 = vld [vmem:[%s6213_s23 + $0x18] sm:$0xff]  ;;  %v4556_v2 = vld [vmem:[%s6213_s23 + $0x10] sm:$0xff]  ;;  %v4573_v5 = vld [vmem:[%s6213_s23 + $0x8] sm:$0xff]  ;;  %213 = vmatpush.msra.mxu3 %v4606_v11 }
   0x9   :  { %101 = vmatpush.msra.mxu1 %v4546_v0  ;;  %v4596_v9 = vld [vmem:[%s6213_s23] sm:$0xff]  ;;  %4009 = vmatmul.msk.f32.vlgmr.msra.gmra.mxu3 %vm6210_vm0, %v4007_v13 }
   0xa   :  { %321 = vmatpush.msrb.mxu2 %v4546_v0  ;;  %433 = vmatpush.msrb.mxu3 %v4551_v1 }
   0xb   :  { %102 = vmatpush.msra.mxu1 %v4556_v2  ;;  %301 = vmatpush.msrb.mxu0 %v4589_v8 }
   0xc   :  { %322 = vmatpush.msrb.mxu2 %v4556_v2  ;;  %434 = vmatpush.msrb.mxu3 %v4563_v3 }
   0xd   :  { %103 = vmatpush.msra.mxu1 %v4573_v5  ;;  %527 = vmatpush.msra.mxu0 %v4568_v4 }
   0xe   :  { %323 = vmatpush.msrb.mxu2 %v4573_v5  ;;  %435 = vmatpush.msrb.mxu3 %v4584_v7 }
   0xf   :  { %104 = vmatpush.msra.mxu1 %v4596_v9  ;;  %528 = vmatpush.msra.mxu0 %v4589_v8 }
  0x10   :  { %4005 = vmatmul.msk.f32.vlgmr.msra.gmra.mxu1 %vm6210_vm0, %v53_v12  ;;  %324 = vmatpush.msrb.mxu2 %v4596_v9 }
  0x11   :  { %412 = vmatpush.msrb.mxu1 %v4579_v6  ;;  %436 = vmatpush.msrb.mxu3 %v4606_v11 }
  0x12   :  { %548 = vmatpush.msra.mxu2 %v4546_v0 }
  0x13   :  { %413 = vmatpush.msrb.mxu1 %v4601_v10  ;;  %663 = vmatpush.msra.mxu3 %v4551_v1 }
  0x14   :  { %549 = vmatpush.msra.mxu2 %v4556_v2 }
  0x15   :  { %642 = vmatpush.msra.mxu1 %v4579_v6  ;;  %664 = vmatpush.msra.mxu3 %v4563_v3 }
  0x16   :  { %550 = vmatpush.msra.mxu2 %v4573_v5 }
  0x17   :  { %643 = vmatpush.msra.mxu1 %v4601_v10  ;;  %665 = vmatpush.msra.mxu3 %v4584_v7 }
  0x18   :  { %551 = vmatpush.msra.mxu2 %v4596_v9 }
  0x19   :  { %666 = vmatpush.msra.mxu3 %v4606_v11 }
  0x82   :  { %v82_v15 = vpop.f32.mrf.mxu0 }
  0x89   :  { %v192_v20 = vpop.f32.mrf.mxu2 }
  0x8c   :  { %v215_v22 = vpop.f32.mrf.mxu3 }
  0x8d   :  { %v106_v17 = vpop.f32.mrf.mxu1  ;;  %v216_v23 = vadd.f32 %v215_v22, %v192_v20  ;;  %v4011_v20 = vld [vmem:[%s6194_s0 + $0x2] sm:$0x3] }
  0x8e   :  { %v107_v18 = vadd.f32 %v106_v17, %v82_v15  ;;  %4014 = vmatmul.msk.f32.vlgmr.msrb.gmra.mxu2 %vm6210_vm0, %v4011_v20 }
  0x8f   :  { %v222_v24 = vadd.f32 %v4164_v21, %v216_v23  ;;  %778 = vmatpush.msrb.mxu2 %v4546_v0 }
  0x90   :  { %v113_v19 = vadd.f32 %v4163_v16, %v107_v18  ;;  %v54_v16 = vld [vmem:[%s6197_s1] sm:$0x3] }
  0x91   :  { %v4010_v28 = vmul.f32 -1.442695, %v222_v24  ;;  %vm151_vm10 = vcmp.gt.f32.partialorder %v54_v16, 0.0  ;;  %779 = vmatpush.msrb.mxu2 %v4556_v2 }
  0x92   :  { %4196 = vtanh.f32 %v113_v19  ;;  %v4006_v27 = vmul.f32 -1.442695, %v113_v19  ;;  %v152_v17 = vsel %vm151_vm10, 1, %v4454_v34 }
  0x93   :  { %4198 = vtanh.f32 %v222_v24  ;;  %780 = vmatpush.msrb.mxu2 %v4573_v5 }
  0x94   :  { %4200 = vpow2.f32 %v4006_v27 }
  0x95   :  { %4202 = vpow2.f32 %v4010_v28  ;;  %781 = vmatpush.msrb.mxu2 %v4596_v9  ;;  %v4016_v28 = vld [vmem:[%s6194_s0 + $0xc] sm:$0x3] }
  0x96   :  { %4019 = vmatmul.msk.f32.vlgmr.msrb.gmra.mxu3 %vm6210_vm0, %v4016_v28 }
  0x97   :  { %893 = vmatpush.msrb.mxu3 %v4551_v1 }
  0x98   :  { %v4197_v25 = vpop.eup %4196 }
  0x99   :  { %136 = vrot.lane.b32.xlu0 %v4197_v25, %s4453_s26  ;;  %v4199_v26 = vpop.eup %4198  ;;  %894 = vmatpush.msrb.mxu3 %v4563_v3 }
  0x9a   :  { %v4201_v29 = vpop.eup %4200 }
  0x9b   :  { %v117_v30 = vadd.f32 1.0, %v4201_v29  ;;  %v4203_v31 = vpop.eup %4202  ;;  %895 = vmatpush.msrb.mxu3 %v4584_v7 }
  0x9c   :  { %v226_v32 = vadd.f32 1.0, %v4203_v31 }
  0x9d   :  { %4204 = vrcp.f32 %v117_v30  ;;  %v129_v42 = vand.u32 2147483648, %v117_v30  ;;  %vm123_vm2 = vweird.f32 %v117_v30  ;;  %v127_v43 = vand.u32 2147483647, %v117_v30  ;;  %896 = vmatpush.msrb.mxu3 %v4606_v11 }
  0x9e   :  { %4206 = vrcp.f32 %v226_v32  ;;  %v238_v51 = vand.u32 2147483648, %v226_v32  ;;  %vm232_vm6 = vweird.f32 %v226_v32  ;;  %v236_v52 = vand.u32 2147483647, %v226_v32 }
  0x9f   :  { %v130_v46 = vor.u32 1.1754944e-38, %v129_v42  ;;  %vm128_vm4 = vcmp.eq.f32.partialorder %v127_v43, 8.507059e+37 }
  0xa0   :  { %v239_v54 = vor.u32 1.1754944e-38, %v238_v51  ;;  %vm237_vm8 = vcmp.eq.f32.partialorder %v236_v52, 8.507059e+37 }
  0xa1   :  { %245 = vrot.lane.b32.xlu0 %v4199_v26, %s4453_s26 }
  0xa3   :  { %v4205_v33 = vpop.eup %4204 }
  0xa4   :  { %v119_v35 = vmul.f32 %v4205_v33, %v117_v30  ;;  %v4207_v37 = vpop.eup %4206  ;;  %vm124_vm1 = vweird.f32 %v4205_v33 }
  0xa5   :  { %v228_v39 = vmul.f32 %v4207_v37, %v226_v32  ;;  %vm125_vm3 = vmor %vm123_vm2, %vm124_vm1  ;;  %vm233_vm5 = vweird.f32 %v4207_v37  ;;  %v4165_v32 = vld [vmem:[%s6195_s6] ss:$0 sm:$0xff] }
  0xa6   :  { %v120_v36 = vsub.f32 1.0, %v119_v35  ;;  %vm234_vm7 = vmor %vm232_vm6, %vm233_vm5 }
  0xa7   :  { %v229_v41 = vsub.f32 1.0, %v228_v39  ;;  %v4166_v39 = vld [vmem:[%s6196_s7] ss:$0 sm:$0xff] }
  0xa8   :  { %v121_v38 = vmul.f32 %v4205_v33, %v120_v36 }
  0xa9   :  { %v230_v45 = vmul.f32 %v4207_v37, %v229_v41 }
  0xaa   :  { %v122_v40 = vadd.f32 %v4205_v33, %v121_v38 }
  0xab   :  { %v231_v50 = vadd.f32 %v4207_v37, %v230_v45 }
  0xac   :  { %v126_v44 = vsel %vm125_vm3, %v4205_v33, %v122_v40 }
  0xad   :  { %v131_v48 = vsel %vm128_vm4, %v130_v46, %v126_v44  ;;  %v235_v53 = vsel %vm234_vm7, %v4207_v37, %v231_v50 }
  0xae   :  { %v240_v55 = vsel %vm237_vm8, %v239_v54, %v235_v53  ;;  %v134_v60 = vmul.f32 0.0, %v131_v48 }
  0xaf   :  { %v243_v63 = vmul.f32 0.0, %v240_v55 }
 0x10b   :  { %v137_v47 = vpop.permute.xlu0 %136 }
 0x10c   :  { %v139_v49 = vmul.f32 %v137_v47, %v131_v48 }
 0x10e   :  { %141 = vrot.lane.b32.xlu1 %v139_v49, %s4455_s27 }
 0x111   :  { %v326_v31 = vpop.f32.mrf.mxu2 }
 0x113   :  { %v246_v56 = vpop.permute.xlu0 %245 }
 0x114   :  { %v248_v57 = vmul.f32 %v246_v56, %v240_v55 }
 0x116   :  { %250 = vrot.lane.b32.xlu1 %v248_v57, %s4455_s27 }
 0x119   :  { %v438_v38 = vpop.f32.mrf.mxu3 }
 0x11e   :  { %263 = vperm.xlu1 %4161, %v261_v59  }
 0x180   :  { %v142_v61 = vpop.permute.xlu1 %141 }
 0x181   :  { %v4666_v62 = vadd.f32 %v142_v61, %v134_v60 }
 0x183   :  { %4208 = vtanh.f32 %v4666_v62 }
 0x188   :  { %v251_v12 = vpop.permute.xlu1 %250 }
 0x189   :  { %v4209_v13 = vpop.eup %4208  ;;  %v4669_v15 = vadd.f32 %v251_v12, %v243_v63  ;;  %v4012_v63 = vld [vmem:[%s6197_s1 + $0x2] sm:$0x3] }
 0x18a   :  { %147 = vrot.lane.b32.xlu2 %v4209_v13, %s4456_s17  ;;  %vm371_vm4 = vcmp.gt.f32.partialorder %v4012_v63, 0.0 }
 0x18b   :  { %4210 = vtanh.f32 %v4669_v15  ;;  %v372_v16 = vsel %vm371_vm4, 1, %v4454_v34 }
 0x190   :  { %v4695_v24 = vpop.permute.xlu1 %263 }
 0x191   :  { %v4211_v18 = vpop.eup %4210  ;;  %vm265_vm12 = vcmp.eq.s32.totalorder %v4695_v24, 1  ;;  %v4021_v24 = vld [vmem:[%s6194_s0 + $0x4] sm:$0x3] }
 0x192   :  { %256 = vrot.lane.b32.xlu0 %v4211_v18, %s4456_s17  ;;  %154 = vperm.xlu2 %4160, %v152_v17  }
 0x193   :  { %4024 = vmatmul.msk.f32.vlgmr.msra.gmra.mxu2 %vm6210_vm0, %v4021_v24 }
 0x194   :  { %1006 = vmatpush.msra.mxu2 %v4546_v0 }
 0x196   :  { %1007 = vmatpush.msra.mxu2 %v4556_v2  ;;  %v4026_v2 = vld [vmem:[%s6194_s0 + $0xa] sm:$0x3] }
 0x197   :  { %4029 = vmatmul.msk.f32.vlgmr.msra.gmra.mxu3 %vm6210_vm0, %v4026_v2  ;;  %v4027_v2 = vld [vmem:[%s6197_s1 + $0xa] sm:$0x3] }
 0x198   :  { %1008 = vmatpush.msra.mxu2 %v4573_v5  ;;  %1119 = vmatpush.msra.mxu3 %v4551_v1 }
 0x19a   :  { %1009 = vmatpush.msra.mxu2 %v4596_v9  ;;  %1120 = vmatpush.msra.mxu3 %v4563_v3  ;;  %v4167_v3 = vld [vmem:[%s6195_s6] ss:$0 sm:$0xff] }
 0x19c   :  { %1121 = vmatpush.msra.mxu3 %v4584_v7 }
 0x19e   :  { %1122 = vmatpush.msra.mxu3 %v4606_v11 }
 0x1e4   :  { %v148_v19 = vpop.permute.xlu2 %147 }
 0x1e5   :  { %v150_v21 = vmul.f32 %v148_v19, %v131_v48 }
 0x1ec   :  { %v4683_v22 = vpop.permute.xlu2 %154 }
 0x1ed   :  { %vm156_vm11 = vcmp.eq.s32.totalorder %v4683_v22, 1 }
 0x1ee   :  { %v4689_v23 = vsel %vm156_vm11, %v150_v21, 0.0 }
 0x1ef   :  { %160 = vrot.lane.b32.xlu2 %v4689_v23, %s4457_s20 }
 0x204   :  { %v257_v25 = vpop.permute.xlu0 %256 }
 0x205   :  { %v259_v26 = vmul.f32 %v257_v25, %v240_v55 }
 0x207   :  { %v4700_v27 = vsel %vm265_vm12, %v259_v26, 0.0 }
 0x208   :  { %269 = vrot.lane.b32.xlu0 %v4700_v27, %s4457_s20 }
 0x216   :  { %v553_v1 = vpop.f32.mrf.mxu2 }
 0x249   :  { %v161_v29 = vpop.permute.xlu2 %160 }
 0x24a   :  { %164 = vst.msk [vmem:[#allocation2] sm:$0x3] %vm163_vm13, %v161_v29  ;;  %4013 = vmatmul.msk.f32.vlgmr.msrb.gmra.mxu0 %vm61_vm14, %v161_v29 }
 0x24b   :  { %757 = vmatpush.msrb.mxu0 %v4568_v4 }
 0x24d   :  { %758 = vmatpush.msrb.mxu0 %v4589_v8 }
 0x27a   :  { %v270_v30 = vpop.permute.xlu0 %269 }
 0x27b   :  { %273 = vst.msk [vmem:[#allocation3 + $0xe] sm:$0x3] %vm163_vm13, %v270_v30  ;;  %4018 = vmatmul.msk.f32.vlgmr.msrb.gmra.mxu1 %vm61_vm14, %v270_v30 }
 0x27c   :  { %872 = vmatpush.msrb.mxu1 %v4579_v6 }
 0x27e   :  { %873 = vmatpush.msrb.mxu1 %v4601_v10 }
 0x2c7   :  { %v303_v33 = vpop.f32.mrf.mxu0 }
 0x2c8   :  { %v327_v35 = vadd.f32 %v326_v31, %v303_v33  ;;  %v4737_v31 = vsel %vm156_vm11, %v4666_v62, 0.0  ;;  %v4751_v62 = vsel %vm265_vm12, %v4669_v15, 0.0 }
 0x2ca   :  { %v333_v36 = vadd.f32 %v4165_v32, %v327_v35 }
 0x2cc   :  { %4212 = vtanh.f32 %v333_v36  ;;  %v4015_v44 = vmul.f32 -1.442695, %v333_v36 }
 0x2d2   :  { %v4213_v37 = vpop.eup %4212 }
 0x2d3   :  { %356 = vrot.lane.b32.xlu1 %v4213_v37, %s4453_s26  ;;  %v4017_v37 = vld [vmem:[%s6197_s1 + $0xc] sm:$0x3] }
 0x2d4   :  { %vm483_vm9 = vcmp.gt.f32.partialorder %v4017_v37, 0.0 }
 0x2f8   :  { %v415_v40 = vpop.f32.mrf.mxu1 }
 0x2f9   :  { %v439_v41 = vadd.f32 %v438_v38, %v415_v40  ;;  %v484_v38 = vsel %vm483_vm9, 1, %v4454_v34 }
 0x2fb   :  { %v445_v42 = vadd.f32 %v4166_v39, %v439_v41 }
 0x2fd   :  { %4214 = vtanh.f32 %v445_v42  ;;  %v4020_v48 = vmul.f32 -1.442695, %v445_v42 }
 0x2fe   :  { %4216 = vpow2.f32 %v4015_v44 }
 0x303   :  { %v4215_v43 = vpop.eup %4214 }
 0x304   :  { %468 = vrot.lane.b32.xlu2 %v4215_v43, %s4453_s26  ;;  %v4217_v45 = vpop.eup %4216 }
 0x305   :  { %v337_v46 = vadd.f32 1.0, %v4217_v45 }
 0x307   :  { %4218 = vrcp.f32 %v337_v46  ;;  %v349_v55 = vand.u32 2147483648, %v337_v46  ;;  %vm343_vm1 = vweird.f32 %v337_v46  ;;  %v347_v56 = vand.u32 2147483647, %v337_v46 }
 0x308   :  { %4220 = vpow2.f32 %v4020_v48 }
 0x309   :  { %v350_v58 = vor.u32 1.1754944e-38, %v349_v55  ;;  %vm348_vm3 = vcmp.eq.f32.partialorder %v347_v56, 8.507059e+37 }
 0x30d   :  { %v4219_v47 = vpop.eup %4218 }
 0x30e   :  { %v339_v49 = vmul.f32 %v4219_v47, %v337_v46  ;;  %v4221_v52 = vpop.eup %4220  ;;  %vm344_vm15 = vweird.f32 %v4219_v47 }
 0x30f   :  { %v449_v53 = vadd.f32 1.0, %v4221_v52  ;;  %vm345_vm2 = vmor %vm343_vm1, %vm344_vm15 }
 0x310   :  { %v340_v50 = vsub.f32 1.0, %v339_v49 }
 0x311   :  { %4222 = vrcp.f32 %v449_v53  ;;  %v461_v20 = vand.u32 2147483648, %v449_v53  ;;  %vm455_vm6 = vweird.f32 %v449_v53  ;;  %v459_v21 = vand.u32 2147483647, %v449_v53 }
 0x312   :  { %v341_v51 = vmul.f32 %v4219_v47, %v340_v50 }
 0x313   :  { %v462_v26 = vor.u32 1.1754944e-38, %v461_v20  ;;  %vm460_vm8 = vcmp.eq.f32.partialorder %v459_v21, 8.507059e+37  ;;  %v4022_v20 = vld [vmem:[%s6197_s1 + $0x4] sm:$0x3] }
 0x314   :  { %v342_v54 = vadd.f32 %v4219_v47, %v341_v51 }
 0x316   :  { %v346_v57 = vsel %vm345_vm2, %v4219_v47, %v342_v54 }
 0x317   :  { %v351_v60 = vsel %vm348_vm3, %v350_v58, %v346_v57  ;;  %v4223_v12 = vpop.eup %4222  ;;  %vm598_vm3 = vcmp.gt.f32.partialorder %v4022_v20, 0.0 }
 0x318   :  { %v451_v13 = vmul.f32 %v4223_v12, %v449_v53  ;;  %vm456_vm5 = vweird.f32 %v4223_v12  ;;  %v354_v32 = vmul.f32 %v351_v60, %v4737_v31 }
 0x319   :  { %vm457_vm7 = vmor %vm455_vm6, %vm456_vm5 }
 0x31a   :  { %v452_v17 = vsub.f32 1.0, %v451_v13 }
 0x31c   :  { %v453_v18 = vmul.f32 %v4223_v12, %v452_v17 }
 0x31e   :  { %v454_v19 = vadd.f32 %v4223_v12, %v453_v18 }
 0x320   :  { %v458_v25 = vsel %vm457_vm7, %v4223_v12, %v454_v19 }
 0x321   :  { %v463_v28 = vsel %vm460_vm8, %v462_v26, %v458_v25  ;;  %v599_v26 = vsel %vm598_vm3, 1, %v4454_v34  ;;  %vm713_vm8 = vcmp.gt.f32.partialorder %v4027_v2, 0.0 }
 0x322   :  { %v466_v22 = vmul.f32 %v463_v28, %v4751_v62 }
 0x345   :  { %v357_v59 = vpop.permute.xlu1 %356 }
 0x346   :  { %v359_v61 = vmul.f32 %v357_v59, %v351_v60 }
 0x348   :  { %361 = vrot.lane.b32.xlu0 %v359_v61, %s4455_s27 }
 0x350   :  { %374 = vperm.xlu0 %4162, %v372_v16  }
 0x35e   :  { %v469_v29 = vpop.permute.xlu2 %468 }
 0x35f   :  { %v471_v30 = vmul.f32 %v469_v29, %v463_v28 }
 0x361   :  { %473 = vrot.lane.b32.xlu1 %v471_v30, %s4455_s27 }
 0x3ba   :  { %v362_v33 = vpop.permute.xlu0 %361 }
 0x3bb   :  { %v4740_v35 = vadd.f32 %v362_v33, %v354_v32 }
 0x3bd   :  { %4224 = vtanh.f32 %v4740_v35 }
 0x3c2   :  { %v4758_v42 = vpop.permute.xlu0 %374 }
 0x3c3   :  { %v4225_v36 = vpop.eup %4224  ;;  %vm376_vm10 = vcmp.eq.s32.totalorder %v4758_v42, 1 }
 0x3c4   :  { %367 = vrot.lane.b32.xlu2 %v4225_v36, %s4456_s17 }
 0x3cc   :  { %486 = vperm.xlu2 %4160, %v484_v38  }
 0x3d3   :  { %v474_v39 = vpop.permute.xlu1 %473 }
 0x3d4   :  { %v4754_v40 = vadd.f32 %v474_v39, %v466_v22 }
 0x3d6   :  { %4226 = vtanh.f32 %v4754_v40 }
 0x3dc   :  { %v4227_v41 = vpop.eup %4226 }
 0x3dd   :  { %479 = vrot.lane.b32.xlu1 %v4227_v41, %s4456_s17  ;;  %v4825_v41 = vsel %vm376_vm10, %v4740_v35, %v4737_v31 }
 0x41e   :  { %v368_v43 = vpop.permute.xlu2 %367 }
 0x41f   :  { %v4760_v44 = vmul.f32 %v368_v43, %v351_v60 }
 0x421   :  { %v4767_v15 = vsel %vm376_vm10, %v4760_v44, %v4689_v23 }
 0x422   :  { %509 = vrot.lane.b32.xlu1 %v4767_v15, %s4457_s20 }
 0x426   :  { %v4779_v45 = vpop.permute.xlu2 %486 }
 0x427   :  { %vm488_vm11 = vcmp.eq.s32.totalorder %v4779_v45, 1 }
 0x428   :  { %v4840_v31 = vsel %vm488_vm11, %v4754_v40, %v4751_v62  ;;  %v4031_v40 = vld [vmem:[%s6194_s0 + $0x6] sm:$0x3] }
 0x429   :  { %4034 = vmatmul.msk.f32.vlgmr.msrb.gmra.mxu2 %vm6210_vm0, %v4031_v40 }
 0x44f   :  { %v480_v23 = vpop.permute.xlu1 %479 }
 0x450   :  { %v482_v46 = vmul.f32 %v480_v23, %v463_v28 }
 0x452   :  { %v4785_v47 = vsel %vm488_vm11, %v482_v46, %v4700_v27  ;;  %v4789_v0 = vsel %vm488_vm11, %v482_v46, 0.0 }
 0x453   :  { %624 = vrot.lane.b32.xlu2 %v4785_v47, %s4457_s20 }
 0x494   :  { %v510_v5 = vpop.permute.xlu1 %509 }
 0x495   :  { %4023 = vmatmul.msk.f32.vlgmr.msra.gmra.mxu0 %vm61_vm14, %v510_v5  ;;  %v714_v5 = vsel %vm713_vm8, 1, %v4454_v34 }
 0x496   :  { %985 = vmatpush.msra.mxu0 %v4568_v4  ;;  %v668_v4 = vpop.f32.mrf.mxu3 }
 0x498   :  { %986 = vmatpush.msra.mxu0 %v4589_v8  ;;  %v4168_v8 = vld [vmem:[%s6196_s7] ss:$0 sm:$0xff] }
 0x4ad   :  { %v625_v9 = vpop.permute.xlu2 %624 }
 0x4ae   :  { %4028 = vmatmul.msk.f32.vlgmr.msra.gmra.mxu1 %vm61_vm14, %v625_v9 }
 0x4af   :  { %1098 = vmatpush.msra.mxu1 %v4579_v6 }
 0x4b1   :  { %1099 = vmatpush.msra.mxu1 %v4601_v10 }
 0x512   :  { %v530_v7 = vpop.f32.mrf.mxu0 }
 0x513   :  { %v554_v11 = vadd.f32 %v553_v1, %v530_v7 }
 0x515   :  { %v560_v27 = vadd.f32 %v4167_v3, %v554_v11 }
 0x517   :  { %4228 = vtanh.f32 %v560_v27  ;;  %v4025_v51 = vmul.f32 -1.442695, %v560_v27 }
 0x51d   :  { %v4229_v48 = vpop.eup %4228 }
 0x51e   :  { %583 = vrot.lane.b32.xlu0 %v4229_v48, %s4453_s26 }
 0x52b   :  { %v645_v6 = vpop.f32.mrf.mxu1 }
 0x52c   :  { %v669_v49 = vadd.f32 %v668_v4, %v645_v6  ;;  %v4036_v6 = vld [vmem:[%s6194_s0 + $0x8] sm:$0x3] }
 0x52d   :  { %4039 = vmatmul.msk.f32.vlgmr.msrb.gmra.mxu3 %vm6210_vm0, %v4036_v6 }
 0x52e   :  { %v675_v10 = vadd.f32 %v4168_v8, %v669_v49 }
 0x530   :  { %4230 = vtanh.f32 %v675_v10  ;;  %v4030_v55 = vmul.f32 -1.442695, %v675_v10 }
 0x531   :  { %4232 = vpow2.f32 %v4025_v51 }
 0x536   :  { %v4231_v50 = vpop.eup %4230 }
 0x537   :  { %698 = vrot.lane.b32.xlu1 %v4231_v50, %s4453_s26  ;;  %v4233_v52 = vpop.eup %4232  ;;  %v4169_v50 = vld [vmem:[%s6195_s6] ss:$0 sm:$0xff] }
 0x538   :  { %v564_v53 = vadd.f32 1.0, %v4233_v52 }
 0x53a   :  { %4234 = vrcp.f32 %v564_v53  ;;  %v576_v63 = vand.u32 2147483648, %v564_v53  ;;  %vm570_vm15 = vweird.f32 %v564_v53  ;;  %v574_v12 = vand.u32 2147483647, %v564_v53 }
 0x53b   :  { %4236 = vpow2.f32 %v4030_v55 }
 0x53c   :  { %v577_v16 = vor.u32 1.1754944e-38, %v576_v63  ;;  %vm575_vm2 = vcmp.eq.f32.partialorder %v574_v12, 8.507059e+37 }
 0x540   :  { %v4235_v54 = vpop.eup %4234 }
 0x541   :  { %v566_v56 = vmul.f32 %v4235_v54, %v564_v53  ;;  %v4237_v59 = vpop.eup %4236  ;;  %vm571_vm12 = vweird.f32 %v4235_v54 }
 0x542   :  { %v679_v60 = vadd.f32 1.0, %v4237_v59  ;;  %vm572_vm1 = vmor %vm570_vm15, %vm571_vm12 }
 0x543   :  { %v567_v57 = vsub.f32 1.0, %v566_v56  ;;  %v4170_v56 = vld [vmem:[%s6196_s7] ss:$0 sm:$0xff] }
 0x544   :  { %4238 = vrcp.f32 %v679_v60  ;;  %v691_v32 = vand.u32 2147483648, %v679_v60  ;;  %vm685_vm5 = vweird.f32 %v679_v60  ;;  %v689_v33 = vand.u32 2147483647, %v679_v60 }
 0x545   :  { %v568_v58 = vmul.f32 %v4235_v54, %v567_v57 }
 0x546   :  { %v692_v37 = vor.u32 1.1754944e-38, %v691_v32  ;;  %vm690_vm7 = vcmp.eq.f32.partialorder %v689_v33, 8.507059e+37  ;;  %v4032_v32 = vld [vmem:[%s6197_s1 + $0x6] sm:$0x3] }
 0x547   :  { %v569_v61 = vadd.f32 %v4235_v54, %v568_v58  ;;  %vm828_vm3 = vcmp.gt.f32.partialorder %v4032_v32, 0.0 }
 0x549   :  { %v573_v13 = vsel %vm572_vm1, %v4235_v54, %v569_v61 }
 0x54a   :  { %v578_v18 = vsel %vm575_vm2, %v577_v16, %v573_v13  ;;  %v4239_v21 = vpop.eup %4238 }
 0x54b   :  { %v681_v25 = vmul.f32 %v4239_v21, %v679_v60  ;;  %vm686_vm4 = vweird.f32 %v4239_v21  ;;  %v581_v43 = vmul.f32 %v578_v18, %v4825_v41 }
 0x54c   :  { %vm687_vm6 = vmor %vm685_vm5, %vm686_vm4 }
 0x54d   :  { %v682_v28 = vsub.f32 1.0, %v681_v25 }
 0x54f   :  { %v683_v29 = vmul.f32 %v4239_v21, %v682_v28 }
 0x551   :  { %v684_v30 = vadd.f32 %v4239_v21, %v683_v29 }
 0x553   :  { %v688_v36 = vsel %vm687_vm6, %v4239_v21, %v684_v30 }
 0x554   :  { %v693_v22 = vsel %vm690_vm7, %v692_v37, %v688_v36  ;;  %v829_v36 = vsel %vm828_vm3, 1, %v4454_v34 }
 0x555   :  { %v696_v35 = vmul.f32 %v693_v22, %v4840_v31 }
 0x590   :  { %v584_v17 = vpop.permute.xlu0 %583 }
 0x591   :  { %v586_v19 = vmul.f32 %v584_v17, %v578_v18 }
 0x593   :  { %588 = vrot.lane.b32.xlu2 %v586_v19, %s4455_s27 }
 0x59b   :  { %601 = vperm.xlu2 %4160, %v599_v26  }
 0x5a9   :  { %v699_v38 = vpop.permute.xlu1 %698 }
 0x5aa   :  { %v701_v39 = vmul.f32 %v699_v38, %v693_v22 }
 0x5ac   :  { %703 = vrot.lane.b32.xlu0 %v701_v39, %s4455_s27 }
 0x5b0   :  { %v898_v55 = vpop.f32.mrf.mxu3 }
 0x5ed   :  { %v589_v24 = vpop.permute.xlu2 %588 }
 0x5ee   :  { %v4828_v23 = vadd.f32 %v589_v24, %v581_v43 }
 0x5f0   :  { %4240 = vtanh.f32 %v4828_v23 }
 0x5f5   :  { %v4847_v7 = vpop.permute.xlu2 %601 }
 0x5f6   :  { %v4241_v46 = vpop.eup %4240  ;;  %vm603_vm9 = vcmp.eq.s32.totalorder %v4847_v7, 1 }
 0x5f7   :  { %594 = vrot.lane.b32.xlu1 %v4241_v46, %s4456_s17 }
 0x5ff   :  { %716 = vperm.xlu1 %4161, %v714_v5  }
 0x61e   :  { %v704_v9 = vpop.permute.xlu0 %703 }
 0x61f   :  { %v4843_v1 = vadd.f32 %v704_v9, %v696_v35 }
 0x621   :  { %4242 = vtanh.f32 %v4843_v1 }
 0x627   :  { %v4243_v3 = vpop.eup %4242 }
 0x628   :  { %709 = vrot.lane.b32.xlu0 %v4243_v3, %s4456_s17 }
 0x669   :  { %v595_v11 = vpop.permute.xlu1 %594 }
 0x66a   :  { %v4849_v27 = vmul.f32 %v595_v11, %v578_v18 }
 0x66c   :  { %v4856_v62 = vsel %vm603_vm9, %v4849_v27, %v4767_v15 }
 0x66d   :  { %739 = vrot.lane.b32.xlu2 %v4856_v62, %s4457_s20 }
 0x671   :  { %v4864_v45 = vpop.permute.xlu1 %716 }
 0x672   :  { %vm718_vm11 = vcmp.eq.s32.totalorder %v4864_v45, 1 }
 0x69a   :  { %v710_v48 = vpop.permute.xlu0 %709 }
 0x69b   :  { %v712_v4 = vmul.f32 %v710_v48, %v693_v22  ;;  %v4902_v48 = vsel %vm603_vm9, %v4828_v23, %v4825_v41  ;;  %v4917_v41 = vsel %vm718_vm11, %v4843_v1, %v4840_v31  ;;  %v4041_v1 = vld [vmem:[%s6194_s0 + $0x8] sm:$0x3] }
 0x69c   :  { %4044 = vmatmul.msk.f32.vlgmr.msra.gmra.mxu2 %vm6210_vm0, %v4041_v1 }
 0x69d   :  { %v4870_v15 = vsel %vm718_vm11, %v712_v4, %v4785_v47  ;;  %v4874_v8 = vsel %vm718_vm11, %v712_v4, 0.0  ;;  %v783_v47 = vpop.f32.mrf.mxu2 }
 0x69e   :  { %854 = vrot.lane.b32.xlu0 %v4870_v15, %s4457_s20 }
 0x6c7   :  { %v740_v49 = vpop.permute.xlu2 %739 }
 0x6c8   :  { %4033 = vmatmul.msk.f32.vlgmr.msrb.gmra.mxu0 %vm61_vm14, %v740_v49 }
 0x710   :  { %v855_v10 = vpop.permute.xlu0 %854 }
 0x711   :  { %4038 = vmatmul.msk.f32.vlgmr.msrb.gmra.mxu1 %vm61_vm14, %v855_v10 }
 0x745   :  { %v760_v51 = vpop.f32.mrf.mxu0 }
 0x746   :  { %v784_v52 = vadd.f32 %v783_v47, %v760_v51  ;;  %v4037_v47 = vld [vmem:[%s6197_s1 + $0x8] sm:$0x3] }
 0x747   :  { %vm943_vm8 = vcmp.gt.f32.partialorder %v4037_v47, 0.0 }
 0x748   :  { %v790_v53 = vadd.f32 %v4169_v50, %v784_v52  ;;  %v944_v50 = vsel %vm943_vm8, 1, %v4454_v34 }
 0x74a   :  { %4244 = vtanh.f32 %v790_v53  ;;  %v4035_v60 = vmul.f32 -1.442695, %v790_v53 }
 0x750   :  { %v4245_v54 = vpop.eup %4244 }
 0x751   :  { %813 = vrot.lane.b32.xlu1 %v4245_v54, %s4453_s26 }
 0x78e   :  { %v875_v57 = vpop.f32.mrf.mxu1 }
 0x78f   :  { %v899_v58 = vadd.f32 %v898_v55, %v875_v57 }
 0x791   :  { %v905_v59 = vadd.f32 %v4170_v56, %v899_v58 }
 0x793   :  { %4246 = vtanh.f32 %v905_v59  ;;  %v4040_v33 = vmul.f32 -1.442695, %v905_v59  ;;  %v4046_v59 = vld [vmem:[%s6194_s0 + $0x6] sm:$0x3] }
 0x794   :  { %4248 = vpow2.f32 %v4035_v60  ;;  %4049 = vmatmul.msk.f32.vlgmr.msra.gmra.mxu3 %vm6210_vm0, %v4046_v59 }
 0x799   :  { %v4247_v61 = vpop.eup %4246 }
 0x79a   :  { %928 = vrot.lane.b32.xlu2 %v4247_v61, %s4453_s26  ;;  %v4249_v63 = vpop.eup %4248 }
 0x79b   :  { %v794_v12 = vadd.f32 1.0, %v4249_v63  ;;  %v1011_v63 = vpop.f32.mrf.mxu2 }
 0x79d   :  { %4250 = vrcp.f32 %v794_v12  ;;  %v806_v20 = vand.u32 2147483648, %v794_v12  ;;  %vm800_vm15 = vweird.f32 %v794_v12  ;;  %v804_v21 = vand.u32 2147483647, %v794_v12 }
 0x79e   :  { %4252 = vpow2.f32 %v4040_v33 }
 0x79f   :  { %v807_v26 = vor.u32 1.1754944e-38, %v806_v20  ;;  %vm805_vm2 = vcmp.eq.f32.partialorder %v804_v21, 8.507059e+37 }
 0x7a3   :  { %v4251_v13 = vpop.eup %4250 }
 0x7a4   :  { %v796_v16 = vmul.f32 %v4251_v13, %v794_v12  ;;  %vm801_vm12 = vweird.f32 %v4251_v13  ;;  %v4253_v37 = vpop.eup %4252 }
 0x7a5   :  { %vm802_vm1 = vmor %vm800_vm15, %vm801_vm12  ;;  %v909_v38 = vadd.f32 1.0, %v4253_v37 }
 0x7a6   :  { %v797_v17 = vsub.f32 1.0, %v796_v16 }
 0x7a7   :  { %4254 = vrcp.f32 %v909_v38  ;;  %v921_v2 = vand.u32 2147483648, %v909_v38  ;;  %vm915_vm5 = vweird.f32 %v909_v38  ;;  %v919_v5 = vand.u32 2147483647, %v909_v38 }
 0x7a8   :  { %v798_v18 = vmul.f32 %v4251_v13, %v797_v17 }
 0x7a9   :  { %v922_v9 = vor.u32 1.1754944e-38, %v921_v2  ;;  %vm920_vm7 = vcmp.eq.f32.partialorder %v919_v5, 8.507059e+37 }
 0x7aa   :  { %v799_v19 = vadd.f32 %v4251_v13, %v798_v18 }
 0x7ac   :  { %v803_v25 = vsel %vm802_vm1, %v4251_v13, %v799_v19 }
 0x7ad   :  { %v808_v29 = vsel %vm805_vm2, %v807_v26, %v803_v25  ;;  %v4255_v22 = vpop.eup %4254  ;;  %v4172_v25 = vld [vmem:[%s6196_s7] ss:$0 sm:$0xff] }
 0x7ae   :  { %v911_v39 = vmul.f32 %v4255_v22, %v909_v38  ;;  %vm916_vm4 = vweird.f32 %v4255_v22  ;;  %v811_v4 = vmul.f32 %v808_v29, %v4902_v48 }
 0x7af   :  { %vm917_vm6 = vmor %vm915_vm5, %vm916_vm4 }
 0x7b0   :  { %v912_v43 = vsub.f32 1.0, %v911_v39 }
 0x7b2   :  { %v913_v24 = vmul.f32 %v4255_v22, %v912_v43 }
 0x7b4   :  { %v914_v46 = vadd.f32 %v4255_v22, %v913_v24 }
 0x7b6   :  { %v918_v35 = vsel %vm917_vm6, %v4255_v22, %v914_v46 }
 0x7b7   :  { %v923_v3 = vsel %vm920_vm7, %v922_v9, %v918_v35  ;;  %v4042_v35 = vld [vmem:[%s6197_s1 + $0x8] sm:$0x3] }
 0x7b8   :  { %v926_v23 = vmul.f32 %v923_v3, %v4917_v41  ;;  %vm1056_vm4 = vcmp.gt.f32.partialorder %v4042_v35, 0.0  ;;  %v4056_v35 = vld [vmem:[%s6194_s0 + $0x4] sm:$0x3] }
 0x7b9   :  { %v1057_v9 = vsel %vm1056_vm4, 1, %v4454_v34 }
 0x7c3   :  { %v814_v28 = vpop.permute.xlu1 %813 }
 0x7c4   :  { %v816_v30 = vmul.f32 %v814_v28, %v808_v29 }
 0x7c6   :  { %818 = vrot.lane.b32.xlu0 %v816_v30, %s4455_s27 }
 0x7ce   :  { %831 = vperm.xlu0 %4162, %v829_v36  }
 0x7f4   :  { %v929_v11 = vpop.permute.xlu2 %928 }
 0x7f5   :  { %v931_v40 = vmul.f32 %v929_v11, %v923_v3 }
 0x7f7   :  { %933 = vrot.lane.b32.xlu1 %v931_v40, %s4455_s27 }
 0x817   :  { %v1124_v21 = vpop.f32.mrf.mxu3 }
 0x838   :  { %v819_v6 = vpop.permute.xlu0 %818 }
 0x839   :  { %v4905_v49 = vadd.f32 %v819_v6, %v811_v4 }
 0x83b   :  { %4256 = vtanh.f32 %v4905_v49 }
 0x840   :  { %v4924_v54 = vpop.permute.xlu0 %831 }
 0x841   :  { %v4257_v10 = vpop.eup %4256  ;;  %vm833_vm12 = vcmp.eq.s32.totalorder %v4924_v54, 1 }
 0x842   :  { %824 = vrot.lane.b32.xlu2 %v4257_v10, %s4456_s17 }
 0x84a   :  { %946 = vperm.xlu2 %4160, %v944_v50  }
 0x869   :  { %v934_v51 = vpop.permute.xlu1 %933 }
 0x86a   :  { %v4920_v52 = vadd.f32 %v934_v51, %v926_v23 }
 0x86c   :  { %4258 = vtanh.f32 %v4920_v52 }
 0x872   :  { %v4259_v53 = vpop.eup %4258 }
 0x873   :  { %939 = vrot.lane.b32.xlu1 %v4259_v53, %s4456_s17 }
 0x89c   :  { %v825_v55 = vpop.permute.xlu2 %824 }
 0x89d   :  { %v4926_v56 = vmul.f32 %v825_v55, %v808_v29 }
 0x89f   :  { %v4933_v31 = vsel %vm833_vm12, %v4926_v56, %v4856_v62 }
 0x8a0   :  { %967 = vrot.lane.b32.xlu0 %v4933_v31, %s4457_s20 }
 0x8a4   :  { %v4941_v45 = vpop.permute.xlu2 %946 }
 0x8a5   :  { %vm948_vm11 = vcmp.eq.s32.totalorder %v4941_v45, 1 }
 0x8e5   :  { %v940_v57 = vpop.permute.xlu1 %939 }
 0x8e6   :  { %v4943_v58 = vmul.f32 %v940_v57, %v923_v3 }
 0x8e8   :  { %v4950_v62 = vsel %vm948_vm11, %v4943_v58, %v4870_v15  ;;  %v4171_v15 = vld [vmem:[%s6195_s6] ss:$0 sm:$0xff] }
 0x8e9   :  { %1080 = vrot.lane.b32.xlu1 %v4950_v62, %s4457_s20 }
 0x912   :  { %v968_v60 = vpop.permute.xlu0 %967 }
 0x913   :  { %4043 = vmatmul.msk.f32.vlgmr.msra.gmra.mxu0 %vm61_vm14, %v968_v60  ;;  %v4978_v60 = vsel %vm833_vm12, %v4905_v49, %v4902_v48  ;;  %v951_v48 = vsel %vm948_vm11, %v4920_v52, %v4917_v41 }
 0x95b   :  { %v1081_v61 = vpop.permute.xlu1 %1080 }
 0x95c   :  { %4048 = vmatmul.msk.f32.vlgmr.msra.gmra.mxu1 %vm61_vm14, %v1081_v61 }
 0x990   :  { %v988_v12 = vpop.f32.mrf.mxu0 }
 0x991   :  { %v1012_v13 = vadd.f32 %v1011_v63, %v988_v12 }
 0x993   :  { %v1018_v16 = vadd.f32 %v4171_v15, %v1012_v13  ;;  %v4047_v13 = vld [vmem:[%s6197_s1 + $0x6] sm:$0x3] }
 0x995   :  { %4260 = vtanh.f32 %v1018_v16  ;;  %v4045_v18 = vmul.f32 -1.442695, %v1018_v16 }
 0x997   :  { %4262 = vpow2.f32 %v4045_v18 }
 0x99b   :  { %v4261_v17 = vpop.eup %4260 }
 0x99c   :  { %1041 = vrot.lane.b32.xlu2 %v4261_v17, %s4453_s26 }
 0x99d   :  { %v4263_v19 = vpop.eup %4262 }
 0x99e   :  { %v1022_v20 = vadd.f32 1.0, %v4263_v19 }
 0x9a0   :  { %4264 = vrcp.f32 %v1022_v20  ;;  %v1034_v22 = vand.u32 2147483648, %v1022_v20  ;;  %vm1028_vm1 = vweird.f32 %v1022_v20  ;;  %v1032_v39 = vand.u32 2147483647, %v1022_v20 }
 0x9a2   :  { %v1035_v24 = vor.u32 1.1754944e-38, %v1034_v22  ;;  %vm1033_vm3 = vcmp.eq.f32.partialorder %v1032_v39, 8.507059e+37 }
 0x9a6   :  { %v4265_v30 = vpop.eup %4264 }
 0x9a7   :  { %v1024_v32 = vmul.f32 %v4265_v30, %v1022_v20  ;;  %vm1029_vm15 = vweird.f32 %v4265_v30 }
 0x9a8   :  { %vm1030_vm2 = vmor %vm1028_vm1, %vm1029_vm15  ;;  %vm1169_vm15 = vcmp.gt.f32.partialorder %v4047_v13, 0.0 }
 0x9a9   :  { %v1025_v36 = vsub.f32 1.0, %v1024_v32  ;;  %v1170_v16 = vsel %vm1169_vm15, 1, %v4454_v34  ;;  %v1190_v32 = vld [vmem:[%s6192_s4] sm:$0xff] }
 0x9ab   :  { %v1026_v37 = vmul.f32 %v4265_v30, %v1025_v36  ;;  %v4051_v36 = vld [vmem:[%s6194_s0 + $0xa] sm:$0x3] }
 0x9ad   :  { %v1027_v38 = vadd.f32 %v4265_v30, %v1026_v37 }
 0x9af   :  { %v1031_v43 = vsel %vm1030_vm2, %v4265_v30, %v1027_v38  ;;  %v1187_v30 = vld [vmem:[%s6213_s23 + $0x8] sm:$0xff] }
 0x9b0   :  { %v1036_v46 = vsel %vm1033_vm3, %v1035_v24, %v1031_v43  ;;  %v1302_v43 = vld [vmem:[%s6191_s3 + $0x18] sm:$0xff]  ;;  %v1301_v24 = vld [vmem:[%s6191_s3 + $0x10] sm:$0xff] }
 0x9b1   :  { %v1039_v61 = vmul.f32 %v1036_v46, %v4978_v60  ;;  %1345 = vmatpush.msrb.mxu3 %v1302_v43 }
 0x9b3   :  { %1346 = vmatpush.msrb.mxu3 %v1301_v24 }
 0x9d9   :  { %v1101_v26 = vpop.f32.mrf.mxu1 }
 0x9da   :  { %v1125_v28 = vadd.f32 %v1124_v21, %v1101_v26 }
 0x9dc   :  { %v1131_v29 = vadd.f32 %v4172_v25, %v1125_v28  ;;  %v1189_v28 = vld [vmem:[%s6213_s23 + $0x18] sm:$0xff] }
 0x9dd   :  { %1232 = vmatpush.msrb.mxu2 %v1189_v28 }
 0x9de   :  { %4266 = vtanh.f32 %v1131_v29  ;;  %v4050_v3 = vmul.f32 -1.442695, %v1131_v29  ;;  %v1188_v29 = vld [vmem:[%s6213_s23 + $0x10] sm:$0xff] }
 0x9df   :  { %1233 = vmatpush.msrb.mxu2 %v1188_v29 }
 0x9e0   :  { %4268 = vpow2.f32 %v4050_v3 }
 0x9e1   :  { %1234 = vmatpush.msrb.mxu2 %v1187_v30 }
 0x9e4   :  { %v4267_v33 = vpop.eup %4266 }
 0x9e5   :  { %1154 = vrot.lane.b32.xlu0 %v4267_v33, %s4453_s26  ;;  %v1186_v33 = vld [vmem:[%s6213_s23] sm:$0xff] }
 0x9e6   :  { %v4269_v11 = vpop.eup %4268  ;;  %1235 = vmatpush.msrb.mxu2 %v1186_v33 }
 0x9e7   :  { %v1135_v40 = vadd.f32 1.0, %v4269_v11  ;;  %4054 = vmatmul.msk.f32.vlgmr.msrb.gmra.mxu2 %vm6210_vm0, %v4051_v36 }
 0x9e8   :  { %1458 = vmatpush.msra.mxu2 %v1189_v28 }
 0x9e9   :  { %4270 = vrcp.f32 %v1135_v40  ;;  %v1147_v23 = vand.u32 2147483648, %v1135_v40  ;;  %vm1141_vm6 = vweird.f32 %v1135_v40  ;;  %v1145_v51 = vand.u32 2147483647, %v1135_v40 }
 0x9ea   :  { %1459 = vmatpush.msra.mxu2 %v1188_v29 }
 0x9eb   :  { %v1148_v55 = vor.u32 1.1754944e-38, %v1147_v23  ;;  %vm1146_vm8 = vcmp.eq.f32.partialorder %v1145_v51, 8.507059e+37  ;;  %v4174_v23 = vld [vmem:[%s6196_s7] ss:$0 sm:$0xff] }
 0x9ec   :  { %1460 = vmatpush.msra.mxu2 %v1187_v30 }
 0x9ee   :  { %1461 = vmatpush.msra.mxu2 %v1186_v33 }
 0x9ef   :  { %v4271_v4 = vpop.eup %4270 }
 0x9f0   :  { %v1137_v6 = vmul.f32 %v4271_v4, %v1135_v40  ;;  %vm1142_vm5 = vweird.f32 %v4271_v4  ;;  %1684 = vmatpush.msrb.mxu2 %v1189_v28  ;;  %v4173_v40 = vld [vmem:[%s6195_s6] ss:$0 sm:$0xff] }
 0x9f1   :  { %vm1143_vm7 = vmor %vm1141_vm6, %vm1142_vm5 }
 0x9f2   :  { %v1138_v10 = vsub.f32 1.0, %v1137_v6  ;;  %1685 = vmatpush.msrb.mxu2 %v1188_v29 }
 0x9f4   :  { %v1139_v47 = vmul.f32 %v4271_v4, %v1138_v10  ;;  %1686 = vmatpush.msrb.mxu2 %v1187_v30 }
 0x9f6   :  { %v1042_v2 = vpop.permute.xlu2 %1041  ;;  %v1140_v50 = vadd.f32 %v4271_v4, %v1139_v47  ;;  %1687 = vmatpush.msrb.mxu2 %v1186_v33 }
 0x9f7   :  { %v1044_v5 = vmul.f32 %v1042_v2, %v1036_v46  ;;  %v1303_v2 = vld [vmem:[%s6193_s5] sm:$0xff] }
 0x9f8   :  { %v1144_v53 = vsel %vm1143_vm7, %v4271_v4, %v1140_v50 }
 0x9f9   :  { %1046 = vrot.lane.b32.xlu1 %v1044_v5, %s4455_s27  ;;  %v1149_v57 = vsel %vm1146_vm8, %v1148_v55, %v1144_v53  ;;  %v1299_v5 = vld [vmem:[%s6191_s3] sm:$0xff] }
 0x9fa   :  { %v1152_v49 = vmul.f32 %v1149_v57, %v951_v48 }
 0xa01   :  { %1059 = vperm.xlu1 %4161, %v1057_v9  }
 0xa57   :  { %v1155_v1 = vpop.permute.xlu0 %1154 }
 0xa58   :  { %v1157_v59 = vmul.f32 %v1155_v1, %v1149_v57 }
 0xa5a   :  { %1159 = vrot.lane.b32.xlu2 %v1157_v59, %s4455_s27 }
 0xa6a   :  { %v1237_v11 = vpop.f32.mrf.mxu2 }
 0xa6b   :  { %v1047_v63 = vpop.permute.xlu1 %1046 }
 0xa6c   :  { %v4981_v15 = vadd.f32 %v1047_v63, %v1039_v61 }
 0xa6e   :  { %4272 = vtanh.f32 %v4981_v15 }
 0xa73   :  { %v4994_v20 = vpop.permute.xlu1 %1059 }
 0xa74   :  { %v4273_v12 = vpop.eup %4272  ;;  %vm1061_vm1 = vcmp.eq.s32.totalorder %v4994_v20, 1 }
 0xa75   :  { %1052 = vrot.lane.b32.xlu0 %v4273_v12, %s4456_s17 }
 0xa7d   :  { %1172 = vperm.xlu0 %4162, %v1170_v16  }
 0xab4   :  { %v1160_v17 = vpop.permute.xlu2 %1159 }
 0xab5   :  { %v1162_v18 = vadd.f32 %v1160_v17, %v1152_v49 }
 0xab7   :  { %4274 = vtanh.f32 %v1162_v18 }
 0xabd   :  { %v4275_v19 = vpop.eup %4274 }
 0xabe   :  { %1165 = vrot.lane.b32.xlu2 %v4275_v19, %s4456_s17 }
 0xae7   :  { %v1053_v21 = vpop.permute.xlu0 %1052 }
 0xae8   :  { %v4996_v25 = vmul.f32 %v1053_v21, %v1036_v46  ;;  %v1300_v46 = vld [vmem:[%s6191_s3 + $0x8] sm:$0xff] }
 0xae9   :  { %1347 = vmatpush.msrb.mxu3 %v1300_v46 }
 0xaea   :  { %v5003_v26 = vsel %vm1061_vm1, %v4996_v25, %v4933_v31  ;;  %v1191_v31 = vld [vmem:[%s6192_s4 + $0x8] sm:$0xff] }
 0xaeb   :  { %1193 = vrot.lane.b32.xlu1 %v5003_v26, %s4457_s20  ;;  %1211 = vmatpush.msrb.mxu0 %v1191_v31 }
 0xaec   :  { %1348 = vmatpush.msrb.mxu3 %v1299_v5 }
 0xaed   :  { %1212 = vmatpush.msrb.mxu0 %v1190_v32  ;;  %4059 = vmatmul.msk.f32.vlgmr.msrb.gmra.mxu3 %vm6210_vm0, %v4056_v35 }
 0xaee   :  { %1571 = vmatpush.msra.mxu3 %v1302_v43 }
 0xaef   :  { %v1173_v41 = vpop.permute.xlu0 %1172  ;;  %1437 = vmatpush.msra.mxu0 %v1191_v31 }
 0xaf0   :  { %vm1174_vm2 = vcmp.eq.s32.totalorder %v1173_v41, 1  ;;  %1572 = vmatpush.msra.mxu3 %v1301_v24 }
 0xaf1   :  { %v5008_v52 = vsel %vm1174_vm2, %v1162_v18, %v951_v48  ;;  %1438 = vmatpush.msra.mxu0 %v1190_v32 }
 0xaf2   :  { %1573 = vmatpush.msra.mxu3 %v1300_v46 }
 0xaf4   :  { %1574 = vmatpush.msra.mxu3 %v1299_v5 }
 0xaf6   :  { %1795 = vmatpush.msrb.mxu3 %v1302_v43 }
 0xaf8   :  { %1796 = vmatpush.msrb.mxu3 %v1301_v24 }
 0xafa   :  { %1797 = vmatpush.msrb.mxu3 %v1300_v46 }
 0xafc   :  { %1798 = vmatpush.msrb.mxu3 %v1299_v5 }
 0xb18   :  { %v1166_v37 = vpop.permute.xlu2 %1165 }
 0xb19   :  { %v1168_v38 = vmul.f32 %v1166_v37, %v1149_v57 }
 0xb1b   :  { %v5034_v22 = vsel %vm1174_vm2, %v1168_v38, %v4950_v62  ;;  %v5037_v39 = vsel %vm1174_vm2, %v1168_v38, 0.0  ;;  %v1304_v62 = vld [vmem:[%s6193_s5 + $0x8] sm:$0xff] }
 0xb1c   :  { %1306 = vrot.lane.b32.xlu2 %v5034_v22, %s4457_s20  ;;  %1324 = vmatpush.msrb.mxu1 %v1304_v62 }
 0xb1e   :  { %1325 = vmatpush.msrb.mxu1 %v1303_v2 }
 0xb20   :  { %1550 = vmatpush.msra.mxu1 %v1304_v62 }
 0xb22   :  { %1551 = vmatpush.msra.mxu1 %v1303_v2 }
 0xb5d   :  { %v1194_v9 = vpop.permute.xlu1 %1193 }
 0xb5e   :  { %4053 = vmatmul.msk.f32.vlgmr.msrb.gmra.mxu0 %vm61_vm14, %v1194_v9 }
 0xb5f   :  { %1663 = vmatpush.msrb.mxu0 %v1191_v31 }
 0xb61   :  { %1664 = vmatpush.msrb.mxu0 %v1190_v32  ;;  %v4052_v32 = vld [vmem:[%s6197_s1 + $0xa] sm:$0x3] }
 0xb62   :  { %vm1282_vm7 = vcmp.gt.f32.partialorder %v4052_v32, 0.0 }
 0xb63   :  { %v1283_v37 = vsel %vm1282_vm7, 1, %v4454_v34 }
 0xb70   :  { %v1350_v50 = vpop.f32.mrf.mxu3 }
 0xb76   :  { %v1307_v3 = vpop.permute.xlu2 %1306 }
 0xb77   :  { %4058 = vmatmul.msk.f32.vlgmr.msrb.gmra.mxu1 %vm61_vm14, %v1307_v3 }
 0xb78   :  { %1774 = vmatpush.msrb.mxu1 %v1304_v62 }
 0xb7a   :  { %1775 = vmatpush.msrb.mxu1 %v1303_v2 }
 0xbdb   :  { %v1214_v4 = vpop.f32.mrf.mxu0 }
 0xbdc   :  { %v1238_v6 = vadd.f32 %v1237_v11, %v1214_v4  ;;  %v5083_v11 = vsel %vm1061_vm1, %v4981_v15, %v4978_v60 }
 0xbde   :  { %v1244_v10 = vadd.f32 %v4173_v40, %v1238_v6 }
 0xbe0   :  { %4276 = vtanh.f32 %v1244_v10  ;;  %v4055_v57 = vmul.f32 -1.442695, %v1244_v10 }
 0xbe6   :  { %v4277_v47 = vpop.eup %4276 }
 0xbe7   :  { %1267 = vrot.lane.b32.xlu0 %v4277_v47, %s4453_s26  ;;  %v4057_v47 = vld [vmem:[%s6197_s1 + $0x4] sm:$0x3] }
 0xbf4   :  { %v1327_v51 = vpop.f32.mrf.mxu1 }
 0xbf5   :  { %v1351_v53 = vadd.f32 %v1350_v50, %v1327_v51 }
 0xbf7   :  { %v1357_v55 = vadd.f32 %v4174_v23, %v1351_v53 }
 0xbf9   :  { %4278 = vtanh.f32 %v1357_v55  ;;  %v4060_v12 = vmul.f32 -1.442695, %v1357_v55 }
 0xbfa   :  { %4280 = vpow2.f32 %v4055_v57 }
 0xbff   :  { %v4279_v1 = vpop.eup %4278 }
 0xc00   :  { %1380 = vrot.lane.b32.xlu1 %v4279_v1, %s4453_s26  ;;  %v4281_v59 = vpop.eup %4280 }
 0xc01   :  { %v1248_v61 = vadd.f32 1.0, %v4281_v59  ;;  %v4061_v59 = vld [vmem:[%s6194_s0 + $0xc] sm:$0x3] }
 0xc02   :  { %4064 = vmatmul.msk.f32.vlgmr.msra.gmra.mxu2 %vm6210_vm0, %v4061_v59 }
 0xc03   :  { %4282 = vrcp.f32 %v1248_v61  ;;  %v1260_v19 = vand.u32 2147483648, %v1248_v61  ;;  %vm1254_vm4 = vweird.f32 %v1248_v61  ;;  %v1258_v21 = vand.u32 2147483647, %v1248_v61 }
 0xc04   :  { %4284 = vpow2.f32 %v4060_v12 }
 0xc05   :  { %v1261_v28 = vor.u32 1.1754944e-38, %v1260_v19  ;;  %vm1259_vm6 = vcmp.eq.f32.partialorder %v1258_v21, 8.507059e+37 }
 0xc09   :  { %v4283_v63 = vpop.eup %4282 }
 0xc0a   :  { %v1250_v13 = vmul.f32 %v4283_v63, %v1248_v61  ;;  %v4285_v49 = vpop.eup %4284  ;;  %vm1255_vm3 = vweird.f32 %v4283_v63 }
 0xc0b   :  { %v1361_v17 = vadd.f32 1.0, %v4285_v49  ;;  %vm1256_vm5 = vmor %vm1254_vm4, %vm1255_vm3  ;;  %vm1395_vm4 = vcmp.gt.f32.partialorder %v4057_v47, 0.0  ;;  %v4062_v47 = vld [vmem:[%s6197_s1 + $0xc] sm:$0x3] }
 0xc0c   :  { %v1251_v16 = vsub.f32 1.0, %v1250_v13  ;;  %v1396_v50 = vsel %vm1395_vm4, 1, %v4454_v34 }
 0xc0d   :  { %4286 = vrcp.f32 %v1361_v17  ;;  %v1373_v62 = vand.u32 2147483648, %v1361_v17  ;;  %vm1367_vm15 = vweird.f32 %v1361_v17  ;;  %v1371_v46 = vand.u32 2147483647, %v1361_v17 }
 0xc0e   :  { %v1252_v48 = vmul.f32 %v4283_v63, %v1251_v16  ;;  %v4066_v16 = vld [vmem:[%s6194_s0 + $0x2] sm:$0x3] }
 0xc0f   :  { %v1374_v5 = vor.u32 1.1754944e-38, %v1373_v62  ;;  %vm1372_vm3 = vcmp.eq.f32.partialorder %v1371_v46, 8.507059e+37  ;;  %4069 = vmatmul.msk.f32.vlgmr.msra.gmra.mxu3 %vm6210_vm0, %v4066_v16 }
 0xc10   :  { %v1253_v18 = vadd.f32 %v4283_v63, %v1252_v48 }
 0xc12   :  { %v1257_v41 = vsel %vm1256_vm5, %v4283_v63, %v1253_v18 }
 0xc13   :  { %v1262_v31 = vsel %vm1259_vm6, %v1261_v28, %v1257_v41  ;;  %v4287_v33 = vpop.eup %4286 }
 0xc14   :  { %v1363_v36 = vmul.f32 %v4287_v33, %v1361_v17  ;;  %vm1368_vm8 = vweird.f32 %v4287_v33  ;;  %v1265_v40 = vmul.f32 %v1262_v31, %v5083_v11  ;;  %v4175_v17 = vld [vmem:[%s6195_s6] ss:$0 sm:$0xff] }
 0xc15   :  { %vm1369_vm2 = vmor %vm1367_vm15, %vm1368_vm8 }
 0xc16   :  { %v1364_v38 = vsub.f32 1.0, %v1363_v36 }
 0xc18   :  { %v1365_v43 = vmul.f32 %v4287_v33, %v1364_v38 }
 0xc1a   :  { %v1366_v24 = vadd.f32 %v4287_v33, %v1365_v43 }
 0xc1c   :  { %v1370_v2 = vsel %vm1369_vm2, %v4287_v33, %v1366_v24 }
 0xc1d   :  { %v1375_v9 = vsel %vm1372_vm3, %v1374_v5, %v1370_v2  ;;  %vm1508_vm3 = vcmp.gt.f32.partialorder %v4062_v47, 0.0 }
 0xc1e   :  { %v1378_v60 = vmul.f32 %v1375_v9, %v5008_v52 }
 0xc59   :  { %v1268_v29 = vpop.permute.xlu0 %1267 }
 0xc5a   :  { %v1270_v30 = vmul.f32 %v1268_v29, %v1262_v31  ;;  %v4176_v29 = vld [vmem:[%s6196_s7] ss:$0 sm:$0xff] }
 0xc5c   :  { %1272 = vrot.lane.b32.xlu2 %v1270_v30, %s4455_s27 }
 0xc64   :  { %1285 = vperm.xlu2 %4160, %v1283_v37  }
 0xc72   :  { %v1381_v35 = vpop.permute.xlu1 %1380 }
 0xc73   :  { %v1383_v3 = vmul.f32 %v1381_v35, %v1375_v9 }
 0xc75   :  { %1385 = vrot.lane.b32.xlu0 %v1383_v3, %s4455_s27 }
 0xc92   :  { %v1576_v28 = vpop.f32.mrf.mxu3 }
 0xcb6   :  { %v1273_v4 = vpop.permute.xlu2 %1272 }
 0xcb7   :  { %v5086_v6 = vadd.f32 %v1273_v4, %v1265_v40 }
 0xcb9   :  { %4288 = vtanh.f32 %v5086_v6 }
 0xcbe   :  { %v5099_v53 = vpop.permute.xlu2 %1285 }
 0xcbf   :  { %v4289_v10 = vpop.eup %4288  ;;  %vm1287_vm5 = vcmp.eq.s32.totalorder %v5099_v53, 1 }
 0xcc0   :  { %1278 = vrot.lane.b32.xlu1 %v4289_v10, %s4456_s17 }
 0xcc8   :  { %1398 = vperm.xlu1 %4161, %v1396_v50  }
 0xce7   :  { %v1386_v15 = vpop.permute.xlu0 %1385 }
 0xce8   :  { %v5095_v23 = vadd.f32 %v1386_v15, %v1378_v60  ;;  %v1509_v60 = vsel %vm1508_vm3, 1, %v4454_v34 }
 0xcea   :  { %4290 = vtanh.f32 %v5095_v23 }
 0xcf0   :  { %v4291_v51 = vpop.eup %4290 }
 0xcf1   :  { %1391 = vrot.lane.b32.xlu0 %v4291_v51, %s4456_s17 }
 0xd32   :  { %v1279_v55 = vpop.permute.xlu1 %1278 }
 0xd33   :  { %v5101_v1 = vmul.f32 %v1279_v55, %v1262_v31 }
 0xd35   :  { %v5108_v57 = vsel %vm1287_vm5, %v5101_v1, %v5003_v26 }
 0xd36   :  { %1419 = vrot.lane.b32.xlu2 %v5108_v57, %s4457_s20 }
 0xd3a   :  { %v5116_v61 = vpop.permute.xlu1 %1398 }
 0xd3b   :  { %vm1400_vm6 = vcmp.eq.s32.totalorder %v5116_v61, 1 }
 0xd63   :  { %v1392_v63 = vpop.permute.xlu0 %1391 }
 0xd64   :  { %v1394_v12 = vmul.f32 %v1392_v63, %v1375_v9 }
 0xd66   :  { %v5122_v26 = vsel %vm1400_vm6, %v1394_v12, %v5034_v22  ;;  %v5126_v13 = vsel %vm1400_vm6, %v1394_v12, 0.0  ;;  %v1463_v22 = vpop.f32.mrf.mxu2 }
 0xd67   :  { %1532 = vrot.lane.b32.xlu0 %v5122_v26, %s4457_s20 }
 0xd90   :  { %v1420_v48 = vpop.permute.xlu2 %1419 }
 0xd91   :  { %4063 = vmatmul.msk.f32.vlgmr.msra.gmra.mxu0 %vm61_vm14, %v1420_v48 }
 0xdd9   :  { %v1533_v49 = vpop.permute.xlu0 %1532 }
 0xdda   :  { %4068 = vmatmul.msk.f32.vlgmr.msra.gmra.mxu1 %vm61_vm14, %v1533_v49 }
 0xe0e   :  { %v1440_v18 = vpop.f32.mrf.mxu0 }
 0xe0f   :  { %v1464_v19 = vadd.f32 %v1463_v22, %v1440_v18 }
 0xe11   :  { %v1470_v21 = vadd.f32 %v4175_v17, %v1464_v19 }
 0xe13   :  { %4292 = vtanh.f32 %v1470_v21  ;;  %v4065_v33 = vmul.f32 -1.442695, %v1470_v21 }
 0xe19   :  { %v4293_v41 = vpop.eup %4292 }
 0xe1a   :  { %1493 = vrot.lane.b32.xlu1 %v4293_v41, %s4453_s26  ;;  %v5154_v41 = vsel %vm1287_vm5, %v5086_v6, %v5083_v11  ;;  %v5169_v11 = vsel %vm1400_vm6, %v5095_v23, %v5008_v52  ;;  %v4071_v23 = vld [vmem:[%s6194_s0 + $0xe] sm:$0x3] }
 0xe1b   :  { %4074 = vmatmul.msk.f32.vlgmr.msrb.gmra.mxu2 %vm6210_vm0, %v4071_v23 }
 0xe57   :  { %v1553_v31 = vpop.f32.mrf.mxu1 }
 0xe58   :  { %v1577_v30 = vadd.f32 %v1576_v28, %v1553_v31 }
 0xe5a   :  { %v1583_v32 = vadd.f32 %v4176_v29, %v1577_v30 }
 0xe5c   :  { %4294 = vtanh.f32 %v1583_v32  ;;  %v4070_v50 = vmul.f32 -1.442695, %v1583_v32  ;;  %v4067_v32 = vld [vmem:[%s6197_s1 + $0x2] sm:$0x3] }
 0xe5d   :  { %4296 = vpow2.f32 %v4065_v33 }
 0xe62   :  { %v4295_v36 = vpop.eup %4294 }
 0xe63   :  { %1606 = vrot.lane.b32.xlu2 %v4295_v36, %s4453_s26  ;;  %v4297_v37 = vpop.eup %4296 }
 0xe64   :  { %v1474_v38 = vadd.f32 1.0, %v4297_v37 }
 0xe66   :  { %4298 = vrcp.f32 %v1474_v38  ;;  %v1486_v5 = vand.u32 2147483648, %v1474_v38  ;;  %vm1480_vm8 = vweird.f32 %v1474_v38  ;;  %v1484_v35 = vand.u32 2147483647, %v1474_v38 }
 0xe67   :  { %4300 = vpow2.f32 %v4070_v50 }
 0xe68   :  { %v1487_v3 = vor.u32 1.1754944e-38, %v1486_v5  ;;  %vm1485_vm2 = vcmp.eq.f32.partialorder %v1484_v35, 8.507059e+37  ;;  %v1747_v5 = vld [vmem:[%s6194_s0] sm:$0x3] }
 0xe69   :  { %4077 = vmatmul.msk.f32.vlgmr.msrb.gmra.mxu3 %vm6210_vm0, %v1747_v5 }
 0xe6c   :  { %v4299_v43 = vpop.eup %4298 }
 0xe6d   :  { %v1476_v24 = vmul.f32 %v4299_v43, %v1474_v38  ;;  %vm1481_vm7 = vweird.f32 %v4299_v43  ;;  %v4301_v15 = vpop.eup %4300 }
 0xe6e   :  { %vm1482_vm15 = vmor %vm1480_vm8, %vm1481_vm7  ;;  %v1587_v51 = vadd.f32 1.0, %v4301_v15 }
 0xe6f   :  { %v1477_v62 = vsub.f32 1.0, %v1476_v24 }
 0xe70   :  { %4302 = vrcp.f32 %v1587_v51  ;;  %v1599_v48 = vand.u32 2147483648, %v1587_v51  ;;  %vm1593_vm7 = vweird.f32 %v1587_v51  ;;  %v1597_v49 = vand.u32 2147483647, %v1587_v51 }
 0xe71   :  { %v1478_v46 = vmul.f32 %v4299_v43, %v1477_v62 }
 0xe72   :  { %v1600_v17 = vor.u32 1.1754944e-38, %v1599_v48 }
 0xe73   :  { %v1479_v2 = vadd.f32 %v4299_v43, %v1478_v46 }
 0xe75   :  { %v1483_v9 = vsel %vm1482_vm15, %v4299_v43, %v1479_v2  ;;  %vm1598_vm15 = vcmp.eq.f32.partialorder %v1597_v49, 8.507059e+37 }
 0xe76   :  { %v1488_v4 = vsel %vm1485_vm2, %v1487_v3, %v1483_v9  ;;  %v4303_v55 = vpop.eup %4302  ;;  %vm1621_vm2 = vcmp.gt.f32.partialorder %v4067_v32, 0.0 }
 0xe77   :  { %v1589_v59 = vmul.f32 %v4303_v55, %v1587_v51  ;;  %vm1594_vm4 = vweird.f32 %v4303_v55  ;;  %v1491_v28 = vmul.f32 %v1488_v4, %v5154_v41  ;;  %v1622_v33 = vsel %vm1621_vm2, 1, %v4454_v34 }
 0xe78   :  { %vm1595_vm8 = vmor %vm1593_vm7, %vm1594_vm4 }
 0xe79   :  { %v1590_v63 = vsub.f32 1.0, %v1589_v59 }
 0xe7b   :  { %v1591_v12 = vmul.f32 %v4303_v55, %v1590_v63 }
 0xe7d   :  { %v1592_v16 = vadd.f32 %v4303_v55, %v1591_v12 }
 0xe7f   :  { %v1596_v22 = vsel %vm1595_vm8, %v4303_v55, %v1592_v16  ;;  %v4178_v55 = vld [vmem:[%s6196_s7] ss:$0 sm:$0xff] }
 0xe80   :  { %v1601_v18 = vsel %vm1598_vm15, %v1600_v17, %v1596_v22 }
 0xe81   :  { %v1604_v6 = vmul.f32 %v1601_v18, %v5169_v11 }
 0xe8c   :  { %v1494_v40 = vpop.permute.xlu1 %1493 }
 0xe8d   :  { %v1496_v10 = vmul.f32 %v1494_v40, %v1488_v4  ;;  %v4177_v40 = vld [vmem:[%s6195_s6] ss:$0 sm:$0xff] }
 0xe8f   :  { %1498 = vrot.lane.b32.xlu0 %v1496_v10, %s4455_s27 }
 0xe97   :  { %1511 = vperm.xlu0 %4162, %v1509_v60  }
 0xe9e   :  { %v1689_v3 = vpop.f32.mrf.mxu2 }
 0xebd   :  { %v1607_v19 = vpop.permute.xlu2 %1606 }
 0xebe   :  { %v1609_v21 = vmul.f32 %v1607_v19, %v1601_v18 }
 0xec0   :  { %1611 = vrot.lane.b32.xlu1 %v1609_v21, %s4455_s27 }
 0xeec   :  { %v1800_v51 = vpop.f32.mrf.mxu3 }
 0xf01   :  { %v1499_v29 = vpop.permute.xlu0 %1498 }
 0xf02   :  { %v5157_v31 = vadd.f32 %v1499_v29, %v1491_v28 }
 0xf04   :  { %4304 = vtanh.f32 %v5157_v31 }
 0xf09   :  { %v5176_v43 = vpop.permute.xlu0 %1511 }
 0xf0a   :  { %v4305_v30 = vpop.eup %4304  ;;  %vm1513_vm3 = vcmp.eq.s32.totalorder %v5176_v43, 1 }
 0xf0b   :  { %1504 = vrot.lane.b32.xlu2 %v4305_v30, %s4456_s17 }
 0xf13   :  { %1624 = vperm.xlu2 %4160, %v1622_v33  }
 0xf32   :  { %v1612_v36 = vpop.permute.xlu1 %1611 }
 0xf33   :  { %v5172_v37 = vadd.f32 %v1612_v36, %v1604_v6  ;;  %v4072_v6 = vld [vmem:[%s6197_s1 + $0xe] sm:$0x3] }
 0xf34   :  { %vm1734_vm2 = vcmp.gt.f32.partialorder %v4072_v6, 0.0  ;;  %v5265_v6 = vld [vmem:[%s6199_s11 + $0x8] sm:$0xff] }
 0xf35   :  { %4306 = vtanh.f32 %v5172_v37  ;;  %v1735_v36 = vsel %vm1734_vm2, 1, %v4454_v34  ;;  %1997 = vmatpush.msra.mxu1 %v5265_v6 }
 0xf3b   :  { %v4307_v38 = vpop.eup %4306 }
 0xf3c   :  { %1617 = vrot.lane.b32.xlu1 %v4307_v38, %s4456_s17 }
 0xf65   :  { %v1505_v24 = vpop.permute.xlu2 %1504 }
 0xf66   :  { %v5178_v62 = vmul.f32 %v1505_v24, %v1488_v4 }
 0xf68   :  { %v1515_v52 = vsel %vm1513_vm3, %v5178_v62, %v5108_v57 }
 0xf69   :  { %1645 = vrot.lane.b32.xlu0 %v1515_v52, %s4457_s20 }
 0xf6d   :  { %v5190_v61 = vpop.permute.xlu2 %1624 }
 0xf6e   :  { %vm1626_vm6 = vcmp.eq.s32.totalorder %v5190_v61, 1 }
 0xfae   :  { %v1618_v46 = vpop.permute.xlu1 %1617 }
 0xfaf   :  { %v5192_v2 = vmul.f32 %v1618_v46, %v1601_v18 }
 0xfb1   :  { %v1628_v57 = vsel %vm1626_vm6, %v5192_v2, %v5122_v26 }
 0xfb2   :  { %1756 = vrot.lane.b32.xlu1 %v1628_v57, %s4457_s20 }
 0xfdb   :  { %v1646_v35 = vpop.permute.xlu0 %1645 }
 0xfdc   :  { %4073 = vmatmul.msk.f32.vlgmr.msrb.gmra.mxu0 %vm61_vm14, %v1646_v35 }
0x1024   :  { %v1757_v9 = vpop.permute.xlu1 %1756 }
0x1025   :  { %4076 = vmatmul.msk.f32.vlgmr.msrb.gmra.mxu1 %vm61_vm14, %v1757_v9 }
0x1059   :  { %v1666_v26 = vpop.f32.mrf.mxu0 }
0x105a   :  { %v1690_v4 = vadd.f32 %v1689_v3, %v1666_v26 }
0x105c   :  { %v1696_v10 = vadd.f32 %v4177_v40, %v1690_v4 }
0x105e   :  { %4308 = vtanh.f32 %v1696_v10  ;;  %v4075_v50 = vmul.f32 -1.442695, %v1696_v10 }
0x1060   :  { %4310 = vpow2.f32 %v4075_v50  ;;  %v1516_v50 = vsel %vm1513_vm3, %v5157_v31, %v5154_v41  ;;  %v1629_v41 = vsel %vm1626_vm6, %v5172_v37, %v5169_v11  ;;  %v5240_v11 = vld [vmem:[%s6198_s9 + $0x18] sm:$0xff]  ;;  %v5245_v37 = vld [vmem:[%s6198_s9 + $0x10] sm:$0xff] }
0x1061   :  { %2018 = vmatpush.msra.mxu3 %v5240_v11 }
0x1063   :  { %2019 = vmatpush.msra.mxu3 %v5245_v37 }
0x1064   :  { %v4309_v47 = vpop.eup %4308 }
0x1065   :  { %1719 = vrot.lane.b32.xlu2 %v4309_v47, %s4453_s26 }
0x1066   :  { %v4311_v60 = vpop.eup %4310 }
0x1067   :  { %v1700_v15 = vadd.f32 1.0, %v4311_v60 }
0x1069   :  { %4312 = vrcp.f32 %v1700_v15  ;;  %v1712_v19 = vand.u32 2147483648, %v1700_v15  ;;  %vm1706_vm7 = vweird.f32 %v1700_v15  ;;  %v1710_v21 = vand.u32 2147483647, %v1700_v15 }
0x106b   :  { %v1713_v29 = vor.u32 1.1754944e-38, %v1712_v19  ;;  %vm1711_vm15 = vcmp.eq.f32.partialorder %v1710_v21, 8.507059e+37 }
0x106f   :  { %v4313_v16 = vpop.eup %4312 }
0x1070   :  { %v1702_v48 = vmul.f32 %v4313_v16, %v1700_v15  ;;  %vm1707_vm4 = vweird.f32 %v4313_v16 }
0x1071   :  { %vm1708_vm8 = vmor %vm1706_vm7, %vm1707_vm4 }
0x1072   :  { %v1703_v22 = vsub.f32 1.0, %v1702_v48 }
0x1074   :  { %v1704_v17 = vmul.f32 %v4313_v16, %v1703_v22 }
0x1076   :  { %v1705_v18 = vadd.f32 %v4313_v16, %v1704_v17 }
0x1078   :  { %v1709_v28 = vsel %vm1708_vm8, %v4313_v16, %v1705_v18 }
0x1079   :  { %v1714_v30 = vsel %vm1711_vm15, %v1713_v29, %v1709_v28 }
0x107a   :  { %v1717_v60 = vmul.f32 %v1714_v30, %v1516_v50 }
0x10a2   :  { %v1777_v59 = vpop.f32.mrf.mxu1 }
0x10a3   :  { %v1801_v63 = vadd.f32 %v1800_v51, %v1777_v59  ;;  %v1748_v59 = vld [vmem:[%s6197_s1] sm:$0x3] }
0x10a4   :  { %vm1845_vm2 = vcmp.gt.f32.partialorder %v1748_v59, 0.0  ;;  %v4081_v59 = vld [vmem:[%s6197_s1 + $0xe] sm:$0x3] }
0x10a5   :  { %v1807_v12 = vadd.f32 %v4178_v55, %v1801_v63  ;;  %v1846_v63 = vsel %vm1845_vm2, 1, %v4454_v34 }
0x10a7   :  { %4314 = vtanh.f32 %v1807_v12  ;;  %v4078_v38 = vmul.f32 -1.442695, %v1807_v12  ;;  %v1970_v12 = vld [vmem:[#allocation3 + $0xe] sm:$0x3] }
0x10a9   :  { %4316 = vpow2.f32 %v4078_v38 }
0x10ad   :  { %v4315_v49 = vpop.eup %4314 }
0x10ae   :  { %1830 = vrot.lane.b32.xlu0 %v4315_v49, %s4453_s26 }
0x10af   :  { %v4317_v24 = vpop.eup %4316 }
0x10b0   :  { %v1811_v52 = vadd.f32 1.0, %v4317_v24 }
0x10b2   :  { %4318 = vrcp.f32 %v1811_v52  ;;  %v1823_v9 = vand.u32 2147483648, %v1811_v52  ;;  %vm1817_vm7 = vweird.f32 %v1811_v52  ;;  %v1821_v3 = vand.u32 2147483647, %v1811_v52 }
0x10b4   :  { %v1824_v26 = vor.u32 1.1754944e-38, %v1823_v9  ;;  %vm1822_vm15 = vcmp.eq.f32.partialorder %v1821_v3, 8.507059e+37  ;;  %v5306_v9 = vld [vmem:[%s6201_s8 + $0x8] sm:$0xff]  ;;  %v5312_v3 = vld [vmem:[%s6201_s8] sm:$0xff] }
0x10b8   :  { %v4319_v23 = vpop.eup %4318 }
0x10b9   :  { %v1813_v46 = vmul.f32 %v4319_v23, %v1811_v52  ;;  %vm1818_vm4 = vweird.f32 %v4319_v23 }
0x10ba   :  { %vm1819_vm8 = vmor %vm1817_vm7, %vm1818_vm4 }
0x10bb   :  { %v1814_v57 = vsub.f32 1.0, %v1813_v46 }
0x10bd   :  { %v1815_v5 = vmul.f32 %v4319_v23, %v1814_v57 }
0x10bf   :  { %v1720_v32 = vpop.permute.xlu2 %1719  ;;  %v1816_v35 = vadd.f32 %v4319_v23, %v1815_v5  ;;  %v5294_v5 = vld [vmem:[%s6201_s8 + $0x18] sm:$0xff] }
0x10c0   :  { %v1722_v33 = vmul.f32 %v1720_v32, %v1714_v30  ;;  %1906 = vmatpush.msra.mxu2 %v5294_v5 }
0x10c1   :  { %v1820_v40 = vsel %vm1819_vm8, %v4319_v23, %v1816_v35  ;;  %v5300_v35 = vld [vmem:[%s6201_s8 + $0x10] sm:$0xff]  ;;  %vm2068_vm8 = vcmp.gt.f32.partialorder %v4081_v59, 0.0  ;;  %v1627_v59 = vsel %vm1626_vm6, %v5192_v2, 0.0 }
0x10c2   :  { %1724 = vrot.lane.b32.xlu1 %v1722_v33, %s4455_s27  ;;  %v1825_v10 = vsel %vm1822_vm15, %v1824_v26, %v1820_v40  ;;  %v5257_v33 = vld [vmem:[%s6198_s9] sm:$0xff]  ;;  %1907 = vmatpush.msra.mxu2 %v5300_v35  ;;  %v5319_v40 = vld [vmem:[%s6202_s10 + $0x8] sm:$0xff] }
0x10c3   :  { %v1828_v31 = vmul.f32 %v1825_v10, %v1629_v41  ;;  %1885 = vmatpush.msra.mxu0 %v5319_v40  ;;  %v5326_v26 = vld [vmem:[%s6202_s10] sm:$0xff] }
0x10c4   :  { %1908 = vmatpush.msra.mxu2 %v5306_v9 }
0x10c5   :  { %1886 = vmatpush.msra.mxu0 %v5326_v26 }
0x10c6   :  { %1909 = vmatpush.msra.mxu2 %v5312_v3  ;;  %1887 = vmatmul.f32.vlgmr.msra.gmra.mxu0 %v4452_v14 }
0x10c7   :  { %2112 = vmatpush.msrb.mxu0 %v5319_v40 }
0x10c8   :  { %2133 = vmatpush.msrb.mxu2 %v5294_v5 }
0x10c9   :  { %2113 = vmatpush.msrb.mxu0 %v5326_v26 }
0x10ca   :  { %1737 = vperm.xlu1 %4161, %v1735_v36   ;;  %v5270_v36 = vld [vmem:[%s6199_s11] sm:$0xff]  ;;  %2134 = vmatpush.msrb.mxu2 %v5300_v35 }
0x10cb   :  { %1998 = vmatpush.msra.mxu1 %v5270_v36  ;;  %2347 = vmatpush.msra.mxu0 %v5319_v40 }
0x10cc   :  { %1999 = vmatmul.f32.vlgmr.msra.gmra.mxu1 %v4452_v14  ;;  %2135 = vmatpush.msrb.mxu2 %v5306_v9  ;;  %v1857_v14 = vld [vmem:[#allocation2] sm:$0x3] }
0x10cd   :  { %2228 = vmatpush.msrb.mxu1 %v5265_v6  ;;  %2348 = vmatpush.msra.mxu0 %v5326_v26 }
0x10ce   :  { %2136 = vmatpush.msrb.mxu2 %v5312_v3 }
0x10cf   :  { %2229 = vmatpush.msrb.mxu1 %v5270_v36 }
0x10d1   :  { %2466 = vmatpush.msra.mxu1 %v5265_v6 }
0x10d3   :  { %2467 = vmatpush.msra.mxu1 %v5270_v36 }
0x1120   :  { %v1831_v4 = vpop.permute.xlu0 %1830 }
0x1121   :  { %v1833_v47 = vmul.f32 %v1831_v4, %v1825_v10 }
0x1123   :  { %1835 = vrot.lane.b32.xlu2 %v1833_v47, %s4455_s27 }
0x1134   :  { %v1725_v15 = vpop.permute.xlu1 %1724 }
0x1135   :  { %v1727_v51 = vadd.f32 %v1725_v15, %v1717_v60 }
0x1137   :  { %4320 = vtanh.f32 %v1727_v51 }
0x113c   :  { %v1738_v22 = vpop.permute.xlu1 %1737 }
0x113d   :  { %v4321_v55 = vpop.eup %4320  ;;  %vm1739_vm4 = vcmp.eq.s32.totalorder %v1738_v22, 1 }
0x113e   :  { %1730 = vrot.lane.b32.xlu0 %v4321_v55, %s4456_s17 }
0x1146   :  { %1848 = vperm.xlu0 %4162, %v1846_v63   ;;  %v2069_v63 = vsel %vm2068_vm8, 1, %v4454_v34 }
0x1149   :  { %v2000_v4 = vpop.f32.mrf.mxu1 }
0x114e   :  { %1972 = vrot.lane.b32.xlu0 %v1970_v12, %s4455_s27 }
0x117d   :  { %v1836_v16 = vpop.permute.xlu2 %1835 }
0x117e   :  { %v1838_v48 = vadd.f32 %v1836_v16, %v1828_v31 }
0x1180   :  { %4322 = vtanh.f32 %v1838_v48 }
0x1186   :  { %v4323_v49 = vpop.eup %4322 }
0x1187   :  { %1841 = vrot.lane.b32.xlu2 %v4323_v49, %s4456_s17 }
0x11b0   :  { %v1731_v17 = vpop.permute.xlu0 %1730 }
0x11b1   :  { %v1733_v18 = vmul.f32 %v1731_v17, %v1714_v30  ;;  %v5251_v30 = vld [vmem:[%s6198_s9 + $0x8] sm:$0xff] }
0x11b2   :  { %2020 = vmatpush.msra.mxu3 %v5251_v30 }
0x11b3   :  { %v1740_v19 = vsel %vm1739_vm4, %v1733_v18, 0.0 }
0x11b4   :  { %1742 = vrot.lane.b32.xlu1 %v1740_v19, %s4457_s20  ;;  %2021 = vmatpush.msra.mxu3 %v5257_v33 }
0x11b6   :  { %2249 = vmatpush.msrb.mxu3 %v5240_v11 }
0x11b8   :  { %v1849_v21 = vpop.permute.xlu0 %1848  ;;  %2250 = vmatpush.msrb.mxu3 %v5245_v37 }
0x11b9   :  { %vm1850_vm7 = vcmp.eq.s32.totalorder %v1849_v21, 1 }
0x11ba   :  { %2251 = vmatpush.msrb.mxu3 %v5251_v30 }
0x11bc   :  { %2252 = vmatpush.msrb.mxu3 %v5257_v33 }
0x11c0   :  { %v1973_v24 = vpop.permute.xlu0 %1972 }
0x11e1   :  { %v1842_v28 = vpop.permute.xlu2 %1841 }
0x11e2   :  { %v1844_v29 = vmul.f32 %v1842_v28, %v1825_v10  ;;  %v4179_v10 = vld [vmem:[%s6200_s13] ss:$0 sm:$0xff] }
0x11e4   :  { %v1851_v32 = vsel %vm1850_vm7, %v1844_v29, 0.0 }
0x11e5   :  { %1853 = vrot.lane.b32.xlu2 %v1851_v32, %s4457_s20 }
0x1226   :  { %v1743_v38 = vpop.permute.xlu1 %1742 }
0x1227   :  { %1746 = vst.msk [vmem:[#allocation2 + $0xe] sm:$0x3] %vm163_vm13, %v1743_v38 }
0x122e   :  { %v1969_v52 = vld [vmem:[#allocation2 + $0xe] sm:$0x3] }
0x122f   :  { %v1975_v23 = vsel %vm61_vm14, %v1969_v52, %v1973_v24  ;;  %v1888_v52 = vpop.f32.mrf.mxu0 }
0x1230   :  { %4082 = vmatmul.msk.f32.vlgmr.msra.gmra.mxu3 %vm6210_vm0, %v1975_v23  ;;  %v4180_v23 = vld [vmem:[%s6203_s12] ss:$0 sm:$0xff] }
0x1231   :  { %2487 = vmatpush.msra.mxu3 %v5240_v11 }
0x1233   :  { %2488 = vmatpush.msra.mxu3 %v5245_v37 }
0x1235   :  { %2489 = vmatpush.msra.mxu3 %v5251_v30 }
0x1237   :  { %2490 = vmatpush.msra.mxu3 %v5257_v33 }
0x123f   :  { %v1854_v46 = vpop.permute.xlu2 %1853 }
0x1240   :  { %1856 = vst.msk [vmem:[#allocation3] sm:$0x3] %vm163_vm13, %v1854_v46 }
0x1247   :  { %v1858_v57 = vld [vmem:[#allocation3] sm:$0x3] }
0x1248   :  { %1860 = vrot.lane.b32.xlu1 %v1858_v57, %s4455_s27 }
0x12b3   :  { %v2023_v47 = vpop.f32.mrf.mxu3 }
0x12b4   :  { %v2024_v50 = vadd.f32 %v2023_v47, %v2000_v4 }
0x12b6   :  { %v2030_v60 = vadd.f32 %v4179_v10, %v2024_v50 }
0x12b8   :  { %4324 = vtanh.f32 %v2030_v60  ;;  %v4083_v12 = vmul.f32 -1.442695, %v2030_v60 }
0x12ba   :  { %v1861_v15 = vpop.permute.xlu1 %1860  ;;  %4326 = vpow2.f32 %v4083_v12 }
0x12bb   :  { %v1863_v51 = vsel %vm61_vm14, %v1857_v14, %v1861_v15 }
0x12bc   :  { %4079 = vmatmul.msk.f32.vlgmr.msra.gmra.mxu2 %vm6210_vm0, %v1863_v51 }
0x12bd   :  { %2368 = vmatpush.msra.mxu2 %v5294_v5 }
0x12be   :  { %v4325_v55 = vpop.eup %4324 }
0x12bf   :  { %2053 = vrot.lane.b32.xlu2 %v4325_v55, %s4453_s26  ;;  %2369 = vmatpush.msra.mxu2 %v5300_v35 }
0x12c0   :  { %v4327_v41 = vpop.eup %4326 }
0x12c1   :  { %2370 = vmatpush.msra.mxu2 %v5306_v9  ;;  %v2034_v31 = vadd.f32 1.0, %v4327_v41 }
0x12c3   :  { %2371 = vmatpush.msra.mxu2 %v5312_v3  ;;  %4328 = vrcp.f32 %v2034_v31  ;;  %v2046_v18 = vand.u32 2147483648, %v2034_v31  ;;  %vm2040_vm2 = vweird.f32 %v2034_v31  ;;  %v2044_v19 = vand.u32 2147483647, %v2034_v31 }
0x12c5   :  { %v2047_v21 = vor.u32 1.1754944e-38, %v2046_v18  ;;  %vm2045_vm7 = vcmp.eq.f32.partialorder %v2044_v19, 8.507059e+37 }
0x12c7   :  { %493 = vrot.lane.b32.xlu2 %v4789_v0, %s4457_s20 }
0x12c9   :  { %v4329_v16 = vpop.eup %4328 }
0x12ca   :  { %v2036_v48 = vmul.f32 %v4329_v16, %v2034_v31  ;;  %vm2041_vm15 = vweird.f32 %v4329_v16 }
0x12cb   :  { %vm2042_vm4 = vmor %vm2040_vm2, %vm2041_vm15 }
0x12cc   :  { %v2037_v49 = vsub.f32 1.0, %v2036_v48 }
0x12ce   :  { %v2038_v22 = vmul.f32 %v4329_v16, %v2037_v49 }
0x12cf   :  { %2071 = vperm.xlu2 %4160, %v2069_v63   ;;  %v1864_v63 = vld [vmem:[%s6197_s1] sm:$0x3] }
0x12d0   :  { %v2039_v17 = vadd.f32 %v4329_v16, %v2038_v22  ;;  %vm1956_vm8 = vcmp.gt.f32.partialorder %v1864_v63, 0.0 }
0x12d1   :  { %v1957_v12 = vsel %vm1956_vm8, 1, %v4454_v34 }
0x12d2   :  { %v2043_v0 = vsel %vm2042_vm4, %v4329_v16, %v2039_v17 }
0x12d3   :  { %v2048_v28 = vsel %vm2045_vm7, %v2047_v21, %v2043_v0  ;;  %v1514_v21 = vsel %vm1513_vm3, %v5178_v62, 0.0 }
0x12d4   :  { %v2051_v47 = vmul.f32 0.0, %v2048_v28 }
0x1319   :  { %v2054_v29 = vpop.permute.xlu2 %2053 }
0x131a   :  { %v2056_v32 = vmul.f32 %v2054_v29, %v2048_v28 }
0x131c   :  { %2058 = vrot.lane.b32.xlu1 %v2056_v32, %s4455_s27 }
0x1321   :  { %v494_v38 = vpop.permute.xlu2 %493 }
0x1322   :  { %497 = vst.msk [vmem:[#allocation3 + $0xc] sm:$0x3] %vm163_vm13, %v494_v38 }
0x1329   :  { %v2199_v24 = vld [vmem:[#allocation3 + $0xc] sm:$0x3]  ;;  %v5376_v29 = vpop.permute.xlu2 %2071 }
0x132a   :  { %2201 = vrot.lane.b32.xlu2 %v2199_v24, %s4455_s27  ;;  %vm2073_vm7 = vcmp.eq.s32.totalorder %v5376_v29, 1 }
0x133f   :  { %v1911_v46 = vpop.f32.mrf.mxu2 }
0x1340   :  { %v1912_v57 = vadd.f32 %v1911_v46, %v1888_v52 }
0x1342   :  { %v1918_v4 = vadd.f32 %v4180_v23, %v1912_v57 }
0x1344   :  { %4330 = vtanh.f32 %v1918_v4  ;;  %v4080_v14 = vmul.f32 -1.442695, %v1918_v4 }
0x134a   :  { %v4331_v10 = vpop.eup %4330 }
0x134b   :  { %1941 = vrot.lane.b32.xlu0 %v4331_v10, %s4453_s26 }
0x1384   :  { %v2202_v4 = vpop.permute.xlu2 %2201 }
0x138e   :  { %v2059_v50 = vpop.permute.xlu1 %2058 }
0x138f   :  { %v5359_v60 = vadd.f32 %v2059_v50, %v2051_v47  ;;  %v377_v47 = vsel %vm376_vm10, %v4760_v44, 0.0 }
0x1391   :  { %4332 = vtanh.f32 %v5359_v60 }
0x1392   :  { %4334 = vpow2.f32 %v4080_v14 }
0x1397   :  { %v4333_v15 = vpop.eup %4332 }
0x1398   :  { %2064 = vrot.lane.b32.xlu1 %v4333_v15, %s4456_s17  ;;  %v4335_v51 = vpop.eup %4334 }
0x1399   :  { %v1922_v55 = vadd.f32 1.0, %v4335_v51 }
0x139b   :  { %4336 = vrcp.f32 %v1922_v55  ;;  %v1934_v22 = vand.u32 2147483648, %v1922_v55  ;;  %vm1928_vm2 = vweird.f32 %v1922_v55  ;;  %v1932_v61 = vand.u32 2147483647, %v1922_v55 }
0x139d   :  { %v1935_v17 = vor.u32 1.1754944e-38, %v1934_v22  ;;  %vm1933_vm4 = vcmp.eq.f32.partialorder %v1932_v61, 8.507059e+37 }
0x13a0   :  { %1631 = vrot.lane.b32.xlu1 %v1627_v59, %s4457_s20 }
0x13a1   :  { %v4337_v41 = vpop.eup %4336 }
0x13a2   :  { %v1924_v31 = vmul.f32 %v4337_v41, %v1922_v55  ;;  %vm1929_vm15 = vweird.f32 %v4337_v41 }
0x13a3   :  { %vm1930_vm6 = vmor %vm1928_vm2, %vm1929_vm15 }
0x13a4   :  { %v1925_v16 = vsub.f32 1.0, %v1924_v31 }
0x13a6   :  { %v1926_v48 = vmul.f32 %v4337_v41, %v1925_v16 }
0x13a8   :  { %1959 = vperm.xlu1 %4161, %v1957_v12   ;;  %v1927_v49 = vadd.f32 %v4337_v41, %v1926_v48 }
0x13aa   :  { %v1931_v2 = vsel %vm1930_vm6, %v4337_v41, %v1927_v49 }
0x13ab   :  { %v1936_v19 = vsel %vm1933_vm4, %v1935_v17, %v1931_v2 }
0x13ac   :  { %v1939_v62 = vmul.f32 0.0, %v1936_v19 }
0x13bd   :  { %v1942_v18 = vpop.permute.xlu0 %1941 }
0x13be   :  { %v1944_v0 = vmul.f32 %v1942_v18, %v1936_v19 }
0x13c0   :  { %1946 = vrot.lane.b32.xlu0 %v1944_v0, %s4455_s27 }
0x13c8   :  { %1518 = vrot.lane.b32.xlu0 %v1514_v21, %s4457_s20 }
0x140a   :  { %v2065_v32 = vpop.permute.xlu1 %2064 }
0x140b   :  { %v2067_v38 = vmul.f32 %v2065_v32, %v2048_v28  ;;  %v4182_v32 = vld [vmem:[%s6203_s12] ss:$0 sm:$0xff] }
0x140d   :  { %v5381_v24 = vsel %vm2073_vm7, %v2067_v38, 0.0 }
0x140e   :  { %2077 = vrot.lane.b32.xlu2 %v5381_v24, %s4457_s20 }
0x1412   :  { %v1632_v52 = vpop.permute.xlu1 %1631 }
0x1413   :  { %1635 = vst.msk [vmem:[#allocation3 + $0x2] sm:$0x3] %vm163_vm13, %v1632_v52 }
0x141a   :  { %v2083_v43 = vld [vmem:[#allocation3 + $0x2] sm:$0x3]  ;;  %v5406_v42 = vpop.permute.xlu1 %1959 }
0x141b   :  { %2085 = vrot.lane.b32.xlu1 %v2083_v43, %s4455_s27  ;;  %vm1961_vm10 = vcmp.eq.s32.totalorder %v5406_v42, 1 }
0x1432   :  { %v1947_v23 = vpop.permute.xlu0 %1946 }
0x1433   :  { %v5387_v46 = vadd.f32 %v1947_v23, %v1939_v62 }
0x1435   :  { %4338 = vtanh.f32 %v5387_v46 }
0x143a   :  { %v1519_v28 = vpop.permute.xlu0 %1518 }
0x143b   :  { %v4339_v57 = vpop.eup %4338  ;;  %1522 = vst.msk [vmem:[#allocation2 + $0xc] sm:$0x3] %vm163_vm13, %v1519_v28  ;;  %v5446_v28 = vsel %vm2073_vm7, %v5359_v60, 0.0 }
0x143c   :  { %1952 = vrot.lane.b32.xlu0 %v4339_v57, %s4456_s17 }
0x1442   :  { %v2198_v10 = vld [vmem:[#allocation2 + $0xc] sm:$0x3] }
0x1443   :  { %v2204_v50 = vsel %vm61_vm14, %v2198_v10, %v2202_v4 }
0x1444   :  { %381 = vrot.lane.b32.xlu0 %v377_v47, %s4457_s20  ;;  %4090 = vmatmul.msk.f32.vlgmr.msrb.gmra.mxu3 %vm6210_vm0, %v2204_v50  ;;  %v4084_v50 = vld [vmem:[%s6197_s1 + $0x2] sm:$0x3] }
0x1445   :  { %2725 = vmatpush.msrb.mxu3 %v5240_v11  ;;  %vm2183_vm4 = vcmp.gt.f32.partialorder %v4084_v50, 0.0 }
0x1446   :  { %v2184_v60 = vsel %vm2183_vm4, 1, %v4454_v34 }
0x1447   :  { %2726 = vmatpush.msrb.mxu3 %v5245_v37 }
0x1449   :  { %2727 = vmatpush.msrb.mxu3 %v5251_v30 }
0x144b   :  { %2728 = vmatpush.msrb.mxu3 %v5257_v33 }
0x1468   :  { %v2078_v14 = vpop.permute.xlu2 %2077 }
0x1469   :  { %2081 = vst.msk [vmem:[#allocation5 + $0xe] sm:$0x3] %vm163_vm13, %v2078_v14  ;;  %4089 = vmatmul.msk.f32.vlgmr.msrb.gmra.mxu1 %vm61_vm14, %v2078_v14 }
0x146a   :  { %2704 = vmatpush.msrb.mxu1 %v5265_v6 }
0x146c   :  { %2705 = vmatpush.msrb.mxu1 %v5270_v36  ;;  %v4181_v36 = vld [vmem:[%s6200_s13] ss:$0 sm:$0xff] }
0x148d   :  { %v2086_v30 = vpop.permute.xlu1 %2085 }
0x14ae   :  { %v1953_v44 = vpop.permute.xlu0 %1952 }
0x14af   :  { %v1955_v15 = vmul.f32 %v1953_v44, %v1936_v19 }
0x14b1   :  { %v5411_v11 = vsel %vm1961_vm10, %v1955_v15, 0.0 }
0x14b2   :  { %1965 = vrot.lane.b32.xlu2 %v5411_v11, %s4457_s20 }
0x14b6   :  { %v382_v37 = vpop.permute.xlu0 %381 }
0x14b7   :  { %385 = vst.msk [vmem:[#allocation2 + $0x2] sm:$0x3] %vm163_vm13, %v382_v37 }
0x14be   :  { %v2082_v33 = vld [vmem:[#allocation2 + $0x2] sm:$0x3] }
0x14bf   :  { %v2088_v6 = vsel %vm61_vm14, %v2082_v33, %v2086_v30 }
0x14c0   :  { %4086 = vmatmul.msk.f32.vlgmr.msrb.gmra.mxu2 %vm6210_vm0, %v2088_v6 }
0x14c1   :  { %2606 = vmatpush.msrb.mxu2 %v5294_v5  ;;  %v4088_v5 = vld [vmem:[%s6197_s1 + $0xc] sm:$0x3] }
0x14c2   :  { %vm2299_vm3 = vcmp.gt.f32.partialorder %v4088_v5, 0.0  ;;  %v1288_v5 = vsel %vm1287_vm5, %v5101_v1, 0.0 }
0x14c3   :  { %2607 = vmatpush.msrb.mxu2 %v5300_v35  ;;  %v2300_v35 = vsel %vm2299_vm3, 1, %v4454_v34 }
0x14c5   :  { %2608 = vmatpush.msrb.mxu2 %v5306_v9 }
0x14c7   :  { %2609 = vmatpush.msrb.mxu2 %v5312_v3  ;;  %v2254_v51 = vpop.f32.mrf.mxu3 }
0x14e6   :  { %v2231_v55 = vpop.f32.mrf.mxu1 }
0x14e7   :  { %v2255_v59 = vadd.f32 %v2254_v51, %v2231_v55 }
0x14e9   :  { %v2261_v63 = vadd.f32 %v4181_v36, %v2255_v59 }
0x14eb   :  { %4340 = vtanh.f32 %v2261_v63  ;;  %v4091_v3 = vmul.f32 -1.442695, %v2261_v63 }
0x14ed   :  { %4342 = vpow2.f32 %v4091_v3 }
0x14f1   :  { %v4341_v12 = vpop.eup %4340 }
0x14f2   :  { %2284 = vrot.lane.b32.xlu0 %v4341_v12, %s4453_s26 }
0x14f3   :  { %v4343_v41 = vpop.eup %4342 }
0x14f4   :  { %v2265_v31 = vadd.f32 1.0, %v4343_v41 }
0x14f6   :  { %4344 = vrcp.f32 %v2265_v31  ;;  %v2277_v61 = vand.u32 2147483648, %v2265_v31  ;;  %vm2271_vm15 = vweird.f32 %v2265_v31  ;;  %v2275_v2 = vand.u32 2147483647, %v2265_v31 }
0x14f8   :  { %v2278_v18 = vor.u32 1.1754944e-38, %v2277_v61  ;;  %vm2276_vm6 = vcmp.eq.f32.partialorder %v2275_v2, 8.507059e+37 }
0x14fa   :  { %723 = vrot.lane.b32.xlu0 %v4874_v8, %s4457_s20 }
0x14fc   :  { %v4345_v16 = vpop.eup %4344 }
0x14fd   :  { %v2267_v8 = vmul.f32 %v4345_v16, %v2265_v31  ;;  %vm2272_vm8 = vweird.f32 %v4345_v16  ;;  %v5482_v31 = vsel %vm1961_vm10, %v5387_v46, 0.0  ;;  %v604_v46 = vsel %vm603_vm9, %v4849_v27, 0.0 }
0x14fe   :  { %vm2273_vm2 = vmor %vm2271_vm15, %vm2272_vm8 }
0x14ff   :  { %v2268_v48 = vsub.f32 1.0, %v2267_v8 }
0x1501   :  { %v2269_v49 = vmul.f32 %v4345_v16, %v2268_v48 }
0x1502   :  { %2302 = vperm.xlu0 %4162, %v2300_v35  }
0x1503   :  { %v2270_v22 = vadd.f32 %v4345_v16, %v2269_v49 }
0x1505   :  { %v2274_v17 = vsel %vm2273_vm2, %v4345_v16, %v2270_v22 }
0x150c   :  { %v1966_v9 = vpop.permute.xlu2 %1965 }
0x150d   :  { %1968 = vst.msk [vmem:[#allocation4] sm:$0x3] %vm163_vm13, %v1966_v9  ;;  %4085 = vmatmul.msk.f32.vlgmr.msrb.gmra.mxu0 %vm61_vm14, %v1966_v9 }
0x150e   :  { %2585 = vmatpush.msrb.mxu0 %v5319_v40 }
0x1510   :  { %2586 = vmatpush.msrb.mxu0 %v5326_v26  ;;  %v2279_v26 = vsel %vm2276_vm6, %v2278_v18, %v2274_v17 }
0x1511   :  { %v2282_v57 = vmul.f32 %v2279_v26, %v5446_v28 }
0x1543   :  { %v2138_v38 = vpop.f32.mrf.mxu2 }
0x1564   :  { %v2285_v40 = vpop.permute.xlu0 %2284 }
0x1565   :  { %v2287_v19 = vmul.f32 %v2285_v40, %v2279_v26 }
0x1567   :  { %2289 = vrot.lane.b32.xlu2 %v2287_v19, %s4455_s27 }
0x156c   :  { %v724_v0 = vpop.permute.xlu0 %723 }
0x156d   :  { %727 = vst.msk [vmem:[#allocation3 + $0xa] sm:$0x3] %vm163_vm13, %v724_v0 }
0x1574   :  { %v2434_v21 = vld [vmem:[#allocation3 + $0xa] sm:$0x3]  ;;  %v5464_v35 = vpop.permute.xlu0 %2302 }
0x1575   :  { %2436 = vrot.lane.b32.xlu0 %v2434_v21, %s4455_s27  ;;  %vm2304_vm2 = vcmp.eq.s32.totalorder %v5464_v35, 1  ;;  %v4183_v21 = vld [vmem:[%s6200_s13] ss:$0 sm:$0xff] }
0x158a   :  { %v2115_v52 = vpop.f32.mrf.mxu0 }
0x158b   :  { %v2139_v43 = vadd.f32 %v2138_v38, %v2115_v52 }
0x158d   :  { %v2145_v62 = vadd.f32 %v4182_v32, %v2139_v43 }
0x158f   :  { %4346 = vtanh.f32 %v2145_v62  ;;  %v4087_v29 = vmul.f32 -1.442695, %v2145_v62  ;;  %v949_v62 = vsel %vm948_vm11, %v4943_v58, 0.0 }
0x1595   :  { %v4347_v23 = vpop.eup %4346 }
0x1596   :  { %2168 = vrot.lane.b32.xlu1 %v4347_v23, %s4453_s26  ;;  %v4096_v23 = vld [vmem:[%s6197_s1 + $0xa] sm:$0x3] }
0x1597   :  { %vm2537_vm9 = vcmp.gt.f32.partialorder %v4096_v23, 0.0 }
0x15c1   :  { %v2290_v4 = vpop.permute.xlu2 %2289 }
0x15c2   :  { %v5449_v10 = vadd.f32 %v2290_v4, %v2282_v57  ;;  %v2538_v57 = vsel %vm2537_vm9, 1, %v4454_v34 }
0x15c4   :  { %4348 = vtanh.f32 %v5449_v10 }
0x15c5   :  { %4350 = vpow2.f32 %v4087_v29 }
0x15ca   :  { %v4349_v47 = vpop.eup %4348 }
0x15cb   :  { %2295 = vrot.lane.b32.xlu2 %v4349_v47, %s4456_s17  ;;  %v4351_v14 = vpop.eup %4350 }
0x15cc   :  { %v2149_v44 = vadd.f32 1.0, %v4351_v14 }
0x15ce   :  { %4352 = vrcp.f32 %v2149_v44  ;;  %v2161_v36 = vand.u32 2147483648, %v2149_v44  ;;  %vm2155_vm3 = vweird.f32 %v2149_v44  ;;  %v2159_v51 = vand.u32 2147483647, %v2149_v44 }
0x15d0   :  { %v2162_v55 = vor.u32 1.1754944e-38, %v2161_v36  ;;  %vm2160_vm15 = vcmp.eq.f32.partialorder %v2159_v51, 8.507059e+37 }
0x15d3   :  { %1405 = vrot.lane.b32.xlu2 %v5126_v13, %s4457_s20 }
0x15d4   :  { %v4353_v15 = vpop.eup %4352 }
0x15d5   :  { %v2151_v37 = vmul.f32 %v4353_v15, %v2149_v44  ;;  %vm2156_vm7 = vweird.f32 %v4353_v15 }
0x15d6   :  { %vm2157_vm8 = vmor %vm2155_vm3, %vm2156_vm7 }
0x15d7   :  { %v2152_v30 = vsub.f32 1.0, %v2151_v37 }
0x15d9   :  { %v2153_v33 = vmul.f32 %v4353_v15, %v2152_v30 }
0x15db   :  { %2186 = vperm.xlu2 %4160, %v2184_v60   ;;  %v2154_v6 = vadd.f32 %v4353_v15, %v2153_v33 }
0x15dd   :  { %v2158_v13 = vsel %vm2157_vm8, %v4353_v15, %v2154_v6 }
0x15de   :  { %v2163_v63 = vsel %vm2160_vm15, %v2162_v55, %v2158_v13 }
0x15df   :  { %v2166_v16 = vmul.f32 %v2163_v63, %v5482_v31 }
0x15e7   :  { %v2437_v22 = vpop.permute.xlu0 %2436 }
0x1608   :  { %v2169_v59 = vpop.permute.xlu1 %2168 }
0x1609   :  { %v2171_v12 = vmul.f32 %v2169_v59, %v2163_v63  ;;  %v4184_v59 = vld [vmem:[%s6203_s12] ss:$0 sm:$0xff] }
0x160b   :  { %2173 = vrot.lane.b32.xlu1 %v2171_v12, %s4455_s27 }
0x1613   :  { %1292 = vrot.lane.b32.xlu1 %v1288_v5, %s4457_s20 }
0x1625   :  { %v2296_v9 = vpop.permute.xlu2 %2295 }
0x1626   :  { %v5466_v3 = vmul.f32 %v2296_v9, %v2279_v26 }
0x1628   :  { %v5473_v41 = vsel %vm2304_vm2, %v5466_v3, %v5381_v24 }
0x1629   :  { %2448 = vrot.lane.b32.xlu0 %v5473_v41, %s4457_s20 }
0x162d   :  { %v1406_v53 = vpop.permute.xlu2 %1405 }
0x162e   :  { %1409 = vst.msk [vmem:[#allocation3 + $0x4] sm:$0x3] %vm163_vm13, %v1406_v53 }
0x1635   :  { %v2315_v1 = vld [vmem:[#allocation3 + $0x4] sm:$0x3]  ;;  %v5497_v17 = vpop.permute.xlu2 %2186 }
0x1636   :  { %2317 = vrot.lane.b32.xlu2 %v2315_v1, %s4455_s27  ;;  %vm2188_vm5 = vcmp.eq.s32.totalorder %v5497_v17, 1  ;;  %v5537_v1 = vsel %vm2304_vm2, %v5449_v10, %v5446_v28 }
0x167d   :  { %v2174_v8 = vpop.permute.xlu1 %2173 }
0x167e   :  { %v5485_v48 = vadd.f32 %v2174_v8, %v2166_v16 }
0x1680   :  { %4354 = vtanh.f32 %v5485_v48 }
0x1685   :  { %v1293_v24 = vpop.permute.xlu1 %1292 }
0x1686   :  { %v4355_v49 = vpop.eup %4354  ;;  %1296 = vst.msk [vmem:[#allocation2 + $0xa] sm:$0x3] %vm163_vm13, %v1293_v24 }
0x1687   :  { %2179 = vrot.lane.b32.xlu1 %v4355_v49, %s4456_s17 }
0x168d   :  { %v2433_v61 = vld [vmem:[#allocation2 + $0xa] sm:$0x3] }
0x168e   :  { %v2439_v2 = vsel %vm61_vm14, %v2433_v61, %v2437_v22  ;;  %v4092_v22 = vld [vmem:[%s6197_s1 + $0x4] sm:$0x3] }
0x168f   :  { %4098 = vmatmul.msk.f32.vlgmr.msra.gmra.mxu3 %vm6210_vm0, %v2439_v2  ;;  %608 = vrot.lane.b32.xlu1 %v604_v46, %s4457_s20  ;;  %vm2418_vm7 = vcmp.gt.f32.partialorder %v4092_v22, 0.0 }
0x1690   :  { %v2318_v26 = vpop.permute.xlu2 %2317  ;;  %v2419_v28 = vsel %vm2418_vm7, 1, %v4454_v34 }
0x169b   :  { %v2449_v42 = vpop.permute.xlu0 %2448 }
0x169c   :  { %4097 = vmatmul.msk.f32.vlgmr.msra.gmra.mxu1 %vm61_vm14, %v2449_v42 }
0x16f9   :  { %v2180_v18 = vpop.permute.xlu1 %2179 }
0x16fa   :  { %v5499_v40 = vmul.f32 %v2180_v18, %v2163_v63 }
0x16fc   :  { %v5506_v7 = vsel %vm2188_vm5, %v5499_v40, %v5411_v11 }
0x16fd   :  { %2329 = vrot.lane.b32.xlu0 %v5506_v7, %s4457_s20 }
0x1701   :  { %v609_v27 = vpop.permute.xlu1 %608 }
0x1702   :  { %612 = vst.msk [vmem:[#allocation2 + $0x4] sm:$0x3] %vm163_vm13, %v609_v27 }
0x1709   :  { %v2314_v19 = vld [vmem:[#allocation2 + $0x4] sm:$0x3] }
0x170a   :  { %v2320_v0 = vsel %vm61_vm14, %v2314_v19, %v2318_v26 }
0x170b   :  { %4094 = vmatmul.msk.f32.vlgmr.msra.gmra.mxu2 %vm6210_vm0, %v2320_v0 }
0x1712   :  { %v2492_v32 = vpop.f32.mrf.mxu3 }
0x1719   :  { %v2469_v38 = vpop.f32.mrf.mxu1 }
0x171a   :  { %v2493_v11 = vadd.f32 %v2492_v32, %v2469_v38 }
0x171c   :  { %v2499_v52 = vadd.f32 %v4183_v21, %v2493_v11 }
0x171e   :  { %4356 = vtanh.f32 %v2499_v52  ;;  %v4099_v4 = vmul.f32 -1.442695, %v2499_v52  ;;  %v1062_v52 = vsel %vm1061_vm1, %v4996_v25, 0.0 }
0x1720   :  { %4358 = vpow2.f32 %v4099_v4  ;;  %v5574_v4 = vsel %vm2188_vm5, %v5485_v48, %v5482_v31  ;;  %v834_v31 = vsel %vm833_vm12, %v4926_v56, 0.0 }
0x1724   :  { %v4357_v43 = vpop.eup %4356 }
0x1725   :  { %2522 = vrot.lane.b32.xlu1 %v4357_v43, %s4453_s26 }
0x1726   :  { %v4359_v50 = vpop.eup %4358 }
0x1727   :  { %v2503_v60 = vadd.f32 1.0, %v4359_v50 }
0x1729   :  { %4360 = vrcp.f32 %v2503_v60  ;;  %v2515_v15 = vand.u32 2147483648, %v2503_v60  ;;  %vm2509_vm10 = vweird.f32 %v2503_v60  ;;  %v2513_v37 = vand.u32 2147483647, %v2503_v60 }
0x172b   :  { %v2516_v33 = vor.u32 1.1754944e-38, %v2515_v15  ;;  %vm2514_vm4 = vcmp.eq.f32.partialorder %v2513_v37, 8.507059e+37 }
0x172d   :  { %953 = vrot.lane.b32.xlu1 %v949_v62, %s4457_s20 }
0x172f   :  { %v4361_v45 = vpop.eup %4360 }
0x1730   :  { %v2505_v58 = vmul.f32 %v4361_v45, %v2503_v60  ;;  %vm2510_vm11 = vweird.f32 %v4361_v45 }
0x1731   :  { %vm2511_vm6 = vmor %vm2509_vm10, %vm2510_vm11 }
0x1732   :  { %v2506_v29 = vsub.f32 1.0, %v2505_v58 }
0x1734   :  { %v2507_v14 = vmul.f32 %v4361_v45, %v2506_v29 }
0x1735   :  { %2540 = vperm.xlu1 %4161, %v2538_v57  }
0x1736   :  { %v2508_v44 = vadd.f32 %v4361_v45, %v2507_v14 }
0x1738   :  { %v2512_v30 = vsel %vm2511_vm6, %v4361_v45, %v2508_v44 }
0x1739   :  { %v2517_v36 = vsel %vm2514_vm4, %v2516_v33, %v2512_v30 }
0x173a   :  { %v2520_v16 = vmul.f32 %v2517_v36, %v5537_v1 }
0x176f   :  { %v2330_v47 = vpop.permute.xlu0 %2329 }
0x1770   :  { %4093 = vmatmul.msk.f32.vlgmr.msra.gmra.mxu0 %vm61_vm14, %v2330_v47 }
0x178e   :  { %v2373_v63 = vpop.f32.mrf.mxu2 }
0x1797   :  { %v2523_v6 = vpop.permute.xlu1 %2522 }
0x1798   :  { %v2525_v51 = vmul.f32 %v2523_v6, %v2517_v36 }
0x179a   :  { %2527 = vrot.lane.b32.xlu0 %v2525_v51, %s4455_s27 }
0x179f   :  { %v954_v13 = vpop.permute.xlu1 %953 }
0x17a0   :  { %957 = vst.msk [vmem:[#allocation3 + $0x8] sm:$0x3] %vm163_vm13, %v954_v13 }
0x17a7   :  { %v2672_v55 = vld [vmem:[#allocation3 + $0x8] sm:$0x3]  ;;  %v5555_v43 = vpop.permute.xlu1 %2540 }
0x17a8   :  { %2674 = vrot.lane.b32.xlu1 %v2672_v55, %s4455_s27  ;;  %vm2542_vm11 = vcmp.eq.s32.totalorder %v5555_v43, 1 }
0x17ed   :  { %v2350_v12 = vpop.f32.mrf.mxu0 }
0x17ee   :  { %v2374_v5 = vadd.f32 %v2373_v63, %v2350_v12 }
0x17f0   :  { %v2380_v9 = vadd.f32 %v4184_v59, %v2374_v5 }
0x17f2   :  { %4362 = vtanh.f32 %v2380_v9  ;;  %v4095_v10 = vmul.f32 -1.442695, %v2380_v9 }
0x17f8   :  { %v4363_v53 = vpop.eup %4362 }
0x17f9   :  { %2403 = vrot.lane.b32.xlu2 %v4363_v53, %s4453_s26 }
0x180c   :  { %v2528_v8 = vpop.permute.xlu0 %2527 }
0x180d   :  { %v5540_v24 = vadd.f32 %v2528_v8, %v2520_v16 }
0x180f   :  { %4364 = vtanh.f32 %v5540_v24 }
0x1810   :  { %4366 = vpow2.f32 %v4095_v10 }
0x1815   :  { %v4365_v49 = vpop.eup %4364 }
0x1816   :  { %2533 = vrot.lane.b32.xlu0 %v4365_v49, %s4456_s17  ;;  %v4367_v61 = vpop.eup %4366 }
0x1817   :  { %v2384_v2 = vadd.f32 1.0, %v4367_v61 }
0x1819   :  { %4368 = vrcp.f32 %v2384_v2  ;;  %v2396_v19 = vand.u32 2147483648, %v2384_v2  ;;  %vm2390_vm8 = vweird.f32 %v2384_v2  ;;  %v2394_v0 = vand.u32 2147483647, %v2384_v2 }
0x181a   :  { %v2675_v58 = vpop.permute.xlu1 %2674 }
0x181b   :  { %v2397_v21 = vor.u32 1.1754944e-38, %v2396_v19  ;;  %vm2395_vm9 = vcmp.eq.f32.partialorder %v2394_v0, 8.507059e+37  ;;  %v4100_v19 = vld [vmem:[%s6197_s1 + $0x6] sm:$0x3] }
0x181e   :  { %1179 = vrot.lane.b32.xlu0 %v5037_v39, %s4457_s20 }
0x181f   :  { %v4369_v46 = vpop.eup %4368 }
0x1820   :  { %v2386_v42 = vmul.f32 %v4369_v46, %v2384_v2  ;;  %vm2391_vm3 = vweird.f32 %v4369_v46 }
0x1821   :  { %vm2392_vm15 = vmor %vm2390_vm8, %vm2391_vm3  ;;  %vm2656_vm3 = vcmp.gt.f32.partialorder %v4100_v19, 0.0 }
0x1822   :  { %v2387_v18 = vsub.f32 1.0, %v2386_v42  ;;  %v2657_v0 = vsel %vm2656_vm3, 1, %v4454_v34 }
0x1824   :  { %v2388_v27 = vmul.f32 %v4369_v46, %v2387_v18 }
0x1826   :  { %2421 = vperm.xlu0 %4162, %v2419_v28   ;;  %v2389_v26 = vadd.f32 %v4369_v46, %v2388_v27  ;;  %v4104_v27 = vld [vmem:[%s6197_s1 + $0x8] sm:$0x3] }
0x1827   :  { %vm2775_vm7 = vcmp.gt.f32.partialorder %v4104_v27, 0.0  ;;  %v5742_v27 = vld [vmem:[%s6201_s8] sm:$0xff] }
0x1828   :  { %v2393_v39 = vsel %vm2392_vm15, %v4369_v46, %v2389_v26  ;;  %v2776_v26 = vsel %vm2775_vm7, 1, %v4454_v34 }
0x1829   :  { %v2398_v38 = vsel %vm2395_vm9, %v2397_v21, %v2393_v39  ;;  %v4186_v39 = vld [vmem:[%s6203_s12] ss:$0 sm:$0xff] }
0x182a   :  { %v2401_v47 = vmul.f32 %v2398_v38, %v5574_v4 }
0x1853   :  { %v2404_v32 = vpop.permute.xlu2 %2403 }
0x1854   :  { %v2406_v11 = vmul.f32 %v2404_v32, %v2398_v38 }
0x1856   :  { %2408 = vrot.lane.b32.xlu2 %v2406_v11, %s4455_s27 }
0x185e   :  { %1066 = vrot.lane.b32.xlu2 %v1062_v52, %s4457_s20 }
0x1888   :  { %v2534_v62 = vpop.permute.xlu0 %2533 }
0x1889   :  { %v5557_v23 = vmul.f32 %v2534_v62, %v2517_v36  ;;  %v4185_v36 = vld [vmem:[%s6200_s13] ss:$0 sm:$0xff]  ;;  %v5630_v62 = vsel %vm2542_vm11, %v5540_v24, %v5537_v1 }
0x188b   :  { %v5564_v57 = vsel %vm2542_vm11, %v5557_v23, %v5473_v41 }
0x188c   :  { %2686 = vrot.lane.b32.xlu1 %v5564_v57, %s4457_s20 }
0x1890   :  { %v1180_v20 = vpop.permute.xlu0 %1179 }
0x1891   :  { %1183 = vst.msk [vmem:[#allocation3 + $0x6] sm:$0x3] %vm163_vm13, %v1180_v20 }
0x1898   :  { %v2553_v25 = vld [vmem:[#allocation3 + $0x6] sm:$0x3]  ;;  %v5589_v44 = vpop.permute.xlu0 %2421 }
0x1899   :  { %2555 = vrot.lane.b32.xlu0 %v2553_v25, %s4455_s27  ;;  %vm6208_vm1 = vcmp.eq.s32.totalorder %v5589_v44, 1 }
0x18b0   :  { %v2409_v50 = vpop.permute.xlu2 %2408 }
0x18b1   :  { %v5577_v41 = vadd.f32 %v2409_v50, %v2401_v47 }
0x18b3   :  { %4370 = vtanh.f32 %v5577_v41 }
0x18b8   :  { %v1067_v60 = vpop.permute.xlu2 %1066 }
0x18b9   :  { %v4371_v45 = vpop.eup %4370  ;;  %1070 = vst.msk [vmem:[#allocation2 + $0x8] sm:$0x3] %vm163_vm13, %v1067_v60 }
0x18ba   :  { %2414 = vrot.lane.b32.xlu2 %v4371_v45, %s4456_s17 }
0x18c0   :  { %v2671_v29 = vld [vmem:[#allocation2 + $0x8] sm:$0x3] }
0x18c1   :  { %v2677_v14 = vsel %vm61_vm14, %v2671_v29, %v2675_v58 }
0x18c2   :  { %4106 = vmatmul.msk.f32.vlgmr.msrb.gmra.mxu3 %vm6210_vm0, %v2677_v14  ;;  %838 = vrot.lane.b32.xlu2 %v834_v31, %s4457_s20 }
0x18fe   :  { %v2687_v48 = vpop.permute.xlu1 %2686 }
0x18ff   :  { %4105 = vmatmul.msk.f32.vlgmr.msrb.gmra.mxu1 %vm61_vm14, %v2687_v48 }
0x190b   :  { %v2556_v30 = vpop.permute.xlu0 %2555 }
0x1914   :  { %v2415_v15 = vpop.permute.xlu2 %2414 }
0x1915   :  { %v5591_v37 = vmul.f32 %v2415_v15, %v2398_v38 }
0x1917   :  { %v5598_v54 = vsel %vm6208_vm1, %v5591_v37, %v5506_v7 }
0x1918   :  { %2567 = vrot.lane.b32.xlu1 %v5598_v54, %s4457_s20 }
0x191c   :  { %v839_v56 = vpop.permute.xlu2 %838 }
0x191d   :  { %842 = vst.msk [vmem:[#allocation2 + $0x6] sm:$0x3] %vm163_vm13, %v839_v56 }
0x1924   :  { %v2552_v33 = vld [vmem:[#allocation2 + $0x6] sm:$0x3] }
0x1925   :  { %v2558_v6 = vsel %vm61_vm14, %v2552_v33, %v2556_v30 }
0x1926   :  { %4102 = vmatmul.msk.f32.vlgmr.msrb.gmra.mxu2 %vm6210_vm0, %v2558_v6 }
0x1945   :  { %v2730_v51 = vpop.f32.mrf.mxu3 }
0x197c   :  { %v2707_v13 = vpop.f32.mrf.mxu1 }
0x197d   :  { %v2731_v7 = vadd.f32 %v2730_v51, %v2707_v13  ;;  %v2910_v51 = vld [vmem:[#allocation3 + $0x6] sm:$0x3]  ;;  %v5646_v13 = vld [vmem:[%s6198_s9 + $0x18] sm:$0xff] }
0x197e   :  { %2963 = vmatpush.msra.mxu3 %v5646_v13 }
0x197f   :  { %v2737_v55 = vadd.f32 %v4185_v36, %v2731_v7  ;;  %v5651_v7 = vld [vmem:[%s6198_s9 + $0x10] sm:$0xff] }
0x1980   :  { %2964 = vmatpush.msra.mxu3 %v5651_v7 }
0x1981   :  { %4372 = vtanh.f32 %v2737_v55  ;;  %v4107_v12 = vmul.f32 -1.442695, %v2737_v55  ;;  %v5657_v55 = vld [vmem:[%s6198_s9 + $0x8] sm:$0xff] }
0x1982   :  { %2965 = vmatpush.msra.mxu3 %v5657_v55 }
0x1983   :  { %4374 = vpow2.f32 %v4107_v12 }
0x1987   :  { %v4373_v59 = vpop.eup %4372 }
0x1988   :  { %2760 = vrot.lane.b32.xlu2 %v4373_v59, %s4453_s26  ;;  %v5664_v59 = vld [vmem:[%s6198_s9] sm:$0xff] }
0x1989   :  { %v4375_v5 = vpop.eup %4374  ;;  %2966 = vmatpush.msra.mxu3 %v5664_v59 }
0x198a   :  { %v2568_v63 = vpop.permute.xlu1 %2567  ;;  %v2741_v9 = vadd.f32 1.0, %v4375_v5 }
0x198b   :  { %4101 = vmatmul.msk.f32.vlgmr.msrb.gmra.mxu0 %vm61_vm14, %v2568_v63  ;;  %3201 = vmatpush.msrb.mxu3 %v5646_v13 }
0x198c   :  { %4376 = vrcp.f32 %v2741_v9  ;;  %v2753_v28 = vand.u32 2147483648, %v2741_v9  ;;  %vm2747_vm10 = vweird.f32 %v2741_v9  ;;  %v2751_v10 = vand.u32 2147483647, %v2741_v9 }
0x198d   :  { %3202 = vmatpush.msrb.mxu3 %v5651_v7 }
0x198e   :  { %v2754_v2 = vor.u32 1.1754944e-38, %v2753_v28  ;;  %vm2752_vm4 = vcmp.eq.f32.partialorder %v2751_v10, 8.507059e+37  ;;  %v2909_v28 = vld [vmem:[#allocation2 + $0x6] sm:$0x3] }
0x198f   :  { %3203 = vmatpush.msrb.mxu3 %v5657_v55 }
0x1991   :  { %3204 = vmatpush.msrb.mxu3 %v5664_v59 }
0x1992   :  { %v4377_v53 = vpop.eup %4376 }
0x1993   :  { %v2743_v16 = vmul.f32 %v4377_v53, %v2741_v9  ;;  %vm2748_vm12 = vweird.f32 %v4377_v53  ;;  %v5680_v9 = vld [vmem:[%s6199_s11 + $0x8] sm:$0xff] }
0x1994   :  { %vm2749_vm6 = vmor %vm2747_vm10, %vm2748_vm12  ;;  %2942 = vmatpush.msra.mxu1 %v5680_v9 }
0x1995   :  { %v2744_v8 = vsub.f32 1.0, %v2743_v16 }
0x1997   :  { %v2745_v49 = vmul.f32 %v4377_v53, %v2744_v8  ;;  %v5703_v8 = vsel %vm6208_vm1, %v5577_v41, %v5574_v4  ;;  %v2791_v4 = vld [vmem:[#allocation3 + $0x8] sm:$0x3] }
0x1999   :  { %v2746_v22 = vadd.f32 %v4377_v53, %v2745_v49 }
0x199b   :  { %v2750_v61 = vsel %vm2749_vm6, %v4377_v53, %v2746_v22  ;;  %v5685_v53 = vld [vmem:[%s6199_s11] sm:$0xff] }
0x199c   :  { %v5610_v46 = vsel %vm2752_vm4, %v2754_v2, %v2750_v61  ;;  %2943 = vmatpush.msra.mxu1 %v5685_v53 }
0x199d   :  { %v2758_v20 = vmul.f32 %v5610_v46, %v5630_v62 }
0x199e   :  { %3180 = vmatpush.msrb.mxu1 %v5680_v9 }
0x19a0   :  { %3181 = vmatpush.msrb.mxu1 %v5685_v53 }
0x19a9   :  { %v2611_v21 = vpop.f32.mrf.mxu2 }
0x19e2   :  { %v2761_v42 = vpop.permute.xlu2 %2760 }
0x19e3   :  { %v2763_v18 = vmul.f32 %v2761_v42, %v5610_v46  ;;  %v5730_v42 = vld [vmem:[%s6201_s8 + $0x10] sm:$0xff] }
0x19e5   :  { %2765 = vrot.lane.b32.xlu1 %v2763_v18, %s4455_s27  ;;  %v5735_v18 = vld [vmem:[%s6201_s8 + $0x8] sm:$0xff] }
0x19ed   :  { %2778 = vperm.xlu1 %4161, %v2776_v26  }
0x19f5   :  { %2659 = vperm.xlu1 %4161, %v2657_v0  }
0x1a08   :  { %v2588_v32 = vpop.f32.mrf.mxu0 }
0x1a09   :  { %v2612_v38 = vadd.f32 %v2611_v21, %v2588_v32  ;;  %v2790_v21 = vld [vmem:[#allocation2 + $0x8] sm:$0x3] }
0x1a0b   :  { %v2618_v11 = vadd.f32 %v4186_v39, %v2612_v38 }
0x1a0d   :  { %4378 = vtanh.f32 %v2618_v11  ;;  %v4103_v50 = vmul.f32 -1.442695, %v2618_v11  ;;  %v5777_v11 = vld [vmem:[%s6202_s10] sm:$0xff] }
0x1a13   :  { %v4379_v52 = vpop.eup %4378 }
0x1a14   :  { %2641 = vrot.lane.b32.xlu0 %v4379_v52, %s4453_s26  ;;  %v4187_v52 = vld [vmem:[%s6200_s13] ss:$0 sm:$0xff] }
0x1a57   :  { %v2766_v25 = vpop.permute.xlu1 %2765 }
0x1a58   :  { %v5634_v47 = vadd.f32 %v2766_v25, %v2758_v20 }
0x1a5a   :  { %4380 = vtanh.f32 %v5634_v47 }
0x1a5b   :  { %4382 = vpow2.f32 %v4103_v50 }
0x1a5f   :  { %v5669_v63 = vpop.permute.xlu1 %2778 }
0x1a60   :  { %v4381_v60 = vpop.eup %4380  ;;  %vm6209_vm10 = vcmp.eq.s32.totalorder %v5669_v63, 1 }
0x1a61   :  { %2771 = vrot.lane.b32.xlu0 %v4381_v60, %s4456_s17  ;;  %v4383_v45 = vpop.eup %4382 }
0x1a62   :  { %v2622_v58 = vadd.f32 1.0, %v4383_v45 }
0x1a64   :  { %4384 = vrcp.f32 %v2622_v58  ;;  %v2634_v48 = vand.u32 2147483648, %v2622_v58  ;;  %vm2628_vm15 = vweird.f32 %v2622_v58  ;;  %v2632_v15 = vand.u32 2147483647, %v2622_v58 }
0x1a66   :  { %v2635_v30 = vor.u32 1.1754944e-38, %v2634_v48  ;;  %vm2633_vm12 = vcmp.eq.f32.partialorder %v2632_v15, 8.507059e+37 }
0x1a67   :  { %v5749_v26 = vpop.permute.xlu1 %2659 }
0x1a68   :  { %vm2661_vm6 = vcmp.eq.s32.totalorder %v5749_v26, 1 }
0x1a6a   :  { %v4385_v29 = vpop.eup %4384 }
0x1a6b   :  { %v2624_v14 = vmul.f32 %v4385_v29, %v2622_v58  ;;  %vm2629_vm8 = vweird.f32 %v4385_v29 }
0x1a6c   :  { %vm2630_vm9 = vmor %vm2628_vm15, %vm2629_vm8 }
0x1a6d   :  { %v2625_v1 = vsub.f32 1.0, %v2624_v14 }
0x1a6f   :  { %v2626_v24 = vmul.f32 %v4385_v29, %v2625_v1 }
0x1a71   :  { %v2627_v31 = vadd.f32 %v4385_v29, %v2626_v24 }
0x1a73   :  { %v2631_v56 = vsel %vm2630_vm9, %v4385_v29, %v2627_v31 }
0x1a74   :  { %v5638_v6 = vsel %vm2633_vm12, %v2635_v30, %v2631_v56 }
0x1a86   :  { %v2642_v33 = vpop.permute.xlu0 %2641 }
0x1a87   :  { %v2644_v36 = vmul.f32 %v2642_v33, %v5638_v6 }
0x1a89   :  { %2646 = vrot.lane.b32.xlu2 %v2644_v36, %s4455_s27 }
0x1a91   :  { %2912 = vrot.lane.b32.xlu2 %v2910_v51, %s4455_s27 }
0x1ad3   :  { %v2772_v12 = vpop.permute.xlu0 %2771 }
0x1ad4   :  { %v5673_v5 = vmul.f32 %v2772_v12, %v5610_v46  ;;  %v5724_v46 = vld [vmem:[%s6201_s8 + $0x18] sm:$0xff] }
0x1ad5   :  { %2844 = vmatpush.msra.mxu2 %v5724_v46 }
0x1ad6   :  { %v5691_v16 = vsel %vm6209_vm10, %v5673_v5, %v5564_v57  ;;  %v2639_v57 = vmul.f32 %v5638_v6, %v5703_v8 }
0x1ad7   :  { %2924 = vrot.lane.b32.xlu2 %v5691_v16, %s4457_s20  ;;  %2845 = vmatpush.msra.mxu2 %v5730_v42 }
0x1ad9   :  { %2846 = vmatpush.msra.mxu2 %v5735_v18 }
0x1adb   :  { %2847 = vmatpush.msra.mxu2 %v5742_v27 }
0x1add   :  { %3082 = vmatpush.msrb.mxu2 %v5724_v46 }
0x1adf   :  { %3083 = vmatpush.msrb.mxu2 %v5730_v42 }
0x1ae1   :  { %3084 = vmatpush.msrb.mxu2 %v5735_v18 }
0x1ae3   :  { %v2647_v49 = vpop.permute.xlu2 %2646  ;;  %3085 = vmatpush.msrb.mxu2 %v5742_v27 }
0x1ae4   :  { %v5707_v22 = vadd.f32 %v2647_v49, %v2639_v57  ;;  %v4112_v49 = vld [vmem:[%s6197_s1 + $0x6] sm:$0x3] }
0x1ae5   :  { %vm3013_vm15 = vcmp.gt.f32.partialorder %v4112_v49, 0.0 }
0x1ae6   :  { %4386 = vtanh.f32 %v5707_v22 }
0x1aeb   :  { %v2913_v10 = vpop.permute.xlu2 %2912 }
0x1aec   :  { %v4387_v61 = vpop.eup %4386  ;;  %v2915_v2 = vsel %vm61_vm14, %v2909_v28, %v2913_v10  ;;  %v3014_v28 = vsel %vm3013_vm15, 1, %v4454_v34  ;;  %v4108_v10 = vld [vmem:[%s6197_s1 + $0x8] sm:$0x3] }
0x1aed   :  { %2652 = vrot.lane.b32.xlu0 %v4387_v61, %s4456_s17  ;;  %4114 = vmatmul.msk.f32.vlgmr.msra.gmra.mxu3 %vm6210_vm0, %v2915_v2  ;;  %vm2894_vm9 = vcmp.gt.f32.partialorder %v4108_v10, 0.0  ;;  %v4188_v2 = vld [vmem:[%s6203_s12] ss:$0 sm:$0xff] }
0x1aee   :  { %3439 = vmatpush.msra.mxu3 %v5646_v13  ;;  %v2895_v61 = vsel %vm2894_vm9, 1, %v4454_v34 }
0x1af0   :  { %3440 = vmatpush.msra.mxu3 %v5651_v7 }
0x1af2   :  { %3441 = vmatpush.msra.mxu3 %v5657_v55 }
0x1af4   :  { %3442 = vmatpush.msra.mxu3 %v5664_v59 }
0x1af5   :  { %2793 = vrot.lane.b32.xlu0 %v2791_v4, %s4455_s27 }
0x1b31   :  { %v2925_v41 = vpop.permute.xlu2 %2924 }
0x1b32   :  { %4113 = vmatmul.msk.f32.vlgmr.msra.gmra.mxu1 %vm61_vm14, %v2925_v41 }
0x1b33   :  { %3418 = vmatpush.msra.mxu1 %v5680_v9 }
0x1b35   :  { %3419 = vmatpush.msra.mxu1 %v5685_v53 }
0x1b5f   :  { %v2653_v19 = vpop.permute.xlu0 %2652 }
0x1b60   :  { %v5752_v0 = vmul.f32 %v2653_v19, %v5638_v6 }
0x1b62   :  { %v5759_v39 = vsel %vm2661_vm6, %v5752_v0, %v5598_v54  ;;  %v5772_v54 = vld [vmem:[%s6202_s10 + $0x8] sm:$0xff] }
0x1b63   :  { %2805 = vrot.lane.b32.xlu1 %v5759_v39, %s4457_s20  ;;  %2823 = vmatpush.msra.mxu0 %v5772_v54 }
0x1b65   :  { %2824 = vmatpush.msra.mxu0 %v5777_v11 }
0x1b67   :  { %v2794_v32 = vpop.permute.xlu0 %2793  ;;  %3061 = vmatpush.msrb.mxu0 %v5772_v54 }
0x1b68   :  { %v2796_v38 = vsel %vm61_vm14, %v2790_v21, %v2794_v32 }
0x1b69   :  { %4110 = vmatmul.msk.f32.vlgmr.msra.gmra.mxu2 %vm6210_vm0, %v2796_v38  ;;  %3062 = vmatpush.msrb.mxu0 %v5777_v11  ;;  %v5807_v38 = vsel %vm6209_vm10, %v5634_v47, %v5630_v62 }
0x1b6a   :  { %3320 = vmatpush.msra.mxu2 %v5724_v46 }
0x1b6c   :  { %3321 = vmatpush.msra.mxu2 %v5730_v42 }
0x1b6e   :  { %3322 = vmatpush.msra.mxu2 %v5735_v18 }
0x1b70   :  { %3323 = vmatpush.msra.mxu2 %v5742_v27  ;;  %v2968_v20 = vpop.f32.mrf.mxu3 }
0x1baf   :  { %v2945_v25 = vpop.f32.mrf.mxu1 }
0x1bb0   :  { %v2969_v50 = vadd.f32 %v2968_v20, %v2945_v25 }
0x1bb2   :  { %v2975_v60 = vadd.f32 %v4187_v52, %v2969_v50 }
0x1bb4   :  { %4388 = vtanh.f32 %v2975_v60  ;;  %v4115_v29 = vmul.f32 -1.442695, %v2975_v60 }
0x1bb6   :  { %4390 = vpow2.f32 %v4115_v29 }
0x1bba   :  { %v4389_v45 = vpop.eup %4388 }
0x1bbb   :  { %2998 = vrot.lane.b32.xlu2 %v4389_v45, %s4453_s26 }
0x1bbc   :  { %v4391_v14 = vpop.eup %4390 }
0x1bbd   :  { %v2979_v1 = vadd.f32 1.0, %v4391_v14 }
0x1bbf   :  { %4392 = vrcp.f32 %v2979_v1  ;;  %v2991_v30 = vand.u32 2147483648, %v2979_v1  ;;  %vm2985_vm7 = vweird.f32 %v2979_v1  ;;  %v2989_v33 = vand.u32 2147483647, %v2979_v1 }
0x1bc1   :  { %v2992_v36 = vor.u32 1.1754944e-38, %v2991_v30  ;;  %vm2990_vm8 = vcmp.eq.f32.partialorder %v2989_v33, 8.507059e+37 }
0x1bc5   :  { %v4393_v24 = vpop.eup %4392 }
0x1bc6   :  { %v2981_v31 = vmul.f32 %v4393_v24, %v2979_v1  ;;  %vm2986_vm4 = vweird.f32 %v4393_v24 }
0x1bc7   :  { %vm2987_vm3 = vmor %vm2985_vm7, %vm2986_vm4 }
0x1bc8   :  { %v2982_v48 = vsub.f32 1.0, %v2981_v31 }
0x1bca   :  { %v2983_v15 = vmul.f32 %v4393_v24, %v2982_v48 }
0x1bcc   :  { %v2984_v56 = vadd.f32 %v4393_v24, %v2983_v15 }
0x1bce   :  { %v2988_v6 = vsel %vm2987_vm3, %v4393_v24, %v2984_v56 }
0x1bcf   :  { %v2993_v12 = vsel %vm2990_vm8, %v2992_v36, %v2988_v6  ;;  %v3148_v6 = vld [vmem:[#allocation3 + $0x4] sm:$0x3] }
0x1bd0   :  { %v2996_v52 = vmul.f32 %v2993_v12, %v5807_v38 }
0x1bd5   :  { %v2806_v58 = vpop.permute.xlu1 %2805 }
0x1bd6   :  { %4109 = vmatmul.msk.f32.vlgmr.msra.gmra.mxu0 %vm61_vm14, %v2806_v58 }
0x1bd7   :  { %3299 = vmatpush.msra.mxu0 %v5772_v54 }
0x1bd9   :  { %3300 = vmatpush.msra.mxu0 %v5777_v11 }
0x1bec   :  { %v2849_v4 = vpop.f32.mrf.mxu2 }
0x1c15   :  { %v2999_v51 = vpop.permute.xlu2 %2998 }
0x1c16   :  { %v3001_v57 = vmul.f32 %v2999_v51, %v2993_v12 }
0x1c18   :  { %3003 = vrot.lane.b32.xlu1 %v3001_v57, %s4455_s27 }
0x1c20   :  { %3016 = vperm.xlu1 %4161, %v3014_v28   ;;  %v5833_v28 = vsel %vm2661_vm6, %v5707_v22, %v5703_v8  ;;  %v3029_v8 = vld [vmem:[#allocation3 + $0xa] sm:$0x3] }
0x1c28   :  { %2897 = vperm.xlu1 %4161, %v2895_v61  }
0x1c53   :  { %v2826_v41 = vpop.f32.mrf.mxu0 }
0x1c54   :  { %v2850_v19 = vadd.f32 %v2849_v4, %v2826_v41 }
0x1c56   :  { %v2856_v21 = vadd.f32 %v4188_v2, %v2850_v19  ;;  %v3147_v2 = vld [vmem:[#allocation2 + $0x4] sm:$0x3] }
0x1c58   :  { %4394 = vtanh.f32 %v2856_v21  ;;  %v4111_v60 = vmul.f32 -1.442695, %v2856_v21 }
0x1c5e   :  { %v4395_v32 = vpop.eup %4394 }
0x1c5f   :  { %2879 = vrot.lane.b32.xlu0 %v4395_v32, %s4453_s26 }
0x1c8a   :  { %v3004_v20 = vpop.permute.xlu1 %3003 }
0x1c8b   :  { %v5810_v25 = vadd.f32 %v3004_v20, %v2996_v52 }
0x1c8d   :  { %4396 = vtanh.f32 %v5810_v25 }
0x1c8e   :  { %4398 = vpow2.f32 %v4111_v60 }
0x1c92   :  { %v5816_v36 = vpop.permute.xlu1 %3016 }
0x1c93   :  { %v4397_v50 = vpop.eup %4396  ;;  %vm3018_vm8 = vcmp.eq.s32.totalorder %v5816_v36, 1 }
0x1c94   :  { %3009 = vrot.lane.b32.xlu0 %v4397_v50, %s4456_s17  ;;  %v4399_v45 = vpop.eup %4398 }
0x1c95   :  { %v2860_v58 = vadd.f32 1.0, %v4399_v45 }
0x1c97   :  { %4400 = vrcp.f32 %v2860_v58  ;;  %v2872_v24 = vand.u32 2147483648, %v2860_v58  ;;  %vm2866_vm4 = vweird.f32 %v2860_v58  ;;  %v2870_v31 = vand.u32 2147483647, %v2860_v58 }
0x1c99   :  { %v2873_v15 = vor.u32 1.1754944e-38, %v2872_v24  ;;  %vm2871_vm3 = vcmp.eq.f32.partialorder %v2870_v31, 8.507059e+37 }
0x1c9a   :  { %v5850_v19 = vpop.permute.xlu1 %2897 }
0x1c9b   :  { %vm2899_vm15 = vcmp.eq.s32.totalorder %v5850_v19, 1 }
0x1c9d   :  { %v4401_v29 = vpop.eup %4400 }
0x1c9e   :  { %v2862_v14 = vmul.f32 %v4401_v29, %v2860_v58  ;;  %vm2867_vm12 = vweird.f32 %v4401_v29 }
0x1c9f   :  { %vm2868_vm7 = vmor %vm2866_vm4, %vm2867_vm12 }
0x1ca0   :  { %v2863_v1 = vsub.f32 1.0, %v2862_v14 }
0x1ca2   :  { %v2864_v62 = vmul.f32 %v4401_v29, %v2863_v1 }
0x1ca4   :  { %v2865_v47 = vadd.f32 %v4401_v29, %v2864_v62 }
0x1ca6   :  { %v2869_v48 = vsel %vm2868_vm7, %v4401_v29, %v2865_v47 }
0x1ca7   :  { %v2874_v30 = vsel %vm2871_vm3, %v2873_v15, %v2869_v48 }
0x1cd1   :  { %v2880_v56 = vpop.permute.xlu0 %2879 }
0x1cd2   :  { %v2882_v33 = vmul.f32 %v2880_v56, %v2874_v30  ;;  %v4116_v56 = vld [vmem:[%s6197_s1 + $0xa] sm:$0x3] }
0x1cd4   :  { %2884 = vrot.lane.b32.xlu2 %v2882_v33, %s4455_s27  ;;  %v4190_v33 = vld [vmem:[%s6203_s12] ss:$0 sm:$0xff] }
0x1cdc   :  { %3150 = vrot.lane.b32.xlu2 %v3148_v6, %s4455_s27 }
0x1d06   :  { %v3010_v51 = vpop.permute.xlu0 %3009 }
0x1d07   :  { %v5818_v57 = vmul.f32 %v3010_v51, %v2993_v12  ;;  %v2877_v12 = vmul.f32 %v2874_v30, %v5833_v28 }
0x1d09   :  { %v5825_v49 = vsel %vm3018_vm8, %v5818_v57, %v5691_v16 }
0x1d0a   :  { %3162 = vrot.lane.b32.xlu2 %v5825_v49, %s4457_s20 }
0x1d2e   :  { %v2885_v10 = vpop.permute.xlu2 %2884 }
0x1d2f   :  { %v5836_v61 = vadd.f32 %v2885_v10, %v2877_v12 }
0x1d31   :  { %4402 = vtanh.f32 %v5836_v61 }
0x1d36   :  { %v3151_v4 = vpop.permute.xlu2 %3150 }
0x1d37   :  { %v4403_v16 = vpop.eup %4402  ;;  %v3153_v41 = vsel %vm61_vm14, %v3147_v2, %v3151_v4  ;;  %v5893_v4 = vsel %vm3018_vm8, %v5810_v25, %v5807_v38 }
0x1d38   :  { %4122 = vmatmul.msk.f32.vlgmr.msrb.gmra.mxu3 %vm6210_vm0, %v3153_v41  ;;  %2890 = vrot.lane.b32.xlu0 %v4403_v16, %s4456_s17 }
0x1d39   :  { %3675 = vmatpush.msrb.mxu3 %v5646_v13 }
0x1d3b   :  { %3676 = vmatpush.msrb.mxu3 %v5651_v7 }
0x1d3d   :  { %3677 = vmatpush.msrb.mxu3 %v5657_v55  ;;  %v3028_v55 = vld [vmem:[#allocation2 + $0xa] sm:$0x3] }
0x1d3f   :  { %3678 = vmatpush.msrb.mxu3 %v5664_v59 }
0x1d40   :  { %3031 = vrot.lane.b32.xlu0 %v3029_v8, %s4455_s27 }
0x1d64   :  { %v3163_v22 = vpop.permute.xlu2 %3162 }
0x1d65   :  { %4121 = vmatmul.msk.f32.vlgmr.msrb.gmra.mxu1 %vm61_vm14, %v3163_v22 }
0x1d66   :  { %3654 = vmatpush.msrb.mxu1 %v5680_v9 }
0x1d68   :  { %3655 = vmatpush.msrb.mxu1 %v5685_v53  ;;  %v4189_v53 = vld [vmem:[%s6200_s13] ss:$0 sm:$0xff] }
0x1daa   :  { %v2891_v21 = vpop.permute.xlu0 %2890 }
0x1dab   :  { %v5852_v13 = vmul.f32 %v2891_v21, %v2874_v30 }
0x1dad   :  { %v5859_v7 = vsel %vm2899_vm15, %v5852_v13, %v5759_v39 }
0x1dae   :  { %3043 = vrot.lane.b32.xlu1 %v5859_v7, %s4457_s20 }
0x1db2   :  { %v3032_v59 = vpop.permute.xlu0 %3031 }
0x1db3   :  { %v3034_v9 = vsel %vm61_vm14, %v3028_v55, %v3032_v59 }
0x1db4   :  { %4118 = vmatmul.msk.f32.vlgmr.msrb.gmra.mxu2 %vm6210_vm0, %v3034_v9 }
0x1db5   :  { %3558 = vmatpush.msrb.mxu2 %v5724_v46 }
0x1db7   :  { %3559 = vmatpush.msrb.mxu2 %v5730_v42 }
0x1db9   :  { %3560 = vmatpush.msrb.mxu2 %v5735_v18 }
0x1dbb   :  { %3561 = vmatpush.msrb.mxu2 %v5742_v27  ;;  %v3206_v39 = vpop.f32.mrf.mxu3 }
0x1de2   :  { %v3183_v32 = vpop.f32.mrf.mxu1 }
0x1de3   :  { %v3207_v52 = vadd.f32 %v3206_v39, %v3183_v32 }
0x1de5   :  { %v3213_v20 = vadd.f32 %v4189_v53, %v3207_v52 }
0x1de7   :  { %4404 = vtanh.f32 %v3213_v20  ;;  %v4123_v60 = vmul.f32 -1.442695, %v3213_v20 }
0x1de9   :  { %4406 = vpow2.f32 %v4123_v60 }
0x1ded   :  { %v4405_v50 = vpop.eup %4404 }
0x1dee   :  { %3236 = vrot.lane.b32.xlu2 %v4405_v50, %s4453_s26 }
0x1def   :  { %v4407_v42 = vpop.eup %4406 }
0x1df0   :  { %v3217_v18 = vadd.f32 1.0, %v4407_v42 }
0x1df2   :  { %4408 = vrcp.f32 %v3217_v18  ;;  %v3229_v1 = vand.u32 2147483648, %v3217_v18  ;;  %vm3223_vm12 = vweird.f32 %v3217_v18  ;;  %v3227_v62 = vand.u32 2147483647, %v3217_v18 }
0x1df4   :  { %v3230_v24 = vor.u32 1.1754944e-38, %v3229_v1  ;;  %vm3228_vm7 = vcmp.eq.f32.partialorder %v3227_v62, 8.507059e+37 }
0x1df8   :  { %v4409_v27 = vpop.eup %4408 }
0x1df9   :  { %v3219_v45 = vmul.f32 %v4409_v27, %v3217_v18  ;;  %vm3224_vm9 = vweird.f32 %v4409_v27  ;;  %v3386_v18 = vld [vmem:[#allocation3 + $0x2] sm:$0x3] }
0x1dfa   :  { %vm3225_vm4 = vmor %vm3223_vm12, %vm3224_vm9  ;;  %vm3132_vm9 = vcmp.gt.f32.partialorder %v4116_v56, 0.0 }
0x1dfb   :  { %v3220_v58 = vsub.f32 1.0, %v3219_v45  ;;  %v3133_v30 = vsel %vm3132_vm9, 1, %v4454_v34 }
0x1dfd   :  { %v3221_v29 = vmul.f32 %v4409_v27, %v3220_v58 }
0x1dff   :  { %v3222_v14 = vadd.f32 %v4409_v27, %v3221_v29 }
0x1e01   :  { %v3226_v47 = vsel %vm3225_vm4, %v4409_v27, %v3222_v14  ;;  %v5919_v14 = vsel %vm2899_vm15, %v5836_v61, %v5833_v28 }
0x1e20   :  { %v3044_v46 = vpop.permute.xlu1 %3043 }
0x1e21   :  { %4117 = vmatmul.msk.f32.vlgmr.msrb.gmra.mxu0 %vm61_vm14, %v3044_v46 }
0x1e22   :  { %3537 = vmatpush.msrb.mxu0 %v5772_v54  ;;  %v3231_v54 = vsel %vm3228_vm7, %v3230_v24, %v3226_v47  ;;  %v3385_v24 = vld [vmem:[#allocation2 + $0x2] sm:$0x3] }
0x1e23   :  { %v3234_v16 = vmul.f32 %v3231_v54, %v5893_v4 }
0x1e24   :  { %3538 = vmatpush.msrb.mxu0 %v5777_v11  ;;  %v4120_v11 = vld [vmem:[%s6197_s1 + $0x4] sm:$0x3] }
0x1e25   :  { %vm3251_vm3 = vcmp.gt.f32.partialorder %v4120_v11, 0.0 }
0x1e26   :  { %v3252_v15 = vsel %vm3251_vm3, 1, %v4454_v34 }
0x1e37   :  { %v3087_v6 = vpop.f32.mrf.mxu2 }
0x1e48   :  { %v3237_v31 = vpop.permute.xlu2 %3236 }
0x1e49   :  { %v3239_v48 = vmul.f32 %v3237_v31, %v3231_v54 }
0x1e4b   :  { %3241 = vrot.lane.b32.xlu1 %v3239_v48, %s4455_s27  ;;  %v3267_v48 = vld [vmem:[#allocation3 + $0xc] sm:$0x3] }
0x1e53   :  { %3254 = vperm.xlu1 %4161, %v3252_v15  }
0x1e5b   :  { %3135 = vperm.xlu1 %4161, %v3133_v30   ;;  %v3266_v30 = vld [vmem:[#allocation2 + $0xc] sm:$0x3] }
0x1e9e   :  { %v3064_v51 = vpop.f32.mrf.mxu0 }
0x1e9f   :  { %v3088_v12 = vadd.f32 %v3087_v6, %v3064_v51  ;;  %v4191_v51 = vld [vmem:[%s6200_s13] ss:$0 sm:$0xff] }
0x1ea1   :  { %v3094_v10 = vadd.f32 %v4190_v33, %v3088_v12 }
0x1ea3   :  { %4410 = vtanh.f32 %v3094_v10  ;;  %v4119_v21 = vmul.f32 -1.442695, %v3094_v10 }
0x1ea9   :  { %v4411_v2 = vpop.eup %4410 }
0x1eaa   :  { %3117 = vrot.lane.b32.xlu0 %v4411_v2, %s4453_s26 }
0x1ebd   :  { %v3242_v41 = vpop.permute.xlu1 %3241 }
0x1ebe   :  { %v5896_v8 = vadd.f32 %v3242_v41, %v3234_v16 }
0x1ec0   :  { %4412 = vtanh.f32 %v5896_v8 }
0x1ec1   :  { %4414 = vpow2.f32 %v4119_v21 }
0x1ec5   :  { %v5902_v27 = vpop.permute.xlu1 %3254 }
0x1ec6   :  { %v4413_v22 = vpop.eup %4412  ;;  %vm3256_vm9 = vcmp.eq.s32.totalorder %v5902_v27, 1 }
0x1ec7   :  { %3247 = vrot.lane.b32.xlu0 %v4413_v22, %s4456_s17  ;;  %v4415_v55 = vpop.eup %4414 }
0x1ec8   :  { %v3098_v59 = vadd.f32 1.0, %v4415_v55 }
0x1eca   :  { %4416 = vrcp.f32 %v3098_v59  ;;  %v3110_v32 = vand.u32 2147483648, %v3098_v59  ;;  %vm3104_vm4 = vweird.f32 %v3098_v59  ;;  %v3108_v52 = vand.u32 2147483647, %v3098_v59 }
0x1ecc   :  { %v3111_v50 = vor.u32 1.1754944e-38, %v3110_v32  ;;  %vm3109_vm3 = vcmp.eq.f32.partialorder %v3108_v52, 8.507059e+37 }
0x1ecd   :  { %v5930_v61 = vpop.permute.xlu1 %3135 }
0x1ed0   :  { %v4417_v9 = vpop.eup %4416 }
0x1ed1   :  { %v3100_v53 = vmul.f32 %v4417_v9, %v3098_v59  ;;  %vm3105_vm12 = vweird.f32 %v4417_v9 }
0x1ed2   :  { %vm3106_vm7 = vmor %vm3104_vm4, %vm3105_vm12  ;;  %vm3137_vm12 = vcmp.eq.s32.totalorder %v5930_v61, 1 }
0x1ed3   :  { %v3101_v39 = vsub.f32 1.0, %v3100_v53 }
0x1ed5   :  { %v3102_v38 = vmul.f32 %v4417_v9, %v3101_v39 }
0x1ed7   :  { %v3103_v25 = vadd.f32 %v4417_v9, %v3102_v38 }
0x1ed9   :  { %v3107_v20 = vsel %vm3106_vm7, %v4417_v9, %v3103_v25 }
0x1eda   :  { %v3112_v46 = vsel %vm3109_vm3, %v3111_v50, %v3107_v20 }
0x1edb   :  { %v3115_v1 = vmul.f32 %v3112_v46, %v5919_v14 }
0x1f1c   :  { %v3118_v60 = vpop.permute.xlu0 %3117 }
0x1f1d   :  { %v3120_v42 = vmul.f32 %v3118_v60, %v3112_v46 }
0x1f1f   :  { %3122 = vrot.lane.b32.xlu2 %v3120_v42, %s4455_s27  ;;  %v4128_v42 = vld [vmem:[%s6197_s1 + $0x2] sm:$0x3] }
0x1f20   :  { %vm3489_vm10 = vcmp.gt.f32.partialorder %v4128_v42, 0.0  ;;  %v3621_v42 = vld [vmem:[#allocation2] sm:$0x3] }
0x1f27   :  { %3388 = vrot.lane.b32.xlu2 %v3386_v18, %s4455_s27  ;;  %v3490_v18 = vsel %vm3489_vm10, 1, %v4454_v34 }
0x1f39   :  { %v3248_v45 = vpop.permute.xlu0 %3247 }
0x1f3a   :  { %v5904_v58 = vmul.f32 %v3248_v45, %v3231_v54  ;;  %v4124_v45 = vld [vmem:[%s6197_s1 + $0xc] sm:$0x3] }
0x1f3c   :  { %v5911_v29 = vsel %vm3256_vm9, %v5904_v58, %v5825_v49 }
0x1f3d   :  { %3400 = vrot.lane.b32.xlu2 %v5911_v29, %s4457_s20 }
0x1f79   :  { %v3123_v62 = vpop.permute.xlu2 %3122 }
0x1f7a   :  { %v5922_v47 = vadd.f32 %v3123_v62, %v3115_v1  ;;  %v4192_v62 = vld [vmem:[%s6203_s12] ss:$0 sm:$0xff] }
0x1f7c   :  { %4418 = vtanh.f32 %v5922_v47 }
0x1f81   :  { %v3389_v31 = vpop.permute.xlu2 %3388 }
0x1f82   :  { %v4419_v49 = vpop.eup %4418  ;;  %v3391_v54 = vsel %vm61_vm14, %v3385_v24, %v3389_v31 }
0x1f83   :  { %4130 = vmatmul.msk.f32.vlgmr.msra.gmra.mxu3 %vm6210_vm0, %v3391_v54  ;;  %3128 = vrot.lane.b32.xlu0 %v4419_v49, %s4456_s17 }
0x1f8b   :  { %3269 = vrot.lane.b32.xlu0 %v3267_v48, %s4455_s27  ;;  %v5966_v48 = vsel %vm3256_vm9, %v5896_v8, %v5893_v4 }
0x1f97   :  { %v3401_v28 = vpop.permute.xlu2 %3400 }
0x1f98   :  { %4129 = vmatmul.msk.f32.vlgmr.msra.gmra.mxu1 %vm61_vm14, %v3401_v28 }
0x1ff5   :  { %v3129_v11 = vpop.permute.xlu0 %3128 }
0x1ff6   :  { %v5932_v15 = vmul.f32 %v3129_v11, %v3112_v46 }
0x1ff8   :  { %v5939_v56 = vsel %vm3137_vm12, %v5932_v15, %v5859_v7 }
0x1ff9   :  { %3281 = vrot.lane.b32.xlu1 %v5939_v56, %s4457_s20 }
0x1ffd   :  { %v3270_v33 = vpop.permute.xlu0 %3269 }
0x1ffe   :  { %v3272_v6 = vsel %vm61_vm14, %v3266_v30, %v3270_v33 }
0x1fff   :  { %4126 = vmatmul.msk.f32.vlgmr.msra.gmra.mxu2 %vm6210_vm0, %v3272_v6 }
0x2006   :  { %v3444_v12 = vpop.f32.mrf.mxu3 }
0x2015   :  { %v3421_v10 = vpop.f32.mrf.mxu1 }
0x2016   :  { %v3445_v2 = vadd.f32 %v3444_v12, %v3421_v10 }
0x2018   :  { %v3451_v16 = vadd.f32 %v4191_v51, %v3445_v2 }
0x201a   :  { %4420 = vtanh.f32 %v3451_v16  ;;  %v4131_v41 = vmul.f32 -1.442695, %v3451_v16 }
0x201c   :  { %4422 = vpow2.f32 %v4131_v41 }
0x2020   :  { %v4421_v7 = vpop.eup %4420 }
0x2021   :  { %3474 = vrot.lane.b32.xlu2 %v4421_v7, %s4453_s26 }
0x2022   :  { %v4423_v22 = vpop.eup %4422 }
0x2023   :  { %v3455_v21 = vadd.f32 1.0, %v4423_v22 }
0x2025   :  { %4424 = vrcp.f32 %v3455_v21  ;;  %v3467_v25 = vand.u32 2147483648, %v3455_v21  ;;  %vm3461_vm7 = vweird.f32 %v3455_v21  ;;  %v3465_v32 = vand.u32 2147483647, %v3455_v21 }
0x2027   :  { %v3468_v20 = vor.u32 1.1754944e-38, %v3467_v25  ;;  %vm3466_vm1 = vcmp.eq.f32.partialorder %v3465_v32, 8.507059e+37 }
0x202b   :  { %v4425_v55 = vpop.eup %4424 }
0x202c   :  { %v3457_v59 = vmul.f32 %v4425_v55, %v3455_v21  ;;  %vm3462_vm4 = vweird.f32 %v4425_v55 }
0x202d   :  { %vm3463_vm3 = vmor %vm3461_vm7, %vm3462_vm4  ;;  %vm3370_vm4 = vcmp.gt.f32.partialorder %v4124_v45, 0.0 }
0x202e   :  { %v3458_v53 = vsub.f32 1.0, %v3457_v59  ;;  %v3371_v1 = vsel %vm3370_vm4, 1, %v4454_v34 }
0x2030   :  { %v3459_v39 = vmul.f32 %v4425_v55, %v3458_v53 }
0x2032   :  { %v3460_v38 = vadd.f32 %v4425_v55, %v3459_v39  ;;  %v3622_v39 = vld [vmem:[#allocation3] sm:$0x3] }
0x2034   :  { %v3464_v52 = vsel %vm3463_vm3, %v4425_v55, %v3460_v38 }
0x2035   :  { %v3469_v60 = vsel %vm3466_vm1, %v3468_v20, %v3464_v52  ;;  %v5990_v20 = vsel %vm3137_vm12, %v5922_v47, %v5919_v14  ;;  %v3505_v14 = vld [vmem:[#allocation3 + $0xe] sm:$0x3] }
0x2036   :  { %v3472_v28 = vmul.f32 %v3469_v60, %v5966_v48 }
0x206b   :  { %v3282_v9 = vpop.permute.xlu1 %3281 }
0x206c   :  { %4125 = vmatmul.msk.f32.vlgmr.msra.gmra.mxu0 %vm61_vm14, %v3282_v9 }
0x207b   :  { %v3475_v50 = vpop.permute.xlu2 %3474 }
0x207c   :  { %v3477_v46 = vmul.f32 %v3475_v50, %v3469_v60 }
0x207e   :  { %3479 = vrot.lane.b32.xlu1 %v3477_v46, %s4455_s27 }
0x2082   :  { %v3325_v24 = vpop.f32.mrf.mxu2 }
0x2086   :  { %3492 = vperm.xlu1 %4161, %v3490_v18  }
0x208e   :  { %3373 = vperm.xlu1 %4161, %v3371_v1  }
0x20e9   :  { %v3302_v31 = vpop.f32.mrf.mxu0 }
0x20ea   :  { %v3326_v49 = vadd.f32 %v3325_v24, %v3302_v31 }
0x20ec   :  { %v3332_v54 = vadd.f32 %v4192_v62, %v3326_v49  ;;  %v3504_v49 = vld [vmem:[#allocation2 + $0xe] sm:$0x3] }
0x20ee   :  { %4426 = vtanh.f32 %v3332_v54  ;;  %v4127_v51 = vmul.f32 -1.442695, %v3332_v54 }
0x20f0   :  { %v3480_v11 = vpop.permute.xlu1 %3479 }
0x20f1   :  { %v5969_v30 = vadd.f32 %v3480_v11, %v3472_v28 }
0x20f3   :  { %4428 = vtanh.f32 %v5969_v30 }
0x20f4   :  { %v4427_v33 = vpop.eup %4426  ;;  %4430 = vpow2.f32 %v4127_v51 }
0x20f5   :  { %3355 = vrot.lane.b32.xlu0 %v4427_v33, %s4453_s26  ;;  %v4193_v33 = vld [vmem:[%s6200_s13] ss:$0 sm:$0xff] }
0x20f8   :  { %v5976_v25 = vpop.permute.xlu1 %3492 }
0x20f9   :  { %v4429_v6 = vpop.eup %4428  ;;  %vm3494_vm4 = vcmp.eq.s32.totalorder %v5976_v25, 1  ;;  %v2662_v25 = vsel %vm2661_vm6, %v5752_v0, 0.0 }
0x20fa   :  { %v4431_v12 = vpop.eup %4430 }
0x20fb   :  { %v3336_v10 = vadd.f32 1.0, %v4431_v12 }
0x20fd   :  { %3485 = vrot.lane.b32.xlu0 %v4429_v6, %s4456_s17  ;;  %4432 = vrcp.f32 %v3336_v10  ;;  %v3348_v41 = vand.u32 2147483648, %v3336_v10  ;;  %vm3342_vm10 = vweird.f32 %v3336_v10  ;;  %v3346_v22 = vand.u32 2147483647, %v3336_v10 }
0x20ff   :  { %v3349_v55 = vor.u32 1.1754944e-38, %v3348_v41  ;;  %vm3347_vm3 = vcmp.eq.f32.partialorder %v3346_v22, 8.507059e+37 }
0x2100   :  { %v6001_v47 = vpop.permute.xlu1 %3373 }
0x2103   :  { %v4433_v4 = vpop.eup %4432 }
0x2104   :  { %v3338_v8 = vmul.f32 %v4433_v4, %v3336_v10  ;;  %vm3343_vm1 = vweird.f32 %v4433_v4 }
0x2105   :  { %vm3344_vm7 = vmor %vm3342_vm10, %vm3343_vm1  ;;  %vm6211_vm1 = vcmp.eq.s32.totalorder %v6001_v47, 1 }
0x2106   :  { %v3339_v2 = vsub.f32 1.0, %v3338_v8 }
0x2108   :  { %v3340_v16 = vmul.f32 %v4433_v4, %v3339_v2 }
0x210a   :  { %v3341_v7 = vadd.f32 %v4433_v4, %v3340_v16 }
0x210c   :  { %v3345_v21 = vsel %vm3344_vm7, %v4433_v4, %v3341_v7 }
0x210d   :  { %v3350_v9 = vsel %vm3347_vm3, %v3349_v55, %v3345_v21 }
0x210e   :  { %v3353_v50 = vmul.f32 %v3350_v9, %v5990_v20 }
0x2167   :  { %v3356_v59 = vpop.permute.xlu0 %3355 }
0x2168   :  { %v3358_v53 = vmul.f32 %v3356_v59, %v3350_v9 }
0x216a   :  { %3360 = vrot.lane.b32.xlu2 %v3358_v53, %s4455_s27 }
0x216f   :  { %v3486_v38 = vpop.permute.xlu0 %3485 }
0x2170   :  { %v5978_v32 = vmul.f32 %v3486_v38, %v3469_v60 }
0x2172   :  { %3624 = vrot.lane.b32.xlu2 %v3622_v39, %s4455_s27  ;;  %v3496_v52 = vsel %vm3494_vm4, %v5978_v32, %v5911_v29 }
0x217a   :  { %3636 = vrot.lane.b32.xlu2 %v3496_v52, %s4457_s20 }
0x21c4   :  { %v3361_v46 = vpop.permute.xlu2 %3360 }
0x21c5   :  { %v5993_v60 = vadd.f32 %v3361_v46, %v3353_v50  ;;  %v3628_v50 = vld [vmem:[%s6197_s1] sm:$0x3] }
0x21c7   :  { %4434 = vtanh.f32 %v5993_v60 }
0x21cc   :  { %v3625_v18 = vpop.permute.xlu2 %3624 }
0x21cd   :  { %v4435_v45 = vpop.eup %4434  ;;  %v3627_v29 = vsel %vm61_vm14, %v3621_v42, %v3625_v18  ;;  %v4194_v42 = vld [vmem:[%s6203_s12] ss:$0 sm:$0xff] }
0x21ce   :  { %4137 = vmatmul.msk.f32.vlgmr.msrb.gmra.mxu3 %vm6210_vm0, %v3627_v29  ;;  %3366 = vrot.lane.b32.xlu0 %v4435_v45, %s4456_s17 }
0x21d4   :  { %v3637_v1 = vpop.permute.xlu2 %3636 }
0x21d5   :  { %4136 = vmatmul.msk.f32.vlgmr.msrb.gmra.mxu1 %vm61_vm14, %v3637_v1 }
0x21d6   :  { %3507 = vrot.lane.b32.xlu0 %v3505_v14, %s4455_s27  ;;  %v3497_v14 = vsel %vm3494_vm4, %v5969_v30, %v5966_v48  ;;  %v2305_v30 = vsel %vm2304_vm2, %v5466_v3, 0.0 }
0x2240   :  { %v3367_v62 = vpop.permute.xlu0 %3366 }
0x2241   :  { %v6003_v24 = vmul.f32 %v3367_v62, %v3350_v9 }
0x2243   :  { %v3377_v31 = vsel %vm6211_vm1, %v6003_v24, %v5939_v56  ;;  %vm3725_vm1 = vcmp.gt.f32.partialorder %v3628_v50, 0.0 }
0x2244   :  { %3519 = vrot.lane.b32.xlu1 %v3377_v31, %s4457_s20  ;;  %v3726_v46 = vsel %vm3725_vm1, 1, %v4454_v34  ;;  %vm6218_vm1 = vcmask 261120  }
0x2248   :  { %v3508_v54 = vpop.permute.xlu0 %3507 }
0x2249   :  { %v3510_v28 = vsel %vm61_vm14, %v3504_v49, %v3508_v54 }
0x224a   :  { %4134 = vmatmul.msk.f32.vlgmr.msrb.gmra.mxu2 %vm6210_vm0, %v3510_v28 }
0x2251   :  { %v3680_v11 = vpop.f32.mrf.mxu3 }
0x2252   :  { %v3657_v6 = vpop.f32.mrf.mxu1 }
0x2253   :  { %v3681_v51 = vadd.f32 %v3680_v11, %v3657_v6  ;;  %v3495_v11 = vsel %vm3494_vm4, %v5978_v32, 0.0  ;;  %v2900_v32 = vsel %vm2899_vm15, %v5852_v13, 0.0 }
0x2255   :  { %v3687_v12 = vadd.f32 %v4193_v33, %v3681_v51  ;;  %v4132_v33 = vld [vmem:[%s6197_s1 + $0xe] sm:$0x3] }
0x2257   :  { %4436 = vtanh.f32 %v3687_v12  ;;  %v4138_v56 = vmul.f32 -1.442695, %v3687_v12 }
0x2259   :  { %4438 = vpow2.f32 %v4138_v56 }
0x225d   :  { %v4437_v10 = vpop.eup %4436 }
0x225e   :  { %3710 = vrot.lane.b32.xlu2 %v4437_v10, %s4453_s26 }
0x225f   :  { %v4439_v4 = vpop.eup %4438 }
0x2260   :  { %v3691_v8 = vadd.f32 1.0, %v4439_v4 }
0x2262   :  { %4440 = vrcp.f32 %v3691_v8  ;;  %v3703_v21 = vand.u32 2147483648, %v3691_v8  ;;  %vm3697_vm7 = vweird.f32 %v3691_v8  ;;  %v3701_v55 = vand.u32 2147483647, %v3691_v8 }
0x2264   :  { %v3704_v53 = vor.u32 1.1754944e-38, %v3703_v21  ;;  %vm3702_vm0 = vcmp.eq.f32.partialorder %v3701_v55, 8.507059e+37  ;;  %v2543_v55 = vsel %vm2542_vm11, %v5557_v23, 0.0  ;;  %vm6214_vm11 = vcmp.eq.s32.totalorder %v6001_v47, 1 }
0x2265   :  { %v3378_v17 = vsel %vm6214_vm11, %v5993_v60, %v5990_v20 }
0x2268   :  { %v4441_v2 = vpop.eup %4440 }
0x2269   :  { %v3693_v16 = vmul.f32 %v4441_v2, %v3691_v8  ;;  %vm3698_vm10 = vweird.f32 %v4441_v2 }
0x226a   :  { %vm3699_vm3 = vmor %vm3697_vm7, %vm3698_vm10 }
0x226b   :  { %v3694_v7 = vsub.f32 1.0, %v3693_v16  ;;  %vm6219_vm7 = vmmov %vm6218_vm1 }
0x226d   :  { %v3695_v41 = vmul.f32 %v4441_v2, %v3694_v7  ;;  %v3019_v7 = vsel %vm3018_vm8, %v5818_v57, 0.0  ;;  %v2189_v57 = vsel %vm2188_vm5, %v5499_v40, 0.0  ;;  %vm6215_vm8 = vcmp.eq.s32.totalorder %v5669_v63, 1  ;;  %v3739_v63 = vld [vmem:[%s6204_s14 + $0x10] sm:$0xff] }
0x226e   :  { %v2781_v60 = vsel %vm6215_vm8, %v5673_v5, 0.0  ;;  %v3738_v5 = vld [vmem:[%s6204_s14 + $0x8] sm:$0xff] }
0x226f   :  { %v3696_v22 = vadd.f32 %v4441_v2, %v3695_v41 }
0x2271   :  { %v3700_v59 = vsel %vm3699_vm3, %v4441_v2, %v3696_v22  ;;  %v3257_v22 = vsel %vm3256_vm9, %v5904_v58, 0.0  ;;  %v3138_v58 = vsel %vm3137_vm12, %v5932_v15, 0.0  ;;  %vm6216_vm9 = vcmp.eq.s32.totalorder %v5589_v44, 1  ;;  %vm6217_vm12 = vmmov %vm6214_vm11 }
0x2272   :  { %v6018_v38 = vsel %vm3702_vm0, %v3704_v53, %v3700_v59  ;;  %vm3608_vm0 = vcmp.gt.f32.partialorder %v4132_v33, 0.0  ;;  %vm6220_vm3 = vmmov %vm6218_vm1 }
0x2273   :  { %v3708_v31 = vmul.f32 %v6018_v38, %v3497_v14  ;;  %v3609_v48 = vsel %vm3608_vm0, 1, %v4454_v34  ;;  %vm6221_vm0 = vmmov %vm6218_vm1 }
0x22b6   :  { %v3520_v9 = vpop.permute.xlu1 %3519 }
0x22b7   :  { %4133 = vmatmul.msk.f32.vlgmr.msrb.gmra.mxu0 %vm61_vm14, %v3520_v9 }
0x22b8   :  { %v3711_v39 = vpop.permute.xlu2 %3710 }
0x22b9   :  { %v3713_v52 = vmul.f32 %v3711_v39, %v6018_v38 }
0x22bb   :  { %3715 = vrot.lane.b32.xlu1 %v3713_v52, %s4455_s27 }
0x22c3   :  { %3728 = vperm.xlu1 %4161, %v3726_v46   ;;  %v2424_v46 = vsel %vm6216_vm9, %v5591_v37, 0.0 }
0x22cd   :  { %v3563_v18 = vpop.f32.mrf.mxu2 }
0x232d   :  { %v3716_v62 = vpop.permute.xlu1 %3715 }
0x232e   :  { %v3718_v49 = vadd.f32 %v3716_v62, %v3708_v31 }
0x2334   :  { %v3540_v45 = vpop.f32.mrf.mxu0 }
0x2335   :  { %v3564_v29 = vadd.f32 %v3563_v18, %v3540_v45  ;;  %v3729_v61 = vpop.permute.xlu1 %3728  ;;  %v3376_v18 = vsel %vm6217_vm12, %v6003_v24, 0.0 }
0x2336   :  { %vm3730_vm5 = vcmp.eq.s32.totalorder %v3729_v61, 1 }
0x2337   :  { %v3570_v1 = vadd.f32 %v4194_v42, %v3564_v29  ;;  %v3740_v42 = vld [vmem:[%s6204_s14 + $0x18] sm:$0xff] }
0x2338   :  { %3863 = vmatpush.msra.mxu3 %v3740_v42  ;;  %3799 = vmatpush.msra.mxu2 %v3740_v42 }
0x2339   :  { %4442 = vtanh.f32 %v3570_v1  ;;  %v4135_v34 = vmul.f32 -1.442695, %v3570_v1  ;;  %3767 = vmatpush.msra.mxu0 %v3740_v42  ;;  %3831 = vmatpush.msra.mxu1 %v3740_v42  ;;  %v3737_v1 = vld [vmem:[%s6204_s14] sm:$0xff] }
0x233a   :  { %4444 = vtanh.f32 %v3718_v49  ;;  %3864 = vmatpush.msra.mxu3 %v3739_v63  ;;  %3800 = vmatpush.msra.mxu2 %v3739_v63 }
0x233b   :  { %4446 = vpow2.f32 %v4135_v34  ;;  %3768 = vmatpush.msra.mxu0 %v3739_v63  ;;  %3832 = vmatpush.msra.mxu1 %v3739_v63 }
0x233c   :  { %3865 = vmatpush.msra.mxu3 %v3738_v5  ;;  %3801 = vmatpush.msra.mxu2 %v3738_v5 }
0x233d   :  { %3769 = vmatpush.msra.mxu0 %v3738_v5  ;;  %3833 = vmatpush.msra.mxu1 %v3738_v5 }
0x233e   :  { %3866 = vmatpush.msra.mxu3 %v3737_v1  ;;  %3802 = vmatpush.msra.mxu2 %v3737_v1 }
0x233f   :  { %v4443_v54 = vpop.eup %4442  ;;  %3770 = vmatpush.msra.mxu0 %v3737_v1  ;;  %3834 = vmatpush.msra.mxu1 %v3737_v1 }
0x2340   :  { %3593 = vrot.lane.b32.xlu0 %v4443_v54, %s4453_s26  ;;  %v4445_v28 = vpop.eup %4444  ;;  %3927 = vmatpush.msrb.mxu2 %v3740_v42 }
0x2341   :  { %v4447_v6 = vpop.eup %4446  ;;  %3991 = vmatpush.msrb.mxu3 %v3740_v42  ;;  %3959 = vmatpush.msrb.mxu1 %v3740_v42 }
0x2342   :  { %v3574_v51 = vadd.f32 1.0, %v4447_v6  ;;  %3928 = vmatpush.msrb.mxu2 %v3739_v63  ;;  %3895 = vmatpush.msrb.mxu0 %v3740_v42 }
0x2343   :  { %3992 = vmatpush.msrb.mxu3 %v3739_v63  ;;  %3960 = vmatpush.msrb.mxu1 %v3739_v63 }
0x2344   :  { %4448 = vrcp.f32 %v3574_v51  ;;  %v3586_v26 = vand.u32 2147483648, %v3574_v51  ;;  %vm3580_vm6 = vweird.f32 %v3574_v51  ;;  %v3584_v0 = vand.u32 2147483647, %v3574_v51  ;;  %3929 = vmatpush.msrb.mxu2 %v3738_v5  ;;  %3896 = vmatpush.msrb.mxu0 %v3739_v63 }
0x2345   :  { %3993 = vmatpush.msrb.mxu3 %v3738_v5  ;;  %3961 = vmatpush.msrb.mxu1 %v3738_v5 }
0x2346   :  { %v3587_v19 = vor.u32 1.1754944e-38, %v3586_v26  ;;  %vm3585_vm15 = vcmp.eq.f32.partialorder %v3584_v0, 8.507059e+37  ;;  %3930 = vmatpush.msrb.mxu2 %v3737_v1  ;;  %3897 = vmatpush.msrb.mxu0 %v3738_v5  ;;  %v4195_v0 = vld [vmem:[%s6205_s15] ss:$0 sm:$0xff] }
0x2347   :  { %3994 = vmatpush.msrb.mxu3 %v3737_v1  ;;  %3962 = vmatpush.msrb.mxu1 %v3737_v1 }
0x2348   :  { %3721 = vrot.lane.b32.xlu0 %v4445_v28, %s4456_s17  ;;  %3898 = vmatpush.msrb.mxu0 %v3737_v1 }
0x234a   :  { %v4449_v35 = vpop.eup %4448 }
0x234b   :  { %v3576_v3 = vmul.f32 %v4449_v35, %v3574_v51  ;;  %vm3581_vm2 = vweird.f32 %v4449_v35 }
0x234c   :  { %vm3582_vm4 = vmor %vm3580_vm6, %vm3581_vm2  ;;  %vm3775_vm2 = vcmask 58368  }
0x234d   :  { %v3577_v12 = vsub.f32 1.0, %v3576_v3  ;;  %vm6222_vm6 = vmmov %vm6221_vm0 }
0x234f   :  { %v3578_v10 = vmul.f32 %v4449_v35, %v3577_v12 }
0x2350   :  { %3499 = vrot.lane.b32.xlu0 %v3495_v11, %s4457_s20 }
0x2351   :  { %v3579_v56 = vadd.f32 %v4449_v35, %v3578_v10  ;;  %v3742_v10 = vld [vmem:[#allocation4] sm:$0x3] }
0x2353   :  { %v3583_v4 = vsel %vm3582_vm4, %v4449_v35, %v3579_v56  ;;  %vm6223_vm4 = vmmov %vm6221_vm0 }
0x2354   :  { %v6056_v8 = vsel %vm3585_vm15, %v3587_v19, %v3583_v4  ;;  %vm6224_vm15 = vmmov %vm6221_vm0 }
0x2355   :  { %v3591_v40 = vmul.f32 %v6056_v8, %v3378_v17 }
0x2358   :  { %3611 = vperm.xlu0 %4162, %v3609_v48  }
0x2360   :  { %2309 = vrot.lane.b32.xlu0 %v2305_v30, %s4457_s20  ;;  %v3970_v30 = vld [vmem:[#allocation5 + $0xe] sm:$0x3] }
0x2368   :  { %2666 = vrot.lane.b32.xlu0 %v2662_v25, %s4457_s20 }
0x2370   :  { %2904 = vrot.lane.b32.xlu0 %v2900_v32, %s4457_s20 }
0x23b2   :  { %v3594_v13 = vpop.permute.xlu0 %3593 }
0x23b3   :  { %v3596_v2 = vmul.f32 %v3594_v13, %v6056_v8 }
0x23b5   :  { %3598 = vrot.lane.b32.xlu2 %v3596_v2, %s4455_s27 }
0x23ba   :  { %v3722_v16 = vpop.permute.xlu0 %3721 }
0x23bb   :  { %v3724_v15 = vmul.f32 %v3722_v16, %v6018_v38 }
0x23bd   :  { %3023 = vrot.lane.b32.xlu2 %v3019_v7, %s4457_s20  ;;  %v3731_v50 = vsel %vm3730_vm5, %v3724_v15, 0.0 }
0x23c2   :  { %v3500_v41 = vpop.permute.xlu0 %3499 }
0x23c3   :  { %3503 = vst.msk [vmem:[#allocation5 + $0x2] sm:$0x3] %vm163_vm13, %v3500_v41 }
0x23c5   :  { %3261 = vrot.lane.b32.xlu2 %v3257_v22, %s4457_s20 }
0x23ca   :  { %v6069_v21 = vpop.permute.xlu0 %3611  ;;  %v3778_v37 = vld [vmem:[#allocation5 + $0x2] sm:$0x3] }
0x23cb   :  { %vm3613_vm10 = vcmp.eq.s32.totalorder %v6069_v21, 1 }
0x23cd   :  { %2547 = vrot.lane.b32.xlu2 %v2543_v55, %s4457_s20 }
0x23d2   :  { %v2310_v36 = vpop.permute.xlu0 %2309 }
0x23d3   :  { %2313 = vst.msk [vmem:[#allocation5 + $0xc] sm:$0x3] %vm163_vm13, %v2310_v36 }
0x23d5   :  { %2193 = vrot.lane.b32.xlu2 %v2189_v57, %s4457_s20 }
0x23da   :  { %v2667_v27 = vpop.permute.xlu0 %2666  ;;  %v3938_v29 = vld [vmem:[#allocation5 + $0xc] sm:$0x3] }
0x23db   :  { %2670 = vst.msk [vmem:[#allocation4 + $0x6] sm:$0x3] %vm163_vm13, %v2667_v27 }
0x23dd   :  { %3142 = vrot.lane.b32.xlu2 %v3138_v58, %s4457_s20 }
0x23e2   :  { %v2905_v43 = vpop.permute.xlu0 %2904  ;;  %v3841_v47 = vld [vmem:[#allocation4 + $0x6] sm:$0x3] }
0x23e3   :  { %2908 = vst.msk [vmem:[#allocation4 + $0x8] sm:$0x3] %vm163_vm13, %v2905_v43 }
0x23ea   :  { %v3873_v57 = vld [vmem:[#allocation4 + $0x8] sm:$0x3] }
0x240f   :  { %v3599_v23 = vpop.permute.xlu2 %3598 }
0x2410   :  { %v3601_v59 = vadd.f32 %v3599_v23, %v3591_v40 }
0x2412   :  { %4450 = vtanh.f32 %v3601_v59 }
0x2417   :  { %v3024_v9 = vpop.permute.xlu2 %3023 }
0x2418   :  { %v4451_v53 = vpop.eup %4450  ;;  %3027 = vst.msk [vmem:[#allocation5 + $0x6] sm:$0x3] %vm163_vm13, %v3024_v9 }
0x2419   :  { %3604 = vrot.lane.b32.xlu1 %v4451_v53, %s4456_s17 }
0x241f   :  { %v3262_v39 = vpop.permute.xlu2 %3261  ;;  %v3842_v52 = vld [vmem:[#allocation5 + $0x6] sm:$0x3] }
0x2420   :  { %3265 = vst.msk [vmem:[#allocation5 + $0x4] sm:$0x3] %vm163_vm13, %v3262_v39  ;;  %3844 = vrot.lane.b32.xlu2 %v3842_v52, %s4455_s27 }
0x2421   :  { %3733 = vrot.lane.b32.xlu1 %v3731_v50, %s4457_s20 }
0x2427   :  { %v2548_v20 = vpop.permute.xlu2 %2547  ;;  %v3810_v28 = vld [vmem:[#allocation5 + $0x4] sm:$0x3] }
0x2428   :  { %2551 = vst.msk [vmem:[#allocation5 + $0xa] sm:$0x3] %vm163_vm13, %v2548_v20 }
0x2429   :  { %2785 = vrot.lane.b32.xlu1 %v2781_v60, %s4457_s20 }
0x242f   :  { %v2194_v38 = vpop.permute.xlu2 %2193  ;;  %v3906_v45 = vld [vmem:[#allocation5 + $0xa] sm:$0x3] }
0x2430   :  { %2197 = vst.msk [vmem:[#allocation4 + $0x2] sm:$0x3] %vm163_vm13, %v2194_v38 }
0x2431   :  { %2428 = vrot.lane.b32.xlu1 %v2424_v46, %s4457_s20 }
0x2437   :  { %v3143_v44 = vpop.permute.xlu2 %3142  ;;  %v3777_v32 = vld [vmem:[#allocation4 + $0x2] sm:$0x3] }
0x2438   :  { %3146 = vst.msk [vmem:[#allocation4 + $0xa] sm:$0x3] %vm163_vm13, %v3143_v44 }
0x2439   :  { %3780 = vrot.lane.b32.xlu1 %v3778_v37, %s4455_s27 }
0x243f   :  { %v3905_v35 = vld [vmem:[#allocation4 + $0xa] sm:$0x3] }
0x2441   :  { %3380 = vrot.lane.b32.xlu1 %v3376_v18, %s4457_s20 }
0x2449   :  { %3908 = vrot.lane.b32.xlu1 %v3906_v45, %s4455_s27 }
0x2451   :  { %3940 = vrot.lane.b32.xlu1 %v3938_v29, %s4455_s27 }
0x247a   :  { %v3845_v24 = vpop.permute.xlu2 %3844 }
0x247b   :  { %v3847_v14 = vsel %vm61_vm14, %v3841_v47, %v3845_v24 }
0x247c   :  { %4144 = vmatmul.msk.f32.vlgmr.msra.gmra.mxu3 %vm6218_vm1, %v3847_v14 }
0x248b   :  { %v3605_v62 = vpop.permute.xlu1 %3604 }
0x248c   :  { %v3607_v31 = vmul.f32 %v3605_v62, %v6056_v8 }
0x248e   :  { %v3614_v49 = vsel %vm3613_vm10, %v3607_v31, 0.0 }
0x248f   :  { %3616 = vrot.lane.b32.xlu0 %v3614_v49, %s4457_s20 }
0x2493   :  { %v3734_v54 = vpop.permute.xlu1 %3733 }
0x2494   :  { %3736 = vst.msk [vmem:[#allocation5] sm:$0x3] %vm163_vm13, %v3734_v54 }
0x2497   :  { %3812 = vrot.lane.b32.xlu0 %v3810_v28, %s4455_s27 }
0x249b   :  { %v2786_v11 = vpop.permute.xlu1 %2785  ;;  %v3743_v33 = vld [vmem:[#allocation5] sm:$0x3] }
0x249c   :  { %2789 = vst.msk [vmem:[#allocation5 + $0x8] sm:$0x3] %vm163_vm13, %v2786_v11  ;;  %3745 = vrot.lane.b32.xlu2 %v3743_v33, %s4455_s27 }
0x24a3   :  { %v2429_v48 = vpop.permute.xlu1 %2428  ;;  %v3874_v25 = vld [vmem:[#allocation5 + $0x8] sm:$0x3] }
0x24a4   :  { %2432 = vst.msk [vmem:[#allocation4 + $0x4] sm:$0x3] %vm163_vm13, %v2429_v48  ;;  %3972 = vrot.lane.b32.xlu2 %v3970_v30, %s4455_s27  ;;  %3876 = vrot.lane.b32.xlu0 %v3874_v25, %s4455_s27 }
0x24ab   :  { %v3781_v34 = vpop.permute.xlu1 %3780  ;;  %v3809_v2 = vld [vmem:[#allocation4 + $0x4] sm:$0x3] }
0x24ac   :  { %v3783_v6 = vsel %vm61_vm14, %v3777_v32, %v3781_v34 }
0x24ad   :  { %4140 = vmatmul.msk.f32.vlgmr.msra.gmra.mxu2 %vm6219_vm7, %v3783_v6 }
0x24b3   :  { %v3381_v51 = vpop.permute.xlu1 %3380 }
0x24b4   :  { %3384 = vst.msk [vmem:[#allocation4 + $0xc] sm:$0x3] %vm163_vm13, %v3381_v51 }
0x24bb   :  { %v3909_v3 = vpop.permute.xlu1 %3908  ;;  %v3937_v55 = vld [vmem:[#allocation4 + $0xc] sm:$0x3] }
0x24bc   :  { %v3911_v12 = vsel %vm61_vm14, %v3905_v35, %v3909_v3 }
0x24bd   :  { %4148 = vmatmul.msk.f32.vlgmr.msrb.gmra.mxu2 %vm6220_vm3, %v3911_v12 }
0x24c3   :  { %v3941_v21 = vpop.permute.xlu1 %3940 }
0x24c4   :  { %v3943_v36 = vsel %vm61_vm14, %v3937_v55, %v3941_v21 }
0x24f6   :  { %v3746_v56 = vpop.permute.xlu2 %3745 }
0x24f7   :  { %v3748_v26 = vsel %vm61_vm14, %v3742_v10, %v3746_v56 }
0x24f8   :  { %4139 = vmatmul.msk.f32.vlgmr.msra.gmra.mxu0 %vm6221_vm0, %v3748_v26 }
0x24fe   :  { %v3973_v16 = vpop.permute.xlu2 %3972 }
0x24ff   :  { %v3868_v4 = vpop.f32.mrf.mxu3 }
0x2500   :  { %v3869_v19 = vadd.f32 %v4195_v0, %v3868_v4 }
0x2501   :  { %v3617_v13 = vpop.permute.xlu0 %3616 }
0x2502   :  { %4145 = vst.msk [vmem:[%s6206_s16 + $0x6] sm:$0x3] %vm3775_vm2, %v3869_v19 }
0x2503   :  { %3620 = vst.msk [vmem:[#allocation4 + $0xe] sm:$0x3] %vm163_vm13, %v3617_v13  ;;  %vm6225_vm13 = vmmov %vm6221_vm0 }
0x2509   :  { %v3813_v8 = vpop.permute.xlu0 %3812 }
0x250a   :  { %v3815_v7 = vsel %vm61_vm14, %v3809_v2, %v3813_v8  ;;  %v3969_v41 = vld [vmem:[#allocation4 + $0xe] sm:$0x3] }
0x250b   :  { %4142 = vmatmul.msk.f32.vlgmr.msra.gmra.mxu1 %vm6222_vm6, %v3815_v7  ;;  %v3975_v22 = vsel %vm61_vm14, %v3969_v41, %v3973_v16 }
0x250c   :  { %4152 = vmatmul.msk.f32.vlgmr.msrb.gmra.mxu3 %vm6223_vm4, %v3975_v22 }
0x2513   :  { %4150 = vmatmul.msk.f32.vlgmr.msrb.gmra.mxu1 %vm6224_vm15, %v3943_v36 }
0x2516   :  { %v3877_v27 = vpop.permute.xlu0 %3876 }
0x2517   :  { %v3879_v58 = vsel %vm61_vm14, %v3873_v57, %v3877_v27 }
0x2518   :  { %4146 = vmatmul.msk.f32.vlgmr.msrb.gmra.mxu0 %vm6225_vm13, %v3879_v58 }
0x2530   :  { %v3804_v43 = vpop.f32.mrf.mxu2 }
0x2531   :  { %v3805_v17 = vadd.f32 %v4195_v0, %v3804_v43 }
0x2533   :  { %4141 = vst.msk [vmem:[%s6206_s16 + $0x2] sm:$0x3] %vm3775_vm2, %v3805_v17 }
0x2540   :  { %v3932_v40 = vpop.f32.mrf.mxu2 }
0x2541   :  { %v3933_v23 = vadd.f32 %v4195_v0, %v3932_v40 }
0x2543   :  { %4149 = vst.msk [vmem:[%s6206_s16 + $0xa] sm:$0x3] %vm3775_vm2, %v3933_v23 }
0x2575   :  { %v3772_v59 = vpop.f32.mrf.mxu0 }
0x2576   :  { %v3773_v9 = vadd.f32 %v4195_v0, %v3772_v59 }
0x2578   :  { %3776 = vst.msk [vmem:[%s6206_s16] sm:$0x3] %vm3775_vm2, %v3773_v9 }
0x2588   :  { %v3836_v53 = vpop.f32.mrf.mxu1 }
0x2589   :  { %v3837_v61 = vadd.f32 %v4195_v0, %v3836_v53 }
0x258b   :  { %4143 = vst.msk [vmem:[%s6206_s16 + $0x4] sm:$0x3] %vm3775_vm2, %v3837_v61 }
0x258f   :  { %v3996_v15 = vpop.f32.mrf.mxu3 }
0x2590   :  { %v3997_v39 = vadd.f32 %v4195_v0, %v3996_v15  ;;  %v3964_v52 = vpop.f32.mrf.mxu1 }
0x2591   :  { %v3965_v50 = vadd.f32 %v4195_v0, %v3964_v52 }
0x2592   :  { %4153 = vst.msk [vmem:[%s6206_s16 + $0xe] sm:$0x3] %vm3775_vm2, %v3997_v39 }
0x2593   :  { %4151 = vst.msk [vmem:[%s6206_s16 + $0xc] sm:$0x3] %vm3775_vm2, %v3965_v50 }
0x2595   :  { %v3900_v20 = vpop.f32.mrf.mxu0 }
0x2596   :  { %v3901_v60 = vadd.f32 %v4195_v0, %v3900_v20 }
0x2598   :  { %4147 = vst.msk [vmem:[%s6206_s16 + $0x8] sm:$0x3] %vm3775_vm2, %v3901_v60 }

</bundles_post_ra>
